<compile_context>
chip_gen: v7x
topology: tpu7x:2x2x1
jax: 0.10.0
libtpu: 0.0.40
codegen_flags: <defaults>
</compile_context>

<pallas_src>
import functools
import math

import jax
import jax.numpy as jnp
from jax.experimental import pallas as pl
from jax.experimental.pallas import tpu as pltpu


# ----------------------------- Pallas kernels -------------------------------

def _conv_pool_kernel(p_ref, w_ref, b_ref, o_ref):
    """im2col matmul + bias, then 2x2/stride-2 max pool.

    Patch rows are pre-ordered as (pool_corner, b, hp, wp), so the pool is an
    elementwise max over the four contiguous quarter row-blocks of the result.
    """
    acc = jnp.dot(p_ref[...], w_ref[...], preferred_element_type=jnp.float32)
    acc = acc + b_ref[...]
    q = acc.shape[0] // 4
    pooled = jnp.maximum(jnp.maximum(acc[0:q], acc[q:2 * q]),
                         jnp.maximum(acc[2 * q:3 * q], acc[3 * q:4 * q]))
    o_ref[...] = pooled.astype(o_ref.dtype)


def _head_kernel(x_ref, w1_ref, b1_ref, y_ref, w2a_ref, w2b_ref, b2_ref, o_ref):
    """Single-tile head: relu(x @ W1 + b1) @ W2a + y @ W2b + b2 -> (B, 2)."""
    h = jnp.dot(x_ref[...], w1_ref[...], preferred_element_type=jnp.float32)
    h = jnp.maximum(h + b1_ref[...], 0.0)
    out = jnp.dot(h, w2a_ref[...], preferred_element_type=jnp.float32)
    out = out + jnp.dot(y_ref[...], w2b_ref[...], preferred_element_type=jnp.float32)
    o_ref[...] = out + b2_ref[...]


def _head_kernel_split(x_ref, w1_ref, b1_ref, w2a_ref, o_ref):
    """One fc1-output tile (2-TC chips): relu(x @ W1_tile + b1_tile) @ W2a_tile.

    fc2 on concat([h, y], 1) is a split matmul; the tiny y @ W2b + b2 term is
    hoisted out of the kernel and added to the summed per-tile partials outside.
    """
    h = jnp.dot(x_ref[...], w1_ref[...], preferred_element_type=jnp.float32)
    h = jnp.maximum(h + b1_ref[...], 0.0)
    o_ref[0] = jnp.dot(h, w2a_ref[...], preferred_element_type=jnp.float32)


# ------------------------------ wrappers -------------------------------------

def conv_pool(patches, w, b, out_dtype=jnp.bfloat16):
    """patches: (4*Q, K) pool-ordered im2col rows, w: (K, C), b: (1, C) -> (Q, C)."""
    m, k = patches.shape
    n = w.shape[1]
    q = m // 4
    cost = pl.CostEstimate(
        flops=2 * m * k * n,
        transcendentals=0,
        bytes_accessed=(m * k * patches.dtype.itemsize
                        + k * n * w.dtype.itemsize + q * n * 2))
    return pl.pallas_call(
        _conv_pool_kernel,
        out_shape=jax.ShapeDtypeStruct((q, n), out_dtype),
        grid=(1,),
        in_specs=[pl.BlockSpec((m, k), lambda i: (0, 0)),
                  pl.BlockSpec((k, n), lambda i: (0, 0)),
                  pl.BlockSpec((1, n), lambda i: (0, 0))],
        out_specs=pl.BlockSpec((q, n), lambda i: (0, 0)),
        cost_estimate=cost,
    )(patches, w, b)


def head(flat, y, w1, b1, w2a, w2b, b2, *, n_split=1):
    """relu(flat @ w1 + b1) then fc2 on concat with y.

    n_split=1: one full-width tile (best on 1-TC chips: v5e / v6e).
    n_split=2: fc1's N split across a "parallel" grid axis so each TensorCore of
    a 2-TC chip (v4 / v7x) streams half of the fc1 weight.
    """
    bsz, kdim = flat.shape
    npad = w1.shape[1]                 # 512 (padded from 500)
    nout = w2a.shape[1]                # 2
    cost = pl.CostEstimate(
        flops=2 * bsz * kdim * npad + 2 * bsz * npad * nout,
        transcendentals=0,
        bytes_accessed=(kdim * npad * w1.dtype.itemsize
                        + bsz * kdim * flat.dtype.itemsize + bsz * nout * 4))

    if n_split == 1:
        return pl.pallas_call(
            _head_kernel,
            out_shape=jax.ShapeDtypeStruct((bsz, nout), jnp.float32),
            grid=(1,),
            in_specs=[pl.BlockSpec((bsz, kdim), lambda i: (0, 0)),
                      pl.BlockSpec((kdim, npad), lambda i: (0, 0)),
                      pl.BlockSpec((1, npad), lambda i: (0, 0)),
                      pl.BlockSpec((bsz, 2), lambda i: (0, 0)),
                      pl.BlockSpec((npad, nout), lambda i: (0, 0)),
                      pl.BlockSpec((2, nout), lambda i: (0, 0)),
                      pl.BlockSpec((1, nout), lambda i: (0, 0))],
            out_specs=pl.BlockSpec((bsz, nout), lambda i: (0, 0)),
            cost_estimate=cost,
        )(flat, w1, b1, y, w2a, w2b, b2)

    tn = npad // n_split               # 256 per TensorCore
    partials = pl.pallas_call(
        _head_kernel_split,
        out_shape=jax.ShapeDtypeStruct((n_split, bsz, nout), jnp.float32),
        grid=(n_split,),
        in_specs=[pl.BlockSpec((bsz, kdim), lambda nb: (0, 0)),
                  pl.BlockSpec((kdim, tn), lambda nb: (0, nb)),
                  pl.BlockSpec((1, tn), lambda nb: (0, nb)),
                  pl.BlockSpec((tn, nout), lambda nb: (nb, 0))],
        out_specs=pl.BlockSpec((1, bsz, nout), lambda nb: (nb, 0, 0)),
        compiler_params=pltpu.CompilerParams(
            dimension_semantics=("parallel",)),
        cost_estimate=cost,
    )(flat, w1, b1, w2a)
    # y-part of fc2 and the bias are hoisted out of the kernel (computed once).
    return partials.sum(axis=0) + jnp.dot(y, w2b) + b2


def _pool_ordered_patches(x, k):
    """x: (B, H, W, C) -> ((4*B*Hp*Wp, k*k*C), (Hp, Wp)) valid-conv im2col.

    Rows are ordered (pool_corner, b, hp, wp); patch columns are (dy, dx, c),
    matching the weight layout built in prepare_params().  Runs in XLA (tiny
    arrays); see TODO(synk) at the top about in-kernel im2col.
    """
    b, h, w, c = x.shape
    ho, wo = h - k + 1, w - k + 1
    hp, wp = ho // 2, wo // 2
    cols = [x[:, dy:dy + ho, dx:dx + wo, :] for dy in range(k) for dx in range(k)]
    p = jnp.stack(cols, axis=3)                       # (B, Ho, Wo, k*k, C)
    p = p.reshape(b, hp, 2, wp, 2, k * k * c)         # split spatial for 2x2 pool
    p = p.transpose(2, 4, 0, 1, 3, 5)                 # (ci, cj, B, Hp, Wp, K)
    return p.reshape(4 * b * hp * wp, k * k * c), (hp, wp)


# ------------------------------ params ----------------------------------------

def init_params(key):
    """Deterministic synthetic init mirroring the PyTorch _initialize_weight()."""
    ks = jax.random.split(key, 4)
    conv1_w = 0.1 * jax.random.normal(ks[0], (20, 1, 5, 5), jnp.float32)    # std 0.1
    conv2_w = 0.01 * jax.random.normal(ks[1], (50, 20, 5, 5), jnp.float32)  # std 0.01
    lim1 = math.sqrt(6.0 / (3600 + 500))                                    # xavier_uniform
    fc1_w = jax.random.uniform(ks[2], (500, 3600), jnp.float32, -lim1, lim1)
    lim2 = math.sqrt(6.0 / (502 + 2))
    fc2_w = jax.random.uniform(ks[3], (2, 502), jnp.float32, -lim2, lim2)
    return dict(
        conv1_w=conv1_w, conv1_b=jnp.zeros((20,), jnp.float32),
        conv2_w=conv2_w, conv2_b=jnp.zeros((50,), jnp.float32),
        fc1_w=fc1_w, fc1_b=jnp.zeros((500,), jnp.float32),
        fc2_w=fc2_w, fc2_b=jnp.zeros((2,), jnp.float32),
    )


def prepare_params(params):
    """One-time (outside jit) weight prep: transposes, layout permutes, bf16, padding."""
    # conv1: (20,1,5,5) -> (25, 20), patch order (dy, dx) since Cin == 1.
    wm1 = params["conv1_w"].reshape(20, 25).T.astype(jnp.bfloat16)
    # conv2: (50,20,5,5) -> (dy,dx,c,co) -> (500, 50), patch order (dy, dx, c).
    wm2 = (params["conv2_w"].transpose(2, 3, 1, 0)
           .reshape(500, 50).astype(jnp.bfloat16))
    # fc1: torch flattens (c, h, w); our conv path yields (h, w, c) features, so
    # permute columns once here, transpose to (K, N), pad N 500 -> 512, cast bf16.
    w1 = (params["fc1_w"].reshape(500, 50, 8, 9)       # (o, c, h, w)
          .transpose(2, 3, 1, 0)                        # (h, w, c, o)
          .reshape(3600, 500))
    # Invariants: padded bias columns are zero AND padded w2a rows are zero, so
    # the 500->512 padding never changes the result (relu(0) * 0 == 0).
    w1 = jnp.pad(w1, ((0, 0), (0, 12))).astype(jnp.bfloat16)        # (3600, 512)
    b1 = jnp.pad(params["fc1_b"], (0, 12)).reshape(1, 512)
    # fc2: split the concat([h, y]) matmul; pad the h-part rows to 512 (zeros).
    w2 = params["fc2_w"].T                                          # (502, 2)
    w2a = jnp.pad(w2[:500], ((0, 12), (0, 0)))                      # (512, 2)
    w2b = w2[500:]                                                  # (2, 2)
    return dict(
        wm1=wm1, b1c=params["conv1_b"].reshape(1, 20),
        wm2=wm2, b2c=params["conv2_b"].reshape(1, 50),
        fc1_wT=w1, fc1_b=b1,
        fc2_wa=w2a, fc2_wb=w2b, fc2_b=params["fc2_b"].reshape(1, 2),
    )


# ------------------------------ model ----------------------------------------

@functools.partial(jax.jit, static_argnames=("n_split",))
def forward(prep, x_nchw, y, *, n_split=1):
    bsz = x_nchw.shape[0]
    # bf16 activations / weights with f32 MXU accumulation (~1e-2 rel. vs f32).
    x1 = x_nchw[:, 0].astype(jnp.bfloat16)[..., None]          # (B, 44, 48, 1)

    # conv1 (1->20, 5x5, valid) + fused 2x2 max pool
    p1, (hp1, wp1) = _pool_ordered_patches(x1, 5)              # (4*B*20*22, 25)
    pooled1 = conv_pool(p1, prep["wm1"], prep["b1c"])          # (B*20*22, 20) bf16

    # conv2 (20->50, 5x5, valid) + fused 2x2 max pool
    a1 = pooled1.reshape(bsz, hp1, wp1, pooled1.shape[-1])     # (B, 20, 22, 20)
    p2, (hp2, wp2) = _pool_ordered_patches(a1, 5)              # (4*B*8*9, 500)
    pooled2 = conv_pool(p2, prep["wm2"], prep["b2c"])          # (B*8*9, 50) bf16

    # features in (h, w, c) order; the matching permutation is baked into fc1_wT
    flat = pooled2.reshape(bsz, hp2 * wp2 * pooled2.shape[-1])  # (B, 3600) bf16

    # fc1 + ReLU, concat y, fc2 (fused head kernel)
    return head(flat, y, prep["fc1_wT"], prep["fc1_b"],
                prep["fc2_wa"], prep["fc2_wb"], prep["fc2_b"], n_split=n_split)


def _fc1_n_split():
    """2-way fc1 split only on 2-TensorCore chips (v4 megacore / v7x)."""
    try:
        kind = jax.devices()[0].device_kind.lower()
    except Exception:
        return 1
    return 2 if ("v7" in kind or "7x" in kind or "v4" in kind) else 1


if __name__ == "__main__":
    key = jax.random.PRNGKey(0)
    kp, kx, ky = jax.random.split(key, 3)
    params = init_params(kp)
    prep = prepare_params(params)   # one-time weight preprocessing (outside jit)
    # Input spatial size 44x48: conv/pool stack -> (50, 8, 9) = 3600 features,
    # matching fc1's in_features=3600; y has 2 features (502 - 500).
    x = jax.random.normal(kx, (2, 1, 44, 48), jnp.float32)
    y = jax.random.normal(ky, (2, 2), jnp.float32)
    out = forward(prep, x, y, n_split=_fc1_n_split())
    jax.block_until_ready(out)
    assert out.shape == (2, 2) and out.dtype == jnp.float32
    print("KERNEL_OK")
</pallas_src>

<mosaic_0001>
module attributes {stable_mosaic.version = 11 : i64} {
  func.func @_conv_pool_kernel(%arg0: i32, %arg1: memref<3520x25xbf16, #tpu.memory_space<vmem>>, %arg2: memref<25x20xbf16, #tpu.memory_space<vmem>>, %arg3: memref<1x20xf32, #tpu.memory_space<vmem>>, %arg4: memref<880x20xbf16, #tpu.memory_space<vmem>>) attributes {dimension_semantics = [#tpu.dimension_semantics<arbitrary>], iteration_bounds = array<i64: 1>, scalar_prefetch = 0 : i64, scratch_operands = 0 : i64, tpu.core_type = #tpu.core_type<tc>, window_params = [{pipeline_mode = #tpu.pipeline_mode<synchronous>, transform_indices = @transform_0, window_bounds = array<i64: 3520, 25>}, {pipeline_mode = #tpu.pipeline_mode<synchronous>, transform_indices = @transform_1, window_bounds = array<i64: 25, 20>}, {pipeline_mode = #tpu.pipeline_mode<synchronous>, transform_indices = @transform_2, window_bounds = array<i64: 1, 20>}, {pipeline_mode = #tpu.pipeline_mode<synchronous>, transform_indices = @transform_3, window_bounds = array<i64: 880, 20>}]} {
    %c0 = arith.constant 0 : index
    %c0_0 = arith.constant 0 : index
    %0 = vector.load %arg1[%c0, %c0_0] : memref<3520x25xbf16, #tpu.memory_space<vmem>>, vector<3520x25xbf16>
    %c0_1 = arith.constant 0 : index
    %c0_2 = arith.constant 0 : index
    %1 = vector.load %arg2[%c0_1, %c0_2] : memref<25x20xbf16, #tpu.memory_space<vmem>>, vector<25x20xbf16>
    %cst = arith.constant dense<0.000000e+00> : vector<3520x20xf32>
    %2 = tpu.matmul %0, %1, %cst {dimension_numbers = #tpu.dot_dimension_numbers<[1], [0], [0], [1], [0, 0, 1, 1], [], []>} : vector<3520x25xbf16>, vector<25x20xbf16>, vector<3520x20xf32> -> vector<3520x20xf32>
    %c0_3 = arith.constant 0 : index
    %c0_4 = arith.constant 0 : index
    %3 = vector.load %arg3[%c0_3, %c0_4] : memref<1x20xf32, #tpu.memory_space<vmem>>, vector<1x20xf32>
    %4 = vector.broadcast %3 : vector<1x20xf32> to vector<3520x20xf32>
    %5 = arith.addf %2, %4 : vector<3520x20xf32>
    %6 = vector.extract_strided_slice %5 {offsets = [0, 0], sizes = [880, 20], strides = [1, 1]} : vector<3520x20xf32> to vector<880x20xf32>
    %7 = vector.extract_strided_slice %5 {offsets = [880, 0], sizes = [880, 20], strides = [1, 1]} : vector<3520x20xf32> to vector<880x20xf32>
    %8 = arith.maximumf %6, %7 : vector<880x20xf32>
    %9 = vector.extract_strided_slice %5 {offsets = [1760, 0], sizes = [880, 20], strides = [1, 1]} : vector<3520x20xf32> to vector<880x20xf32>
    %10 = vector.extract_strided_slice %5 {offsets = [2640, 0], sizes = [880, 20], strides = [1, 1]} : vector<3520x20xf32> to vector<880x20xf32>
    %11 = arith.maximumf %9, %10 : vector<880x20xf32>
    %12 = arith.maximumf %8, %11 : vector<880x20xf32>
    %13 = arith.truncf %12 : vector<880x20xf32> to vector<880x20xbf16>
    %c0_5 = arith.constant 0 : index
    %c0_6 = arith.constant 0 : index
    %14 = vector.load %arg4[%c0_5, %c0_6] : memref<880x20xbf16, #tpu.memory_space<vmem>>, vector<880x20xbf16>
    tpu.vector_store %arg4[%c0_5, %c0_6], %13 {strides = array<i32>} : memref<880x20xbf16, #tpu.memory_space<vmem>>, vector<880x20xbf16>,
    return
  }
  func.func @transform_0(%arg0: i32) -> (i32, i32) {
    %c0_i32 = arith.constant 0 : i32
    %c0_i32_0 = arith.constant 0 : i32
    %c0_i32_1 = arith.constant 0 : i32
    return %c0_i32, %c0_i32_0 : i32, i32
  }
  func.func @transform_1(%arg0: i32) -> (i32, i32) {
    %c0_i32 = arith.constant 0 : i32
    %c0_i32_0 = arith.constant 0 : i32
    %c0_i32_1 = arith.constant 0 : i32
    return %c0_i32, %c0_i32_0 : i32, i32
  }
  func.func @transform_2(%arg0: i32) -> (i32, i32) {
    %c0_i32 = arith.constant 0 : i32
    %c0_i32_0 = arith.constant 0 : i32
    %c0_i32_1 = arith.constant 0 : i32
    return %c0_i32, %c0_i32_0 : i32, i32
  }
  func.func @transform_3(%arg0: i32) -> (i32, i32) {
    %c0_i32 = arith.constant 0 : i32
    %c0_i32_0 = arith.constant 0 : i32
    %c0_i32_1 = arith.constant 0 : i32
    return %c0_i32, %c0_i32_0 : i32, i32
  }
}

module attributes {stable_mosaic.version = 11 : i64} {
  func.func @_conv_pool_kernel(%arg0: i32, %arg1: memref<576x500xbf16, #tpu.memory_space<vmem>>, %arg2: memref<500x50xbf16, #tpu.memory_space<vmem>>, %arg3: memref<1x50xf32, #tpu.memory_space<vmem>>, %arg4: memref<144x50xbf16, #tpu.memory_space<vmem>>) attributes {dimension_semantics = [#tpu.dimension_semantics<arbitrary>], iteration_bounds = array<i64: 1>, scalar_prefetch = 0 : i64, scratch_operands = 0 : i64, tpu.core_type = #tpu.core_type<tc>, window_params = [{pipeline_mode = #tpu.pipeline_mode<synchronous>, transform_indices = @transform_0, window_bounds = array<i64: 576, 500>}, {pipeline_mode = #tpu.pipeline_mode<synchronous>, transform_indices = @transform_1, window_bounds = array<i64: 500, 50>}, {pipeline_mode = #tpu.pipeline_mode<synchronous>, transform_indices = @transform_2, window_bounds = array<i64: 1, 50>}, {pipeline_mode = #tpu.pipeline_mode<synchronous>, transform_indices = @transform_3, window_bounds = array<i64: 144, 50>}]} {
    %c0 = arith.constant 0 : index
    %c0_0 = arith.constant 0 : index
    %0 = vector.load %arg1[%c0, %c0_0] : memref<576x500xbf16, #tpu.memory_space<vmem>>, vector<576x500xbf16>
    %c0_1 = arith.constant 0 : index
    %c0_2 = arith.constant 0 : index
    %1 = vector.load %arg2[%c0_1, %c0_2] : memref<500x50xbf16, #tpu.memory_space<vmem>>, vector<500x50xbf16>
    %cst = arith.constant dense<0.000000e+00> : vector<576x50xf32>
    %2 = tpu.matmul %0, %1, %cst {dimension_numbers = #tpu.dot_dimension_numbers<[1], [0], [0], [1], [0, 0, 1, 1], [], []>} : vector<576x500xbf16>, vector<500x50xbf16>, vector<576x50xf32> -> vector<576x50xf32>
    %c0_3 = arith.constant 0 : index
    %c0_4 = arith.constant 0 : index
    %3 = vector.load %arg3[%c0_3, %c0_4] : memref<1x50xf32, #tpu.memory_space<vmem>>, vector<1x50xf32>
    %4 = vector.broadcast %3 : vector<1x50xf32> to vector<576x50xf32>
    %5 = arith.addf %2, %4 : vector<576x50xf32>
    %6 = vector.extract_strided_slice %5 {offsets = [0, 0], sizes = [144, 50], strides = [1, 1]} : vector<576x50xf32> to vector<144x50xf32>
    %7 = vector.extract_strided_slice %5 {offsets = [144, 0], sizes = [144, 50], strides = [1, 1]} : vector<576x50xf32> to vector<144x50xf32>
    %8 = arith.maximumf %6, %7 : vector<144x50xf32>
    %9 = vector.extract_strided_slice %5 {offsets = [288, 0], sizes = [144, 50], strides = [1, 1]} : vector<576x50xf32> to vector<144x50xf32>
    %10 = vector.extract_strided_slice %5 {offsets = [432, 0], sizes = [144, 50], strides = [1, 1]} : vector<576x50xf32> to vector<144x50xf32>
    %11 = arith.maximumf %9, %10 : vector<144x50xf32>
    %12 = arith.maximumf %8, %11 : vector<144x50xf32>
    %13 = arith.truncf %12 : vector<144x50xf32> to vector<144x50xbf16>
    %c0_5 = arith.constant 0 : index
    %c0_6 = arith.constant 0 : index
    %14 = vector.load %arg4[%c0_5, %c0_6] : memref<144x50xbf16, #tpu.memory_space<vmem>>, vector<144x50xbf16>
    tpu.vector_store %arg4[%c0_5, %c0_6], %13 {strides = array<i32>} : memref<144x50xbf16, #tpu.memory_space<vmem>>, vector<144x50xbf16>,
    return
  }
  func.func @transform_0(%arg0: i32) -> (i32, i32) {
    %c0_i32 = arith.constant 0 : i32
    %c0_i32_0 = arith.constant 0 : i32
    %c0_i32_1 = arith.constant 0 : i32
    return %c0_i32, %c0_i32_0 : i32, i32
  }
  func.func @transform_1(%arg0: i32) -> (i32, i32) {
    %c0_i32 = arith.constant 0 : i32
    %c0_i32_0 = arith.constant 0 : i32
    %c0_i32_1 = arith.constant 0 : i32
    return %c0_i32, %c0_i32_0 : i32, i32
  }
  func.func @transform_2(%arg0: i32) -> (i32, i32) {
    %c0_i32 = arith.constant 0 : i32
    %c0_i32_0 = arith.constant 0 : i32
    %c0_i32_1 = arith.constant 0 : i32
    return %c0_i32, %c0_i32_0 : i32, i32
  }
  func.func @transform_3(%arg0: i32) -> (i32, i32) {
    %c0_i32 = arith.constant 0 : i32
    %c0_i32_0 = arith.constant 0 : i32
    %c0_i32_1 = arith.constant 0 : i32
    return %c0_i32, %c0_i32_0 : i32, i32
  }
}

module attributes {stable_mosaic.version = 11 : i64} {
  func.func @_head_kernel(%arg0: i32, %arg1: memref<2x3600xbf16, #tpu.memory_space<vmem>>, %arg2: memref<3600x512xbf16, #tpu.memory_space<vmem>>, %arg3: memref<1x512xf32, #tpu.memory_space<vmem>>, %arg4: memref<2x2xf32, #tpu.memory_space<vmem>>, %arg5: memref<512x2xf32, #tpu.memory_space<vmem>>, %arg6: memref<2x2xf32, #tpu.memory_space<vmem>>, %arg7: memref<1x2xf32, #tpu.memory_space<vmem>>, %arg8: memref<2x2xf32, #tpu.memory_space<vmem>>) attributes {dimension_semantics = [#tpu.dimension_semantics<arbitrary>], iteration_bounds = array<i64: 1>, scalar_prefetch = 0 : i64, scratch_operands = 0 : i64, tpu.core_type = #tpu.core_type<tc>, window_params = [{pipeline_mode = #tpu.pipeline_mode<synchronous>, transform_indices = @transform_0, window_bounds = array<i64: 2, 3600>}, {pipeline_mode = #tpu.pipeline_mode<synchronous>, transform_indices = @transform_1, window_bounds = array<i64: 3600, 512>}, {pipeline_mode = #tpu.pipeline_mode<synchronous>, transform_indices = @transform_2, window_bounds = array<i64: 1, 512>}, {pipeline_mode = #tpu.pipeline_mode<synchronous>, transform_indices = @transform_3, window_bounds = array<i64: 2, 2>}, {pipeline_mode = #tpu.pipeline_mode<synchronous>, transform_indices = @transform_4, window_bounds = array<i64: 512, 2>}, {pipeline_mode = #tpu.pipeline_mode<synchronous>, transform_indices = @transform_5, window_bounds = array<i64: 2, 2>}, {pipeline_mode = #tpu.pipeline_mode<synchronous>, transform_indices = @transform_6, window_bounds = array<i64: 1, 2>}, {pipeline_mode = #tpu.pipeline_mode<synchronous>, transform_indices = @transform_7, window_bounds = array<i64: 2, 2>}]} {
    %c0 = arith.constant 0 : index
    %c0_0 = arith.constant 0 : index
    %0 = vector.load %arg1[%c0, %c0_0] : memref<2x3600xbf16, #tpu.memory_space<vmem>>, vector<2x3600xbf16>
    %c0_1 = arith.constant 0 : index
    %c0_2 = arith.constant 0 : index
    %1 = vector.load %arg2[%c0_1, %c0_2] : memref<3600x512xbf16, #tpu.memory_space<vmem>>, vector<3600x512xbf16>
    %cst = arith.constant dense<0.000000e+00> : vector<2x512xf32>
    %2 = tpu.matmul %0, %1, %cst {dimension_numbers = #tpu.dot_dimension_numbers<[1], [0], [0], [1], [0, 0, 1, 1], [], []>} : vector<2x3600xbf16>, vector<3600x512xbf16>, vector<2x512xf32> -> vector<2x512xf32>
    %c0_3 = arith.constant 0 : index
    %c0_4 = arith.constant 0 : index
    %3 = vector.load %arg3[%c0_3, %c0_4] : memref<1x512xf32, #tpu.memory_space<vmem>>, vector<1x512xf32>
    %4 = vector.broadcast %3 : vector<1x512xf32> to vector<2x512xf32>
    %5 = arith.addf %2, %4 : vector<2x512xf32>
    %cst_5 = arith.constant 0.000000e+00 : f32
    %6 = vector.broadcast %cst_5 : f32 to vector<2x512xf32>
    %7 = arith.maximumf %5, %6 : vector<2x512xf32>
    %c0_6 = arith.constant 0 : index
    %c0_7 = arith.constant 0 : index
    %8 = vector.load %arg5[%c0_6, %c0_7] : memref<512x2xf32, #tpu.memory_space<vmem>>, vector<512x2xf32>
    %cst_8 = arith.constant dense<0.000000e+00> : vector<2x2xf32>
    %9 = tpu.matmul %7, %8, %cst_8 {dimension_numbers = #tpu.dot_dimension_numbers<[1], [0], [0], [1], [0, 0, 1, 1], [], []>} : vector<2x512xf32>, vector<512x2xf32>, vector<2x2xf32> -> vector<2x2xf32>
    %c0_9 = arith.constant 0 : index
    %c0_10 = arith.constant 0 : index
    %10 = vector.load %arg4[%c0_9, %c0_10] : memref<2x2xf32, #tpu.memory_space<vmem>>, vector<2x2xf32>
    %c0_11 = arith.constant 0 : index
    %c0_12 = arith.constant 0 : index
    %11 = vector.load %arg6[%c0_11, %c0_12] : memref<2x2xf32, #tpu.memory_space<vmem>>, vector<2x2xf32>
    %cst_13 = arith.constant dense<0.000000e+00> : vector<2x2xf32>
    %12 = tpu.matmul %10, %11, %cst_13 {dimension_numbers = #tpu.dot_dimension_numbers<[1], [0], [0], [1], [0, 0, 1, 1], [], []>} : vector<2x2xf32>, vector<2x2xf32>, vector<2x2xf32> -> vector<2x2xf32>
    %13 = arith.addf %9, %12 : vector<2x2xf32>
    %c0_14 = arith.constant 0 : index
    %c0_15 = arith.constant 0 : index
    %14 = vector.load %arg7[%c0_14, %c0_15] : memref<1x2xf32, #tpu.memory_space<vmem>>, vector<1x2xf32>
    %15 = vector.broadcast %14 : vector<1x2xf32> to vector<2x2xf32>
    %16 = arith.addf %13, %15 : vector<2x2xf32>
    %c0_16 = arith.constant 0 : index
    %c0_17 = arith.constant 0 : index
    %17 = vector.load %arg8[%c0_16, %c0_17] : memref<2x2xf32, #tpu.memory_space<vmem>>, vector<2x2xf32>
    tpu.vector_store %arg8[%c0_16, %c0_17], %16 {strides = array<i32>} : memref<2x2xf32, #tpu.memory_space<vmem>>, vector<2x2xf32>,
    return
  }
  func.func @transform_0(%arg0: i32) -> (i32, i32) {
    %c0_i32 = arith.constant 0 : i32
    %c0_i32_0 = arith.constant 0 : i32
    %c0_i32_1 = arith.constant 0 : i32
    return %c0_i32, %c0_i32_0 : i32, i32
  }
  func.func @transform_1(%arg0: i32) -> (i32, i32) {
    %c0_i32 = arith.constant 0 : i32
    %c0_i32_0 = arith.constant 0 : i32
    %c0_i32_1 = arith.constant 0 : i32
    return %c0_i32, %c0_i32_0 : i32, i32
  }
  func.func @transform_2(%arg0: i32) -> (i32, i32) {
    %c0_i32 = arith.constant 0 : i32
    %c0_i32_0 = arith.constant 0 : i32
    %c0_i32_1 = arith.constant 0 : i32
    return %c0_i32, %c0_i32_0 : i32, i32
  }
  func.func @transform_3(%arg0: i32) -> (i32, i32) {
    %c0_i32 = arith.constant 0 : i32
    %c0_i32_0 = arith.constant 0 : i32
    %c0_i32_1 = arith.constant 0 : i32
    return %c0_i32, %c0_i32_0 : i32, i32
  }
  func.func @transform_4(%arg0: i32) -> (i32, i32) {
    %c0_i32 = arith.constant 0 : i32
    %c0_i32_0 = arith.constant 0 : i32
    %c0_i32_1 = arith.constant 0 : i32
    return %c0_i32, %c0_i32_0 : i32, i32
  }
  func.func @transform_5(%arg0: i32) -> (i32, i32) {
    %c0_i32 = arith.constant 0 : i32
    %c0_i32_0 = arith.constant 0 : i32
    %c0_i32_1 = arith.constant 0 : i32
    return %c0_i32, %c0_i32_0 : i32, i32
  }
  func.func @transform_6(%arg0: i32) -> (i32, i32) {
    %c0_i32 = arith.constant 0 : i32
    %c0_i32_0 = arith.constant 0 : i32
    %c0_i32_1 = arith.constant 0 : i32
    return %c0_i32, %c0_i32_0 : i32, i32
  }
  func.func @transform_7(%arg0: i32) -> (i32, i32) {
    %c0_i32 = arith.constant 0 : i32
    %c0_i32_0 = arith.constant 0 : i32
    %c0_i32_1 = arith.constant 0 : i32
    return %c0_i32, %c0_i32_0 : i32, i32
  }
}

</mosaic_0001>

<bundles_post_ra>
// kernel: forward.3
= control target key start
LH: loop header
LB: loop body
LE: loop exit
PB: predicated region body
PF: predicated region fallthrough
CT: control target
= control target key end

     0   :  { %vm2238_vm0 = vcmask 1043456   ;;  %vm2239_vm1 = vcmask 1044480   ;;  %vm1577_vm2 = vcmask 203776   ;;  %v6481_v1 = vmov 65535   ;;  %s8943_s1 = inlined_call_operand.vmem [shape: bf16[25,20], index: 1, kind: input, shape index: {}]   ;;  %s8944_s0 = inlined_call_operand.vmem [shape: bf16[3520,25], index: 0, kind: input, shape index: {}]   ;;  %s8945_s2 = inlined_call_operand.vmem [shape: f32[1,20], index: 2, kind: input, shape index: {}]   ;;  %s8946_s3 = inlined_call_operand.vmem [shape: bf16[880,20], index: 3, kind: output, shape index: {}]  }
   0x1   :  { %v6257_v0 = vld [vmem:[%s8943_s1] sm:$0xff]   ;;  %v2240_v2 = vsel %vm2238_vm0, 4294967295, %v6481_v1  ;;  %v6258_v3 = vld [vmem:[%s8943_s1 + $0x8] sm:$0x1f]   ;;  %v6260_v7 = vld [vmem:[%s8944_s0 + $0x370] sm:$0xff]   ;;  %vm4808_vm3 = vcmask 158720  }
   0x2   :  { %5808 = vmatprep.subr.bf16.mxu0 %v6257_v0  ;;  %6252 = vmatprep.subr.bf16.mxu1 %v6257_v0  ;;  %v2241_v4 = vsel %vm2239_vm1, %v2240_v2, 0  ;;  %v6259_v5 = vld [vmem:[%s8944_s0] sm:$0xff]   ;;  %v6261_v8 = vld [vmem:[%s8944_s0 + $0x8] sm:$0xff]   ;;  %v6262_v9 = vld [vmem:[%s8944_s0 + $0x378] sm:$0xff]  }
   0x3   :  { %5809 = vmatpush3.bf16.msra.mxu0 %v6257_v0  ;;  %6254 = vmatpush3.bf16.msra.mxu1 %v6257_v0  ;;  %v2243_v6 = vand.u32 %v6258_v3, %v2241_v4  ;;  %v6263_v10 = vld [vmem:[%s8944_s0 + $0x10] sm:$0xff]   ;;  %v6264_v11 = vld [vmem:[%s8944_s0 + $0x380] sm:$0xff]   ;;  %v6265_v12 = vld [vmem:[%s8944_s0 + $0x18] sm:$0xff]  }
   0x4   :  { %5812 = vmatprep.mubr.msk.bf16.mxu0 %vm1577_vm2, %v6259_v5  ;;  %6032 = vmatprep.mubr.msk.bf16.mxu1 %vm1577_vm2, %v6260_v7  ;;  %v6266_v13 = vld [vmem:[%s8944_s0 + $0x388] sm:$0xff]   ;;  %v6267_v14 = vld [vmem:[%s8944_s0 + $0x20] sm:$0xff]   ;;  %v6268_v15 = vld [vmem:[%s8944_s0 + $0x390] sm:$0xff]  }
   0x5   :  { %5810 = vmatprep.subr.bf16.mxu0 %v2243_v6  ;;  %6253 = vmatprep.subr.bf16.mxu1 %v2243_v6  ;;  %v6269_v16 = vld [vmem:[%s8944_s0 + $0x28] sm:$0xff]   ;;  %v6270_v17 = vld [vmem:[%s8944_s0 + $0x398] sm:$0xff]   ;;  %v6271_v18 = vld [vmem:[%s8944_s0 + $0x30] sm:$0xff]  }
   0x6   :  { %v6272_v19 = vld [vmem:[%s8944_s0 + $0x3a0] sm:$0xff]   ;;  %v6273_v20 = vld [vmem:[%s8944_s0 + $0x38] sm:$0xff]   ;;  %v6274_v21 = vld [vmem:[%s8944_s0 + $0x3a8] sm:$0xff]  }
   0x7   :  { %5811 = vmatpush3.bf16.msra.mxu0 %v2243_v6  ;;  %6255 = vmatpush3.bf16.msra.mxu1 %v2243_v6  ;;  %v6275_v22 = vld [vmem:[%s8944_s0 + $0x40] sm:$0xff]   ;;  %v6276_v23 = vld [vmem:[%s8944_s0 + $0x3b0] sm:$0xff]   ;;  %v6277_v24 = vld [vmem:[%s8944_s0 + $0x48] sm:$0xff]  }
   0x8   :  { %v6278_v25 = vld [vmem:[%s8944_s0 + $0x3b8] sm:$0xff]   ;;  %v6279_v26 = vld [vmem:[%s8944_s0 + $0x50] sm:$0xff]   ;;  %v6280_v27 = vld [vmem:[%s8944_s0 + $0x3c0] sm:$0xff]  }
   0x9   :  { %v6281_v28 = vld [vmem:[%s8944_s0 + $0x58] sm:$0xff]   ;;  %v6282_v29 = vld [vmem:[%s8944_s0 + $0x3c8] sm:$0xff]   ;;  %v6283_v30 = vld [vmem:[%s8944_s0 + $0x60] sm:$0xff]  }
   0xa   :  { %5813 = vmatmul.mubr.msk.bf16.vlgmr.msra.gmra.mrb[0].mxu0 %vm1577_vm2, %v6261_v8  ;;  %6033 = vmatmul.mubr.msk.bf16.vlgmr.msra.gmra.mrb[0].mxu1 %vm1577_vm2, %v6262_v9  ;;  %v6284_v31 = vld [vmem:[%s8944_s0 + $0x3d0] sm:$0xff]   ;;  %v6285_v32 = vld [vmem:[%s8944_s0 + $0x68] sm:$0xff]   ;;  %v6286_v33 = vld [vmem:[%s8944_s0 + $0x3d8] sm:$0xff]  }
   0xb   :  { %5816 = vmatprep.mubr.msk.bf16.mxu0 %vm1577_vm2, %v6263_v10  ;;  %6036 = vmatprep.mubr.msk.bf16.mxu1 %vm1577_vm2, %v6264_v11  ;;  %v6287_v34 = vld [vmem:[%s8944_s0 + $0x70] sm:$0xff]   ;;  %v6288_v35 = vld [vmem:[%s8944_s0 + $0x3e0] sm:$0xff]   ;;  %v6289_v36 = vld [vmem:[%s8944_s0 + $0x78] sm:$0xff]  }
   0xc   :  { %v6290_v37 = vld [vmem:[%s8944_s0 + $0x3e8] sm:$0xff]   ;;  %v6291_v38 = vld [vmem:[%s8944_s0 + $0x80] sm:$0xff]   ;;  %v6292_v39 = vld [vmem:[%s8944_s0 + $0x3f0] sm:$0xff]  }
   0xd   :  { %v6293_v40 = vld [vmem:[%s8944_s0 + $0x88] sm:$0xff]   ;;  %v6294_v41 = vld [vmem:[%s8944_s0 + $0x3f8] sm:$0xff]   ;;  %v6295_v42 = vld [vmem:[%s8944_s0 + $0x90] sm:$0xff]  }
   0xe   :  { %v6296_v43 = vld [vmem:[%s8944_s0 + $0x400] sm:$0xff]   ;;  %v6297_v44 = vld [vmem:[%s8944_s0 + $0x98] sm:$0xff]   ;;  %v6298_v45 = vld [vmem:[%s8944_s0 + $0x408] sm:$0xff]  }
   0xf   :  { %v6299_v46 = vld [vmem:[%s8944_s0 + $0xa0] sm:$0xff]   ;;  %v6300_v47 = vld [vmem:[%s8944_s0 + $0x410] sm:$0xff]   ;;  %v6301_v48 = vld [vmem:[%s8944_s0 + $0xa8] sm:$0xff]  }
  0x10   :  { %v6302_v49 = vld [vmem:[%s8944_s0 + $0x418] sm:$0xff]   ;;  %v6303_v50 = vld [vmem:[%s8944_s0 + $0xb0] sm:$0xff]   ;;  %v6304_v51 = vld [vmem:[%s8944_s0 + $0x420] sm:$0xff]  }
  0x11   :  { %v6305_v52 = vld [vmem:[%s8944_s0 + $0xb8] sm:$0xff]   ;;  %v6306_v53 = vld [vmem:[%s8944_s0 + $0x428] sm:$0xff]   ;;  %v6307_v54 = vld [vmem:[%s8944_s0 + $0xc0] sm:$0xff]  }
  0x12   :  { %5817 = vmatmul.mubr.msk.bf16.gmra.mrb[4].mxu0 %vm1577_vm2, %v6265_v12  ;;  %6037 = vmatmul.mubr.msk.bf16.gmra.mrb[4].mxu1 %vm1577_vm2, %v6266_v13  ;;  %v6308_v55 = vld [vmem:[%s8944_s0 + $0x430] sm:$0xff]   ;;  %v6309_v56 = vld [vmem:[%s8944_s0 + $0xc8] sm:$0xff]   ;;  %v6310_v57 = vld [vmem:[%s8944_s0 + $0x438] sm:$0xff]  }
  0x13   :  { %5820 = vmatprep.mubr.msk.bf16.mxu0 %vm1577_vm2, %v6267_v14  ;;  %6040 = vmatprep.mubr.msk.bf16.mxu1 %vm1577_vm2, %v6268_v15  ;;  %v6311_v58 = vld [vmem:[%s8944_s0 + $0xd0] sm:$0xff]   ;;  %v6312_v59 = vld [vmem:[%s8944_s0 + $0x440] sm:$0xff]   ;;  %v6313_v60 = vld [vmem:[%s8944_s0 + $0xd8] sm:$0xff]  }
  0x14   :  { %v6314_v61 = vld [vmem:[%s8944_s0 + $0x448] sm:$0xff]   ;;  %v6315_v62 = vld [vmem:[%s8944_s0 + $0xe0] sm:$0xff]   ;;  %v6316_v63 = vld [vmem:[%s8944_s0 + $0x450] sm:$0xff]  }
  0x15   :  { %v6317_v0 = vld [vmem:[%s8944_s0 + $0xe8] sm:$0xff]   ;;  %v6318_v1 = vld [vmem:[%s8944_s0 + $0x458] sm:$0xff]   ;;  %v6319_v2 = vld [vmem:[%s8944_s0 + $0xf0] sm:$0xff]  }
  0x16   :  { %v6320_v3 = vld [vmem:[%s8944_s0 + $0x460] sm:$0xff]   ;;  %v6321_v4 = vld [vmem:[%s8944_s0 + $0xf8] sm:$0xff]   ;;  %v6322_v5 = vld [vmem:[%s8944_s0 + $0x468] sm:$0xff]  }
  0x17   :  { %v6323_v6 = vld [vmem:[%s8944_s0 + $0x100] sm:$0xff]   ;;  %v6324_v7 = vld [vmem:[%s8944_s0 + $0x470] sm:$0xff]   ;;  %v6325_v8 = vld [vmem:[%s8944_s0 + $0x108] sm:$0xff]  }
  0x18   :  { %v6326_v9 = vld [vmem:[%s8944_s0 + $0x478] sm:$0xff]   ;;  %v6327_v10 = vld [vmem:[%s8944_s0 + $0x110] sm:$0xff]   ;;  %v6328_v11 = vld [vmem:[%s8944_s0 + $0x480] sm:$0xff]  }
  0x19   :  { %v6329_v12 = vld [vmem:[%s8944_s0 + $0x118] sm:$0xff]   ;;  %v6330_v13 = vld [vmem:[%s8944_s0 + $0x488] sm:$0xff]   ;;  %v6331_v14 = vld [vmem:[%s8944_s0 + $0x120] sm:$0xff]  }
  0x1a   :  { %5821 = vmatmul.mubr.msk.bf16.gmra.mrb[8].mxu0 %vm1577_vm2, %v6269_v16  ;;  %6041 = vmatmul.mubr.msk.bf16.gmra.mrb[8].mxu1 %vm1577_vm2, %v6270_v17  ;;  %v6332_v15 = vld [vmem:[%s8944_s0 + $0x490] sm:$0xff]   ;;  %v6333_v16 = vld [vmem:[%s8944_s0 + $0x128] sm:$0xff]   ;;  %v6334_v17 = vld [vmem:[%s8944_s0 + $0x498] sm:$0xff]  }
  0x1b   :  { %5824 = vmatprep.mubr.msk.bf16.mxu0 %vm1577_vm2, %v6271_v18  ;;  %6044 = vmatprep.mubr.msk.bf16.mxu1 %vm1577_vm2, %v6272_v19  ;;  %v6335_v18 = vld [vmem:[%s8944_s0 + $0x130] sm:$0xff]   ;;  %v6336_v19 = vld [vmem:[%s8944_s0 + $0x4a0] sm:$0xff]  }
  0x22   :  { %5825 = vmatmul.mubr.msk.bf16.gmra.mrb[12].mxu0 %vm1577_vm2, %v6273_v20  ;;  %6045 = vmatmul.mubr.msk.bf16.gmra.mrb[12].mxu1 %vm1577_vm2, %v6274_v21  ;;  %v6337_v20 = vld [vmem:[%s8944_s0 + $0x138] sm:$0xff]   ;;  %v6338_v21 = vld [vmem:[%s8944_s0 + $0x4a8] sm:$0xff]  }
  0x23   :  { %5828 = vmatprep.mubr.msk.bf16.mxu0 %vm1577_vm2, %v6275_v22  ;;  %6048 = vmatprep.mubr.msk.bf16.mxu1 %vm1577_vm2, %v6276_v23  ;;  %v6339_v22 = vld [vmem:[%s8944_s0 + $0x140] sm:$0xff]   ;;  %v6340_v23 = vld [vmem:[%s8944_s0 + $0x4b0] sm:$0xff]  }
  0x2a   :  { %5829 = vmatmul.mubr.msk.bf16.gmra.mrb[16].mxu0 %vm1577_vm2, %v6277_v24  ;;  %6049 = vmatmul.mubr.msk.bf16.gmra.mrb[16].mxu1 %vm1577_vm2, %v6278_v25  ;;  %v6341_v24 = vld [vmem:[%s8944_s0 + $0x148] sm:$0xff]   ;;  %v6342_v25 = vld [vmem:[%s8944_s0 + $0x4b8] sm:$0xff]  }
  0x2b   :  { %5832 = vmatprep.mubr.msk.bf16.mxu0 %vm1577_vm2, %v6279_v26  ;;  %6052 = vmatprep.mubr.msk.bf16.mxu1 %vm1577_vm2, %v6280_v27  ;;  %v6343_v26 = vld [vmem:[%s8944_s0 + $0x150] sm:$0xff]   ;;  %v6344_v27 = vld [vmem:[%s8944_s0 + $0x4c0] sm:$0xff]  }
  0x32   :  { %5833 = vmatmul.mubr.msk.bf16.gmra.mrb[20].mxu0 %vm1577_vm2, %v6281_v28  ;;  %6053 = vmatmul.mubr.msk.bf16.gmra.mrb[20].mxu1 %vm1577_vm2, %v6282_v29  ;;  %v6345_v28 = vld [vmem:[%s8944_s0 + $0x158] sm:$0xff]   ;;  %v6346_v29 = vld [vmem:[%s8944_s0 + $0x4c8] sm:$0xff]  }
  0x33   :  { %5836 = vmatprep.mubr.msk.bf16.mxu0 %vm1577_vm2, %v6283_v30  ;;  %6056 = vmatprep.mubr.msk.bf16.mxu1 %vm1577_vm2, %v6284_v31  ;;  %v6347_v30 = vld [vmem:[%s8944_s0 + $0x160] sm:$0xff]   ;;  %v6348_v31 = vld [vmem:[%s8944_s0 + $0x4d0] sm:$0xff]  }
  0x3a   :  { %5837 = vmatmul.mubr.msk.bf16.gmra.mrb[24].mxu0 %vm1577_vm2, %v6285_v32  ;;  %6057 = vmatmul.mubr.msk.bf16.gmra.mrb[24].mxu1 %vm1577_vm2, %v6286_v33  ;;  %v6349_v32 = vld [vmem:[%s8944_s0 + $0x168] sm:$0xff]   ;;  %v6350_v33 = vld [vmem:[%s8944_s0 + $0x4d8] sm:$0xff]  }
  0x3b   :  { %5840 = vmatprep.mubr.msk.bf16.mxu0 %vm1577_vm2, %v6287_v34  ;;  %6060 = vmatprep.mubr.msk.bf16.mxu1 %vm1577_vm2, %v6288_v35  ;;  %v6351_v34 = vld [vmem:[%s8944_s0 + $0x170] sm:$0xff]   ;;  %v6352_v35 = vld [vmem:[%s8944_s0 + $0x4e0] sm:$0xff]  }
  0x42   :  { %5841 = vmatmul.mubr.msk.bf16.gmra.mrb[28].mxu0 %vm1577_vm2, %v6289_v36  ;;  %6061 = vmatmul.mubr.msk.bf16.gmra.mrb[28].mxu1 %vm1577_vm2, %v6290_v37  ;;  %v6353_v36 = vld [vmem:[%s8944_s0 + $0x178] sm:$0xff]   ;;  %v6354_v37 = vld [vmem:[%s8944_s0 + $0x4e8] sm:$0xff]  }
  0x43   :  { %5844 = vmatprep.mubr.msk.bf16.mxu0 %vm1577_vm2, %v6291_v38  ;;  %6064 = vmatprep.mubr.msk.bf16.mxu1 %vm1577_vm2, %v6292_v39  ;;  %v6355_v38 = vld [vmem:[%s8944_s0 + $0x180] sm:$0xff]   ;;  %v6356_v39 = vld [vmem:[%s8944_s0 + $0x4f0] sm:$0xff]  }
  0x4a   :  { %5845 = vmatmul.mubr.msk.bf16.gmra.mrb[32].mxu0 %vm1577_vm2, %v6293_v40  ;;  %6065 = vmatmul.mubr.msk.bf16.gmra.mrb[32].mxu1 %vm1577_vm2, %v6294_v41  ;;  %v6357_v40 = vld [vmem:[%s8944_s0 + $0x188] sm:$0xff]   ;;  %v6358_v41 = vld [vmem:[%s8944_s0 + $0x4f8] sm:$0xff]  }
  0x4b   :  { %5848 = vmatprep.mubr.msk.bf16.mxu0 %vm1577_vm2, %v6295_v42  ;;  %6068 = vmatprep.mubr.msk.bf16.mxu1 %vm1577_vm2, %v6296_v43  ;;  %v6359_v42 = vld [vmem:[%s8944_s0 + $0x190] sm:$0xff]   ;;  %v6360_v43 = vld [vmem:[%s8944_s0 + $0x500] sm:$0xff]  }
  0x52   :  { %5849 = vmatmul.mubr.msk.bf16.gmra.mrb[36].mxu0 %vm1577_vm2, %v6297_v44  ;;  %6069 = vmatmul.mubr.msk.bf16.gmra.mrb[36].mxu1 %vm1577_vm2, %v6298_v45  ;;  %v6361_v44 = vld [vmem:[%s8944_s0 + $0x198] sm:$0xff]   ;;  %v6362_v45 = vld [vmem:[%s8944_s0 + $0x508] sm:$0xff]  }
  0x53   :  { %5852 = vmatprep.mubr.msk.bf16.mxu0 %vm1577_vm2, %v6299_v46  ;;  %6072 = vmatprep.mubr.msk.bf16.mxu1 %vm1577_vm2, %v6300_v47  ;;  %v6363_v46 = vld [vmem:[%s8944_s0 + $0x1a0] sm:$0xff]   ;;  %v6364_v47 = vld [vmem:[%s8944_s0 + $0x510] sm:$0xff]  }
  0x5a   :  { %5853 = vmatmul.mubr.msk.bf16.gmra.mrb[40].mxu0 %vm1577_vm2, %v6301_v48  ;;  %6073 = vmatmul.mubr.msk.bf16.gmra.mrb[40].mxu1 %vm1577_vm2, %v6302_v49  ;;  %v6365_v48 = vld [vmem:[%s8944_s0 + $0x1a8] sm:$0xff]   ;;  %v6366_v49 = vld [vmem:[%s8944_s0 + $0x518] sm:$0xff]  }
  0x5b   :  { %5856 = vmatprep.mubr.msk.bf16.mxu0 %vm1577_vm2, %v6303_v50  ;;  %6076 = vmatprep.mubr.msk.bf16.mxu1 %vm1577_vm2, %v6304_v51  ;;  %v6367_v50 = vld [vmem:[%s8944_s0 + $0x1b0] sm:$0xff]   ;;  %v6368_v51 = vld [vmem:[%s8944_s0 + $0x520] sm:$0xff]  }
  0x62   :  { %5857 = vmatmul.mubr.msk.bf16.gmra.mrb[44].mxu0 %vm1577_vm2, %v6305_v52  ;;  %6077 = vmatmul.mubr.msk.bf16.gmra.mrb[44].mxu1 %vm1577_vm2, %v6306_v53 }
  0x63   :  { %5860 = vmatprep.mubr.msk.bf16.mxu0 %vm1577_vm2, %v6307_v54  ;;  %6080 = vmatprep.mubr.msk.bf16.mxu1 %vm1577_vm2, %v6308_v55 }
  0x6a   :  { %5861 = vmatmul.mubr.msk.bf16.gmra.mrb[48].mxu0 %vm1577_vm2, %v6309_v56  ;;  %6081 = vmatmul.mubr.msk.bf16.gmra.mrb[48].mxu1 %vm1577_vm2, %v6310_v57  ;;  %v6369_v56 = vld [vmem:[%s8944_s0 + $0x1b8] sm:$0xff]   ;;  %v6370_v57 = vld [vmem:[%s8944_s0 + $0x528] sm:$0xff]  }
  0x6b   :  { %5864 = vmatprep.mubr.msk.bf16.mxu0 %vm1577_vm2, %v6311_v58  ;;  %6084 = vmatprep.mubr.msk.bf16.mxu1 %vm1577_vm2, %v6312_v59 }
  0x72   :  { %5865 = vmatmul.mubr.msk.bf16.gmra.mrb[52].mxu0 %vm1577_vm2, %v6313_v60  ;;  %6085 = vmatmul.mubr.msk.bf16.gmra.mrb[52].mxu1 %vm1577_vm2, %v6314_v61  ;;  %v6371_v60 = vld [vmem:[%s8944_s0 + $0x1c0] sm:$0xff]   ;;  %v6372_v61 = vld [vmem:[%s8944_s0 + $0x530] sm:$0xff]  }
  0x73   :  { %5868 = vmatprep.mubr.msk.bf16.mxu0 %vm1577_vm2, %v6315_v62  ;;  %6088 = vmatprep.mubr.msk.bf16.mxu1 %vm1577_vm2, %v6316_v63 }
  0x7a   :  { %5869 = vmatmul.mubr.msk.bf16.gmra.mrb[56].mxu0 %vm1577_vm2, %v6317_v0  ;;  %6089 = vmatmul.mubr.msk.bf16.gmra.mrb[56].mxu1 %vm1577_vm2, %v6318_v1 }
  0x7b   :  { %5872 = vmatprep.mubr.msk.bf16.mxu0 %vm1577_vm2, %v6319_v2  ;;  %6092 = vmatprep.mubr.msk.bf16.mxu1 %vm1577_vm2, %v6320_v3 }
  0x82   :  { %5873 = vmatmul.mubr.msk.bf16.gmra.mrb[60].mxu0 %vm1577_vm2, %v6321_v4  ;;  %6093 = vmatmul.mubr.msk.bf16.gmra.mrb[60].mxu1 %vm1577_vm2, %v6322_v5  ;;  %v6373_v4 = vld [vmem:[%s8944_s0 + $0x1c8] sm:$0xff]   ;;  %v6374_v5 = vld [vmem:[%s8944_s0 + $0x538] sm:$0xff]  }
  0x83   :  { %5876 = vmatprep.mubr.msk.bf16.mxu0 %vm1577_vm2, %v6323_v6  ;;  %6096 = vmatprep.mubr.msk.bf16.mxu1 %vm1577_vm2, %v6324_v7 }
  0x8a   :  { %5877 = vmatmul.mubr.msk.bf16.gmra.mrb[64].mxu0 %vm1577_vm2, %v6325_v8  ;;  %6097 = vmatmul.mubr.msk.bf16.gmra.mrb[64].mxu1 %vm1577_vm2, %v6326_v9  ;;  %v6375_v8 = vld [vmem:[%s8944_s0 + $0x1d0] sm:$0xff]   ;;  %v6376_v9 = vld [vmem:[%s8944_s0 + $0x540] sm:$0xff]  }
  0x8b   :  { %5880 = vmatprep.mubr.msk.bf16.mxu0 %vm1577_vm2, %v6327_v10  ;;  %6100 = vmatprep.mubr.msk.bf16.mxu1 %vm1577_vm2, %v6328_v11 }
  0x92   :  { %5881 = vmatmul.mubr.msk.bf16.gmra.mrb[68].mxu0 %vm1577_vm2, %v6329_v12  ;;  %6101 = vmatmul.mubr.msk.bf16.gmra.mrb[68].mxu1 %vm1577_vm2, %v6330_v13 }
  0x93   :  { %5884 = vmatprep.mubr.msk.bf16.mxu0 %vm1577_vm2, %v6331_v14  ;;  %6104 = vmatprep.mubr.msk.bf16.mxu1 %vm1577_vm2, %v6332_v15 }
  0x9a   :  { %5885 = vmatmul.mubr.msk.bf16.gmra.mrb[72].mxu0 %vm1577_vm2, %v6333_v16  ;;  %6105 = vmatmul.mubr.msk.bf16.gmra.mrb[72].mxu1 %vm1577_vm2, %v6334_v17  ;;  %v6377_v16 = vld [vmem:[%s8944_s0 + $0x1d8] sm:$0xff]   ;;  %v6378_v17 = vld [vmem:[%s8944_s0 + $0x548] sm:$0xff]  }
  0x9b   :  { %5888 = vmatprep.mubr.msk.bf16.mxu0 %vm1577_vm2, %v6335_v18  ;;  %6108 = vmatprep.mubr.msk.bf16.mxu1 %vm1577_vm2, %v6336_v19 }
  0xa2   :  { %5889 = vmatmul.mubr.msk.bf16.gmra.mrb[76].mxu0 %vm1577_vm2, %v6337_v20  ;;  %6109 = vmatmul.mubr.msk.bf16.gmra.mrb[76].mxu1 %vm1577_vm2, %v6338_v21  ;;  %v6379_v20 = vld [vmem:[%s8944_s0 + $0x1e0] sm:$0xff]   ;;  %v6380_v21 = vld [vmem:[%s8944_s0 + $0x550] sm:$0xff]  }
  0xa3   :  { %5892 = vmatprep.mubr.msk.bf16.mxu0 %vm1577_vm2, %v6339_v22  ;;  %6112 = vmatprep.mubr.msk.bf16.mxu1 %vm1577_vm2, %v6340_v23 }
  0xaa   :  { %5893 = vmatmul.mubr.msk.bf16.gmra.mrb[80].mxu0 %vm1577_vm2, %v6341_v24  ;;  %6113 = vmatmul.mubr.msk.bf16.gmra.mrb[80].mxu1 %vm1577_vm2, %v6342_v25 }
  0xab   :  { %5896 = vmatprep.mubr.msk.bf16.mxu0 %vm1577_vm2, %v6343_v26  ;;  %6116 = vmatprep.mubr.msk.bf16.mxu1 %vm1577_vm2, %v6344_v27 }
  0xb2   :  { %5897 = vmatmul.mubr.msk.bf16.gmra.mrb[84].mxu0 %vm1577_vm2, %v6345_v28  ;;  %6117 = vmatmul.mubr.msk.bf16.gmra.mrb[84].mxu1 %vm1577_vm2, %v6346_v29  ;;  %v6381_v28 = vld [vmem:[%s8944_s0 + $0x1e8] sm:$0xff]   ;;  %v6382_v29 = vld [vmem:[%s8944_s0 + $0x558] sm:$0xff]  }
  0xb3   :  { %5900 = vmatprep.mubr.msk.bf16.mxu0 %vm1577_vm2, %v6347_v30  ;;  %6120 = vmatprep.mubr.msk.bf16.mxu1 %vm1577_vm2, %v6348_v31 }
  0xba   :  { %5901 = vmatmul.mubr.msk.bf16.gmra.mrb[88].mxu0 %vm1577_vm2, %v6349_v32  ;;  %6121 = vmatmul.mubr.msk.bf16.gmra.mrb[88].mxu1 %vm1577_vm2, %v6350_v33  ;;  %v6383_v32 = vld [vmem:[%s8944_s0 + $0x1f0] sm:$0xff]   ;;  %v6384_v33 = vld [vmem:[%s8944_s0 + $0x560] sm:$0xff]  }
  0xbb   :  { %5904 = vmatprep.mubr.msk.bf16.mxu0 %vm1577_vm2, %v6351_v34  ;;  %6124 = vmatprep.mubr.msk.bf16.mxu1 %vm1577_vm2, %v6352_v35 }
  0xc2   :  { %5905 = vmatmul.mubr.msk.bf16.gmra.mrb[92].mxu0 %vm1577_vm2, %v6353_v36  ;;  %6125 = vmatmul.mubr.msk.bf16.gmra.mrb[92].mxu1 %vm1577_vm2, %v6354_v37 }
  0xc3   :  { %5908 = vmatprep.mubr.msk.bf16.mxu0 %vm1577_vm2, %v6355_v38  ;;  %6128 = vmatprep.mubr.msk.bf16.mxu1 %vm1577_vm2, %v6356_v39 }
  0xca   :  { %5909 = vmatmul.mubr.msk.bf16.gmra.mrb[96].mxu0 %vm1577_vm2, %v6357_v40  ;;  %6129 = vmatmul.mubr.msk.bf16.gmra.mrb[96].mxu1 %vm1577_vm2, %v6358_v41  ;;  %v6385_v40 = vld [vmem:[%s8944_s0 + $0x1f8] sm:$0xff]   ;;  %v6386_v41 = vld [vmem:[%s8944_s0 + $0x568] sm:$0xff]  }
  0xcb   :  { %5912 = vmatprep.mubr.msk.bf16.mxu0 %vm1577_vm2, %v6359_v42  ;;  %6132 = vmatprep.mubr.msk.bf16.mxu1 %vm1577_vm2, %v6360_v43 }
  0xd2   :  { %5913 = vmatmul.mubr.msk.bf16.gmra.mrb[100].mxu0 %vm1577_vm2, %v6361_v44  ;;  %6133 = vmatmul.mubr.msk.bf16.gmra.mrb[100].mxu1 %vm1577_vm2, %v6362_v45  ;;  %v6387_v44 = vld [vmem:[%s8944_s0 + $0x200] sm:$0xff]   ;;  %v6388_v45 = vld [vmem:[%s8944_s0 + $0x570] sm:$0xff]  }
  0xd3   :  { %5916 = vmatprep.mubr.msk.bf16.mxu0 %vm1577_vm2, %v6363_v46  ;;  %6136 = vmatprep.mubr.msk.bf16.mxu1 %vm1577_vm2, %v6364_v47 }
  0xda   :  { %5917 = vmatmul.mubr.msk.bf16.gmra.mrb[104].mxu0 %vm1577_vm2, %v6365_v48  ;;  %6137 = vmatmul.mubr.msk.bf16.gmra.mrb[104].mxu1 %vm1577_vm2, %v6366_v49 }
  0xdb   :  { %5920 = vmatprep.mubr.msk.bf16.mxu0 %vm1577_vm2, %v6367_v50  ;;  %6140 = vmatprep.mubr.msk.bf16.mxu1 %vm1577_vm2, %v6368_v51 }
  0xdd   :  { %v6948_v52 = vpop.f32.mrb[0].mxu0  ;;  %v6950_v53 = vpop.f32.mrb[0].mxu1 }
  0xde   :  { %v6952_v54 = vpop.f32.mrb[1].mxu0  ;;  %v6954_v55 = vpop.f32.mrb[1].mxu1 }
  0xdf   :  { %v6962_v58 = vpop.f32.mrb[2].mxu0  ;;  %v6964_v59 = vpop.f32.mrb[2].mxu1 }
  0xe0   :  { %v6972_v62 = vpop.f32.mrb[3].mxu0  ;;  %v6974_v63 = vpop.f32.mrb[3].mxu1 }
  0xe2   :  { %5921 = vmatmul.mubr.msk.bf16.gmra.mrb[108].mxu0 %vm1577_vm2, %v6369_v56  ;;  %6141 = vmatmul.mubr.msk.bf16.gmra.mrb[108].mxu1 %vm1577_vm2, %v6370_v57  ;;  %v6389_v56 = vld [vmem:[%s8944_s0 + $0x208] sm:$0xff]   ;;  %v6390_v57 = vld [vmem:[%s8944_s0 + $0x578] sm:$0xff]  }
  0xe3   :  { %5924 = vmatprep.mubr.msk.bf16.mxu0 %vm1577_vm2, %v6371_v60  ;;  %6144 = vmatprep.mubr.msk.bf16.mxu1 %vm1577_vm2, %v6372_v61 }
  0xe5   :  { %v6980_v0 = vpop.f32.mrb[4].mxu0  ;;  %v6982_v1 = vpop.f32.mrb[4].mxu1 }
  0xe6   :  { %v6984_v2 = vpop.f32.mrb[5].mxu0  ;;  %v6986_v3 = vpop.f32.mrb[5].mxu1 }
  0xe7   :  { %v6994_v6 = vpop.f32.mrb[6].mxu0  ;;  %v6996_v7 = vpop.f32.mrb[6].mxu1 }
  0xe8   :  { %v7004_v10 = vpop.f32.mrb[7].mxu0  ;;  %v7006_v11 = vpop.f32.mrb[7].mxu1 }
  0xea   :  { %5925 = vmatmul.mubr.msk.bf16.gmra.mrb[112].mxu0 %vm1577_vm2, %v6373_v4  ;;  %6145 = vmatmul.mubr.msk.bf16.gmra.mrb[112].mxu1 %vm1577_vm2, %v6374_v5  ;;  %v6391_v4 = vld [vmem:[%s8944_s0 + $0x210] sm:$0xff]   ;;  %v6392_v5 = vld [vmem:[%s8944_s0 + $0x580] sm:$0xff]  }
  0xeb   :  { %5928 = vmatprep.mubr.msk.bf16.mxu0 %vm1577_vm2, %v6375_v8  ;;  %6148 = vmatprep.mubr.msk.bf16.mxu1 %vm1577_vm2, %v6376_v9 }
  0xed   :  { %v7012_v12 = vpop.f32.mrb[8].mxu0  ;;  %v7014_v13 = vpop.f32.mrb[8].mxu1 }
  0xee   :  { %v7016_v14 = vpop.f32.mrb[9].mxu0  ;;  %v7018_v15 = vpop.f32.mrb[9].mxu1 }
  0xef   :  { %v7026_v18 = vpop.f32.mrb[10].mxu0  ;;  %v7028_v19 = vpop.f32.mrb[10].mxu1 }
  0xf0   :  { %v7036_v22 = vpop.f32.mrb[11].mxu0  ;;  %v7038_v23 = vpop.f32.mrb[11].mxu1 }
  0xf2   :  { %5929 = vmatmul.mubr.msk.bf16.gmra.mrb[116].mxu0 %vm1577_vm2, %v6377_v16  ;;  %6149 = vmatmul.mubr.msk.bf16.gmra.mrb[116].mxu1 %vm1577_vm2, %v6378_v17 }
  0xf3   :  { %5932 = vmatprep.mubr.msk.bf16.mxu0 %vm1577_vm2, %v6379_v20  ;;  %6152 = vmatprep.mubr.msk.bf16.mxu1 %vm1577_vm2, %v6380_v21 }
  0xf5   :  { %v7044_v24 = vpop.f32.mrb[12].mxu0  ;;  %v7046_v25 = vpop.f32.mrb[12].mxu1 }
  0xf6   :  { %v7048_v26 = vpop.f32.mrb[13].mxu0  ;;  %v7050_v27 = vpop.f32.mrb[13].mxu1 }
  0xf7   :  { %v7058_v30 = vpop.f32.mrb[14].mxu0  ;;  %v7060_v31 = vpop.f32.mrb[14].mxu1 }
  0xf8   :  { %v7068_v34 = vpop.f32.mrb[15].mxu0  ;;  %v7070_v35 = vpop.f32.mrb[15].mxu1 }
  0xfa   :  { %5933 = vmatmul.mubr.msk.bf16.gmra.mrb[120].mxu0 %vm1577_vm2, %v6381_v28  ;;  %6153 = vmatmul.mubr.msk.bf16.gmra.mrb[120].mxu1 %vm1577_vm2, %v6382_v29  ;;  %v6393_v28 = vld [vmem:[%s8944_s0 + $0x218] sm:$0xff]   ;;  %v6394_v29 = vld [vmem:[%s8944_s0 + $0x588] sm:$0xff]  }
  0xfb   :  { %5936 = vmatprep.mubr.msk.bf16.mxu0 %vm1577_vm2, %v6383_v32  ;;  %6156 = vmatprep.mubr.msk.bf16.mxu1 %vm1577_vm2, %v6384_v33 }
  0xfd   :  { %v7076_v36 = vpop.f32.mrb[16].mxu0  ;;  %v7078_v37 = vpop.f32.mrb[16].mxu1 }
  0xfe   :  { %v7080_v38 = vpop.f32.mrb[17].mxu0  ;;  %v7082_v39 = vpop.f32.mrb[17].mxu1 }
  0xff   :  { %v7090_v42 = vpop.f32.mrb[18].mxu0  ;;  %v7092_v43 = vpop.f32.mrb[18].mxu1 }
 0x100   :  { %v7100_v46 = vpop.f32.mrb[19].mxu0  ;;  %v7102_v47 = vpop.f32.mrb[19].mxu1 }
 0x102   :  { %5937 = vmatmul.mubr.msk.bf16.gmra.mrb[124].mxu0 %vm1577_vm2, %v6385_v40  ;;  %6157 = vmatmul.mubr.msk.bf16.gmra.mrb[124].mxu1 %vm1577_vm2, %v6386_v41  ;;  %v6395_v40 = vld [vmem:[%s8944_s0 + $0x220] sm:$0xff]   ;;  %v6396_v41 = vld [vmem:[%s8944_s0 + $0x590] sm:$0xff]  }
 0x103   :  { %5940 = vmatprep.mubr.msk.bf16.mxu0 %vm1577_vm2, %v6387_v44  ;;  %6160 = vmatprep.mubr.msk.bf16.mxu1 %vm1577_vm2, %v6388_v45 }
 0x105   :  { %v7108_v48 = vpop.f32.mrb[20].mxu0  ;;  %v7110_v49 = vpop.f32.mrb[20].mxu1 }
 0x106   :  { %v7112_v50 = vpop.f32.mrb[21].mxu0  ;;  %v7114_v51 = vpop.f32.mrb[21].mxu1 }
 0x107   :  { %v7122_v60 = vpop.f32.mrb[22].mxu0  ;;  %v7124_v61 = vpop.f32.mrb[22].mxu1 }
 0x108   :  { %8947 = vst [vmem:[#allocation2_spill] sm:$0xff] %v7122_v60  ;;  %8948 = vst [vmem:[#allocation3_spill] sm:$0xff] %v7124_v61  ;;  %v7132_v8 = vpop.f32.mrb[23].mxu0  ;;  %v7134_v9 = vpop.f32.mrb[23].mxu1 }
 0x10a   :  { %5941 = vmatmul.mubr.msk.bf16.gmra.mrb[128].mxu0 %vm1577_vm2, %v6389_v56  ;;  %6161 = vmatmul.mubr.msk.bf16.gmra.mrb[128].mxu1 %vm1577_vm2, %v6390_v57 }
 0x10b   :  { %5944 = vmatprep.mubr.msk.bf16.mxu0 %vm1577_vm2, %v6391_v4  ;;  %6164 = vmatprep.mubr.msk.bf16.mxu1 %vm1577_vm2, %v6392_v5 }
 0x10d   :  { %v7140_v16 = vpop.f32.mrb[24].mxu0  ;;  %v7142_v17 = vpop.f32.mrb[24].mxu1 }
 0x10e   :  { %8949 = vst [vmem:[#allocation4_spill] sm:$0xff] %v7140_v16  ;;  %8950 = vst [vmem:[#allocation5_spill] sm:$0xff] %v7142_v17  ;;  %v7144_v20 = vpop.f32.mrb[25].mxu0  ;;  %v7146_v21 = vpop.f32.mrb[25].mxu1 }
 0x10f   :  { %8951 = vst [vmem:[#allocation6_spill] sm:$0xff] %v7144_v20  ;;  %8952 = vst [vmem:[#allocation7_spill] sm:$0xff] %v7146_v21  ;;  %v7154_v32 = vpop.f32.mrb[26].mxu0  ;;  %v7156_v33 = vpop.f32.mrb[26].mxu1 }
 0x110   :  { %8953 = vst [vmem:[#allocation8_spill] sm:$0xff] %v7154_v32  ;;  %8954 = vst [vmem:[#allocation9_spill] sm:$0xff] %v7156_v33  ;;  %v7164_v44 = vpop.f32.mrb[27].mxu0  ;;  %v7166_v45 = vpop.f32.mrb[27].mxu1  ;;  %v6397_v33 = vld [vmem:[%s8944_s0 + $0x228] sm:$0xff]  }
 0x111   :  { %8955 = vst [vmem:[#allocation10_spill] sm:$0xff] %v7164_v44  ;;  %8956 = vst [vmem:[#allocation11_spill] sm:$0xff] %v7166_v45 }
 0x112   :  { %5945 = vmatmul.mubr.msk.bf16.gmra.mrb[132].mxu0 %vm1577_vm2, %v6393_v28  ;;  %6165 = vmatmul.mubr.msk.bf16.gmra.mrb[132].mxu1 %vm1577_vm2, %v6394_v29  ;;  %v6398_v28 = vld [vmem:[%s8944_s0 + $0x598] sm:$0xff]  }
 0x113   :  { %5948 = vmatprep.mubr.msk.bf16.mxu0 %vm1577_vm2, %v6395_v40  ;;  %6168 = vmatprep.mubr.msk.bf16.mxu1 %vm1577_vm2, %v6396_v41  ;;  %v6399_v41 = vld [vmem:[%s8944_s0 + $0x230] sm:$0xff]  }
 0x115   :  { %v7172_v56 = vpop.f32.mrb[28].mxu0  ;;  %v7174_v57 = vpop.f32.mrb[28].mxu1 }
 0x116   :  { %8957 = vst [vmem:[#allocation12_spill] sm:$0xff] %v7172_v56  ;;  %8958 = vst [vmem:[#allocation13_spill] sm:$0xff] %v7174_v57  ;;  %v7176_v4 = vpop.f32.mrb[29].mxu0  ;;  %v7178_v5 = vpop.f32.mrb[29].mxu1  ;;  %v6400_v57 = vld [vmem:[%s8944_s0 + $0x5a0] sm:$0xff]  }
 0x117   :  { %8959 = vst [vmem:[#allocation14_spill] sm:$0xff] %v7176_v4  ;;  %8960 = vst [vmem:[#allocation15_spill] sm:$0xff] %v7178_v5  ;;  %v7186_v29 = vpop.f32.mrb[30].mxu0  ;;  %v7188_v40 = vpop.f32.mrb[30].mxu1 }
 0x118   :  { %8961 = vst [vmem:[#allocation16_spill] sm:$0xff] %v7186_v29  ;;  %8962 = vst [vmem:[#allocation17_spill] sm:$0xff] %v7188_v40  ;;  %v7196_v56 = vpop.f32.mrb[31].mxu0  ;;  %v7198_v5 = vpop.f32.mrb[31].mxu1 }
 0x119   :  { %8963 = vst [vmem:[#allocation18_spill] sm:$0xff] %v7196_v56  ;;  %8964 = vst [vmem:[#allocation19_spill] sm:$0xff] %v7198_v5  ;;  %v6401_v5 = vld [vmem:[%s8944_s0 + $0x238] sm:$0xff]  }
 0x11a   :  { %5949 = vmatmul.mubr.msk.bf16.gmra.mrb[136].mxu0 %vm1577_vm2, %v6397_v33  ;;  %6169 = vmatmul.mubr.msk.bf16.gmra.mrb[136].mxu1 %vm1577_vm2, %v6398_v28  ;;  %v6402_v33 = vld [vmem:[%s8944_s0 + $0x5a8] sm:$0xff]  }
 0x11b   :  { %5952 = vmatprep.mubr.msk.bf16.mxu0 %vm1577_vm2, %v6399_v41  ;;  %6172 = vmatprep.mubr.msk.bf16.mxu1 %vm1577_vm2, %v6400_v57  ;;  %v6403_v57 = vld [vmem:[%s8944_s0 + $0x240] sm:$0xff]  }
 0x11d   :  { %v7204_v40 = vpop.f32.mrb[32].mxu0  ;;  %v7206_v29 = vpop.f32.mrb[32].mxu1 }
 0x11e   :  { %8965 = vst [vmem:[#allocation20_spill] sm:$0xff] %v7204_v40  ;;  %8966 = vst [vmem:[#allocation21_spill] sm:$0xff] %v7206_v29  ;;  %v7208_v4 = vpop.f32.mrb[33].mxu0  ;;  %v7210_v32 = vpop.f32.mrb[33].mxu1  ;;  %v6404_v29 = vld [vmem:[%s8944_s0 + $0x5b0] sm:$0xff]  }
 0x11f   :  { %8967 = vst [vmem:[#allocation22_spill] sm:$0xff] %v7208_v4  ;;  %8968 = vst [vmem:[#allocation23_spill] sm:$0xff] %v7210_v32  ;;  %v7218_v28 = vpop.f32.mrb[34].mxu0  ;;  %v7220_v41 = vpop.f32.mrb[34].mxu1 }
 0x120   :  { %8969 = vst [vmem:[#allocation24_spill] sm:$0xff] %v7218_v28  ;;  %8970 = vst [vmem:[#allocation25_spill] sm:$0xff] %v7220_v41  ;;  %v7228_v40 = vpop.f32.mrb[35].mxu0  ;;  %v7230_v32 = vpop.f32.mrb[35].mxu1 }
 0x121   :  { %8971 = vst [vmem:[#allocation26_spill] sm:$0xff] %v7228_v40  ;;  %8972 = vst [vmem:[#allocation27_spill] sm:$0xff] %v7230_v32  ;;  %v6405_v32 = vld [vmem:[%s8944_s0 + $0x248] sm:$0xff]  }
 0x122   :  { %5953 = vmatmul.mubr.msk.bf16.gmra.mrb[140].mxu0 %vm1577_vm2, %v6401_v5  ;;  %6173 = vmatmul.mubr.msk.bf16.gmra.mrb[140].mxu1 %vm1577_vm2, %v6402_v33  ;;  %v6406_v5 = vld [vmem:[%s8944_s0 + $0x5b8] sm:$0xff]  }
 0x123   :  { %5956 = vmatprep.mubr.msk.bf16.mxu0 %vm1577_vm2, %v6403_v57  ;;  %6176 = vmatprep.mubr.msk.bf16.mxu1 %vm1577_vm2, %v6404_v29  ;;  %v6407_v29 = vld [vmem:[%s8944_s0 + $0x250] sm:$0xff]  }
 0x125   :  { %v7236_v41 = vpop.f32.mrb[36].mxu0  ;;  %v7238_v28 = vpop.f32.mrb[36].mxu1 }
 0x126   :  { %8973 = vst [vmem:[#allocation28_spill] sm:$0xff] %v7236_v41  ;;  %8974 = vst [vmem:[#allocation29_spill] sm:$0xff] %v7238_v28  ;;  %v7240_v4 = vpop.f32.mrb[37].mxu0  ;;  %v7242_v56 = vpop.f32.mrb[37].mxu1  ;;  %v6408_v28 = vld [vmem:[%s8944_s0 + $0x5c0] sm:$0xff]  }
 0x127   :  { %8975 = vst [vmem:[#allocation30_spill] sm:$0xff] %v7240_v4  ;;  %8976 = vst [vmem:[#allocation31_spill] sm:$0xff] %v7242_v56  ;;  %v7250_v33 = vpop.f32.mrb[38].mxu0  ;;  %v7252_v57 = vpop.f32.mrb[38].mxu1 }
 0x128   :  { %8977 = vst [vmem:[#allocation32_spill] sm:$0xff] %v7250_v33  ;;  %8978 = vst [vmem:[#allocation33_spill] sm:$0xff] %v7252_v57  ;;  %v7260_v41 = vpop.f32.mrb[39].mxu0  ;;  %v7262_v56 = vpop.f32.mrb[39].mxu1 }
 0x129   :  { %8979 = vst [vmem:[#allocation34_spill] sm:$0xff] %v7260_v41  ;;  %8980 = vst [vmem:[#allocation35_spill] sm:$0xff] %v7262_v56  ;;  %v6409_v56 = vld [vmem:[%s8944_s0 + $0x258] sm:$0xff]  }
 0x12a   :  { %5957 = vmatmul.mubr.msk.bf16.gmra.mrb[144].mxu0 %vm1577_vm2, %v6405_v32  ;;  %6177 = vmatmul.mubr.msk.bf16.gmra.mrb[144].mxu1 %vm1577_vm2, %v6406_v5  ;;  %v6410_v32 = vld [vmem:[%s8944_s0 + $0x5c8] sm:$0xff]  }
 0x12b   :  { %5960 = vmatprep.mubr.msk.bf16.mxu0 %vm1577_vm2, %v6407_v29  ;;  %6180 = vmatprep.mubr.msk.bf16.mxu1 %vm1577_vm2, %v6408_v28  ;;  %v6411_v28 = vld [vmem:[%s8944_s0 + $0x260] sm:$0xff]  }
 0x12d   :  { %v7268_v57 = vpop.f32.mrb[40].mxu0  ;;  %v7270_v33 = vpop.f32.mrb[40].mxu1 }
 0x12e   :  { %8981 = vst [vmem:[#allocation36_spill] sm:$0xff] %v7268_v57  ;;  %8982 = vst [vmem:[#allocation37_spill] sm:$0xff] %v7270_v33  ;;  %v7272_v4 = vpop.f32.mrb[41].mxu0  ;;  %v7274_v40 = vpop.f32.mrb[41].mxu1  ;;  %v6412_v33 = vld [vmem:[%s8944_s0 + $0x5d0] sm:$0xff]  }
 0x12f   :  { %8983 = vst [vmem:[#allocation38_spill] sm:$0xff] %v7272_v4  ;;  %8984 = vst [vmem:[#allocation39_spill] sm:$0xff] %v7274_v40  ;;  %v7282_v5 = vpop.f32.mrb[42].mxu0  ;;  %v7284_v29 = vpop.f32.mrb[42].mxu1 }
 0x130   :  { %8985 = vst [vmem:[#allocation40_spill] sm:$0xff] %v7282_v5  ;;  %8986 = vst [vmem:[#allocation41_spill] sm:$0xff] %v7284_v29  ;;  %v7292_v57 = vpop.f32.mrb[43].mxu0  ;;  %v7294_v40 = vpop.f32.mrb[43].mxu1 }
 0x131   :  { %8987 = vst [vmem:[#allocation42_spill] sm:$0xff] %v7292_v57  ;;  %8988 = vst [vmem:[#allocation43_spill] sm:$0xff] %v7294_v40  ;;  %v6413_v40 = vld [vmem:[%s8944_s0 + $0x268] sm:$0xff]  }
 0x132   :  { %5961 = vmatmul.mubr.msk.bf16.gmra.mrb[148].mxu0 %vm1577_vm2, %v6409_v56  ;;  %6181 = vmatmul.mubr.msk.bf16.gmra.mrb[148].mxu1 %vm1577_vm2, %v6410_v32  ;;  %v6414_v56 = vld [vmem:[%s8944_s0 + $0x5d8] sm:$0xff]  }
 0x133   :  { %5964 = vmatprep.mubr.msk.bf16.mxu0 %vm1577_vm2, %v6411_v28  ;;  %6184 = vmatprep.mubr.msk.bf16.mxu1 %vm1577_vm2, %v6412_v33  ;;  %v6415_v33 = vld [vmem:[%s8944_s0 + $0x270] sm:$0xff]  }
 0x135   :  { %v7300_v29 = vpop.f32.mrb[44].mxu0  ;;  %v7302_v5 = vpop.f32.mrb[44].mxu1 }
 0x136   :  { %8989 = vst [vmem:[#allocation44_spill] sm:$0xff] %v7300_v29  ;;  %8990 = vst [vmem:[#allocation45_spill] sm:$0xff] %v7302_v5  ;;  %v7304_v4 = vpop.f32.mrb[45].mxu0  ;;  %v7306_v41 = vpop.f32.mrb[45].mxu1  ;;  %v6416_v5 = vld [vmem:[%s8944_s0 + $0x5e0] sm:$0xff]  }
 0x137   :  { %8991 = vst [vmem:[#allocation46_spill] sm:$0xff] %v7304_v4  ;;  %8992 = vst [vmem:[#allocation47_spill] sm:$0xff] %v7306_v41  ;;  %v7314_v32 = vpop.f32.mrb[46].mxu0  ;;  %v7316_v28 = vpop.f32.mrb[46].mxu1 }
 0x138   :  { %8993 = vst [vmem:[#allocation48_spill] sm:$0xff] %v7314_v32  ;;  %8994 = vst [vmem:[#allocation49_spill] sm:$0xff] %v7316_v28  ;;  %v7324_v29 = vpop.f32.mrb[47].mxu0  ;;  %v7326_v41 = vpop.f32.mrb[47].mxu1 }
 0x139   :  { %8995 = vst [vmem:[#allocation50_spill] sm:$0xff] %v7324_v29  ;;  %8996 = vst [vmem:[#allocation51_spill] sm:$0xff] %v7326_v41  ;;  %v6417_v41 = vld [vmem:[%s8944_s0 + $0x278] sm:$0xff]  }
 0x13a   :  { %5965 = vmatmul.mubr.msk.bf16.gmra.mrb[152].mxu0 %vm1577_vm2, %v6413_v40  ;;  %6185 = vmatmul.mubr.msk.bf16.gmra.mrb[152].mxu1 %vm1577_vm2, %v6414_v56  ;;  %v6418_v40 = vld [vmem:[%s8944_s0 + $0x5e8] sm:$0xff]  }
 0x13b   :  { %5968 = vmatprep.mubr.msk.bf16.mxu0 %vm1577_vm2, %v6415_v33  ;;  %6188 = vmatprep.mubr.msk.bf16.mxu1 %vm1577_vm2, %v6416_v5  ;;  %v6419_v5 = vld [vmem:[%s8944_s0 + $0x280] sm:$0xff]  }
 0x13d   :  { %v7332_v28 = vpop.f32.mrb[48].mxu0  ;;  %v7334_v32 = vpop.f32.mrb[48].mxu1 }
 0x13e   :  { %8997 = vst [vmem:[#allocation52_spill] sm:$0xff] %v7332_v28  ;;  %8998 = vst [vmem:[#allocation53_spill] sm:$0xff] %v7334_v32  ;;  %v7336_v4 = vpop.f32.mrb[49].mxu0  ;;  %v7338_v57 = vpop.f32.mrb[49].mxu1  ;;  %v6420_v32 = vld [vmem:[%s8944_s0 + $0x5f0] sm:$0xff]  }
 0x13f   :  { %8999 = vst [vmem:[#allocation54_spill] sm:$0xff] %v7336_v4  ;;  %9000 = vst [vmem:[#allocation55_spill] sm:$0xff] %v7338_v57  ;;  %v7346_v56 = vpop.f32.mrb[50].mxu0  ;;  %v7348_v33 = vpop.f32.mrb[50].mxu1 }
 0x140   :  { %9001 = vst [vmem:[#allocation56_spill] sm:$0xff] %v7346_v56  ;;  %9002 = vst [vmem:[#allocation57_spill] sm:$0xff] %v7348_v33  ;;  %v7356_v28 = vpop.f32.mrb[51].mxu0  ;;  %v7358_v57 = vpop.f32.mrb[51].mxu1 }
 0x141   :  { %9003 = vst [vmem:[#allocation58_spill] sm:$0xff] %v7356_v28  ;;  %9004 = vst [vmem:[#allocation59_spill] sm:$0xff] %v7358_v57  ;;  %v6421_v57 = vld [vmem:[%s8944_s0 + $0x288] sm:$0xff]  }
 0x142   :  { %5969 = vmatmul.mubr.msk.bf16.gmra.mrb[156].mxu0 %vm1577_vm2, %v6417_v41  ;;  %6189 = vmatmul.mubr.msk.bf16.gmra.mrb[156].mxu1 %vm1577_vm2, %v6418_v40  ;;  %v6422_v41 = vld [vmem:[%s8944_s0 + $0x5f8] sm:$0xff]  }
 0x143   :  { %5972 = vmatprep.mubr.msk.bf16.mxu0 %vm1577_vm2, %v6419_v5  ;;  %6192 = vmatprep.mubr.msk.bf16.mxu1 %vm1577_vm2, %v6420_v32  ;;  %v6423_v32 = vld [vmem:[%s8944_s0 + $0x290] sm:$0xff]  }
 0x145   :  { %v7364_v33 = vpop.f32.mrb[52].mxu0  ;;  %v7366_v56 = vpop.f32.mrb[52].mxu1 }
 0x146   :  { %9005 = vst [vmem:[#allocation60_spill] sm:$0xff] %v7364_v33  ;;  %9006 = vst [vmem:[#allocation61_spill] sm:$0xff] %v7366_v56  ;;  %v7368_v4 = vpop.f32.mrb[53].mxu0  ;;  %v7370_v29 = vpop.f32.mrb[53].mxu1  ;;  %v6424_v56 = vld [vmem:[%s8944_s0 + $0x600] sm:$0xff]  }
 0x147   :  { %9007 = vst [vmem:[#allocation62_spill] sm:$0xff] %v7368_v4  ;;  %9008 = vst [vmem:[#allocation63_spill] sm:$0xff] %v7370_v29  ;;  %v7378_v40 = vpop.f32.mrb[54].mxu0  ;;  %v7380_v5 = vpop.f32.mrb[54].mxu1 }
 0x148   :  { %9009 = vst [vmem:[#allocation64_spill] sm:$0xff] %v7378_v40  ;;  %9010 = vst [vmem:[#allocation65_spill] sm:$0xff] %v7380_v5  ;;  %v7388_v33 = vpop.f32.mrb[55].mxu0  ;;  %v7390_v29 = vpop.f32.mrb[55].mxu1 }
 0x149   :  { %9011 = vst [vmem:[#allocation66_spill] sm:$0xff] %v7388_v33  ;;  %9012 = vst [vmem:[#allocation67_spill] sm:$0xff] %v7390_v29  ;;  %v6425_v29 = vld [vmem:[%s8944_s0 + $0x298] sm:$0xff]  }
 0x14a   :  { %5973 = vmatmul.mubr.msk.bf16.gmra.mrb[160].mxu0 %vm1577_vm2, %v6421_v57  ;;  %6193 = vmatmul.mubr.msk.bf16.gmra.mrb[160].mxu1 %vm1577_vm2, %v6422_v41  ;;  %v6426_v57 = vld [vmem:[%s8944_s0 + $0x608] sm:$0xff]  }
 0x14b   :  { %5976 = vmatprep.mubr.msk.bf16.mxu0 %vm1577_vm2, %v6423_v32  ;;  %6196 = vmatprep.mubr.msk.bf16.mxu1 %vm1577_vm2, %v6424_v56  ;;  %v6427_v56 = vld [vmem:[%s8944_s0 + $0x2a0] sm:$0xff]  }
 0x14d   :  { %v7396_v5 = vpop.f32.mrb[56].mxu0  ;;  %v7398_v40 = vpop.f32.mrb[56].mxu1 }
 0x14e   :  { %9013 = vst [vmem:[#allocation68_spill] sm:$0xff] %v7396_v5  ;;  %9014 = vst [vmem:[#allocation69_spill] sm:$0xff] %v7398_v40  ;;  %v7400_v4 = vpop.f32.mrb[57].mxu0  ;;  %v7402_v28 = vpop.f32.mrb[57].mxu1  ;;  %v6428_v40 = vld [vmem:[%s8944_s0 + $0x610] sm:$0xff]  }
 0x14f   :  { %9015 = vst [vmem:[#allocation70_spill] sm:$0xff] %v7400_v4  ;;  %9016 = vst [vmem:[#allocation71_spill] sm:$0xff] %v7402_v28  ;;  %v7410_v41 = vpop.f32.mrb[58].mxu0  ;;  %v7412_v32 = vpop.f32.mrb[58].mxu1 }
 0x150   :  { %9017 = vst [vmem:[#allocation72_spill] sm:$0xff] %v7410_v41  ;;  %9018 = vst [vmem:[#allocation73_spill] sm:$0xff] %v7412_v32  ;;  %v7420_v5 = vpop.f32.mrb[59].mxu0  ;;  %v7422_v28 = vpop.f32.mrb[59].mxu1 }
 0x151   :  { %9019 = vst [vmem:[#allocation74_spill] sm:$0xff] %v7420_v5  ;;  %9020 = vst [vmem:[#allocation75_spill] sm:$0xff] %v7422_v28  ;;  %v6429_v28 = vld [vmem:[%s8944_s0 + $0x2a8] sm:$0xff]  }
 0x152   :  { %5977 = vmatmul.mubr.msk.bf16.gmra.mrb[164].mxu0 %vm1577_vm2, %v6425_v29  ;;  %6197 = vmatmul.mubr.msk.bf16.gmra.mrb[164].mxu1 %vm1577_vm2, %v6426_v57  ;;  %v6430_v29 = vld [vmem:[%s8944_s0 + $0x618] sm:$0xff]  }
 0x153   :  { %5980 = vmatprep.mubr.msk.bf16.mxu0 %vm1577_vm2, %v6427_v56  ;;  %6200 = vmatprep.mubr.msk.bf16.mxu1 %vm1577_vm2, %v6428_v40  ;;  %v6431_v40 = vld [vmem:[%s8944_s0 + $0x2b0] sm:$0xff]  }
 0x155   :  { %v7428_v32 = vpop.f32.mrb[60].mxu0  ;;  %v7430_v41 = vpop.f32.mrb[60].mxu1 }
 0x156   :  { %9021 = vst [vmem:[#allocation76_spill] sm:$0xff] %v7428_v32  ;;  %9022 = vst [vmem:[#allocation77_spill] sm:$0xff] %v7430_v41  ;;  %v7432_v4 = vpop.f32.mrb[61].mxu0  ;;  %v7434_v33 = vpop.f32.mrb[61].mxu1  ;;  %v6432_v41 = vld [vmem:[%s8944_s0 + $0x620] sm:$0xff]  }
 0x157   :  { %9023 = vst [vmem:[#allocation78_spill] sm:$0xff] %v7432_v4  ;;  %9024 = vst [vmem:[#allocation79_spill] sm:$0xff] %v7434_v33  ;;  %v7442_v57 = vpop.f32.mrb[62].mxu0  ;;  %v7444_v56 = vpop.f32.mrb[62].mxu1 }
 0x158   :  { %9025 = vst [vmem:[#allocation80_spill] sm:$0xff] %v7442_v57  ;;  %9026 = vst [vmem:[#allocation81_spill] sm:$0xff] %v7444_v56  ;;  %v7452_v32 = vpop.f32.mrb[63].mxu0  ;;  %v7454_v33 = vpop.f32.mrb[63].mxu1 }
 0x159   :  { %9027 = vst [vmem:[#allocation82_spill] sm:$0xff] %v7452_v32  ;;  %9028 = vst [vmem:[#allocation83_spill] sm:$0xff] %v7454_v33  ;;  %v6433_v33 = vld [vmem:[%s8944_s0 + $0x2b8] sm:$0xff]  }
 0x15a   :  { %5981 = vmatmul.mubr.msk.bf16.gmra.mrb[168].mxu0 %vm1577_vm2, %v6429_v28  ;;  %6201 = vmatmul.mubr.msk.bf16.gmra.mrb[168].mxu1 %vm1577_vm2, %v6430_v29  ;;  %v6434_v28 = vld [vmem:[%s8944_s0 + $0x628] sm:$0xff]  }
 0x15b   :  { %5984 = vmatprep.mubr.msk.bf16.mxu0 %vm1577_vm2, %v6431_v40  ;;  %6204 = vmatprep.mubr.msk.bf16.mxu1 %vm1577_vm2, %v6432_v41  ;;  %v6435_v41 = vld [vmem:[%s8944_s0 + $0x2c0] sm:$0xff]  }
 0x15d   :  { %v7460_v56 = vpop.f32.mrb[64].mxu0  ;;  %v7462_v57 = vpop.f32.mrb[64].mxu1 }
 0x15e   :  { %9029 = vst [vmem:[#allocation84_spill] sm:$0xff] %v7460_v56  ;;  %9030 = vst [vmem:[#allocation85_spill] sm:$0xff] %v7462_v57  ;;  %v7464_v4 = vpop.f32.mrb[65].mxu0  ;;  %v7466_v5 = vpop.f32.mrb[65].mxu1  ;;  %v6436_v57 = vld [vmem:[%s8944_s0 + $0x630] sm:$0xff]  }
 0x15f   :  { %9031 = vst [vmem:[#allocation86_spill] sm:$0xff] %v7464_v4  ;;  %9032 = vst [vmem:[#allocation87_spill] sm:$0xff] %v7466_v5  ;;  %v7474_v29 = vpop.f32.mrb[66].mxu0  ;;  %v7476_v40 = vpop.f32.mrb[66].mxu1 }
 0x160   :  { %9033 = vst [vmem:[#allocation88_spill] sm:$0xff] %v7474_v29  ;;  %9034 = vst [vmem:[#allocation89_spill] sm:$0xff] %v7476_v40  ;;  %v7484_v56 = vpop.f32.mrb[67].mxu0  ;;  %v7486_v5 = vpop.f32.mrb[67].mxu1 }
 0x161   :  { %9035 = vst [vmem:[#allocation90_spill] sm:$0xff] %v7484_v56  ;;  %9036 = vst [vmem:[#allocation91_spill] sm:$0xff] %v7486_v5  ;;  %v6437_v5 = vld [vmem:[%s8944_s0 + $0x2c8] sm:$0xff]  }
 0x162   :  { %5985 = vmatmul.mubr.msk.bf16.gmra.mrb[172].mxu0 %vm1577_vm2, %v6433_v33  ;;  %6205 = vmatmul.mubr.msk.bf16.gmra.mrb[172].mxu1 %vm1577_vm2, %v6434_v28  ;;  %v6438_v33 = vld [vmem:[%s8944_s0 + $0x638] sm:$0xff]  }
 0x163   :  { %5988 = vmatprep.mubr.msk.bf16.mxu0 %vm1577_vm2, %v6435_v41  ;;  %6208 = vmatprep.mubr.msk.bf16.mxu1 %vm1577_vm2, %v6436_v57  ;;  %v6439_v57 = vld [vmem:[%s8944_s0 + $0x2d0] sm:$0xff]  }
 0x165   :  { %v7492_v40 = vpop.f32.mrb[68].mxu0  ;;  %v7494_v29 = vpop.f32.mrb[68].mxu1 }
 0x166   :  { %9037 = vst [vmem:[#allocation92_spill] sm:$0xff] %v7492_v40  ;;  %9038 = vst [vmem:[#allocation93_spill] sm:$0xff] %v7494_v29  ;;  %v7496_v4 = vpop.f32.mrb[69].mxu0  ;;  %v7498_v32 = vpop.f32.mrb[69].mxu1  ;;  %v6440_v29 = vld [vmem:[%s8944_s0 + $0x640] sm:$0xff]  }
 0x167   :  { %9039 = vst [vmem:[#allocation94_spill] sm:$0xff] %v7496_v4  ;;  %9040 = vst [vmem:[#allocation95_spill] sm:$0xff] %v7498_v32  ;;  %v7506_v28 = vpop.f32.mrb[70].mxu0  ;;  %v7508_v41 = vpop.f32.mrb[70].mxu1 }
 0x168   :  { %9041 = vst [vmem:[#allocation96_spill] sm:$0xff] %v7506_v28  ;;  %9042 = vst [vmem:[#allocation97_spill] sm:$0xff] %v7508_v41  ;;  %v7516_v40 = vpop.f32.mrb[71].mxu0  ;;  %v7518_v32 = vpop.f32.mrb[71].mxu1 }
 0x169   :  { %9043 = vst [vmem:[#allocation98_spill] sm:$0xff] %v7516_v40  ;;  %9044 = vst [vmem:[#allocation99_spill] sm:$0xff] %v7518_v32  ;;  %v6441_v32 = vld [vmem:[%s8944_s0 + $0x2d8] sm:$0xff]  }
 0x16a   :  { %5989 = vmatmul.mubr.msk.bf16.gmra.mrb[176].mxu0 %vm1577_vm2, %v6437_v5  ;;  %6209 = vmatmul.mubr.msk.bf16.gmra.mrb[176].mxu1 %vm1577_vm2, %v6438_v33  ;;  %v6442_v5 = vld [vmem:[%s8944_s0 + $0x648] sm:$0xff]  }
 0x16b   :  { %5992 = vmatprep.mubr.msk.bf16.mxu0 %vm1577_vm2, %v6439_v57  ;;  %6212 = vmatprep.mubr.msk.bf16.mxu1 %vm1577_vm2, %v6440_v29  ;;  %v6443_v29 = vld [vmem:[%s8944_s0 + $0x2e0] sm:$0xff]  }
 0x16d   :  { %v7524_v41 = vpop.f32.mrb[72].mxu0  ;;  %v7526_v28 = vpop.f32.mrb[72].mxu1 }
 0x16e   :  { %9045 = vst [vmem:[#allocation100_spill] sm:$0xff] %v7524_v41  ;;  %9046 = vst [vmem:[#allocation101_spill] sm:$0xff] %v7526_v28  ;;  %v7528_v4 = vpop.f32.mrb[73].mxu0  ;;  %v7530_v56 = vpop.f32.mrb[73].mxu1  ;;  %v6444_v28 = vld [vmem:[%s8944_s0 + $0x650] sm:$0xff]  }
 0x16f   :  { %9047 = vst [vmem:[#allocation102_spill] sm:$0xff] %v7528_v4  ;;  %9048 = vst [vmem:[#allocation103_spill] sm:$0xff] %v7530_v56  ;;  %v7538_v33 = vpop.f32.mrb[74].mxu0  ;;  %v7540_v57 = vpop.f32.mrb[74].mxu1 }
 0x170   :  { %9049 = vst [vmem:[#allocation104_spill] sm:$0xff] %v7538_v33  ;;  %9050 = vst [vmem:[#allocation105_spill] sm:$0xff] %v7540_v57  ;;  %v7548_v41 = vpop.f32.mrb[75].mxu0  ;;  %v7550_v56 = vpop.f32.mrb[75].mxu1 }
 0x171   :  { %9051 = vst [vmem:[#allocation106_spill] sm:$0xff] %v7548_v41  ;;  %9052 = vst [vmem:[#allocation107_spill] sm:$0xff] %v7550_v56  ;;  %v6445_v56 = vld [vmem:[%s8944_s0 + $0x2e8] sm:$0xff]  }
 0x172   :  { %5993 = vmatmul.mubr.msk.bf16.gmra.mrb[180].mxu0 %vm1577_vm2, %v6441_v32  ;;  %6213 = vmatmul.mubr.msk.bf16.gmra.mrb[180].mxu1 %vm1577_vm2, %v6442_v5  ;;  %v6446_v32 = vld [vmem:[%s8944_s0 + $0x658] sm:$0xff]  }
 0x173   :  { %5996 = vmatprep.mubr.msk.bf16.mxu0 %vm1577_vm2, %v6443_v29  ;;  %6216 = vmatprep.mubr.msk.bf16.mxu1 %vm1577_vm2, %v6444_v28  ;;  %v6447_v28 = vld [vmem:[%s8944_s0 + $0x2f0] sm:$0xff]  }
 0x175   :  { %v7556_v57 = vpop.f32.mrb[76].mxu0  ;;  %v7558_v33 = vpop.f32.mrb[76].mxu1 }
 0x176   :  { %9053 = vst [vmem:[#allocation108_spill] sm:$0xff] %v7556_v57  ;;  %9054 = vst [vmem:[#allocation109_spill] sm:$0xff] %v7558_v33  ;;  %v7560_v4 = vpop.f32.mrb[77].mxu0  ;;  %v7562_v40 = vpop.f32.mrb[77].mxu1  ;;  %v6448_v33 = vld [vmem:[%s8944_s0 + $0x660] sm:$0xff]  }
 0x177   :  { %9055 = vst [vmem:[#allocation110_spill] sm:$0xff] %v7560_v4  ;;  %9056 = vst [vmem:[#allocation111_spill] sm:$0xff] %v7562_v40  ;;  %v7570_v5 = vpop.f32.mrb[78].mxu0  ;;  %v7572_v29 = vpop.f32.mrb[78].mxu1 }
 0x178   :  { %9057 = vst [vmem:[#allocation112_spill] sm:$0xff] %v7570_v5  ;;  %9058 = vst [vmem:[#allocation113_spill] sm:$0xff] %v7572_v29  ;;  %v7580_v57 = vpop.f32.mrb[79].mxu0  ;;  %v7582_v40 = vpop.f32.mrb[79].mxu1 }
 0x179   :  { %9059 = vst [vmem:[#allocation114_spill] sm:$0xff] %v7580_v57  ;;  %9060 = vst [vmem:[#allocation115_spill] sm:$0xff] %v7582_v40  ;;  %v6449_v40 = vld [vmem:[%s8944_s0 + $0x2f8] sm:$0xff]  }
 0x17a   :  { %5997 = vmatmul.mubr.msk.bf16.gmra.mrb[184].mxu0 %vm1577_vm2, %v6445_v56  ;;  %6217 = vmatmul.mubr.msk.bf16.gmra.mrb[184].mxu1 %vm1577_vm2, %v6446_v32  ;;  %v6450_v56 = vld [vmem:[%s8944_s0 + $0x668] sm:$0xff]  }
 0x17b   :  { %6000 = vmatprep.mubr.msk.bf16.mxu0 %vm1577_vm2, %v6447_v28  ;;  %6220 = vmatprep.mubr.msk.bf16.mxu1 %vm1577_vm2, %v6448_v33  ;;  %v6451_v33 = vld [vmem:[%s8944_s0 + $0x300] sm:$0xff]  }
 0x17d   :  { %v7588_v29 = vpop.f32.mrb[80].mxu0  ;;  %v7590_v5 = vpop.f32.mrb[80].mxu1 }
 0x17e   :  { %9061 = vst [vmem:[#allocation116_spill] sm:$0xff] %v7588_v29  ;;  %9062 = vst [vmem:[#allocation117_spill] sm:$0xff] %v7590_v5  ;;  %v7592_v4 = vpop.f32.mrb[81].mxu0  ;;  %v7594_v41 = vpop.f32.mrb[81].mxu1  ;;  %v6452_v5 = vld [vmem:[%s8944_s0 + $0x670] sm:$0xff]  }
 0x17f   :  { %9063 = vst [vmem:[#allocation118_spill] sm:$0xff] %v7592_v4  ;;  %9064 = vst [vmem:[#allocation119_spill] sm:$0xff] %v7594_v41  ;;  %v7602_v32 = vpop.f32.mrb[82].mxu0  ;;  %v7604_v28 = vpop.f32.mrb[82].mxu1 }
 0x180   :  { %9065 = vst [vmem:[#allocation120_spill] sm:$0xff] %v7602_v32  ;;  %9066 = vst [vmem:[#allocation121_spill] sm:$0xff] %v7604_v28  ;;  %v7612_v29 = vpop.f32.mrb[83].mxu0  ;;  %v7614_v41 = vpop.f32.mrb[83].mxu1 }
 0x181   :  { %9067 = vst [vmem:[#allocation122_spill] sm:$0xff] %v7612_v29  ;;  %9068 = vst [vmem:[#allocation123_spill] sm:$0xff] %v7614_v41  ;;  %v6453_v41 = vld [vmem:[%s8944_s0 + $0x308] sm:$0xff]  }
 0x182   :  { %6001 = vmatmul.mubr.msk.bf16.gmra.mrb[188].mxu0 %vm1577_vm2, %v6449_v40  ;;  %6221 = vmatmul.mubr.msk.bf16.gmra.mrb[188].mxu1 %vm1577_vm2, %v6450_v56  ;;  %v6454_v40 = vld [vmem:[%s8944_s0 + $0x678] sm:$0xff]  }
 0x183   :  { %6004 = vmatprep.mubr.msk.bf16.mxu0 %vm1577_vm2, %v6451_v33  ;;  %6224 = vmatprep.mubr.msk.bf16.mxu1 %vm1577_vm2, %v6452_v5  ;;  %v6455_v5 = vld [vmem:[%s8944_s0 + $0x310] sm:$0xff]  }
 0x185   :  { %v7620_v28 = vpop.f32.mrb[84].mxu0  ;;  %v7622_v32 = vpop.f32.mrb[84].mxu1 }
 0x186   :  { %9069 = vst [vmem:[#allocation124_spill] sm:$0xff] %v7620_v28  ;;  %9070 = vst [vmem:[#allocation125_spill] sm:$0xff] %v7622_v32  ;;  %v7624_v4 = vpop.f32.mrb[85].mxu0  ;;  %v7626_v57 = vpop.f32.mrb[85].mxu1  ;;  %v6456_v32 = vld [vmem:[%s8944_s0 + $0x680] sm:$0xff]  }
 0x187   :  { %9071 = vst [vmem:[#allocation126_spill] sm:$0xff] %v7624_v4  ;;  %9072 = vst [vmem:[#allocation127_spill] sm:$0xff] %v7626_v57  ;;  %v7634_v56 = vpop.f32.mrb[86].mxu0  ;;  %v7636_v33 = vpop.f32.mrb[86].mxu1 }
 0x188   :  { %9073 = vst [vmem:[#allocation128_spill] sm:$0xff] %v7634_v56  ;;  %9074 = vst [vmem:[#allocation129_spill] sm:$0xff] %v7636_v33  ;;  %v7644_v28 = vpop.f32.mrb[87].mxu0  ;;  %v7646_v57 = vpop.f32.mrb[87].mxu1 }
 0x189   :  { %9075 = vst [vmem:[#allocation130_spill] sm:$0xff] %v7644_v28  ;;  %9076 = vst [vmem:[#allocation131_spill] sm:$0xff] %v7646_v57  ;;  %v6457_v57 = vld [vmem:[%s8944_s0 + $0x318] sm:$0xff]  }
 0x18a   :  { %6005 = vmatmul.mubr.msk.bf16.gmra.mrb[192].mxu0 %vm1577_vm2, %v6453_v41  ;;  %6225 = vmatmul.mubr.msk.bf16.gmra.mrb[192].mxu1 %vm1577_vm2, %v6454_v40  ;;  %v6458_v41 = vld [vmem:[%s8944_s0 + $0x688] sm:$0xff]  }
 0x18b   :  { %6008 = vmatprep.mubr.msk.bf16.mxu0 %vm1577_vm2, %v6455_v5  ;;  %6228 = vmatprep.mubr.msk.bf16.mxu1 %vm1577_vm2, %v6456_v32  ;;  %v6459_v32 = vld [vmem:[%s8944_s0 + $0x320] sm:$0xff]  }
 0x18d   :  { %v7652_v33 = vpop.f32.mrb[88].mxu0  ;;  %v7654_v56 = vpop.f32.mrb[88].mxu1 }
 0x18e   :  { %9077 = vst [vmem:[#allocation132_spill] sm:$0xff] %v7652_v33  ;;  %9078 = vst [vmem:[#allocation133_spill] sm:$0xff] %v7654_v56  ;;  %v7656_v4 = vpop.f32.mrb[89].mxu0  ;;  %v7658_v29 = vpop.f32.mrb[89].mxu1  ;;  %v6460_v56 = vld [vmem:[%s8944_s0 + $0x690] sm:$0xff]  }
 0x18f   :  { %9079 = vst [vmem:[#allocation134_spill] sm:$0xff] %v7656_v4  ;;  %9080 = vst [vmem:[#allocation135_spill] sm:$0xff] %v7658_v29  ;;  %v7666_v40 = vpop.f32.mrb[90].mxu0  ;;  %v7668_v5 = vpop.f32.mrb[90].mxu1 }
 0x190   :  { %9081 = vst [vmem:[#allocation136_spill] sm:$0xff] %v7666_v40  ;;  %9082 = vst [vmem:[#allocation137_spill] sm:$0xff] %v7668_v5  ;;  %v7676_v33 = vpop.f32.mrb[91].mxu0  ;;  %v7678_v29 = vpop.f32.mrb[91].mxu1 }
 0x191   :  { %9083 = vst [vmem:[#allocation138_spill] sm:$0xff] %v7676_v33  ;;  %9084 = vst [vmem:[#allocation139_spill] sm:$0xff] %v7678_v29  ;;  %v6461_v29 = vld [vmem:[%s8944_s0 + $0x328] sm:$0xff]  }
 0x192   :  { %6009 = vmatmul.mubr.msk.bf16.gmra.mrb[196].mxu0 %vm1577_vm2, %v6457_v57  ;;  %6229 = vmatmul.mubr.msk.bf16.gmra.mrb[196].mxu1 %vm1577_vm2, %v6458_v41  ;;  %v6462_v57 = vld [vmem:[%s8944_s0 + $0x698] sm:$0xff]  }
 0x193   :  { %6012 = vmatprep.mubr.msk.bf16.mxu0 %vm1577_vm2, %v6459_v32  ;;  %6232 = vmatprep.mubr.msk.bf16.mxu1 %vm1577_vm2, %v6460_v56  ;;  %v6463_v56 = vld [vmem:[%s8944_s0 + $0x330] sm:$0xff]  }
 0x195   :  { %v7684_v5 = vpop.f32.mrb[92].mxu0  ;;  %v7686_v40 = vpop.f32.mrb[92].mxu1 }
 0x196   :  { %9085 = vst [vmem:[#allocation140_spill] sm:$0xff] %v7684_v5  ;;  %9086 = vst [vmem:[#allocation141_spill] sm:$0xff] %v7686_v40  ;;  %v7688_v4 = vpop.f32.mrb[93].mxu0  ;;  %v7690_v28 = vpop.f32.mrb[93].mxu1  ;;  %v6464_v40 = vld [vmem:[%s8944_s0 + $0x6a0] sm:$0xff]  }
 0x197   :  { %9087 = vst [vmem:[#allocation142_spill] sm:$0xff] %v7688_v4  ;;  %9088 = vst [vmem:[#allocation143_spill] sm:$0xff] %v7690_v28  ;;  %v7698_v41 = vpop.f32.mrb[94].mxu0  ;;  %v7700_v32 = vpop.f32.mrb[94].mxu1 }
 0x198   :  { %9089 = vst [vmem:[#allocation144_spill] sm:$0xff] %v7698_v41  ;;  %9090 = vst [vmem:[#allocation145_spill] sm:$0xff] %v7700_v32  ;;  %v7708_v5 = vpop.f32.mrb[95].mxu0  ;;  %v7710_v28 = vpop.f32.mrb[95].mxu1 }
 0x199   :  { %9091 = vst [vmem:[#allocation146_spill] sm:$0xff] %v7708_v5  ;;  %9092 = vst [vmem:[#allocation147_spill] sm:$0xff] %v7710_v28  ;;  %v6465_v28 = vld [vmem:[%s8944_s0 + $0x338] sm:$0xff]  }
 0x19a   :  { %6013 = vmatmul.mubr.msk.bf16.gmra.mrb[200].mxu0 %vm1577_vm2, %v6461_v29  ;;  %6233 = vmatmul.mubr.msk.bf16.gmra.mrb[200].mxu1 %vm1577_vm2, %v6462_v57  ;;  %v6466_v29 = vld [vmem:[%s8944_s0 + $0x6a8] sm:$0xff]  }
 0x19b   :  { %6016 = vmatprep.mubr.msk.bf16.mxu0 %vm1577_vm2, %v6463_v56  ;;  %6236 = vmatprep.mubr.msk.bf16.mxu1 %vm1577_vm2, %v6464_v40  ;;  %v6467_v40 = vld [vmem:[%s8944_s0 + $0x340] sm:$0xff]  }
 0x19d   :  { %v7716_v32 = vpop.f32.mrb[96].mxu0  ;;  %v7718_v41 = vpop.f32.mrb[96].mxu1 }
 0x19e   :  { %9093 = vst [vmem:[#allocation148_spill] sm:$0xff] %v7716_v32  ;;  %9094 = vst [vmem:[#allocation149_spill] sm:$0xff] %v7718_v41  ;;  %v7720_v4 = vpop.f32.mrb[97].mxu0  ;;  %v7722_v33 = vpop.f32.mrb[97].mxu1  ;;  %v6468_v41 = vld [vmem:[%s8944_s0 + $0x6b0] sm:$0xff]  }
 0x19f   :  { %9095 = vst [vmem:[#allocation150_spill] sm:$0xff] %v7720_v4  ;;  %9096 = vst [vmem:[#allocation151_spill] sm:$0xff] %v7722_v33  ;;  %v7730_v57 = vpop.f32.mrb[98].mxu0  ;;  %v7732_v56 = vpop.f32.mrb[98].mxu1 }
 0x1a0   :  { %9097 = vst [vmem:[#allocation152_spill] sm:$0xff] %v7730_v57  ;;  %9098 = vst [vmem:[#allocation153_spill] sm:$0xff] %v7732_v56  ;;  %v7740_v32 = vpop.f32.mrb[99].mxu0  ;;  %v7742_v33 = vpop.f32.mrb[99].mxu1 }
 0x1a1   :  { %9099 = vst [vmem:[#allocation154_spill] sm:$0xff] %v7740_v32  ;;  %9100 = vst [vmem:[#allocation155_spill] sm:$0xff] %v7742_v33  ;;  %v6469_v33 = vld [vmem:[%s8944_s0 + $0x348] sm:$0xff]  }
 0x1a2   :  { %6017 = vmatmul.mubr.msk.bf16.gmra.mrb[204].mxu0 %vm1577_vm2, %v6465_v28  ;;  %6237 = vmatmul.mubr.msk.bf16.gmra.mrb[204].mxu1 %vm1577_vm2, %v6466_v29  ;;  %v6470_v28 = vld [vmem:[%s8944_s0 + $0x6b8] sm:$0xff]  }
 0x1a3   :  { %6020 = vmatprep.mubr.msk.bf16.mxu0 %vm1577_vm2, %v6467_v40  ;;  %6240 = vmatprep.mubr.msk.bf16.mxu1 %vm1577_vm2, %v6468_v41  ;;  %v6471_v41 = vld [vmem:[%s8944_s0 + $0x350] sm:$0xff]  }
 0x1a5   :  { %v7748_v56 = vpop.f32.mrb[100].mxu0  ;;  %v7750_v57 = vpop.f32.mrb[100].mxu1 }
 0x1a6   :  { %9101 = vst [vmem:[#allocation156_spill] sm:$0xff] %v7748_v56  ;;  %9102 = vst [vmem:[#allocation157_spill] sm:$0xff] %v7750_v57  ;;  %v7752_v4 = vpop.f32.mrb[101].mxu0  ;;  %v7754_v5 = vpop.f32.mrb[101].mxu1  ;;  %v6472_v57 = vld [vmem:[%s8944_s0 + $0x6c0] sm:$0xff]  }
 0x1a7   :  { %9103 = vst [vmem:[#allocation158_spill] sm:$0xff] %v7752_v4  ;;  %9104 = vst [vmem:[#allocation159_spill] sm:$0xff] %v7754_v5  ;;  %v7762_v29 = vpop.f32.mrb[102].mxu0  ;;  %v7764_v40 = vpop.f32.mrb[102].mxu1 }
 0x1a8   :  { %9105 = vst [vmem:[#allocation160_spill] sm:$0xff] %v7762_v29  ;;  %9106 = vst [vmem:[#allocation161_spill] sm:$0xff] %v7764_v40  ;;  %v7772_v56 = vpop.f32.mrb[103].mxu0  ;;  %v7774_v5 = vpop.f32.mrb[103].mxu1 }
 0x1a9   :  { %9107 = vst [vmem:[#allocation162_spill] sm:$0xff] %v7772_v56  ;;  %9108 = vst [vmem:[#allocation163_spill] sm:$0xff] %v7774_v5  ;;  %v6473_v5 = vld [vmem:[%s8944_s0 + $0x358] sm:$0xff]  }
 0x1aa   :  { %6021 = vmatmul.mubr.msk.bf16.gmra.mrb[208].mxu0 %vm1577_vm2, %v6469_v33  ;;  %6241 = vmatmul.mubr.msk.bf16.gmra.mrb[208].mxu1 %vm1577_vm2, %v6470_v28  ;;  %v6474_v33 = vld [vmem:[%s8944_s0 + $0x6c8] sm:$0xff]  }
 0x1ab   :  { %6024 = vmatprep.mubr.msk.bf16.mxu0 %vm1577_vm2, %v6471_v41  ;;  %6244 = vmatprep.mubr.msk.bf16.mxu1 %vm1577_vm2, %v6472_v57  ;;  %v6475_v57 = vld [vmem:[%s8944_s0 + $0x360] sm:$0xff]  }
 0x1ad   :  { %v7780_v40 = vpop.f32.mrb[104].mxu0  ;;  %v7782_v29 = vpop.f32.mrb[104].mxu1 }
 0x1ae   :  { %9109 = vst [vmem:[#allocation164_spill] sm:$0xff] %v7780_v40  ;;  %9110 = vst [vmem:[#allocation165_spill] sm:$0xff] %v7782_v29  ;;  %v7784_v4 = vpop.f32.mrb[105].mxu0  ;;  %v7786_v32 = vpop.f32.mrb[105].mxu1  ;;  %v6476_v29 = vld [vmem:[%s8944_s0 + $0x6d0] sm:$0xff]  }
 0x1af   :  { %9111 = vst [vmem:[#allocation166_spill] sm:$0xff] %v7784_v4  ;;  %9112 = vst [vmem:[#allocation167_spill] sm:$0xff] %v7786_v32  ;;  %v7794_v28 = vpop.f32.mrb[106].mxu0  ;;  %v7796_v41 = vpop.f32.mrb[106].mxu1 }
 0x1b0   :  { %9113 = vst [vmem:[#allocation168_spill] sm:$0xff] %v7794_v28  ;;  %9114 = vst [vmem:[#allocation169_spill] sm:$0xff] %v7796_v41  ;;  %v7804_v40 = vpop.f32.mrb[107].mxu0  ;;  %v7806_v32 = vpop.f32.mrb[107].mxu1  ;;  %v7813_v41 = vld [vmem:[%s8945_s2] ss:$0 sm:$0xff] }
 0x1b1   :  { %9115 = vst [vmem:[#allocation170_spill] sm:$0xff] %v7804_v40  ;;  %9116 = vst [vmem:[#allocation171_spill] sm:$0xff] %v7806_v32  ;;  %v2280_v40 = vadd.f32 %v7813_v41, %v6952_v54  ;;  %v3160_v32 = vadd.f32 %v7813_v41, %v6954_v55  ;;  %v2283_v54 = vadd.f32 %v7813_v41, %v6972_v62 }
 0x1b2   :  { %6025 = vmatmul.mubr.msk.bf16.gmra.mrb[212].mxu0 %vm1577_vm2, %v6473_v5  ;;  %6245 = vmatmul.mubr.msk.bf16.gmra.mrb[212].mxu1 %vm1577_vm2, %v6474_v33  ;;  %v3163_v55 = vadd.f32 %v7813_v41, %v6974_v63  ;;  %v2288_v62 = vadd.f32 %v6948_v52, %v7813_v41 }
 0x1b3   :  { %6028 = vmatprep.mubr.msk.bf16.mxu0 %vm1577_vm2, %v6475_v57  ;;  %6248 = vmatprep.mubr.msk.bf16.mxu1 %vm1577_vm2, %v6476_v29  ;;  %v6477_v29 = vld [vmem:[%s8944_s0 + $0x368] sm:$0xff]   ;;  %v6478_v57 = vld [vmem:[%s8944_s0 + $0x6d8] sm:$0xff]  }
 0x1b5   :  { %v5922_v28 = vpop.f32.mrb[108].mxu0  ;;  %v6142_v4 = vpop.f32.mrb[108].mxu1 }
 0x1b6   :  { %v2720_v5 = vadd.f32 %v5922_v28, %v7813_v41  ;;  %v3600_v33 = vadd.f32 %v6142_v4, %v7813_v41  ;;  %v7823_v56 = vpop.f32.mrb[109].mxu0  ;;  %v7825_v17 = vpop.f32.mrb[109].mxu1 }
 0x1b7   :  { %9117 = vst [vmem:[#allocation172_spill] sm:$0xff] %v7823_v56  ;;  %9118 = vst [vmem:[#allocation173_spill] sm:$0xff] %v7825_v17  ;;  %v5923_v28 = vpop.f32.mrb[110].mxu0  ;;  %v6143_v4 = vpop.f32.mrb[110].mxu1 }
 0x1b8   :  { %v4038_v16 = vmax.f32 %v2280_v40, %v2720_v5  ;;  %v4148_v56 = vmax.f32 %v3160_v32, %v3600_v33  ;;  %v2723_v17 = vadd.f32 %v5923_v28, %v7813_v41  ;;  %v3603_v45 = vadd.f32 %v6143_v4, %v7813_v41  ;;  %v7839_v44 = vpop.f32.mrb[111].mxu0  ;;  %v7841_v21 = vpop.f32.mrb[111].mxu1 }
 0x1b9   :  { %9119 = vst [vmem:[#allocation174_spill] sm:$0xff] %v7841_v21  ;;  %v3168_v40 = vadd.f32 %v6950_v53, %v7813_v41  ;;  %v2291_v5 = vadd.f32 %v6962_v58, %v7813_v41  ;;  %v3176_v33 = vadd.f32 %v7813_v41, %v6986_v3 }
 0x1ba   :  { %v4258_v20 = vmax.f32 %v4038_v16, %v4148_v56  ;;  %v4039_v61 = vmax.f32 %v2283_v54, %v2723_v17  ;;  %v4149_v60 = vmax.f32 %v3163_v55, %v3603_v45  ;;  %6029 = vmatmul.mubr.msk.bf16.gmra.mrb[216].mxu0 %vm1577_vm2, %v6477_v29  ;;  %6249 = vmatmul.mubr.msk.bf16.gmra.mrb[216].mxu1 %vm1577_vm2, %v6478_v57 }
 0x1bb   :  { %v3171_v16 = vadd.f32 %v6964_v59, %v7813_v41  ;;  %v2296_v17 = vadd.f32 %v7813_v41, %v6984_v2  ;;  %v2299_v2 = vadd.f32 %v7813_v41, %v7004_v10 }
 0x1bc   :  { %v5476_v63 = vpack.c.bf16 %v4258_v20, %v4258_v20  ;;  %v4259_v32 = vmax.f32 %v4039_v61, %v4149_v60  ;;  %v3179_v61 = vadd.f32 %v7813_v41, %v7006_v11 }
 0x1bd   :  { %v5926_v45 = vpop.f32.mrb[112].mxu0  ;;  %v6146_v56 = vpop.f32.mrb[112].mxu1 }
 0x1be   :  { %4809 = vst.msk [vmem:[%s8946_s3] sm:$0xf] %vm4808_vm3, %v5476_v63  ;;  %v5477_v52 = vpack.c.bf16 %v4259_v32, %v4259_v32  ;;  %v2736_v53 = vadd.f32 %v5926_v45, %v7813_v41  ;;  %v3616_v58 = vadd.f32 %v6146_v56, %v7813_v41  ;;  %v2727_v60 = vpop.f32.mrb[113].mxu0  ;;  %v3607_v59 = vpop.f32.mrb[113].mxu1 }
 0x1bf   :  { %v2728_v3 = vadd.f32 %v7813_v41, %v2727_v60  ;;  %v3608_v20 = vadd.f32 %v7813_v41, %v3607_v59  ;;  %v5927_v29 = vpop.f32.mrb[114].mxu0  ;;  %v6147_v57 = vpop.f32.mrb[114].mxu1  ;;  %v2304_v60 = vadd.f32 %v6980_v0, %v7813_v41  ;;  %v2312_v0 = vadd.f32 %v7813_v41, %v7016_v14 }
 0x1c0   :  { %4810 = vst.msk [vmem:[%s8946_s3 + $0x4] sm:$0xf] %vm4808_vm3, %v5477_v52  ;;  %v4042_v54 = vmax.f32 %v2296_v17, %v2736_v53  ;;  %v4152_v55 = vmax.f32 %v3176_v33, %v3616_v58  ;;  %v2739_v28 = vadd.f32 %v5927_v29, %v7813_v41  ;;  %v3619_v10 = vadd.f32 %v6147_v57, %v7813_v41  ;;  %v2730_v4 = vpop.f32.mrb[115].mxu0  ;;  %v3610_v63 = vpop.f32.mrb[115].mxu1 }
 0x1c1   :  { %v4040_v11 = vmax.f32 %v2288_v62, %v2728_v3  ;;  %v4150_v32 = vmax.f32 %v3168_v40, %v3608_v20  ;;  %v2731_v45 = vadd.f32 %v7813_v41, %v2730_v4  ;;  %v3611_v56 = vadd.f32 %v7813_v41, %v3610_v63 }
 0x1c2   :  { %v4262_v59 = vmax.f32 %v4042_v54, %v4152_v55  ;;  %v4043_v21 = vmax.f32 %v2299_v2, %v2739_v28  ;;  %v4153_v52 = vmax.f32 %v3179_v61, %v3619_v10  ;;  %v3184_v17 = vadd.f32 %v6982_v1, %v7813_v41 }
 0x1c3   :  { %v4260_v33 = vmax.f32 %v4040_v11, %v4150_v32  ;;  %v4041_v53 = vmax.f32 %v2291_v5, %v2731_v45  ;;  %v4151_v58 = vmax.f32 %v3171_v16, %v3611_v56  ;;  %v2307_v62 = vadd.f32 %v6994_v6, %v7813_v41 }
 0x1c4   :  { %v3187_v40 = vadd.f32 %v6996_v7, %v7813_v41  ;;  %v5480_v3 = vpack.c.bf16 %v4262_v59, %v4262_v59  ;;  %v4263_v20 = vmax.f32 %v4043_v21, %v4153_v52  ;;  %v3192_v2 = vadd.f32 %v7813_v41, %v7018_v15 }
 0x1c5   :  { %v5478_v61 = vpack.c.bf16 %v4260_v33, %v4260_v33  ;;  %v4261_v29 = vmax.f32 %v4041_v53, %v4151_v58  ;;  %v5930_v1 = vpop.f32.mrb[116].mxu0  ;;  %v6150_v57 = vpop.f32.mrb[116].mxu1  ;;  %v2315_v5 = vadd.f32 %v7813_v41, %v7036_v22  ;;  %v3195_v15 = vadd.f32 %v7813_v41, %v7038_v23 }
 0x1c6   :  { %4813 = vst.msk [vmem:[%s8946_s3 + $0x10] sm:$0xf] %vm4808_vm3, %v5480_v3  ;;  %v5481_v6 = vpack.c.bf16 %v4263_v20, %v4263_v20  ;;  %v2752_v7 = vadd.f32 %v5930_v1, %v7813_v41  ;;  %v3632_v14 = vadd.f32 %v6150_v57, %v7813_v41  ;;  %v2743_v21 = vpop.f32.mrb[117].mxu0  ;;  %v3623_v16 = vpop.f32.mrb[117].mxu1  ;;  %v2320_v53 = vadd.f32 %v7012_v12, %v7813_v41 }
 0x1c7   :  { %4811 = vst.msk [vmem:[%s8946_s3 + $0x8] sm:$0xf] %vm4808_vm3, %v5478_v61  ;;  %v5479_v22 = vpack.c.bf16 %v4261_v29, %v4261_v29  ;;  %v2744_v54 = vadd.f32 %v7813_v41, %v2743_v21  ;;  %v3624_v55 = vadd.f32 %v7813_v41, %v3623_v16  ;;  %v5931_v28 = vpop.f32.mrb[118].mxu0  ;;  %v6151_v10 = vpop.f32.mrb[118].mxu1  ;;  %v2328_v12 = vadd.f32 %v7813_v41, %v7048_v26 }
 0x1c8   :  { %4814 = vst.msk [vmem:[%s8946_s3 + $0x14] sm:$0xf] %vm4808_vm3, %v5481_v6  ;;  %v4046_v4 = vmax.f32 %v2312_v0, %v2752_v7  ;;  %v4156_v63 = vmax.f32 %v3192_v2, %v3632_v14  ;;  %v2755_v23 = vadd.f32 %v5931_v28, %v7813_v41  ;;  %v3635_v11 = vadd.f32 %v6151_v10, %v7813_v41  ;;  %v2746_v32 = vpop.f32.mrb[119].mxu0  ;;  %v3626_v45 = vpop.f32.mrb[119].mxu1 }
 0x1c9   :  { %4812 = vst.msk [vmem:[%s8946_s3 + $0xc] sm:$0xf] %vm4808_vm3, %v5479_v22  ;;  %v4044_v56 = vmax.f32 %v2304_v60, %v2744_v54  ;;  %v4154_v59 = vmax.f32 %v3184_v17, %v3624_v55  ;;  %v2747_v52 = vadd.f32 %v7813_v41, %v2746_v32  ;;  %v3627_v33 = vadd.f32 %v7813_v41, %v3626_v45 }
 0x1ca   :  { %v4266_v58 = vmax.f32 %v4046_v4, %v4156_v63  ;;  %v4047_v3 = vmax.f32 %v2315_v5, %v2755_v23  ;;  %v4157_v20 = vmax.f32 %v3195_v15, %v3635_v11  ;;  %v3200_v0 = vadd.f32 %v7014_v13, %v7813_v41 }
 0x1cb   :  { %v4264_v2 = vmax.f32 %v4044_v56, %v4154_v59  ;;  %v4045_v61 = vmax.f32 %v2307_v62, %v2747_v52  ;;  %v4155_v29 = vmax.f32 %v3187_v40, %v3627_v33  ;;  %v2323_v60 = vadd.f32 %v7026_v18, %v7813_v41 }
 0x1cc   :  { %v3203_v17 = vadd.f32 %v7028_v19, %v7813_v41  ;;  %v5484_v1 = vpack.c.bf16 %v4266_v58, %v4266_v58  ;;  %v4267_v57 = vmax.f32 %v4047_v3, %v4157_v20  ;;  %v3208_v5 = vadd.f32 %v7813_v41, %v7050_v27 }
 0x1cd   :  { %v5482_v6 = vpack.c.bf16 %v4264_v2, %v4264_v2  ;;  %v4265_v7 = vmax.f32 %v4045_v61, %v4155_v29  ;;  %v5934_v13 = vpop.f32.mrb[120].mxu0  ;;  %v6154_v14 = vpop.f32.mrb[120].mxu1  ;;  %v2331_v62 = vadd.f32 %v7813_v41, %v7068_v34  ;;  %v3211_v27 = vadd.f32 %v7813_v41, %v7070_v35 }
 0x1ce   :  { %4817 = vst.msk [vmem:[%s8946_s3 + $0x20] sm:$0xf] %vm4808_vm3, %v5484_v1  ;;  %v5485_v18 = vpack.c.bf16 %v4267_v57, %v4267_v57  ;;  %v2768_v19 = vadd.f32 %v5934_v13, %v7813_v41  ;;  %v3648_v26 = vadd.f32 %v6154_v14, %v7813_v41  ;;  %v2759_v40 = vpop.f32.mrb[121].mxu0  ;;  %v3639_v21 = vpop.f32.mrb[121].mxu1  ;;  %v2336_v56 = vadd.f32 %v7044_v24, %v7813_v41 }
 0x1cf   :  { %4815 = vst.msk [vmem:[%s8946_s3 + $0x18] sm:$0xf] %vm4808_vm3, %v5482_v6  ;;  %v5483_v34 = vpack.c.bf16 %v4265_v7, %v4265_v7  ;;  %v2760_v16 = vadd.f32 %v7813_v41, %v2759_v40  ;;  %v3640_v15 = vadd.f32 %v7813_v41, %v3639_v21  ;;  %v5935_v22 = vpop.f32.mrb[122].mxu0  ;;  %v6155_v54 = vpop.f32.mrb[122].mxu1  ;;  %v3216_v58 = vadd.f32 %v7046_v25, %v7813_v41 }
 0x1d0   :  { %4818 = vst.msk [vmem:[%s8946_s3 + $0x24] sm:$0xf] %vm4808_vm3, %v5485_v18  ;;  %v4050_v55 = vmax.f32 %v2328_v12, %v2768_v19  ;;  %v4160_v28 = vmax.f32 %v3208_v5, %v3648_v26  ;;  %v2771_v35 = vadd.f32 %v5935_v22, %v7813_v41  ;;  %v3651_v10 = vadd.f32 %v6155_v54, %v7813_v41  ;;  %v2762_v4 = vpop.f32.mrb[123].mxu0  ;;  %v3642_v63 = vpop.f32.mrb[123].mxu1 }
 0x1d1   :  { %4816 = vst.msk [vmem:[%s8946_s3 + $0x1c] sm:$0xf] %vm4808_vm3, %v5483_v34  ;;  %v4048_v23 = vmax.f32 %v2320_v53, %v2760_v16  ;;  %v4158_v11 = vmax.f32 %v3200_v0, %v3640_v15  ;;  %v2763_v32 = vadd.f32 %v7813_v41, %v2762_v4  ;;  %v3643_v45 = vadd.f32 %v7813_v41, %v3642_v63 }
 0x1d2   :  { %v4270_v59 = vmax.f32 %v4050_v55, %v4160_v28  ;;  %v4051_v52 = vmax.f32 %v2331_v62, %v2771_v35  ;;  %v4161_v33 = vmax.f32 %v3211_v27, %v3651_v10  ;;  %v2339_v53 = vadd.f32 %v7058_v30, %v7813_v41 }
 0x1d3   :  { %v4268_v3 = vmax.f32 %v4048_v23, %v4158_v11  ;;  %v4049_v20 = vmax.f32 %v2323_v60, %v2763_v32  ;;  %v4159_v2 = vmax.f32 %v3203_v17, %v3643_v45  ;;  %v3219_v0 = vadd.f32 %v7060_v31, %v7813_v41 }
 0x1d4   :  { %v5488_v61 = vpack.c.bf16 %v4270_v59, %v4270_v59  ;;  %v4271_v29 = vmax.f32 %v4051_v52, %v4161_v33  ;;  %v2344_v24 = vadd.f32 %v7813_v41, %v7080_v38  ;;  %v3224_v1 = vadd.f32 %v7813_v41, %v7082_v39 }
 0x1d5   :  { %v5486_v57 = vpack.c.bf16 %v4268_v3, %v4268_v3  ;;  %v4269_v12 = vmax.f32 %v4049_v20, %v4159_v2  ;;  %v5938_v25 = vpop.f32.mrb[124].mxu0  ;;  %v6158_v5 = vpop.f32.mrb[124].mxu1  ;;  %v2347_v60 = vadd.f32 %v7813_v41, %v7100_v46  ;;  %v3227_v39 = vadd.f32 %v7813_v41, %v7102_v47 }
 0x1d6   :  { %4821 = vst.msk [vmem:[%s8946_s3 + $0x30] sm:$0xf] %vm4808_vm3, %v5488_v61  ;;  %v5489_v30 = vpack.c.bf16 %v4271_v29, %v4271_v29  ;;  %v2784_v31 = vadd.f32 %v5938_v25, %v7813_v41  ;;  %v3664_v38 = vadd.f32 %v6158_v5, %v7813_v41  ;;  %v2775_v17 = vpop.f32.mrb[125].mxu0  ;;  %v3655_v6 = vpop.f32.mrb[125].mxu1  ;;  %v2352_v22 = vadd.f32 %v7076_v36, %v7813_v41 }
 0x1d7   :  { %4819 = vst.msk [vmem:[%s8946_s3 + $0x28] sm:$0xf] %vm4808_vm3, %v5486_v57  ;;  %v5487_v46 = vpack.c.bf16 %v4269_v12, %v4269_v12  ;;  %v2776_v7 = vadd.f32 %v7813_v41, %v2775_v17  ;;  %v3656_v13 = vadd.f32 %v7813_v41, %v3655_v6  ;;  %v5939_v14 = vpop.f32.mrb[126].mxu0  ;;  %v6159_v62 = vpop.f32.mrb[126].mxu1  ;;  %v3232_v35 = vadd.f32 %v7078_v37, %v7813_v41 }
 0x1d8   :  { %4822 = vst.msk [vmem:[%s8946_s3 + $0x34] sm:$0xf] %vm4808_vm3, %v5489_v30  ;;  %v4054_v18 = vmax.f32 %v2344_v24, %v2784_v31  ;;  %v4164_v19 = vmax.f32 %v3224_v1, %v3664_v38  ;;  %v2787_v47 = vadd.f32 %v5939_v14, %v7813_v41  ;;  %v3667_v26 = vadd.f32 %v6159_v62, %v7813_v41  ;;  %v2778_v40 = vpop.f32.mrb[127].mxu0  ;;  %v3658_v21 = vpop.f32.mrb[127].mxu1  ;;  %v9120_v14 = vld [vmem:[#allocation2_spill] sm:$0xff] }
 0x1d9   :  { %4820 = vst.msk [vmem:[%s8946_s3 + $0x2c] sm:$0xf] %vm4808_vm3, %v5487_v46  ;;  %v4052_v27 = vmax.f32 %v2336_v56, %v2776_v7  ;;  %v4162_v34 = vmax.f32 %v3216_v58, %v3656_v13  ;;  %v2779_v16 = vadd.f32 %v7813_v41, %v2778_v40  ;;  %v3659_v15 = vadd.f32 %v7813_v41, %v3658_v21  ;;  %v9122_v40 = vld [vmem:[#allocation6_spill] sm:$0xff]  ;;  %v9123_v21 = vld [vmem:[#allocation7_spill] sm:$0xff] }
 0x1da   :  { %v4274_v54 = vmax.f32 %v4054_v18, %v4164_v19  ;;  %v4055_v55 = vmax.f32 %v2347_v60, %v2787_v47  ;;  %v4165_v28 = vmax.f32 %v3227_v39, %v3667_v26  ;;  %v2355_v23 = vadd.f32 %v7090_v42, %v7813_v41  ;;  %v9121_v18 = vld [vmem:[#allocation3_spill] sm:$0xff] }
 0x1db   :  { %v4272_v10 = vmax.f32 %v4052_v27, %v4162_v34  ;;  %v4053_v4 = vmax.f32 %v2339_v53, %v2779_v16  ;;  %v4163_v63 = vmax.f32 %v3219_v0, %v3659_v15  ;;  %v3235_v11 = vadd.f32 %v7092_v43, %v7813_v41 }
 0x1dc   :  { %v5492_v32 = vpack.c.bf16 %v4274_v54, %v4274_v54  ;;  %v4275_v45 = vmax.f32 %v4055_v55, %v4165_v28  ;;  %v2360_v36 = vadd.f32 %v7813_v41, %v7112_v50  ;;  %v3240_v56 = vadd.f32 %v7813_v41, %v7114_v51 }
 0x1dd   :  { %v5490_v59 = vpack.c.bf16 %v4272_v10, %v4272_v10  ;;  %v4273_v52 = vmax.f32 %v4053_v4, %v4163_v63  ;;  %v5942_v37 = vpop.f32.mrb[128].mxu0  ;;  %v6162_v33 = vpop.f32.mrb[128].mxu1  ;;  %v2363_v58 = vadd.f32 %v7813_v41, %v7132_v8  ;;  %v3243_v51 = vadd.f32 %v7813_v41, %v7134_v9  ;;  %v9125_v63 = vld [vmem:[#allocation11_spill] sm:$0xff] }
 0x1de   :  { %4825 = vst.msk [vmem:[%s8946_s3 + $0x40] sm:$0xf] %vm4808_vm3, %v5492_v32  ;;  %v5493_v42 = vpack.c.bf16 %v4275_v45, %v4275_v45  ;;  %v2800_v43 = vadd.f32 %v5942_v37, %v7813_v41  ;;  %v3680_v50 = vadd.f32 %v6162_v33, %v7813_v41  ;;  %v2791_v3 = vpop.f32.mrb[129].mxu0  ;;  %v3671_v20 = vpop.f32.mrb[129].mxu1  ;;  %v2368_v31 = vadd.f32 %v7108_v48, %v7813_v41 }
 0x1df   :  { %4823 = vst.msk [vmem:[%s8946_s3 + $0x38] sm:$0xf] %vm4808_vm3, %v5490_v59  ;;  %v5491_v8 = vpack.c.bf16 %v4273_v52, %v4273_v52  ;;  %v2792_v2 = vadd.f32 %v7813_v41, %v2791_v3  ;;  %v3672_v53 = vadd.f32 %v7813_v41, %v3671_v20  ;;  %v5943_v0 = vpop.f32.mrb[130].mxu0  ;;  %v6163_v61 = vpop.f32.mrb[130].mxu1  ;;  %v3248_v39 = vadd.f32 %v7110_v49, %v7813_v41 }
 0x1e0   :  { %4826 = vst.msk [vmem:[%s8946_s3 + $0x44] sm:$0xf] %vm4808_vm3, %v5493_v42  ;;  %v4058_v29 = vmax.f32 %v2360_v36, %v2800_v43  ;;  %v4168_v24 = vmax.f32 %v3240_v56, %v3680_v50  ;;  %v2803_v9 = vadd.f32 %v5943_v0, %v7813_v41  ;;  %v3683_v1 = vadd.f32 %v6163_v61, %v7813_v41  ;;  %v2794_v57 = vpop.f32.mrb[131].mxu0  ;;  %v3674_v12 = vpop.f32.mrb[131].mxu1  ;;  %v9127_v61 = vld [vmem:[#allocation5_spill] sm:$0xff] }
 0x1e1   :  { %4824 = vst.msk [vmem:[%s8946_s3 + $0x3c] sm:$0xf] %vm4808_vm3, %v5491_v8  ;;  %v4056_v25 = vmax.f32 %v2352_v22, %v2792_v2  ;;  %v4166_v5 = vmax.f32 %v3232_v35, %v3672_v53  ;;  %v2795_v60 = vadd.f32 %v7813_v41, %v2794_v57  ;;  %v3675_v30 = vadd.f32 %v7813_v41, %v3674_v12  ;;  %v9124_v22 = vld [vmem:[#allocation10_spill] sm:$0xff]  ;;  %v9128_v57 = vld [vmem:[#allocation8_spill] sm:$0xff] }
 0x1e2   :  { %v4278_v38 = vmax.f32 %v4058_v29, %v4168_v24  ;;  %v4059_v17 = vmax.f32 %v2363_v58, %v2803_v9  ;;  %v4169_v6 = vmax.f32 %v3243_v51, %v3683_v1  ;;  %v2371_v62 = vadd.f32 %v9120_v14, %v7813_v41  ;;  %v9126_v51 = vld [vmem:[#allocation4_spill] sm:$0xff]  ;;  %v9132_v14 = vld [vmem:[#allocation18_spill] sm:$0xff] }
 0x1e3   :  { %v4276_v46 = vmax.f32 %v4056_v25, %v4166_v5  ;;  %v4057_v7 = vmax.f32 %v2355_v23, %v2795_v60  ;;  %v4167_v13 = vmax.f32 %v3235_v11, %v3675_v30  ;;  %v3251_v19 = vadd.f32 %v9121_v18, %v7813_v41  ;;  %v9129_v25 = vld [vmem:[#allocation9_spill] sm:$0xff] }
 0x1e4   :  { %v5496_v47 = vpack.c.bf16 %v4278_v38, %v4278_v38  ;;  %v4279_v26 = vmax.f32 %v4059_v17, %v4169_v6  ;;  %v2376_v48 = vadd.f32 %v7813_v41, %v9122_v40  ;;  %v3256_v27 = vadd.f32 %v7813_v41, %v9123_v21  ;;  %v9131_v17 = vld [vmem:[#allocation15_spill] sm:$0xff] }
 0x1e5   :  { %v5494_v34 = vpack.c.bf16 %v4276_v46, %v4276_v46  ;;  %v4277_v16 = vmax.f32 %v4057_v7, %v4167_v13  ;;  %v5946_v49 = vpop.f32.mrb[132].mxu0  ;;  %v6166_v15 = vpop.f32.mrb[132].mxu1  ;;  %v2379_v54 = vadd.f32 %v7813_v41, %v9124_v22  ;;  %v3259_v23 = vadd.f32 %v7813_v41, %v9125_v63 }
 0x1e6   :  { %4829 = vst.msk [vmem:[%s8946_s3 + $0x50] sm:$0xf] %vm4808_vm3, %v5496_v47  ;;  %v5497_v55 = vpack.c.bf16 %v4279_v26, %v4279_v26  ;;  %v2816_v28 = vadd.f32 %v5946_v49, %v7813_v41  ;;  %v3696_v35 = vadd.f32 %v6166_v15, %v7813_v41  ;;  %v2807_v10 = vpop.f32.mrb[133].mxu0  ;;  %v3687_v4 = vpop.f32.mrb[133].mxu1  ;;  %v2384_v8 = vadd.f32 %v9126_v51, %v7813_v41 }
 0x1e7   :  { %4827 = vst.msk [vmem:[%s8946_s3 + $0x48] sm:$0xf] %vm4808_vm3, %v5494_v34  ;;  %v5495_v11 = vpack.c.bf16 %v4277_v16, %v4277_v16  ;;  %v2808_v32 = vadd.f32 %v7813_v41, %v2807_v10  ;;  %v3688_v45 = vadd.f32 %v7813_v41, %v3687_v4  ;;  %v5947_v36 = vpop.f32.mrb[134].mxu0  ;;  %v6167_v56 = vpop.f32.mrb[134].mxu1  ;;  %v3264_v29 = vadd.f32 %v9127_v61, %v7813_v41 }
 0x1e8   :  { %4830 = vst.msk [vmem:[%s8946_s3 + $0x54] sm:$0xf] %vm4808_vm3, %v5497_v55  ;;  %v4062_v59 = vmax.f32 %v2376_v48, %v2816_v28  ;;  %v4172_v52 = vmax.f32 %v3256_v27, %v3696_v35  ;;  %v2819_v37 = vadd.f32 %v5947_v36, %v7813_v41  ;;  %v3699_v33 = vadd.f32 %v6167_v56, %v7813_v41  ;;  %v2810_v58 = vpop.f32.mrb[135].mxu0  ;;  %v3690_v42 = vpop.f32.mrb[135].mxu1  ;;  %v9133_v48 = vld [vmem:[#allocation19_spill] sm:$0xff] }
 0x1e9   :  { %4828 = vst.msk [vmem:[%s8946_s3 + $0x4c] sm:$0xf] %vm4808_vm3, %v5495_v11  ;;  %v4060_v43 = vmax.f32 %v2368_v31, %v2808_v32  ;;  %v4170_v50 = vmax.f32 %v3248_v39, %v3688_v45  ;;  %v2811_v3 = vadd.f32 %v7813_v41, %v2810_v58  ;;  %v3691_v20 = vadd.f32 %v7813_v41, %v3690_v42  ;;  %v9130_v31 = vld [vmem:[#allocation14_spill] sm:$0xff]  ;;  %v9134_v32 = vld [vmem:[#allocation12_spill] sm:$0xff] }
 0x1ea   :  { %v4282_v2 = vmax.f32 %v4062_v59, %v4172_v52  ;;  %v4063_v53 = vmax.f32 %v2379_v54, %v2819_v37  ;;  %v4173_v0 = vmax.f32 %v3259_v23, %v3699_v33  ;;  %v2387_v12 = vadd.f32 %v9128_v57, %v7813_v41  ;;  %v9135_v52 = vld [vmem:[#allocation13_spill] sm:$0xff]  ;;  %v9140_v57 = vld [vmem:[#allocation26_spill] sm:$0xff] }
 0x1eb   :  { %v4280_v24 = vmax.f32 %v4060_v43, %v4170_v50  ;;  %v4061_v9 = vmax.f32 %v2371_v62, %v2811_v3  ;;  %v4171_v1 = vmax.f32 %v3251_v19, %v3691_v20  ;;  %v3267_v5 = vadd.f32 %v9129_v25, %v7813_v41  ;;  %v9136_v43 = vld [vmem:[#allocation16_spill] sm:$0xff]  ;;  %v9137_v3 = vld [vmem:[#allocation17_spill] sm:$0xff] }
 0x1ec   :  { %v5500_v60 = vpack.c.bf16 %v4282_v2, %v4282_v2  ;;  %v4283_v30 = vmax.f32 %v4063_v53, %v4173_v0  ;;  %v2392_v38 = vadd.f32 %v7813_v41, %v9130_v31  ;;  %v3272_v6 = vadd.f32 %v7813_v41, %v9131_v17  ;;  %v9138_v2 = vld [vmem:[#allocation22_spill] sm:$0xff]  ;;  %v9139_v0 = vld [vmem:[#allocation23_spill] sm:$0xff] }
 0x1ed   :  { %v5498_v39 = vpack.c.bf16 %v4280_v24, %v4280_v24  ;;  %v4281_v46 = vmax.f32 %v4061_v9, %v4171_v1  ;;  %v5950_v7 = vpop.f32.mrb[136].mxu0  ;;  %v6170_v13 = vpop.f32.mrb[136].mxu1  ;;  %v2395_v62 = vadd.f32 %v7813_v41, %v9132_v14  ;;  %v3275_v21 = vadd.f32 %v7813_v41, %v9133_v48 }
 0x1ee   :  { %4833 = vst.msk [vmem:[%s8946_s3 + $0x60] sm:$0xf] %vm4808_vm3, %v5500_v60  ;;  %v5501_v18 = vpack.c.bf16 %v4283_v30, %v4283_v30  ;;  %v2832_v19 = vadd.f32 %v5950_v7, %v7813_v41  ;;  %v3712_v47 = vadd.f32 %v6170_v13, %v7813_v41  ;;  %v2823_v26 = vpop.f32.mrb[137].mxu0  ;;  %v3703_v40 = vpop.f32.mrb[137].mxu1  ;;  %v2400_v45 = vadd.f32 %v9134_v32, %v7813_v41 }
 0x1ef   :  { %4831 = vst.msk [vmem:[%s8946_s3 + $0x58] sm:$0xf] %vm4808_vm3, %v5498_v39  ;;  %v5499_v27 = vpack.c.bf16 %v4281_v46, %v4281_v46  ;;  %v2824_v34 = vadd.f32 %v7813_v41, %v2823_v26  ;;  %v3704_v16 = vadd.f32 %v7813_v41, %v3703_v40  ;;  %v5951_v49 = vpop.f32.mrb[138].mxu0  ;;  %v6171_v15 = vpop.f32.mrb[138].mxu1  ;;  %v3280_v37 = vadd.f32 %v9135_v52, %v7813_v41 }
 0x1f0   :  { %4834 = vst.msk [vmem:[%s8946_s3 + $0x64] sm:$0xf] %vm4808_vm3, %v5501_v18  ;;  %v4066_v22 = vmax.f32 %v2392_v38, %v2832_v19  ;;  %v4176_v54 = vmax.f32 %v3272_v6, %v3712_v47  ;;  %v2835_v55 = vadd.f32 %v5951_v49, %v7813_v41  ;;  %v3715_v28 = vadd.f32 %v6171_v15, %v7813_v41  ;;  %v2826_v35 = vpop.f32.mrb[139].mxu0  ;;  %v3706_v10 = vpop.f32.mrb[139].mxu1  ;;  %v9141_v38 = vld [vmem:[#allocation27_spill] sm:$0xff] }
 0x1f1   :  { %4832 = vst.msk [vmem:[%s8946_s3 + $0x5c] sm:$0xf] %vm4808_vm3, %v5499_v27  ;;  %v4064_v4 = vmax.f32 %v2384_v8, %v2824_v34  ;;  %v4174_v63 = vmax.f32 %v3264_v29, %v3704_v16  ;;  %v2827_v23 = vadd.f32 %v7813_v41, %v2826_v35  ;;  %v3707_v11 = vadd.f32 %v7813_v41, %v3706_v10  ;;  %v9142_v34 = vld [vmem:[#allocation20_spill] sm:$0xff] }
 0x1f2   :  { %v4286_v36 = vmax.f32 %v4066_v22, %v4176_v54  ;;  %v4067_v56 = vmax.f32 %v2395_v62, %v2835_v55  ;;  %v4177_v59 = vmax.f32 %v3275_v21, %v3715_v28  ;;  %v2403_v50 = vadd.f32 %v9136_v43, %v7813_v41  ;;  %v9143_v54 = vld [vmem:[#allocation21_spill] sm:$0xff]  ;;  %v9148_v43 = vld [vmem:[#allocation34_spill] sm:$0xff] }
 0x1f3   :  { %v4284_v33 = vmax.f32 %v4064_v4, %v4174_v63  ;;  %v4065_v58 = vmax.f32 %v2387_v12, %v2827_v23  ;;  %v4175_v42 = vmax.f32 %v3267_v5, %v3707_v11  ;;  %v3283_v20 = vadd.f32 %v9137_v3, %v7813_v41  ;;  %v9144_v4 = vld [vmem:[#allocation24_spill] sm:$0xff]  ;;  %v9145_v23 = vld [vmem:[#allocation25_spill] sm:$0xff] }
 0x1f4   :  { %v5504_v51 = vpack.c.bf16 %v4286_v36, %v4286_v36  ;;  %v4287_v8 = vmax.f32 %v4067_v56, %v4177_v59  ;;  %v2408_v53 = vadd.f32 %v7813_v41, %v9138_v2  ;;  %v3288_v61 = vadd.f32 %v7813_v41, %v9139_v0  ;;  %v9146_v36 = vld [vmem:[#allocation30_spill] sm:$0xff]  ;;  %v9147_v59 = vld [vmem:[#allocation31_spill] sm:$0xff] }
 0x1f5   :  { %v5502_v29 = vpack.c.bf16 %v4284_v33, %v4284_v33  ;;  %v4285_v24 = vmax.f32 %v4065_v58, %v4175_v42  ;;  %v5954_v9 = vpop.f32.mrb[140].mxu0  ;;  %v6174_v1 = vpop.f32.mrb[140].mxu1  ;;  %v2411_v12 = vadd.f32 %v7813_v41, %v9140_v57  ;;  %v3291_v17 = vadd.f32 %v7813_v41, %v9141_v38 }
 0x1f6   :  { %4837 = vst.msk [vmem:[%s8946_s3 + $0x70] sm:$0xf] %vm4808_vm3, %v5504_v51  ;;  %v5505_v25 = vpack.c.bf16 %v4287_v8, %v4287_v8  ;;  %v2848_v5 = vadd.f32 %v5954_v9, %v7813_v41  ;;  %v3728_v60 = vadd.f32 %v6174_v1, %v7813_v41  ;;  %v2839_v30 = vpop.f32.mrb[141].mxu0  ;;  %v3719_v31 = vpop.f32.mrb[141].mxu1  ;;  %v2416_v16 = vadd.f32 %v9142_v34, %v7813_v41 }
 0x1f7   :  { %4835 = vst.msk [vmem:[%s8946_s3 + $0x68] sm:$0xf] %vm4808_vm3, %v5502_v29  ;;  %v5503_v6 = vpack.c.bf16 %v4285_v24, %v4285_v24  ;;  %v2840_v39 = vadd.f32 %v7813_v41, %v2839_v30  ;;  %v3720_v46 = vadd.f32 %v7813_v41, %v3719_v31  ;;  %v5955_v7 = vpop.f32.mrb[142].mxu0  ;;  %v6175_v13 = vpop.f32.mrb[142].mxu1  ;;  %v3296_v55 = vadd.f32 %v9143_v54, %v7813_v41 }
 0x1f8   :  { %4838 = vst.msk [vmem:[%s8946_s3 + $0x74] sm:$0xf] %vm4808_vm3, %v5505_v25  ;;  %v4070_v14 = vmax.f32 %v2408_v53, %v2848_v5  ;;  %v4180_v62 = vmax.f32 %v3288_v61, %v3728_v60  ;;  %v2851_v18 = vadd.f32 %v5955_v7, %v7813_v41  ;;  %v3731_v19 = vadd.f32 %v6175_v13, %v7813_v41  ;;  %v2842_v47 = vpop.f32.mrb[143].mxu0  ;;  %v3722_v26 = vpop.f32.mrb[143].mxu1  ;;  %v9149_v53 = vld [vmem:[#allocation35_spill] sm:$0xff] }
 0x1f9   :  { %4836 = vst.msk [vmem:[%s8946_s3 + $0x6c] sm:$0xf] %vm4808_vm3, %v5503_v6  ;;  %v4068_v40 = vmax.f32 %v2400_v45, %v2840_v39  ;;  %v4178_v48 = vmax.f32 %v3280_v37, %v3720_v46  ;;  %v2843_v21 = vadd.f32 %v7813_v41, %v2842_v47  ;;  %v3723_v27 = vadd.f32 %v7813_v41, %v3722_v26  ;;  %v9150_v39 = vld [vmem:[#allocation28_spill] sm:$0xff] }
 0x1fa   :  { %v4290_v49 = vmax.f32 %v4070_v14, %v4180_v62  ;;  %v4071_v15 = vmax.f32 %v2411_v12, %v2851_v18  ;;  %v4181_v22 = vmax.f32 %v3291_v17, %v3731_v19  ;;  %v2419_v63 = vadd.f32 %v9144_v4, %v7813_v41  ;;  %v9151_v62 = vld [vmem:[#allocation29_spill] sm:$0xff]  ;;  %v9156_v4 = vld [vmem:[#allocation42_spill] sm:$0xff] }
 0x1fb   :  { %v4288_v28 = vmax.f32 %v4068_v40, %v4178_v48  ;;  %v4069_v35 = vmax.f32 %v2403_v50, %v2843_v21  ;;  %v4179_v10 = vmax.f32 %v3283_v20, %v3723_v27  ;;  %v3299_v11 = vadd.f32 %v9145_v23, %v7813_v41  ;;  %v9152_v40 = vld [vmem:[#allocation32_spill] sm:$0xff]  ;;  %v9153_v21 = vld [vmem:[#allocation33_spill] sm:$0xff] }
 0x1fc   :  { %v5508_v32 = vpack.c.bf16 %v4290_v49, %v4290_v49  ;;  %v4291_v45 = vmax.f32 %v4071_v15, %v4181_v22  ;;  %v2424_v56 = vadd.f32 %v7813_v41, %v9146_v36  ;;  %v3304_v52 = vadd.f32 %v7813_v41, %v9147_v59  ;;  %v9154_v49 = vld [vmem:[#allocation38_spill] sm:$0xff]  ;;  %v9155_v22 = vld [vmem:[#allocation39_spill] sm:$0xff] }
 0x1fd   :  { %v5506_v37 = vpack.c.bf16 %v4288_v28, %v4288_v28  ;;  %v4289_v33 = vmax.f32 %v4069_v35, %v4179_v10  ;;  %v5958_v58 = vpop.f32.mrb[144].mxu0  ;;  %v6178_v42 = vpop.f32.mrb[144].mxu1  ;;  %v2427_v50 = vadd.f32 %v7813_v41, %v9148_v43  ;;  %v3307_v0 = vadd.f32 %v7813_v41, %v9149_v53 }
 0x1fe   :  { %4841 = vst.msk [vmem:[%s8946_s3 + $0x80] sm:$0xf] %vm4808_vm3, %v5508_v32  ;;  %v5509_v3 = vpack.c.bf16 %v4291_v45, %v4291_v45  ;;  %v2864_v20 = vadd.f32 %v5958_v58, %v7813_v41  ;;  %v3744_v51 = vadd.f32 %v6178_v42, %v7813_v41  ;;  %v2855_v8 = vpop.f32.mrb[145].mxu0  ;;  %v3735_v2 = vpop.f32.mrb[145].mxu1  ;;  %v2432_v46 = vadd.f32 %v9150_v39, %v7813_v41 }
 0x1ff   :  { %4839 = vst.msk [vmem:[%s8946_s3 + $0x78] sm:$0xf] %vm4808_vm3, %v5506_v37  ;;  %v5507_v61 = vpack.c.bf16 %v4289_v33, %v4289_v33  ;;  %v2856_v29 = vadd.f32 %v7813_v41, %v2855_v8  ;;  %v3736_v24 = vadd.f32 %v7813_v41, %v3735_v2  ;;  %v5959_v9 = vpop.f32.mrb[146].mxu0  ;;  %v6179_v1 = vpop.f32.mrb[146].mxu1  ;;  %v3312_v18 = vadd.f32 %v9151_v62, %v7813_v41 }
 0x200   :  { %4842 = vst.msk [vmem:[%s8946_s3 + $0x84] sm:$0xf] %vm4808_vm3, %v5509_v3  ;;  %v4074_v57 = vmax.f32 %v2424_v56, %v2864_v20  ;;  %v4184_v12 = vmax.f32 %v3304_v52, %v3744_v51  ;;  %v2867_v25 = vadd.f32 %v5959_v9, %v7813_v41  ;;  %v3747_v5 = vadd.f32 %v6179_v1, %v7813_v41  ;;  %v2858_v60 = vpop.f32.mrb[147].mxu0  ;;  %v3738_v30 = vpop.f32.mrb[147].mxu1  ;;  %v9157_v56 = vld [vmem:[#allocation43_spill] sm:$0xff] }
 0x201   :  { %4840 = vst.msk [vmem:[%s8946_s3 + $0x7c] sm:$0xf] %vm4808_vm3, %v5507_v61  ;;  %v4072_v31 = vmax.f32 %v2416_v16, %v2856_v29  ;;  %v4182_v38 = vmax.f32 %v3296_v55, %v3736_v24  ;;  %v2859_v17 = vadd.f32 %v7813_v41, %v2858_v60  ;;  %v3739_v6 = vadd.f32 %v7813_v41, %v3738_v30  ;;  %v9158_v29 = vld [vmem:[#allocation36_spill] sm:$0xff] }
 0x202   :  { %v4294_v7 = vmax.f32 %v4074_v57, %v4184_v12  ;;  %v4075_v13 = vmax.f32 %v2427_v50, %v2867_v25  ;;  %v4185_v14 = vmax.f32 %v3307_v0, %v3747_v5  ;;  %v2435_v48 = vadd.f32 %v9152_v40, %v7813_v41  ;;  %v9159_v12 = vld [vmem:[#allocation37_spill] sm:$0xff]  ;;  %v9164_v40 = vld [vmem:[#allocation50_spill] sm:$0xff] }
 0x203   :  { %v4292_v19 = vmax.f32 %v4072_v31, %v4182_v38  ;;  %v4073_v47 = vmax.f32 %v2419_v63, %v2859_v17  ;;  %v4183_v26 = vmax.f32 %v3299_v11, %v3739_v6  ;;  %v3315_v27 = vadd.f32 %v9153_v21, %v7813_v41  ;;  %v9160_v31 = vld [vmem:[#allocation40_spill] sm:$0xff]  ;;  %v9161_v17 = vld [vmem:[#allocation41_spill] sm:$0xff] }
 0x204   :  { %v5512_v34 = vpack.c.bf16 %v4294_v7, %v4294_v7  ;;  %v4295_v16 = vmax.f32 %v4075_v13, %v4185_v14  ;;  %v2440_v15 = vadd.f32 %v7813_v41, %v9154_v49  ;;  %v3320_v54 = vadd.f32 %v7813_v41, %v9155_v22  ;;  %v9162_v7 = vld [vmem:[#allocation46_spill] sm:$0xff]  ;;  %v9163_v14 = vld [vmem:[#allocation47_spill] sm:$0xff] }
 0x205   :  { %v5510_v55 = vpack.c.bf16 %v4292_v19, %v4292_v19  ;;  %v4293_v28 = vmax.f32 %v4073_v47, %v4183_v26  ;;  %v5962_v35 = vpop.f32.mrb[148].mxu0  ;;  %v6182_v10 = vpop.f32.mrb[148].mxu1  ;;  %v2443_v63 = vadd.f32 %v7813_v41, %v9156_v4  ;;  %v3323_v59 = vadd.f32 %v7813_v41, %v9157_v56 }
 0x206   :  { %4845 = vst.msk [vmem:[%s8946_s3 + $0x90] sm:$0xf] %vm4808_vm3, %v5512_v34  ;;  %v5513_v23 = vpack.c.bf16 %v4295_v16, %v4295_v16  ;;  %v2880_v11 = vadd.f32 %v5962_v35, %v7813_v41  ;;  %v3760_v32 = vadd.f32 %v6182_v10, %v7813_v41  ;;  %v2871_v45 = vpop.f32.mrb[149].mxu0  ;;  %v3751_v36 = vpop.f32.mrb[149].mxu1  ;;  %v2448_v24 = vadd.f32 %v9158_v29, %v7813_v41 }
 0x207   :  { %4843 = vst.msk [vmem:[%s8946_s3 + $0x88] sm:$0xf] %vm4808_vm3, %v5510_v55  ;;  %v5511_v52 = vpack.c.bf16 %v4293_v28, %v4293_v28  ;;  %v2872_v37 = vadd.f32 %v7813_v41, %v2871_v45  ;;  %v3752_v33 = vadd.f32 %v7813_v41, %v3751_v36  ;;  %v5963_v58 = vpop.f32.mrb[150].mxu0  ;;  %v6183_v42 = vpop.f32.mrb[150].mxu1  ;;  %v3328_v25 = vadd.f32 %v9159_v12, %v7813_v41  ;;  %v9171_v12 = vld [vmem:[#allocation55_spill] sm:$0xff] }
 0x208   :  { %4846 = vst.msk [vmem:[%s8946_s3 + $0x94] sm:$0xf] %vm4808_vm3, %v5513_v23  ;;  %v4078_v43 = vmax.f32 %v2440_v15, %v2880_v11  ;;  %v4188_v50 = vmax.f32 %v3320_v54, %v3760_v32  ;;  %v2883_v3 = vadd.f32 %v5963_v58, %v7813_v41  ;;  %v3763_v20 = vadd.f32 %v6183_v42, %v7813_v41  ;;  %v2874_v51 = vpop.f32.mrb[151].mxu0  ;;  %v3754_v8 = vpop.f32.mrb[151].mxu1  ;;  %v9165_v15 = vld [vmem:[#allocation51_spill] sm:$0xff] }
 0x209   :  { %4844 = vst.msk [vmem:[%s8946_s3 + $0x8c] sm:$0xf] %vm4808_vm3, %v5511_v52  ;;  %v4076_v2 = vmax.f32 %v2432_v46, %v2872_v37  ;;  %v4186_v53 = vmax.f32 %v3312_v18, %v3752_v33  ;;  %v2875_v0 = vadd.f32 %v7813_v41, %v2874_v51  ;;  %v3755_v61 = vadd.f32 %v7813_v41, %v3754_v8  ;;  %v9166_v37 = vld [vmem:[#allocation44_spill] sm:$0xff] }
 0x20a   :  { %v4298_v9 = vmax.f32 %v4078_v43, %v4188_v50  ;;  %v4079_v1 = vmax.f32 %v2443_v63, %v2883_v3  ;;  %v4189_v57 = vmax.f32 %v3323_v59, %v3763_v20  ;;  %v2451_v38 = vadd.f32 %v9160_v31, %v7813_v41  ;;  %v9167_v50 = vld [vmem:[#allocation45_spill] sm:$0xff]  ;;  %v9172_v31 = vld [vmem:[#allocation58_spill] sm:$0xff] }
 0x20b   :  { %v4296_v5 = vmax.f32 %v4076_v2, %v4186_v53  ;;  %v4077_v60 = vmax.f32 %v2435_v48, %v2875_v0  ;;  %v4187_v30 = vmax.f32 %v3315_v27, %v3755_v61  ;;  %v3331_v6 = vadd.f32 %v9161_v17, %v7813_v41  ;;  %v9168_v2 = vld [vmem:[#allocation48_spill] sm:$0xff]  ;;  %v8286_v0 = vld [vmem:[%s8945_s2] ss:$0 sm:$0xff]  ;;  %v9169_v61 = vld [vmem:[#allocation49_spill] sm:$0xff] }
 0x20c   :  { %v5516_v39 = vpack.c.bf16 %v4298_v9, %v4298_v9  ;;  %v4299_v46 = vmax.f32 %v4079_v1, %v4189_v57  ;;  %v2456_v13 = vadd.f32 %v7813_v41, %v9162_v7  ;;  %v3336_v62 = vadd.f32 %v7813_v41, %v9163_v14  ;;  %v9170_v1 = vld [vmem:[#allocation54_spill] sm:$0xff] }
 0x20d   :  { %v5514_v18 = vpack.c.bf16 %v4296_v5, %v4296_v5  ;;  %v4297_v19 = vmax.f32 %v4077_v60, %v4187_v30  ;;  %v5966_v47 = vpop.f32.mrb[152].mxu0  ;;  %v6186_v26 = vpop.f32.mrb[152].mxu1  ;;  %v2459_v48 = vadd.f32 %v7813_v41, %v9164_v40  ;;  %v3339_v22 = vadd.f32 %v7813_v41, %v9165_v15 }
 0x20e   :  { %4849 = vst.msk [vmem:[%s8946_s3 + $0xa0] sm:$0xf] %vm4808_vm3, %v5516_v39  ;;  %v5517_v21 = vpack.c.bf16 %v4299_v46, %v4299_v46  ;;  %v2896_v27 = vadd.f32 %v5966_v47, %v7813_v41  ;;  %v3776_v34 = vadd.f32 %v6186_v26, %v7813_v41  ;;  %v2887_v16 = vpop.f32.mrb[153].mxu0  ;;  %v3767_v49 = vpop.f32.mrb[153].mxu1  ;;  %v2464_v33 = vadd.f32 %v9166_v37, %v7813_v41 }
 0x20f   :  { %4847 = vst.msk [vmem:[%s8946_s3 + $0x98] sm:$0xf] %vm4808_vm3, %v5514_v18  ;;  %v5515_v54 = vpack.c.bf16 %v4297_v19, %v4297_v19  ;;  %v2888_v55 = vadd.f32 %v7813_v41, %v2887_v16  ;;  %v3768_v28 = vadd.f32 %v7813_v41, %v3767_v49  ;;  %v5967_v35 = vpop.f32.mrb[154].mxu0  ;;  %v6187_v10 = vpop.f32.mrb[154].mxu1  ;;  %v3344_v3 = vadd.f32 %v9167_v50, %v7813_v41 }
 0x210   :  { %4850 = vst.msk [vmem:[%s8946_s3 + $0xa4] sm:$0xf] %vm4808_vm3, %v5517_v21  ;;  %v4082_v4 = vmax.f32 %v2456_v13, %v2896_v27  ;;  %v4192_v63 = vmax.f32 %v3336_v62, %v3776_v34  ;;  %v2899_v23 = vadd.f32 %v5967_v35, %v7813_v41  ;;  %v3779_v11 = vadd.f32 %v6187_v10, %v7813_v41  ;;  %v2890_v32 = vpop.f32.mrb[155].mxu0  ;;  %v3770_v45 = vpop.f32.mrb[155].mxu1  ;;  %v9173_v13 = vld [vmem:[#allocation59_spill] sm:$0xff] }
 0x211   :  { %4848 = vst.msk [vmem:[%s8946_s3 + $0x9c] sm:$0xf] %vm4808_vm3, %v5515_v54  ;;  %v4080_v36 = vmax.f32 %v2448_v24, %v2888_v55  ;;  %v4190_v56 = vmax.f32 %v3328_v25, %v3768_v28  ;;  %v2891_v59 = vadd.f32 %v7813_v41, %v2890_v32  ;;  %v3771_v52 = vadd.f32 %v7813_v41, %v3770_v45  ;;  %v9174_v55 = vld [vmem:[#allocation52_spill] sm:$0xff] }
 0x212   :  { %v4302_v58 = vmax.f32 %v4082_v4, %v4192_v63  ;;  %v4083_v42 = vmax.f32 %v2459_v48, %v2899_v23  ;;  %v4193_v43 = vmax.f32 %v3339_v22, %v3779_v11  ;;  %v2467_v53 = vadd.f32 %v9168_v2, %v7813_v41  ;;  %v9175_v63 = vld [vmem:[#allocation53_spill] sm:$0xff]  ;;  %v9180_v2 = vld [vmem:[#allocation66_spill] sm:$0xff] }
 0x213   :  { %v4300_v20 = vmax.f32 %v4080_v36, %v4190_v56  ;;  %v4081_v51 = vmax.f32 %v2451_v38, %v2891_v59  ;;  %v4191_v8 = vmax.f32 %v3331_v6, %v3771_v52  ;;  %v3347_v29 = vadd.f32 %v8286_v0, %v9169_v61  ;;  %v9176_v36 = vld [vmem:[#allocation56_spill] sm:$0xff]  ;;  %v9177_v59 = vld [vmem:[#allocation57_spill] sm:$0xff] }
 0x214   :  { %v5520_v24 = vpack.c.bf16 %v4302_v58, %v4302_v58  ;;  %v4303_v9 = vmax.f32 %v4083_v42, %v4193_v43  ;;  %v2472_v57 = vadd.f32 %v8286_v0, %v9170_v1  ;;  %v3352_v25 = vadd.f32 %v8286_v0, %v9171_v12  ;;  %v9178_v58 = vld [vmem:[#allocation62_spill] sm:$0xff]  ;;  %v9179_v43 = vld [vmem:[#allocation63_spill] sm:$0xff] }
 0x215   :  { %v5518_v5 = vpack.c.bf16 %v4300_v20, %v4300_v20  ;;  %v4301_v60 = vmax.f32 %v4081_v51, %v4191_v8  ;;  %v5970_v30 = vpop.f32.mrb[156].mxu0  ;;  %v6190_v41 = vpop.f32.mrb[156].mxu1  ;;  %v2475_v38 = vadd.f32 %v8286_v0, %v9172_v31  ;;  %v3355_v14 = vadd.f32 %v8286_v0, %v9173_v13 }
 0x216   :  { %4853 = vst.msk [vmem:[%s8946_s3 + $0xb0] sm:$0xf] %vm4808_vm3, %v5520_v24  ;;  %v5521_v17 = vpack.c.bf16 %v4303_v9, %v4303_v9  ;;  %v2912_v6 = vadd.f32 %v8286_v0, %v5970_v30  ;;  %v3792_v39 = vadd.f32 %v8286_v0, %v6190_v41  ;;  %v2903_v46 = vpop.f32.mrb[157].mxu0  ;;  %v3783_v7 = vpop.f32.mrb[157].mxu1  ;;  %v2480_v28 = vadd.f32 %v8286_v0, %v9174_v55 }
 0x217   :  { %4851 = vst.msk [vmem:[%s8946_s3 + $0xa8] sm:$0xf] %vm4808_vm3, %v5518_v5  ;;  %v5519_v62 = vpack.c.bf16 %v4301_v60, %v4301_v60  ;;  %v2904_v18 = vadd.f32 %v8286_v0, %v2903_v46  ;;  %v3784_v19 = vadd.f32 %v8286_v0, %v3783_v7  ;;  %v5971_v47 = vpop.f32.mrb[158].mxu0  ;;  %v6191_v26 = vpop.f32.mrb[158].mxu1  ;;  %v3360_v23 = vadd.f32 %v8286_v0, %v9175_v63 }
 0x218   :  { %4854 = vst.msk [vmem:[%s8946_s3 + $0xb4] sm:$0xf] %vm4808_vm3, %v5521_v17  ;;  %v4086_v40 = vmax.f32 %v2472_v57, %v2912_v6  ;;  %v4196_v48 = vmax.f32 %v3352_v25, %v3792_v39  ;;  %v2915_v21 = vadd.f32 %v8286_v0, %v5971_v47  ;;  %v3795_v27 = vadd.f32 %v8286_v0, %v6191_v26  ;;  %v2906_v34 = vpop.f32.mrb[159].mxu0  ;;  %v3786_v16 = vpop.f32.mrb[159].mxu1  ;;  %v9181_v57 = vld [vmem:[#allocation67_spill] sm:$0xff] }
 0x219   :  { %4852 = vst.msk [vmem:[%s8946_s3 + $0xac] sm:$0xf] %vm4808_vm3, %v5519_v62  ;;  %v4084_v49 = vmax.f32 %v2464_v33, %v2904_v18  ;;  %v4194_v15 = vmax.f32 %v3344_v3, %v3784_v19  ;;  %v2907_v22 = vadd.f32 %v8286_v0, %v2906_v34  ;;  %v3787_v54 = vadd.f32 %v8286_v0, %v3786_v16  ;;  %v9182_v18 = vld [vmem:[#allocation60_spill] sm:$0xff] }
 0x21a   :  { %v4306_v35 = vmax.f32 %v4086_v40, %v4196_v48  ;;  %v4087_v10 = vmax.f32 %v2475_v38, %v2915_v21  ;;  %v4197_v4 = vmax.f32 %v3355_v14, %v3795_v27  ;;  %v2483_v56 = vadd.f32 %v8286_v0, %v9176_v36  ;;  %v9183_v48 = vld [vmem:[#allocation61_spill] sm:$0xff]  ;;  %v9188_v36 = vld [vmem:[#allocation74_spill] sm:$0xff] }
 0x21b   :  { %v4304_v11 = vmax.f32 %v4084_v49, %v4194_v15  ;;  %v4085_v32 = vmax.f32 %v2467_v53, %v2907_v22  ;;  %v4195_v45 = vmax.f32 %v3347_v29, %v3787_v54  ;;  %v3363_v52 = vadd.f32 %v8286_v0, %v9177_v59  ;;  %v9184_v49 = vld [vmem:[#allocation64_spill] sm:$0xff]  ;;  %v9185_v22 = vld [vmem:[#allocation65_spill] sm:$0xff] }
 0x21c   :  { %v5524_v37 = vpack.c.bf16 %v4306_v35, %v4306_v35  ;;  %v4307_v33 = vmax.f32 %v4087_v10, %v4197_v4  ;;  %v2488_v42 = vadd.f32 %v8286_v0, %v9178_v58  ;;  %v3368_v50 = vadd.f32 %v8286_v0, %v9179_v43  ;;  %v9186_v35 = vld [vmem:[#allocation70_spill] sm:$0xff]  ;;  %v9187_v4 = vld [vmem:[#allocation71_spill] sm:$0xff] }
 0x21d   :  { %v5522_v3 = vpack.c.bf16 %v4304_v11, %v4304_v11  ;;  %v4305_v20 = vmax.f32 %v4085_v32, %v4195_v45  ;;  %v5974_v51 = vpop.f32.mrb[160].mxu0  ;;  %v6194_v8 = vpop.f32.mrb[160].mxu1  ;;  %v2491_v53 = vadd.f32 %v8286_v0, %v9180_v2  ;;  %v3371_v12 = vadd.f32 %v8286_v0, %v9181_v57 }
 0x21e   :  { %4857 = vst.msk [vmem:[%s8946_s3 + $0xc0] sm:$0xf] %vm4808_vm3, %v5524_v37  ;;  %v5525_v61 = vpack.c.bf16 %v4307_v33, %v4307_v33  ;;  %v2928_v29 = vadd.f32 %v8286_v0, %v5974_v51  ;;  %v3808_v24 = vadd.f32 %v8286_v0, %v6194_v8  ;;  %v2919_v9 = vpop.f32.mrb[161].mxu0  ;;  %v3799_v1 = vpop.f32.mrb[161].mxu1  ;;  %v2496_v19 = vadd.f32 %v8286_v0, %v9182_v18 }
 0x21f   :  { %4855 = vst.msk [vmem:[%s8946_s3 + $0xb8] sm:$0xf] %vm4808_vm3, %v5522_v3  ;;  %v5523_v25 = vpack.c.bf16 %v4305_v20, %v4305_v20  ;;  %v2920_v5 = vadd.f32 %v8286_v0, %v2919_v9  ;;  %v3800_v60 = vadd.f32 %v8286_v0, %v3799_v1  ;;  %v5975_v30 = vpop.f32.mrb[162].mxu0  ;;  %v6195_v41 = vpop.f32.mrb[162].mxu1  ;;  %v3376_v21 = vadd.f32 %v8286_v0, %v9183_v48 }
 0x220   :  { %4858 = vst.msk [vmem:[%s8946_s3 + $0xc4] sm:$0xf] %vm4808_vm3, %v5525_v61  ;;  %v4090_v31 = vmax.f32 %v2488_v42, %v2928_v29  ;;  %v4200_v38 = vmax.f32 %v3368_v50, %v3808_v24  ;;  %v2931_v17 = vadd.f32 %v8286_v0, %v5975_v30  ;;  %v3811_v6 = vadd.f32 %v8286_v0, %v6195_v41  ;;  %v2922_v39 = vpop.f32.mrb[163].mxu0  ;;  %v3802_v46 = vpop.f32.mrb[163].mxu1  ;;  %v9189_v42 = vld [vmem:[#allocation75_spill] sm:$0xff] }
 0x221   :  { %4856 = vst.msk [vmem:[%s8946_s3 + $0xbc] sm:$0xf] %vm4808_vm3, %v5523_v25  ;;  %v4088_v7 = vmax.f32 %v2480_v28, %v2920_v5  ;;  %v4198_v13 = vmax.f32 %v3360_v23, %v3800_v60  ;;  %v2923_v14 = vadd.f32 %v8286_v0, %v2922_v39  ;;  %v3803_v62 = vadd.f32 %v8286_v0, %v3802_v46  ;;  %v9190_v5 = vld [vmem:[#allocation68_spill] sm:$0xff] }
 0x222   :  { %v4310_v47 = vmax.f32 %v4090_v31, %v4200_v38  ;;  %v4091_v26 = vmax.f32 %v2491_v53, %v2931_v17  ;;  %v4201_v40 = vmax.f32 %v3371_v12, %v3811_v6  ;;  %v2499_v15 = vadd.f32 %v8286_v0, %v9184_v49  ;;  %v9191_v38 = vld [vmem:[#allocation69_spill] sm:$0xff]  ;;  %v9196_v49 = vld [vmem:[#allocation82_spill] sm:$0xff] }
 0x223   :  { %v4308_v27 = vmax.f32 %v4088_v7, %v4198_v13  ;;  %v4089_v34 = vmax.f32 %v2483_v56, %v2923_v14  ;;  %v4199_v16 = vmax.f32 %v3363_v52, %v3803_v62  ;;  %v3379_v54 = vadd.f32 %v8286_v0, %v9185_v22  ;;  %v9192_v7 = vld [vmem:[#allocation72_spill] sm:$0xff]  ;;  %v9193_v14 = vld [vmem:[#allocation73_spill] sm:$0xff] }
 0x224   :  { %v5528_v55 = vpack.c.bf16 %v4310_v47, %v4310_v47  ;;  %v4311_v28 = vmax.f32 %v4091_v26, %v4201_v40  ;;  %v2504_v10 = vadd.f32 %v8286_v0, %v9186_v35  ;;  %v3384_v63 = vadd.f32 %v8286_v0, %v9187_v4  ;;  %v9194_v47 = vld [vmem:[#allocation78_spill] sm:$0xff]  ;;  %v9195_v40 = vld [vmem:[#allocation79_spill] sm:$0xff] }
 0x225   :  { %v5526_v23 = vpack.c.bf16 %v4308_v27, %v4308_v27  ;;  %v4309_v11 = vmax.f32 %v4089_v34, %v4199_v16  ;;  %v5978_v32 = vpop.f32.mrb[164].mxu0  ;;  %v6198_v45 = vpop.f32.mrb[164].mxu1  ;;  %v2507_v56 = vadd.f32 %v8286_v0, %v9188_v36  ;;  %v3387_v43 = vadd.f32 %v8286_v0, %v9189_v42 }
 0x226   :  { %4861 = vst.msk [vmem:[%s8946_s3 + $0xd0] sm:$0xf] %vm4808_vm3, %v5528_v55  ;;  %v5529_v59 = vpack.c.bf16 %v4311_v28, %v4311_v28  ;;  %v2944_v52 = vadd.f32 %v8286_v0, %v5978_v32  ;;  %v3824_v37 = vadd.f32 %v8286_v0, %v6198_v45  ;;  %v2935_v33 = vpop.f32.mrb[165].mxu0  ;;  %v3815_v58 = vpop.f32.mrb[165].mxu1  ;;  %v2512_v60 = vadd.f32 %v8286_v0, %v9190_v5 }
 0x227   :  { %4859 = vst.msk [vmem:[%s8946_s3 + $0xc8] sm:$0xf] %vm4808_vm3, %v5526_v23  ;;  %v5527_v50 = vpack.c.bf16 %v4309_v11, %v4309_v11  ;;  %v2936_v3 = vadd.f32 %v8286_v0, %v2935_v33  ;;  %v3816_v20 = vadd.f32 %v8286_v0, %v3815_v58  ;;  %v5979_v51 = vpop.f32.mrb[166].mxu0  ;;  %v6199_v8 = vpop.f32.mrb[166].mxu1  ;;  %v3392_v17 = vadd.f32 %v8286_v0, %v9191_v38 }
 0x228   :  { %4862 = vst.msk [vmem:[%s8946_s3 + $0xd4] sm:$0xf] %vm4808_vm3, %v5529_v59  ;;  %v4094_v2 = vmax.f32 %v2504_v10, %v2944_v52  ;;  %v4204_v53 = vmax.f32 %v3384_v63, %v3824_v37  ;;  %v2947_v61 = vadd.f32 %v8286_v0, %v5979_v51  ;;  %v3827_v29 = vadd.f32 %v8286_v0, %v6199_v8  ;;  %v2938_v24 = vpop.f32.mrb[167].mxu0  ;;  %v3818_v9 = vpop.f32.mrb[167].mxu1  ;;  %v9197_v10 = vld [vmem:[#allocation83_spill] sm:$0xff] }
 0x229   :  { %4860 = vst.msk [vmem:[%s8946_s3 + $0xcc] sm:$0xf] %vm4808_vm3, %v5527_v50  ;;  %v4092_v1 = vmax.f32 %v2496_v19, %v2936_v3  ;;  %v4202_v57 = vmax.f32 %v3376_v21, %v3816_v20  ;;  %v2939_v12 = vadd.f32 %v8286_v0, %v2938_v24  ;;  %v3819_v25 = vadd.f32 %v8286_v0, %v3818_v9  ;;  %v9198_v3 = vld [vmem:[#allocation76_spill] sm:$0xff] }
 0x22a   :  { %v4314_v30 = vmax.f32 %v4094_v2, %v4204_v53  ;;  %v4095_v41 = vmax.f32 %v2507_v56, %v2947_v61  ;;  %v4205_v31 = vmax.f32 %v3387_v43, %v3827_v29  ;;  %v2515_v13 = vadd.f32 %v8286_v0, %v9192_v7  ;;  %v9199_v53 = vld [vmem:[#allocation77_spill] sm:$0xff]  ;;  %v9204_v7 = vld [vmem:[#allocation90_spill] sm:$0xff] }
 0x22b   :  { %v4312_v6 = vmax.f32 %v4092_v1, %v4202_v57  ;;  %v4093_v39 = vmax.f32 %v2499_v15, %v2939_v12  ;;  %v4203_v46 = vmax.f32 %v3379_v54, %v3819_v25  ;;  %v3395_v62 = vadd.f32 %v8286_v0, %v9193_v14  ;;  %v9200_v1 = vld [vmem:[#allocation80_spill] sm:$0xff]  ;;  %v9201_v12 = vld [vmem:[#allocation81_spill] sm:$0xff] }
 0x22c   :  { %v5532_v18 = vpack.c.bf16 %v4314_v30, %v4314_v30  ;;  %v4315_v19 = vmax.f32 %v4095_v41, %v4205_v31  ;;  %v2520_v26 = vadd.f32 %v8286_v0, %v9194_v47  ;;  %v3400_v48 = vadd.f32 %v8286_v0, %v9195_v40  ;;  %v9202_v30 = vld [vmem:[#allocation86_spill] sm:$0xff]  ;;  %v9203_v31 = vld [vmem:[#allocation87_spill] sm:$0xff] }
 0x22d   :  { %v5530_v21 = vpack.c.bf16 %v4312_v6, %v4312_v6  ;;  %v4313_v27 = vmax.f32 %v4093_v39, %v4203_v46  ;;  %v5982_v34 = vpop.f32.mrb[168].mxu0  ;;  %v6202_v16 = vpop.f32.mrb[168].mxu1  ;;  %v2523_v15 = vadd.f32 %v8286_v0, %v9196_v49  ;;  %v3403_v4 = vadd.f32 %v8286_v0, %v9197_v10 }
 0x22e   :  { %4865 = vst.msk [vmem:[%s8946_s3 + $0xe0] sm:$0xf] %vm4808_vm3, %v5532_v18  ;;  %v5533_v22 = vpack.c.bf16 %v4315_v19, %v4315_v19  ;;  %v2960_v54 = vadd.f32 %v8286_v0, %v5982_v34  ;;  %v3840_v55 = vadd.f32 %v8286_v0, %v6202_v16  ;;  %v2951_v28 = vpop.f32.mrb[169].mxu0  ;;  %v3831_v35 = vpop.f32.mrb[169].mxu1  ;;  %v2528_v20 = vadd.f32 %v8286_v0, %v9198_v3 }
 0x22f   :  { %4863 = vst.msk [vmem:[%s8946_s3 + $0xd8] sm:$0xf] %vm4808_vm3, %v5530_v21  ;;  %v5531_v63 = vpack.c.bf16 %v4313_v27, %v4313_v27  ;;  %v2952_v23 = vadd.f32 %v8286_v0, %v2951_v28  ;;  %v3832_v11 = vadd.f32 %v8286_v0, %v3831_v35  ;;  %v5983_v32 = vpop.f32.mrb[170].mxu0  ;;  %v6203_v45 = vpop.f32.mrb[170].mxu1  ;;  %v3408_v61 = vadd.f32 %v8286_v0, %v9199_v53 }
 0x230   :  { %4866 = vst.msk [vmem:[%s8946_s3 + $0xe4] sm:$0xf] %vm4808_vm3, %v5533_v22  ;;  %v4098_v36 = vmax.f32 %v2520_v26, %v2960_v54  ;;  %v4208_v56 = vmax.f32 %v3400_v48, %v3840_v55  ;;  %v2963_v59 = vadd.f32 %v8286_v0, %v5983_v32  ;;  %v3843_v52 = vadd.f32 %v8286_v0, %v6203_v45  ;;  %v2954_v37 = vpop.f32.mrb[171].mxu0  ;;  %v3834_v33 = vpop.f32.mrb[171].mxu1  ;;  %v9205_v26 = vld [vmem:[#allocation91_spill] sm:$0xff] }
 0x231   :  { %4864 = vst.msk [vmem:[%s8946_s3 + $0xdc] sm:$0xf] %vm4808_vm3, %v5531_v63  ;;  %v4096_v58 = vmax.f32 %v2512_v60, %v2952_v23  ;;  %v4206_v42 = vmax.f32 %v3392_v17, %v3832_v11  ;;  %v2955_v43 = vadd.f32 %v8286_v0, %v2954_v37  ;;  %v3835_v50 = vadd.f32 %v8286_v0, %v3834_v33  ;;  %v9206_v23 = vld [vmem:[#allocation84_spill] sm:$0xff] }
 0x232   :  { %v4318_v51 = vmax.f32 %v4098_v36, %v4208_v56  ;;  %v4099_v8 = vmax.f32 %v2523_v15, %v2963_v59  ;;  %v4209_v2 = vmax.f32 %v3403_v4, %v3843_v52  ;;  %v2531_v57 = vadd.f32 %v8286_v0, %v9200_v1  ;;  %v9207_v56 = vld [vmem:[#allocation85_spill] sm:$0xff]  ;;  %v9212_v1 = vld [vmem:[#allocation98_spill] sm:$0xff] }
 0x233   :  { %v4316_v29 = vmax.f32 %v4096_v58, %v4206_v42  ;;  %v4097_v24 = vmax.f32 %v2515_v13, %v2955_v43  ;;  %v4207_v9 = vmax.f32 %v3395_v62, %v3835_v50  ;;  %v3411_v25 = vadd.f32 %v8286_v0, %v9201_v12  ;;  %v9208_v58 = vld [vmem:[#allocation88_spill] sm:$0xff]  ;;  %v9209_v43 = vld [vmem:[#allocation89_spill] sm:$0xff] }
 0x234   :  { %v5536_v5 = vpack.c.bf16 %v4318_v51, %v4318_v51  ;;  %v4319_v60 = vmax.f32 %v4099_v8, %v4209_v2  ;;  %v2536_v41 = vadd.f32 %v8286_v0, %v9202_v30  ;;  %v3416_v38 = vadd.f32 %v8286_v0, %v9203_v31  ;;  %v9210_v51 = vld [vmem:[#allocation94_spill] sm:$0xff]  ;;  %v9211_v2 = vld [vmem:[#allocation95_spill] sm:$0xff] }
 0x235   :  { %v5534_v17 = vpack.c.bf16 %v4316_v29, %v4316_v29  ;;  %v4317_v6 = vmax.f32 %v4097_v24, %v4207_v9  ;;  %v5986_v39 = vpop.f32.mrb[172].mxu0  ;;  %v6206_v46 = vpop.f32.mrb[172].mxu1  ;;  %v2539_v13 = vadd.f32 %v8286_v0, %v9204_v7  ;;  %v3419_v40 = vadd.f32 %v8286_v0, %v9205_v26 }
 0x236   :  { %4869 = vst.msk [vmem:[%s8946_s3 + $0xf0] sm:$0xf] %vm4808_vm3, %v5536_v5  ;;  %v5537_v14 = vpack.c.bf16 %v4319_v60, %v4319_v60  ;;  %v2976_v62 = vadd.f32 %v8286_v0, %v5986_v39  ;;  %v3856_v18 = vadd.f32 %v8286_v0, %v6206_v46  ;;  %v2967_v19 = vpop.f32.mrb[173].mxu0  ;;  %v3847_v47 = vpop.f32.mrb[173].mxu1  ;;  %v2544_v11 = vadd.f32 %v8286_v0, %v9206_v23 }
 0x237   :  { %4867 = vst.msk [vmem:[%s8946_s3 + $0xe8] sm:$0xf] %vm4808_vm3, %v5534_v17  ;;  %v5535_v48 = vpack.c.bf16 %v4317_v6, %v4317_v6  ;;  %v2968_v21 = vadd.f32 %v8286_v0, %v2967_v19  ;;  %v3848_v27 = vadd.f32 %v8286_v0, %v3847_v47  ;;  %v5987_v34 = vpop.f32.mrb[174].mxu0  ;;  %v6207_v16 = vpop.f32.mrb[174].mxu1  ;;  %v3424_v59 = vadd.f32 %v8286_v0, %v9207_v56 }
 0x238   :  { %4870 = vst.msk [vmem:[%s8946_s3 + $0xf4] sm:$0xf] %vm4808_vm3, %v5537_v14  ;;  %v4102_v49 = vmax.f32 %v2536_v41, %v2976_v62  ;;  %v4212_v15 = vmax.f32 %v3416_v38, %v3856_v18  ;;  %v2979_v22 = vadd.f32 %v8286_v0, %v5987_v34  ;;  %v3859_v54 = vadd.f32 %v8286_v0, %v6207_v16  ;;  %v2970_v55 = vpop.f32.mrb[175].mxu0  ;;  %v3850_v28 = vpop.f32.mrb[175].mxu1  ;;  %v9213_v41 = vld [vmem:[#allocation99_spill] sm:$0xff] }
 0x239   :  { %4868 = vst.msk [vmem:[%s8946_s3 + $0xec] sm:$0xf] %vm4808_vm3, %v5535_v48  ;;  %v4100_v35 = vmax.f32 %v2528_v20, %v2968_v21  ;;  %v4210_v10 = vmax.f32 %v3408_v61, %v3848_v27  ;;  %v2971_v4 = vadd.f32 %v8286_v0, %v2970_v55  ;;  %v3851_v63 = vadd.f32 %v8286_v0, %v3850_v28  ;;  %v9214_v21 = vld [vmem:[#allocation92_spill] sm:$0xff] }
 0x23a   :  { %v4322_v32 = vmax.f32 %v4102_v49, %v4212_v15  ;;  %v4103_v45 = vmax.f32 %v2539_v13, %v2979_v22  ;;  %v4213_v36 = vmax.f32 %v3419_v40, %v3859_v54  ;;  %v2547_v42 = vadd.f32 %v8286_v0, %v9208_v58  ;;  %v9215_v15 = vld [vmem:[#allocation93_spill] sm:$0xff]  ;;  %v9220_v58 = vld [vmem:[#allocation106_spill] sm:$0xff] }
 0x23b   :  { %v4320_v52 = vmax.f32 %v4100_v35, %v4210_v10  ;;  %v4101_v37 = vmax.f32 %v2531_v57, %v2971_v4  ;;  %v4211_v33 = vmax.f32 %v3411_v25, %v3851_v63  ;;  %v3427_v50 = vadd.f32 %v8286_v0, %v9209_v43  ;;  %v9216_v35 = vld [vmem:[#allocation96_spill] sm:$0xff]  ;;  %v9217_v4 = vld [vmem:[#allocation97_spill] sm:$0xff] }
 0x23c   :  { %v5540_v3 = vpack.c.bf16 %v4322_v32, %v4322_v32  ;;  %v4323_v20 = vmax.f32 %v4103_v45, %v4213_v36  ;;  %v2552_v8 = vadd.f32 %v8286_v0, %v9210_v51  ;;  %v3432_v53 = vadd.f32 %v8286_v0, %v9211_v2  ;;  %v9218_v32 = vld [vmem:[#allocation102_spill] sm:$0xff]  ;;  %v9219_v36 = vld [vmem:[#allocation103_spill] sm:$0xff] }
 0x23d   :  { %v5538_v61 = vpack.c.bf16 %v4320_v52, %v4320_v52  ;;  %v4321_v29 = vmax.f32 %v4101_v37, %v4211_v33  ;;  %v5990_v24 = vpop.f32.mrb[176].mxu0  ;;  %v6210_v9 = vpop.f32.mrb[176].mxu1  ;;  %v2555_v57 = vadd.f32 %v8286_v0, %v9212_v1  ;;  %v3435_v31 = vadd.f32 %v8286_v0, %v9213_v41 }
 0x23e   :  { %4873 = vst.msk [vmem:[%s8946_s3 + $0x100] sm:$0xf] %vm4808_vm3, %v5540_v3  ;;  %v5541_v12 = vpack.c.bf16 %v4323_v20, %v4323_v20  ;;  %v2992_v25 = vadd.f32 %v8286_v0, %v5990_v24  ;;  %v3872_v5 = vadd.f32 %v8286_v0, %v6210_v9  ;;  %v2983_v60 = vpop.f32.mrb[177].mxu0  ;;  %v3863_v30 = vpop.f32.mrb[177].mxu1  ;;  %v2560_v27 = vadd.f32 %v8286_v0, %v9214_v21 }
 0x23f   :  { %4871 = vst.msk [vmem:[%s8946_s3 + $0xf8] sm:$0xf] %vm4808_vm3, %v5538_v61  ;;  %v5539_v38 = vpack.c.bf16 %v4321_v29, %v4321_v29  ;;  %v2984_v17 = vadd.f32 %v8286_v0, %v2983_v60  ;;  %v3864_v6 = vadd.f32 %v8286_v0, %v3863_v30  ;;  %v5991_v39 = vpop.f32.mrb[178].mxu0  ;;  %v6211_v46 = vpop.f32.mrb[178].mxu1  ;;  %v3440_v22 = vadd.f32 %v8286_v0, %v9215_v15 }
 0x240   :  { %4874 = vst.msk [vmem:[%s8946_s3 + $0x104] sm:$0xf] %vm4808_vm3, %v5541_v12  ;;  %v4106_v7 = vmax.f32 %v2552_v8, %v2992_v25  ;;  %v4216_v13 = vmax.f32 %v3432_v53, %v3872_v5  ;;  %v2995_v14 = vadd.f32 %v8286_v0, %v5991_v39  ;;  %v3875_v62 = vadd.f32 %v8286_v0, %v6211_v46  ;;  %v2986_v18 = vpop.f32.mrb[179].mxu0  ;;  %v3866_v19 = vpop.f32.mrb[179].mxu1  ;;  %v9221_v8 = vld [vmem:[#allocation107_spill] sm:$0xff] }
 0x241   :  { %4872 = vst.msk [vmem:[%s8946_s3 + $0xfc] sm:$0xf] %vm4808_vm3, %v5539_v38  ;;  %v4104_v47 = vmax.f32 %v2544_v11, %v2984_v17  ;;  %v4214_v26 = vmax.f32 %v3424_v59, %v3864_v6  ;;  %v2987_v40 = vadd.f32 %v8286_v0, %v2986_v18  ;;  %v3867_v48 = vadd.f32 %v8286_v0, %v3866_v19  ;;  %v9222_v17 = vld [vmem:[#allocation100_spill] sm:$0xff] }
 0x242   :  { %v4326_v34 = vmax.f32 %v4106_v7, %v4216_v13  ;;  %v4107_v16 = vmax.f32 %v2555_v57, %v2995_v14  ;;  %v4217_v49 = vmax.f32 %v3435_v31, %v3875_v62  ;;  %v2563_v10 = vadd.f32 %v8286_v0, %v9216_v35  ;;  %v9223_v13 = vld [vmem:[#allocation101_spill] sm:$0xff]  ;;  %v9228_v35 = vld [vmem:[#allocation114_spill] sm:$0xff] }
 0x243   :  { %v4324_v54 = vmax.f32 %v4104_v47, %v4214_v26  ;;  %v4105_v55 = vmax.f32 %v2547_v42, %v2987_v40  ;;  %v4215_v28 = vmax.f32 %v3427_v50, %v3867_v48  ;;  %v3443_v63 = vadd.f32 %v8286_v0, %v9217_v4  ;;  %v9224_v47 = vld [vmem:[#allocation104_spill] sm:$0xff]  ;;  %v9225_v40 = vld [vmem:[#allocation105_spill] sm:$0xff] }
 0x244   :  { %v5544_v23 = vpack.c.bf16 %v4326_v34, %v4326_v34  ;;  %v4327_v11 = vmax.f32 %v4107_v16, %v4217_v49  ;;  %v2568_v45 = vadd.f32 %v8286_v0, %v9218_v32  ;;  %v3448_v56 = vadd.f32 %v8286_v0, %v9219_v36  ;;  %v9226_v34 = vld [vmem:[#allocation110_spill] sm:$0xff]  ;;  %v9227_v49 = vld [vmem:[#allocation111_spill] sm:$0xff] }
 0x245   :  { %v5542_v59 = vpack.c.bf16 %v4324_v54, %v4324_v54  ;;  %v4325_v52 = vmax.f32 %v4105_v55, %v4215_v28  ;;  %v5994_v37 = vpop.f32.mrb[180].mxu0  ;;  %v6214_v33 = vpop.f32.mrb[180].mxu1  ;;  %v2571_v42 = vadd.f32 %v8286_v0, %v9220_v58  ;;  %v3451_v2 = vadd.f32 %v8286_v0, %v9221_v8 }
 0x246   :  { %4877 = vst.msk [vmem:[%s8946_s3 + $0x110] sm:$0xf] %vm4808_vm3, %v5544_v23  ;;  %v5545_v43 = vpack.c.bf16 %v4327_v11, %v4327_v11  ;;  %v3008_v50 = vadd.f32 %v8286_v0, %v5994_v37  ;;  %v3888_v3 = vadd.f32 %v8286_v0, %v6214_v33  ;;  %v2999_v20 = vpop.f32.mrb[181].mxu0  ;;  %v3879_v51 = vpop.f32.mrb[181].mxu1  ;;  %v2576_v6 = vadd.f32 %v8286_v0, %v9222_v17 }
 0x247   :  { %4875 = vst.msk [vmem:[%s8946_s3 + $0x108] sm:$0xf] %vm4808_vm3, %v5542_v59  ;;  %v5543_v53 = vpack.c.bf16 %v4325_v52, %v4325_v52  ;;  %v3000_v61 = vadd.f32 %v8286_v0, %v2999_v20  ;;  %v3880_v29 = vadd.f32 %v8286_v0, %v3879_v51  ;;  %v5995_v24 = vpop.f32.mrb[182].mxu0  ;;  %v6215_v9 = vpop.f32.mrb[182].mxu1  ;;  %v3456_v14 = vadd.f32 %v8286_v0, %v9223_v13 }
 0x248   :  { %4878 = vst.msk [vmem:[%s8946_s3 + $0x114] sm:$0xf] %vm4808_vm3, %v5545_v43  ;;  %v4110_v1 = vmax.f32 %v2568_v45, %v3008_v50  ;;  %v4220_v57 = vmax.f32 %v3448_v56, %v3888_v3  ;;  %v3011_v12 = vadd.f32 %v8286_v0, %v5995_v24  ;;  %v3891_v25 = vadd.f32 %v8286_v0, %v6215_v9  ;;  %v3002_v5 = vpop.f32.mrb[183].mxu0  ;;  %v3882_v60 = vpop.f32.mrb[183].mxu1  ;;  %v9229_v45 = vld [vmem:[#allocation115_spill] sm:$0xff] }
 0x249   :  { %4876 = vst.msk [vmem:[%s8946_s3 + $0x10c] sm:$0xf] %vm4808_vm3, %v5543_v53  ;;  %v4108_v30 = vmax.f32 %v2560_v27, %v3000_v61  ;;  %v4218_v41 = vmax.f32 %v3440_v22, %v3880_v29  ;;  %v3003_v31 = vadd.f32 %v8286_v0, %v3002_v5  ;;  %v3883_v38 = vadd.f32 %v8286_v0, %v3882_v60  ;;  %v9230_v61 = vld [vmem:[#allocation108_spill] sm:$0xff] }
 0x24a   :  { %v4330_v39 = vmax.f32 %v4110_v1, %v4220_v57  ;;  %v4111_v46 = vmax.f32 %v2571_v42, %v3011_v12  ;;  %v4221_v7 = vmax.f32 %v3451_v2, %v3891_v25  ;;  %v2579_v26 = vadd.f32 %v8286_v0, %v9224_v47  ;;  %v9231_v57 = vld [vmem:[#allocation109_spill] sm:$0xff]  ;;  %v9236_v47 = vld [vmem:[#allocation122_spill] sm:$0xff] }
 0x24b   :  { %v4328_v62 = vmax.f32 %v4108_v30, %v4218_v41  ;;  %v4109_v18 = vmax.f32 %v2563_v10, %v3003_v31  ;;  %v4219_v19 = vmax.f32 %v3443_v63, %v3883_v38  ;;  %v3459_v48 = vadd.f32 %v8286_v0, %v9225_v40  ;;  %v9232_v30 = vld [vmem:[#allocation112_spill] sm:$0xff]  ;;  %v9233_v31 = vld [vmem:[#allocation113_spill] sm:$0xff] }
 0x24c   :  { %v5548_v21 = vpack.c.bf16 %v4330_v39, %v4330_v39  ;;  %v4331_v27 = vmax.f32 %v4111_v46, %v4221_v7  ;;  %v2584_v16 = vadd.f32 %v8286_v0, %v9226_v34  ;;  %v3464_v15 = vadd.f32 %v8286_v0, %v9227_v49  ;;  %v9234_v39 = vld [vmem:[#allocation118_spill] sm:$0xff]  ;;  %v9235_v7 = vld [vmem:[#allocation119_spill] sm:$0xff] }
 0x24d   :  { %v5546_v22 = vpack.c.bf16 %v4328_v62, %v4328_v62  ;;  %v4329_v54 = vmax.f32 %v4109_v18, %v4219_v19  ;;  %v5998_v55 = vpop.f32.mrb[184].mxu0  ;;  %v6218_v28 = vpop.f32.mrb[184].mxu1  ;;  %v2587_v10 = vadd.f32 %v8286_v0, %v9228_v35  ;;  %v3467_v36 = vadd.f32 %v8286_v0, %v9229_v45 }
 0x24e   :  { %4881 = vst.msk [vmem:[%s8946_s3 + $0x120] sm:$0xf] %vm4808_vm3, %v5548_v21  ;;  %v5549_v4 = vpack.c.bf16 %v4331_v27, %v4331_v27  ;;  %v3024_v63 = vadd.f32 %v8286_v0, %v5998_v55  ;;  %v3904_v23 = vadd.f32 %v8286_v0, %v6218_v28  ;;  %v3015_v11 = vpop.f32.mrb[185].mxu0  ;;  %v3895_v32 = vpop.f32.mrb[185].mxu1  ;;  %v2592_v29 = vadd.f32 %v8286_v0, %v9230_v61 }
 0x24f   :  { %4879 = vst.msk [vmem:[%s8946_s3 + $0x118] sm:$0xf] %vm4808_vm3, %v5546_v22  ;;  %v5547_v56 = vpack.c.bf16 %v4329_v54, %v4329_v54  ;;  %v3016_v59 = vadd.f32 %v8286_v0, %v3015_v11  ;;  %v3896_v52 = vadd.f32 %v8286_v0, %v3895_v32  ;;  %v5999_v37 = vpop.f32.mrb[186].mxu0  ;;  %v6219_v33 = vpop.f32.mrb[186].mxu1  ;;  %v3472_v12 = vadd.f32 %v8286_v0, %v9231_v57 }
 0x250   :  { %4882 = vst.msk [vmem:[%s8946_s3 + $0x124] sm:$0xf] %vm4808_vm3, %v5549_v4  ;;  %v4114_v58 = vmax.f32 %v2584_v16, %v3024_v63  ;;  %v4224_v42 = vmax.f32 %v3464_v15, %v3904_v23  ;;  %v3027_v43 = vadd.f32 %v8286_v0, %v5999_v37  ;;  %v3907_v50 = vadd.f32 %v8286_v0, %v6219_v33  ;;  %v3018_v3 = vpop.f32.mrb[187].mxu0  ;;  %v3898_v20 = vpop.f32.mrb[187].mxu1  ;;  %v9237_v16 = vld [vmem:[#allocation123_spill] sm:$0xff] }
 0x251   :  { %4880 = vst.msk [vmem:[%s8946_s3 + $0x11c] sm:$0xf] %vm4808_vm3, %v5547_v56  ;;  %v4112_v51 = vmax.f32 %v2576_v6, %v3016_v59  ;;  %v4222_v8 = vmax.f32 %v3456_v14, %v3896_v52  ;;  %v3019_v2 = vadd.f32 %v8286_v0, %v3018_v3  ;;  %v3899_v53 = vadd.f32 %v8286_v0, %v3898_v20  ;;  %v9238_v59 = vld [vmem:[#allocation116_spill] sm:$0xff] }
 0x252   :  { %v4334_v24 = vmax.f32 %v4114_v58, %v4224_v42  ;;  %v4115_v9 = vmax.f32 %v2587_v10, %v3027_v43  ;;  %v4225_v1 = vmax.f32 %v3467_v36, %v3907_v50  ;;  %v2595_v41 = vadd.f32 %v8286_v0, %v9232_v30  ;;  %v9239_v42 = vld [vmem:[#allocation117_spill] sm:$0xff]  ;;  %v9244_v30 = vld [vmem:[#allocation130_spill] sm:$0xff] }
 0x253   :  { %v4332_v25 = vmax.f32 %v4112_v51, %v4222_v8  ;;  %v4113_v5 = vmax.f32 %v2579_v26, %v3019_v2  ;;  %v4223_v60 = vmax.f32 %v3459_v48, %v3899_v53  ;;  %v3475_v38 = vadd.f32 %v8286_v0, %v9233_v31  ;;  %v9240_v51 = vld [vmem:[#allocation120_spill] sm:$0xff]  ;;  %v9241_v2 = vld [vmem:[#allocation121_spill] sm:$0xff] }
 0x254   :  { %v5552_v17 = vpack.c.bf16 %v4334_v24, %v4334_v24  ;;  %v4335_v6 = vmax.f32 %v4115_v9, %v4225_v1  ;;  %v2600_v46 = vadd.f32 %v8286_v0, %v9234_v39  ;;  %v3480_v13 = vadd.f32 %v8286_v0, %v9235_v7  ;;  %v9242_v24 = vld [vmem:[#allocation126_spill] sm:$0xff]  ;;  %v9243_v1 = vld [vmem:[#allocation127_spill] sm:$0xff] }
 0x255   :  { %v5550_v14 = vpack.c.bf16 %v4332_v25, %v4332_v25  ;;  %v4333_v62 = vmax.f32 %v4113_v5, %v4223_v60  ;;  %v6002_v18 = vpop.f32.mrb[188].mxu0  ;;  %v6222_v19 = vpop.f32.mrb[188].mxu1  ;;  %v2603_v26 = vadd.f32 %v8286_v0, %v9236_v47  ;;  %v3483_v49 = vadd.f32 %v8286_v0, %v9237_v16 }
 0x256   :  { %4885 = vst.msk [vmem:[%s8946_s3 + $0x130] sm:$0xf] %vm4808_vm3, %v5552_v17  ;;  %v5553_v40 = vpack.c.bf16 %v4335_v6, %v4335_v6  ;;  %v3040_v48 = vadd.f32 %v8286_v0, %v6002_v18  ;;  %v3920_v21 = vadd.f32 %v8286_v0, %v6222_v19  ;;  %v3031_v27 = vpop.f32.mrb[189].mxu0  ;;  %v3911_v34 = vpop.f32.mrb[189].mxu1  ;;  %v2608_v52 = vadd.f32 %v8286_v0, %v9238_v59 }
 0x257   :  { %4883 = vst.msk [vmem:[%s8946_s3 + $0x128] sm:$0xf] %vm4808_vm3, %v5550_v14  ;;  %v5551_v15 = vpack.c.bf16 %v4333_v62, %v4333_v62  ;;  %v3032_v22 = vadd.f32 %v8286_v0, %v3031_v27  ;;  %v3912_v54 = vadd.f32 %v8286_v0, %v3911_v34  ;;  %v6003_v55 = vpop.f32.mrb[190].mxu0  ;;  %v6223_v28 = vpop.f32.mrb[190].mxu1  ;;  %v3488_v43 = vadd.f32 %v8286_v0, %v9239_v42 }
 0x258   :  { %4886 = vst.msk [vmem:[%s8946_s3 + $0x134] sm:$0xf] %vm4808_vm3, %v5553_v40  ;;  %v4118_v35 = vmax.f32 %v2600_v46, %v3040_v48  ;;  %v4228_v10 = vmax.f32 %v3480_v13, %v3920_v21  ;;  %v3043_v4 = vadd.f32 %v8286_v0, %v6003_v55  ;;  %v3923_v63 = vadd.f32 %v8286_v0, %v6223_v28  ;;  %v3034_v23 = vpop.f32.mrb[191].mxu0  ;;  %v3914_v11 = vpop.f32.mrb[191].mxu1  ;;  %v9245_v46 = vld [vmem:[#allocation131_spill] sm:$0xff] }
 0x259   :  { %4884 = vst.msk [vmem:[%s8946_s3 + $0x12c] sm:$0xf] %vm4808_vm3, %v5551_v15  ;;  %v4116_v32 = vmax.f32 %v2592_v29, %v3032_v22  ;;  %v4226_v45 = vmax.f32 %v3472_v12, %v3912_v54  ;;  %v3035_v36 = vadd.f32 %v8286_v0, %v3034_v23  ;;  %v3915_v56 = vadd.f32 %v8286_v0, %v3914_v11  ;;  %v9246_v22 = vld [vmem:[#allocation124_spill] sm:$0xff] }
 0x25a   :  { %v4338_v37 = vmax.f32 %v4118_v35, %v4228_v10  ;;  %v4119_v33 = vmax.f32 %v2603_v26, %v3043_v4  ;;  %v4229_v58 = vmax.f32 %v3483_v49, %v3923_v63  ;;  %v2611_v8 = vadd.f32 %v8286_v0, %v9240_v51  ;;  %v9247_v10 = vld [vmem:[#allocation125_spill] sm:$0xff]  ;;  %v9252_v51 = vld [vmem:[#allocation138_spill] sm:$0xff] }
 0x25b   :  { %v4336_v50 = vmax.f32 %v4116_v32, %v4226_v45  ;;  %v4117_v3 = vmax.f32 %v2595_v41, %v3035_v36  ;;  %v4227_v20 = vmax.f32 %v3475_v38, %v3915_v56  ;;  %v3491_v53 = vadd.f32 %v8286_v0, %v9241_v2  ;;  %v9248_v32 = vld [vmem:[#allocation128_spill] sm:$0xff]  ;;  %v9249_v36 = vld [vmem:[#allocation129_spill] sm:$0xff] }
 0x25c   :  { %v5556_v61 = vpack.c.bf16 %v4338_v37, %v4338_v37  ;;  %v4339_v29 = vmax.f32 %v4119_v33, %v4229_v58  ;;  %v2616_v9 = vadd.f32 %v8286_v0, %v9242_v24  ;;  %v3496_v57 = vadd.f32 %v8286_v0, %v9243_v1  ;;  %v9250_v37 = vld [vmem:[#allocation134_spill] sm:$0xff]  ;;  %v9251_v58 = vld [vmem:[#allocation135_spill] sm:$0xff] }
 0x25d   :  { %v5554_v12 = vpack.c.bf16 %v4336_v50, %v4336_v50  ;;  %v4337_v25 = vmax.f32 %v4117_v3, %v4227_v20  ;;  %v6006_v5 = vpop.f32.mrb[192].mxu0  ;;  %v6226_v60 = vpop.f32.mrb[192].mxu1  ;;  %v2619_v41 = vadd.f32 %v8286_v0, %v9244_v30  ;;  %v3499_v7 = vadd.f32 %v8286_v0, %v9245_v46 }
 0x25e   :  { %4889 = vst.msk [vmem:[%s8946_s3 + $0x140] sm:$0xf] %vm4808_vm3, %v5556_v61  ;;  %v5557_v31 = vpack.c.bf16 %v4339_v29, %v4339_v29  ;;  %v3056_v38 = vadd.f32 %v8286_v0, %v6006_v5  ;;  %v3936_v17 = vadd.f32 %v8286_v0, %v6226_v60  ;;  %v3047_v6 = vpop.f32.mrb[193].mxu0  ;;  %v3927_v39 = vpop.f32.mrb[193].mxu1  ;;  %v2624_v54 = vadd.f32 %v8286_v0, %v9246_v22 }
 0x25f   :  { %4887 = vst.msk [vmem:[%s8946_s3 + $0x138] sm:$0xf] %vm4808_vm3, %v5554_v12  ;;  %v5555_v13 = vpack.c.bf16 %v4337_v25, %v4337_v25  ;;  %v3048_v14 = vadd.f32 %v8286_v0, %v3047_v6  ;;  %v3928_v62 = vadd.f32 %v8286_v0, %v3927_v39  ;;  %v6007_v18 = vpop.f32.mrb[194].mxu0  ;;  %v6227_v19 = vpop.f32.mrb[194].mxu1  ;;  %v3504_v4 = vadd.f32 %v8286_v0, %v9247_v10 }
 0x260   :  { %4890 = vst.msk [vmem:[%s8946_s3 + $0x144] sm:$0xf] %vm4808_vm3, %v5557_v31  ;;  %v4122_v47 = vmax.f32 %v2616_v9, %v3056_v38  ;;  %v4232_v26 = vmax.f32 %v3496_v57, %v3936_v17  ;;  %v3059_v40 = vadd.f32 %v8286_v0, %v6007_v18  ;;  %v3939_v48 = vadd.f32 %v8286_v0, %v6227_v19  ;;  %v3050_v21 = vpop.f32.mrb[195].mxu0  ;;  %v3930_v27 = vpop.f32.mrb[195].mxu1  ;;  %v9253_v9 = vld [vmem:[#allocation139_spill] sm:$0xff] }
 0x261   :  { %4888 = vst.msk [vmem:[%s8946_s3 + $0x13c] sm:$0xf] %vm4808_vm3, %v5555_v13  ;;  %v4120_v34 = vmax.f32 %v2608_v52, %v3048_v14  ;;  %v4230_v16 = vmax.f32 %v3488_v43, %v3928_v62  ;;  %v3051_v49 = vadd.f32 %v8286_v0, %v3050_v21  ;;  %v3931_v15 = vadd.f32 %v8286_v0, %v3930_v27  ;;  %v9254_v14 = vld [vmem:[#allocation132_spill] sm:$0xff] }
 0x262   :  { %v4342_v55 = vmax.f32 %v4122_v47, %v4232_v26  ;;  %v4123_v28 = vmax.f32 %v2619_v41, %v3059_v40  ;;  %v4233_v35 = vmax.f32 %v3499_v7, %v3939_v48  ;;  %v2627_v45 = vadd.f32 %v8286_v0, %v9248_v32  ;;  %v9255_v26 = vld [vmem:[#allocation133_spill] sm:$0xff]  ;;  %v9260_v32 = vld [vmem:[#allocation146_spill] sm:$0xff] }
 0x263   :  { %v4340_v63 = vmax.f32 %v4120_v34, %v4230_v16  ;;  %v4121_v23 = vmax.f32 %v2611_v8, %v3051_v49  ;;  %v4231_v11 = vmax.f32 %v3491_v53, %v3931_v15  ;;  %v3507_v56 = vadd.f32 %v8286_v0, %v9249_v36  ;;  %v9256_v34 = vld [vmem:[#allocation136_spill] sm:$0xff]  ;;  %v9257_v49 = vld [vmem:[#allocation137_spill] sm:$0xff] }
 0x264   :  { %v5560_v59 = vpack.c.bf16 %v4342_v55, %v4342_v55  ;;  %v4343_v52 = vmax.f32 %v4123_v28, %v4233_v35  ;;  %v2632_v33 = vadd.f32 %v8286_v0, %v9250_v37  ;;  %v3512_v42 = vadd.f32 %v8286_v0, %v9251_v58  ;;  %v9258_v55 = vld [vmem:[#allocation142_spill] sm:$0xff]  ;;  %v9259_v35 = vld [vmem:[#allocation143_spill] sm:$0xff] }
 0x265   :  { %v5558_v43 = vpack.c.bf16 %v4340_v63, %v4340_v63  ;;  %v4341_v50 = vmax.f32 %v4121_v23, %v4231_v11  ;;  %v6010_v3 = vpop.f32.mrb[196].mxu0  ;;  %v6230_v20 = vpop.f32.mrb[196].mxu1  ;;  %v2635_v8 = vadd.f32 %v8286_v0, %v9252_v51  ;;  %v3515_v1 = vadd.f32 %v8286_v0, %v9253_v9 }
 0x266   :  { %4893 = vst.msk [vmem:[%s8946_s3 + $0x150] sm:$0xf] %vm4808_vm3, %v5560_v59  ;;  %v5561_v2 = vpack.c.bf16 %v4343_v52, %v4343_v52  ;;  %v3072_v53 = vadd.f32 %v8286_v0, %v6010_v3  ;;  %v3952_v61 = vadd.f32 %v8286_v0, %v6230_v20  ;;  %v3063_v29 = vpop.f32.mrb[197].mxu0  ;;  %v3943_v24 = vpop.f32.mrb[197].mxu1  ;;  %v2640_v62 = vadd.f32 %v8286_v0, %v9254_v14 }
 0x267   :  { %4891 = vst.msk [vmem:[%s8946_s3 + $0x148] sm:$0xf] %vm4808_vm3, %v5558_v43  ;;  %v5559_v57 = vpack.c.bf16 %v4341_v50, %v4341_v50  ;;  %v3064_v12 = vadd.f32 %v8286_v0, %v3063_v29  ;;  %v3944_v25 = vadd.f32 %v8286_v0, %v3943_v24  ;;  %v6011_v5 = vpop.f32.mrb[198].mxu0  ;;  %v6231_v60 = vpop.f32.mrb[198].mxu1  ;;  %v3520_v40 = vadd.f32 %v8286_v0, %v9255_v26 }
 0x268   :  { %4894 = vst.msk [vmem:[%s8946_s3 + $0x154] sm:$0xf] %vm4808_vm3, %v5561_v2  ;;  %v4126_v30 = vmax.f32 %v2632_v33, %v3072_v53  ;;  %v4236_v41 = vmax.f32 %v3512_v42, %v3952_v61  ;;  %v3075_v31 = vadd.f32 %v8286_v0, %v6011_v5  ;;  %v3955_v38 = vadd.f32 %v8286_v0, %v6231_v60  ;;  %v3066_v17 = vpop.f32.mrb[199].mxu0  ;;  %v3946_v6 = vpop.f32.mrb[199].mxu1  ;;  %v9261_v33 = vld [vmem:[#allocation147_spill] sm:$0xff] }
 0x269   :  { %4892 = vst.msk [vmem:[%s8946_s3 + $0x14c] sm:$0xf] %vm4808_vm3, %v5559_v57  ;;  %v4124_v39 = vmax.f32 %v2624_v54, %v3064_v12  ;;  %v4234_v46 = vmax.f32 %v3504_v4, %v3944_v25  ;;  %v3067_v7 = vadd.f32 %v8286_v0, %v3066_v17  ;;  %v3947_v13 = vadd.f32 %v8286_v0, %v3946_v6  ;;  %v9262_v25 = vld [vmem:[#allocation140_spill] sm:$0xff] }
 0x26a   :  { %v4346_v18 = vmax.f32 %v4126_v30, %v4236_v41  ;;  %v4127_v19 = vmax.f32 %v2635_v8, %v3075_v31  ;;  %v4237_v47 = vmax.f32 %v3515_v1, %v3955_v38  ;;  %v2643_v16 = vadd.f32 %v8286_v0, %v9256_v34  ;;  %v8763_v1 = vld [vmem:[%s8945_s2] ss:$0 sm:$0xff]  ;;  %v9263_v41 = vld [vmem:[#allocation141_spill] sm:$0xff] }
 0x26b   :  { %v4344_v48 = vmax.f32 %v4124_v39, %v4234_v46  ;;  %v4125_v21 = vmax.f32 %v2627_v45, %v3067_v7  ;;  %v4235_v27 = vmax.f32 %v3507_v56, %v3947_v13  ;;  %v3523_v15 = vadd.f32 %v8286_v0, %v9257_v49  ;;  %v9264_v39 = vld [vmem:[#allocation144_spill] sm:$0xff]  ;;  %v9265_v7 = vld [vmem:[#allocation145_spill] sm:$0xff]  ;;  %v9268_v34 = vld [vmem:[#allocation154_spill] sm:$0xff] }
 0x26c   :  { %v5564_v22 = vpack.c.bf16 %v4346_v18, %v4346_v18  ;;  %v4347_v54 = vmax.f32 %v4127_v19, %v4237_v47  ;;  %v2648_v28 = vadd.f32 %v8286_v0, %v9258_v55  ;;  %v3528_v10 = vadd.f32 %v8286_v0, %v9259_v35  ;;  %v9266_v18 = vld [vmem:[#allocation150_spill] sm:$0xff]  ;;  %v9267_v47 = vld [vmem:[#allocation151_spill] sm:$0xff] }
 0x26d   :  { %v5562_v4 = vpack.c.bf16 %v4344_v48, %v4344_v48  ;;  %v4345_v63 = vmax.f32 %v4125_v21, %v4235_v27  ;;  %v6014_v23 = vpop.f32.mrb[200].mxu0  ;;  %v6234_v11 = vpop.f32.mrb[200].mxu1  ;;  %v2651_v45 = vadd.f32 %v8286_v0, %v9260_v32  ;;  %v3531_v58 = vadd.f32 %v8286_v0, %v9261_v33 }
 0x26e   :  { %4897 = vst.msk [vmem:[%s8946_s3 + $0x160] sm:$0xf] %vm4808_vm3, %v5564_v22  ;;  %v5565_v36 = vpack.c.bf16 %v4347_v54, %v4347_v54  ;;  %v3088_v56 = vadd.f32 %v8286_v0, %v6014_v23  ;;  %v3968_v59 = vadd.f32 %v8286_v0, %v6234_v11  ;;  %v3079_v52 = vpop.f32.mrb[201].mxu0  ;;  %v3959_v37 = vpop.f32.mrb[201].mxu1  ;;  %v3536_v31 = vadd.f32 %v8763_v1, %v9263_v41 }
 0x26f   :  { %4895 = vst.msk [vmem:[%s8946_s3 + $0x158] sm:$0xf] %vm4808_vm3, %v5562_v4  ;;  %v5563_v42 = vpack.c.bf16 %v4345_v63, %v4345_v63  ;;  %v3080_v43 = vadd.f32 %v8286_v0, %v3079_v52  ;;  %v3960_v50 = vadd.f32 %v8286_v0, %v3959_v37  ;;  %v6015_v3 = vpop.f32.mrb[202].mxu0  ;;  %v6235_v20 = vpop.f32.mrb[202].mxu1  ;;  %v2659_v46 = vadd.f32 %v8763_v1, %v9264_v39  ;;  %v9276_v39 = vld [vmem:[#allocation162_spill] sm:$0xff] }
 0x270   :  { %4898 = vst.msk [vmem:[%s8946_s3 + $0x164] sm:$0xf] %vm4808_vm3, %v5565_v36  ;;  %v4130_v51 = vmax.f32 %v2648_v28, %v3088_v56  ;;  %v4240_v8 = vmax.f32 %v3528_v10, %v3968_v59  ;;  %v3091_v2 = vadd.f32 %v8286_v0, %v6015_v3  ;;  %v3971_v53 = vadd.f32 %v8286_v0, %v6235_v20  ;;  %v3082_v61 = vpop.f32.mrb[203].mxu0  ;;  %v3962_v29 = vpop.f32.mrb[203].mxu1  ;;  %v9269_v28 = vld [vmem:[#allocation155_spill] sm:$0xff] }
 0x271   :  { %4896 = vst.msk [vmem:[%s8946_s3 + $0x15c] sm:$0xf] %vm4808_vm3, %v5563_v42  ;;  %v4128_v24 = vmax.f32 %v2640_v62, %v3080_v43  ;;  %v4238_v9 = vmax.f32 %v3520_v40, %v3960_v50  ;;  %v3083_v57 = vadd.f32 %v8763_v1, %v3082_v61  ;;  %v3963_v12 = vadd.f32 %v8763_v1, %v3962_v29  ;;  %v9270_v43 = vld [vmem:[#allocation148_spill] sm:$0xff] }
 0x272   :  { %v2656_v0 = vadd.f32 %v8763_v1, %v9262_v25  ;;  %v4350_v5 = vmax.f32 %v4130_v51, %v4240_v8  ;;  %v4131_v60 = vmax.f32 %v2651_v45, %v3091_v2  ;;  %v4241_v30 = vmax.f32 %v3531_v58, %v3971_v53  ;;  %v9271_v8 = vld [vmem:[#allocation149_spill] sm:$0xff] }
 0x273   :  { %v4348_v38 = vmax.f32 %v4128_v24, %v4238_v9  ;;  %v4129_v17 = vmax.f32 %v2643_v16, %v3083_v57  ;;  %v4239_v6 = vmax.f32 %v3523_v15, %v3963_v12  ;;  %v3539_v13 = vadd.f32 %v8763_v1, %v9265_v7  ;;  %v9272_v24 = vld [vmem:[#allocation152_spill] sm:$0xff]  ;;  %v9273_v57 = vld [vmem:[#allocation153_spill] sm:$0xff] }
 0x274   :  { %v5568_v14 = vpack.c.bf16 %v4350_v5, %v4350_v5  ;;  %v4351_v62 = vmax.f32 %v4131_v60, %v4241_v30  ;;  %v2664_v19 = vadd.f32 %v8763_v1, %v9266_v18  ;;  %v3544_v26 = vadd.f32 %v8763_v1, %v9267_v47  ;;  %v9274_v5 = vld [vmem:[#allocation158_spill] sm:$0xff]  ;;  %v9275_v30 = vld [vmem:[#allocation159_spill] sm:$0xff] }
 0x275   :  { %v5566_v40 = vpack.c.bf16 %v4348_v38, %v4348_v38  ;;  %v4349_v48 = vmax.f32 %v4129_v17, %v4239_v6  ;;  %v6018_v21 = vpop.f32.mrb[204].mxu0  ;;  %v6238_v27 = vpop.f32.mrb[204].mxu1  ;;  %v2667_v16 = vadd.f32 %v8763_v1, %v9268_v34  ;;  %v3547_v35 = vadd.f32 %v8763_v1, %v9269_v28 }
 0x276   :  { %4901 = vst.msk [vmem:[%s8946_s3 + $0x170] sm:$0xf] %vm4808_vm3, %v5568_v14  ;;  %v5569_v49 = vpack.c.bf16 %v4351_v62, %v4351_v62  ;;  %v3104_v15 = vadd.f32 %v8763_v1, %v6018_v21  ;;  %v3984_v22 = vadd.f32 %v8763_v1, %v6238_v27  ;;  %v3095_v54 = vpop.f32.mrb[205].mxu0  ;;  %v3975_v55 = vpop.f32.mrb[205].mxu1  ;;  %v2672_v50 = vadd.f32 %v8763_v1, %v9270_v43 }
 0x277   :  { %4899 = vst.msk [vmem:[%s8946_s3 + $0x168] sm:$0xf] %vm4808_vm3, %v5566_v40  ;;  %v5567_v10 = vpack.c.bf16 %v4349_v48, %v4349_v48  ;;  %v3096_v4 = vadd.f32 %v8763_v1, %v3095_v54  ;;  %v3976_v63 = vadd.f32 %v8763_v1, %v3975_v55  ;;  %v6019_v23 = vpop.f32.mrb[206].mxu0  ;;  %v6239_v11 = vpop.f32.mrb[206].mxu1  ;;  %v3552_v2 = vadd.f32 %v8763_v1, %v9271_v8 }
 0x278   :  { %4902 = vst.msk [vmem:[%s8946_s3 + $0x174] sm:$0xf] %vm4808_vm3, %v5569_v49  ;;  %v4134_v32 = vmax.f32 %v2664_v19, %v3104_v15  ;;  %v4244_v45 = vmax.f32 %v3544_v26, %v3984_v22  ;;  %v3107_v36 = vadd.f32 %v8763_v1, %v6019_v23  ;;  %v3987_v56 = vadd.f32 %v8763_v1, %v6239_v11  ;;  %v3098_v59 = vpop.f32.mrb[207].mxu0  ;;  %v3978_v52 = vpop.f32.mrb[207].mxu1  ;;  %v9277_v19 = vld [vmem:[#allocation163_spill] sm:$0xff] }
 0x279   :  { %4900 = vst.msk [vmem:[%s8946_s3 + $0x16c] sm:$0xf] %vm4808_vm3, %v5567_v10  ;;  %v4132_v37 = vmax.f32 %v2656_v0, %v3096_v4  ;;  %v4242_v33 = vmax.f32 %v3536_v31, %v3976_v63  ;;  %v3099_v58 = vadd.f32 %v8763_v1, %v3098_v59  ;;  %v3979_v42 = vadd.f32 %v8763_v1, %v3978_v52  ;;  %v9278_v4 = vld [vmem:[#allocation156_spill] sm:$0xff] }
 0x27a   :  { %v4354_v3 = vmax.f32 %v4134_v32, %v4244_v45  ;;  %v4135_v20 = vmax.f32 %v2667_v16, %v3107_v36  ;;  %v4245_v51 = vmax.f32 %v3547_v35, %v3987_v56  ;;  %v2675_v9 = vadd.f32 %v8763_v1, %v9272_v24  ;;  %v9279_v45 = vld [vmem:[#allocation157_spill] sm:$0xff]  ;;  %v9284_v24 = vld [vmem:[#allocation170_spill] sm:$0xff] }
 0x27b   :  { %v4352_v53 = vmax.f32 %v4132_v37, %v4242_v33  ;;  %v4133_v61 = vmax.f32 %v2659_v46, %v3099_v58  ;;  %v4243_v29 = vmax.f32 %v3539_v13, %v3979_v42  ;;  %v3555_v12 = vadd.f32 %v8763_v1, %v9273_v57  ;;  %v9280_v37 = vld [vmem:[#allocation160_spill] sm:$0xff]  ;;  %v9281_v58 = vld [vmem:[#allocation161_spill] sm:$0xff] }
 0x27c   :  { %v5572_v25 = vpack.c.bf16 %v4354_v3, %v4354_v3  ;;  %v4355_v0 = vmax.f32 %v4135_v20, %v4245_v51  ;;  %v2680_v60 = vadd.f32 %v8763_v1, %v9274_v5  ;;  %v3560_v41 = vadd.f32 %v8763_v1, %v9275_v30  ;;  %v9282_v3 = vld [vmem:[#allocation166_spill] sm:$0xff]  ;;  %v9283_v51 = vld [vmem:[#allocation167_spill] sm:$0xff] }
 0x27d   :  { %v5570_v31 = vpack.c.bf16 %v4352_v53, %v4352_v53  ;;  %v4353_v38 = vmax.f32 %v4133_v61, %v4243_v29  ;;  %v6022_v17 = vpop.f32.mrb[208].mxu0  ;;  %v6242_v6 = vpop.f32.mrb[208].mxu1  ;;  %v2683_v46 = vadd.f32 %v8763_v1, %v9276_v39  ;;  %v3563_v47 = vadd.f32 %v8763_v1, %v9277_v19 }
 0x27e   :  { %4905 = vst.msk [vmem:[%s8946_s3 + $0x180] sm:$0xf] %vm4808_vm3, %v5572_v25  ;;  %v5573_v7 = vpack.c.bf16 %v4355_v0, %v4355_v0  ;;  %v3120_v13 = vadd.f32 %v8763_v1, %v6022_v17  ;;  %v4000_v14 = vadd.f32 %v8763_v1, %v6242_v6  ;;  %v3111_v62 = vpop.f32.mrb[209].mxu0  ;;  %v3991_v18 = vpop.f32.mrb[209].mxu1  ;;  %v2688_v63 = vadd.f32 %v8763_v1, %v9278_v4 }
 0x27f   :  { %4903 = vst.msk [vmem:[%s8946_s3 + $0x178] sm:$0xf] %vm4808_vm3, %v5570_v31  ;;  %v5571_v26 = vpack.c.bf16 %v4353_v38, %v4353_v38  ;;  %v3112_v40 = vadd.f32 %v8763_v1, %v3111_v62  ;;  %v3992_v48 = vadd.f32 %v8763_v1, %v3991_v18  ;;  %v6023_v21 = vpop.f32.mrb[210].mxu0  ;;  %v6243_v27 = vpop.f32.mrb[210].mxu1  ;;  %v3568_v36 = vadd.f32 %v8763_v1, %v9279_v45 }
 0x280   :  { %4906 = vst.msk [vmem:[%s8946_s3 + $0x184] sm:$0xf] %vm4808_vm3, %v5573_v7  ;;  %v4138_v34 = vmax.f32 %v2680_v60, %v3120_v13  ;;  %v4248_v16 = vmax.f32 %v3560_v41, %v4000_v14  ;;  %v3123_v49 = vadd.f32 %v8763_v1, %v6023_v21  ;;  %v4003_v15 = vadd.f32 %v8763_v1, %v6243_v27  ;;  %v3114_v22 = vpop.f32.mrb[211].mxu0  ;;  %v3994_v54 = vpop.f32.mrb[211].mxu1  ;;  %v9285_v60 = vld [vmem:[#allocation171_spill] sm:$0xff] }
 0x281   :  { %4904 = vst.msk [vmem:[%s8946_s3 + $0x17c] sm:$0xf] %vm4808_vm3, %v5571_v26  ;;  %v4136_v55 = vmax.f32 %v2672_v50, %v3112_v40  ;;  %v4246_v28 = vmax.f32 %v3552_v2, %v3992_v48  ;;  %v3115_v35 = vadd.f32 %v8763_v1, %v3114_v22  ;;  %v3995_v10 = vadd.f32 %v8763_v1, %v3994_v54  ;;  %v9286_v40 = vld [vmem:[#allocation164_spill] sm:$0xff] }
 0x282   :  { %v4358_v23 = vmax.f32 %v4138_v34, %v4248_v16  ;;  %v4139_v11 = vmax.f32 %v2683_v46, %v3123_v49  ;;  %v4249_v32 = vmax.f32 %v3563_v47, %v4003_v15  ;;  %v2691_v33 = vadd.f32 %v8763_v1, %v9280_v37  ;;  %v9287_v16 = vld [vmem:[#allocation165_spill] sm:$0xff] }
 0x283   :  { %v4356_v56 = vmax.f32 %v4136_v55, %v4246_v28  ;;  %v4137_v59 = vmax.f32 %v2675_v9, %v3115_v35  ;;  %v4247_v52 = vmax.f32 %v3555_v12, %v3995_v10  ;;  %v3571_v42 = vadd.f32 %v8763_v1, %v9281_v58  ;;  %v9288_v55 = vld [vmem:[#allocation168_spill] sm:$0xff]  ;;  %v9289_v35 = vld [vmem:[#allocation169_spill] sm:$0xff] }
 0x284   :  { %v5576_v43 = vpack.c.bf16 %v4358_v23, %v4358_v23  ;;  %v4359_v50 = vmax.f32 %v4139_v11, %v4249_v32  ;;  %v2696_v20 = vadd.f32 %v8763_v1, %v9282_v3  ;;  %v3576_v8 = vadd.f32 %v8763_v1, %v9283_v51  ;;  %v9290_v23 = vld [vmem:[#allocation172_spill] sm:$0xff]  ;;  %v9291_v32 = vld [vmem:[#allocation173_spill] sm:$0xff]  ;;  %v9292_v3 = vld [vmem:[#allocation174_spill] sm:$0xff] }
 0x285   :  { %v5574_v2 = vpack.c.bf16 %v4356_v56, %v4356_v56  ;;  %v4357_v53 = vmax.f32 %v4137_v59, %v4247_v52  ;;  %v6026_v61 = vpop.f32.mrb[212].mxu0  ;;  %v6246_v29 = vpop.f32.mrb[212].mxu1  ;;  %v2699_v9 = vadd.f32 %v8763_v1, %v9284_v24  ;;  %v3579_v30 = vadd.f32 %v8763_v1, %v9285_v60 }
 0x286   :  { %4909 = vst.msk [vmem:[%s8946_s3 + $0x190] sm:$0xf] %vm4808_vm3, %v5576_v43  ;;  %v5577_v57 = vpack.c.bf16 %v4359_v50, %v4359_v50  ;;  %v3136_v12 = vadd.f32 %v8763_v1, %v6026_v61  ;;  %v4016_v25 = vadd.f32 %v8763_v1, %v6246_v29  ;;  %v3127_v0 = vpop.f32.mrb[213].mxu0  ;;  %v4007_v5 = vpop.f32.mrb[213].mxu1  ;;  %v2704_v48 = vadd.f32 %v8763_v1, %v9286_v40 }
 0x287   :  { %4907 = vst.msk [vmem:[%s8946_s3 + $0x188] sm:$0xf] %vm4808_vm3, %v5574_v2  ;;  %v5575_v41 = vpack.c.bf16 %v4357_v53, %v4357_v53  ;;  %v3128_v31 = vadd.f32 %v8763_v1, %v3127_v0  ;;  %v4008_v38 = vadd.f32 %v8763_v1, %v4007_v5  ;;  %v6027_v17 = vpop.f32.mrb[214].mxu0  ;;  %v6247_v6 = vpop.f32.mrb[214].mxu1  ;;  %v3584_v49 = vadd.f32 %v8763_v1, %v9287_v16 }
 0x288   :  { %4910 = vst.msk [vmem:[%s8946_s3 + $0x194] sm:$0xf] %vm4808_vm3, %v5577_v57  ;;  %v4142_v39 = vmax.f32 %v2696_v20, %v3136_v12  ;;  %v4252_v46 = vmax.f32 %v3576_v8, %v4016_v25  ;;  %v3139_v7 = vadd.f32 %v8763_v1, %v6027_v17  ;;  %v4019_v13 = vadd.f32 %v8763_v1, %v6247_v6  ;;  %v3130_v14 = vpop.f32.mrb[215].mxu0  ;;  %v4010_v62 = vpop.f32.mrb[215].mxu1 }
 0x289   :  { %4908 = vst.msk [vmem:[%s8946_s3 + $0x18c] sm:$0xf] %vm4808_vm3, %v5575_v41  ;;  %v4140_v18 = vmax.f32 %v2688_v63, %v3128_v31  ;;  %v4250_v19 = vmax.f32 %v3568_v36, %v4008_v38  ;;  %v3131_v47 = vadd.f32 %v8763_v1, %v3130_v14  ;;  %v4011_v26 = vadd.f32 %v8763_v1, %v4010_v62 }
 0x28a   :  { %v4362_v21 = vmax.f32 %v4142_v39, %v4252_v46  ;;  %v4143_v27 = vmax.f32 %v2699_v9, %v3139_v7  ;;  %v4253_v34 = vmax.f32 %v3579_v30, %v4019_v13  ;;  %v2707_v28 = vadd.f32 %v8763_v1, %v9288_v55 }
 0x28b   :  { %v4360_v15 = vmax.f32 %v4140_v18, %v4250_v19  ;;  %v4141_v22 = vmax.f32 %v2691_v33, %v3131_v47  ;;  %v4251_v54 = vmax.f32 %v3571_v42, %v4011_v26  ;;  %v3587_v10 = vadd.f32 %v8763_v1, %v9289_v35 }
 0x28c   :  { %v5580_v4 = vpack.c.bf16 %v4362_v21, %v4362_v21  ;;  %v4363_v63 = vmax.f32 %v4143_v27, %v4253_v34  ;;  %v2712_v11 = vadd.f32 %v8763_v1, %v9290_v23  ;;  %v3592_v45 = vadd.f32 %v8763_v1, %v9291_v32 }
 0x28d   :  { %v5578_v36 = vpack.c.bf16 %v4360_v15, %v4360_v15  ;;  %v4361_v56 = vmax.f32 %v4141_v22, %v4251_v54  ;;  %v6030_v59 = vpop.f32.mrb[216].mxu0  ;;  %v6250_v52 = vpop.f32.mrb[216].mxu1  ;;  %v2715_v37 = vadd.f32 %v8763_v1, %v7839_v44  ;;  %v3595_v20 = vadd.f32 %v8763_v1, %v9292_v3 }
 0x28e   :  { %4913 = vst.msk [vmem:[%s8946_s3 + $0x1a0] sm:$0xf] %vm4808_vm3, %v5580_v4  ;;  %v5581_v33 = vpack.c.bf16 %v4363_v63, %v4363_v63  ;;  %v3152_v58 = vadd.f32 %v8763_v1, %v6030_v59  ;;  %v4032_v42 = vadd.f32 %v8763_v1, %v6250_v52  ;;  %v3143_v43 = vpop.f32.mrb[217].mxu0  ;;  %v4023_v50 = vpop.f32.mrb[217].mxu1 }
 0x28f   :  { %4911 = vst.msk [vmem:[%s8946_s3 + $0x198] sm:$0xf] %vm4808_vm3, %v5578_v36  ;;  %v5579_v44 = vpack.c.bf16 %v4361_v56, %v4361_v56  ;;  %v3144_v51 = vadd.f32 %v8763_v1, %v3143_v43  ;;  %v4024_v8 = vadd.f32 %v8763_v1, %v4023_v50  ;;  %v6031_v2 = vpop.f32.mrb[218].mxu0  ;;  %v6251_v53 = vpop.f32.mrb[218].mxu1 }
 0x290   :  { %4914 = vst.msk [vmem:[%s8946_s3 + $0x1a4] sm:$0xf] %vm4808_vm3, %v5581_v33  ;;  %v4146_v61 = vmax.f32 %v2712_v11, %v3152_v58  ;;  %v4256_v29 = vmax.f32 %v3592_v45, %v4032_v42  ;;  %v3155_v24 = vadd.f32 %v8763_v1, %v6031_v2  ;;  %v4035_v9 = vadd.f32 %v8763_v1, %v6251_v53  ;;  %v3146_v57 = vpop.f32.mrb[219].mxu0  ;;  %v4026_v12 = vpop.f32.mrb[219].mxu1 }
 0x291   :  { %4912 = vst.msk [vmem:[%s8946_s3 + $0x19c] sm:$0xf] %vm4808_vm3, %v5579_v44  ;;  %v4144_v25 = vmax.f32 %v2704_v48, %v3144_v51  ;;  %v4254_v0 = vmax.f32 %v3584_v49, %v4024_v8  ;;  %v3147_v5 = vadd.f32 %v8763_v1, %v3146_v57  ;;  %v4027_v60 = vadd.f32 %v8763_v1, %v4026_v12 }
 0x292   :  { %v4366_v30 = vmax.f32 %v4146_v61, %v4256_v29  ;;  %v4147_v41 = vmax.f32 %v2715_v37, %v3155_v24  ;;  %v4257_v31 = vmax.f32 %v3595_v20, %v4035_v9 }
 0x293   :  { %v4364_v38 = vmax.f32 %v4144_v25, %v4254_v0  ;;  %v4145_v17 = vmax.f32 %v2707_v28, %v3147_v5  ;;  %v4255_v6 = vmax.f32 %v3587_v10, %v4027_v60 }
 0x294   :  { %v5584_v39 = vpack.c.bf16 %v4366_v30, %v4366_v30  ;;  %v4367_v46 = vmax.f32 %v4147_v41, %v4257_v31 }
 0x295   :  { %v5582_v7 = vpack.c.bf16 %v4364_v38, %v4364_v38  ;;  %v4365_v13 = vmax.f32 %v4145_v17, %v4255_v6 }
 0x296   :  { %4917 = vst.msk [vmem:[%s8946_s3 + $0x1b0] sm:$0xf] %vm4808_vm3, %v5584_v39  ;;  %v5585_v14 = vpack.c.bf16 %v4367_v46, %v4367_v46 }
 0x297   :  { %4915 = vst.msk [vmem:[%s8946_s3 + $0x1a8] sm:$0xf] %vm4808_vm3, %v5582_v7  ;;  %v5583_v1 = vpack.c.bf16 %v4365_v13, %v4365_v13 }
 0x298   :  { %4918 = vst.msk [vmem:[%s8946_s3 + $0x1b4] sm:$0xf] %vm4808_vm3, %v5585_v14 }
 0x299   :  { %4916 = vst.msk [vmem:[%s8946_s3 + $0x1ac] sm:$0xf] %vm4808_vm3, %v5583_v1 }

// kernel: forward.4
= control target key start
LH: loop header
LB: loop body
LE: loop exit
PB: predicated region body
PF: predicated region fallthrough
CT: control target
= control target key end

     0   :  { %v2649_v0 = vmov 0   ;;  %vm1102_vm0 = vcmask 949248   ;;  %vm1211_vm1 = vcmask 1041408   ;;  %vm1983_vm2 = vcmask 404480   ;;  %s3636_s1 = inlined_call_operand.vmem [shape: bf16[500,50], index: 1, kind: input, shape index: {}]   ;;  %s3637_s0 = inlined_call_operand.vmem [shape: bf16[576,500], index: 0, kind: input, shape index: {}]   ;;  %s3638_s2 = inlined_call_operand.vmem [shape: f32[1,50], index: 2, kind: input, shape index: {}]   ;;  %s3639_s3 = inlined_call_operand.vmem [shape: bf16[144,50], index: 3, kind: output, shape index: {}]  }
   0x1   :  { %1215 = vmatprep.subr.bf16.mxu1 %v2649_v0  ;;  %1536 = vmatprep.subr.bf16.mxu0 %v2649_v0  ;;  %v2400_v1 = vld [vmem:[%s3636_s1] sm:$0xff]   ;;  %v2402_v3 = vld [vmem:[%s3636_s1 + $0x8] sm:$0xff]   ;;  %v2404_v5 = vld [vmem:[%s3636_s1 + $0x10] sm:$0xff]  }
   0x2   :  { %v2401_v2 = vld [vmem:[%s3636_s1 + $0x80] sm:$0xff]   ;;  %1216 = vmatpush1.bf16.msra.mxu1 %v2400_v1  ;;  %v2403_v4 = vld [vmem:[%s3636_s1 + $0x88] sm:$0xff]   ;;  %v2405_v6 = vld [vmem:[%s3636_s1 + $0x90] sm:$0xff]  }
   0x3   :  { %1537 = vmatpush1.bf16.msra.mxu0 %v2401_v2  ;;  %1217 = vmatprep.subr.bf16.mxu1 %v2649_v0  ;;  %v2406_v7 = vld [vmem:[%s3636_s1 + $0x18] sm:$0xff]   ;;  %v2408_v9 = vld [vmem:[%s3636_s1 + $0x20] sm:$0xff]   ;;  %v2410_v11 = vld [vmem:[%s3636_s1 + $0x28] sm:$0xff]  }
   0x4   :  { %1538 = vmatprep.subr.bf16.mxu0 %v2649_v0  ;;  %v2407_v8 = vld [vmem:[%s3636_s1 + $0x98] sm:$0xff]   ;;  %v2409_v10 = vld [vmem:[%s3636_s1 + $0xa0] sm:$0xff]   ;;  %v2411_v12 = vld [vmem:[%s3636_s1 + $0xa8] sm:$0xff]  }
   0x5   :  { %v2412_v13 = vld [vmem:[%s3636_s1 + $0x30] sm:$0xff]   ;;  %v2414_v15 = vld [vmem:[%s3636_s1 + $0x38] sm:$0xff]   ;;  %v2416_v17 = vld [vmem:[%s3636_s1 + $0x40] sm:$0xff]  }
   0x6   :  { %1218 = vmatpush1.bf16.msra.mxu1 %v2402_v3  ;;  %v2413_v14 = vld [vmem:[%s3636_s1 + $0xb0] sm:$0xff]   ;;  %v2415_v16 = vld [vmem:[%s3636_s1 + $0xb8] sm:$0xff]   ;;  %v2417_v18 = vld [vmem:[%s3636_s1 + $0xc0] sm:$0xff]  }
   0x7   :  { %1539 = vmatpush1.bf16.msra.mxu0 %v2403_v4  ;;  %1219 = vmatprep.subr.bf16.mxu1 %v2649_v0  ;;  %v2434_v19 = vld [vmem:[%s3637_s0 + $0x4] ss:$16 sps:$4 sm:$0xff]   ;;  %v2418_v20 = vld [vmem:[%s3636_s1 + $0x48] sm:$0xff]   ;;  %v2422_v25 = vld [vmem:[%s3636_s1 + $0x58] sm:$0xff]  }
   0x8   :  { %1540 = vmatprep.subr.bf16.mxu0 %v2649_v0  ;;  %1247 = vmatprep.mubr.bf16.mxu1 %v2434_v19  ;;  %v2437_v21 = vld [vmem:[%s3637_s0 + $0xc] ss:$16 sps:$4 sm:$0xff]   ;;  %v2420_v23 = vld [vmem:[%s3636_s1 + $0x50] sm:$0xff]   ;;  %v2424_v27 = vld [vmem:[%s3636_s1 + $0x60] sm:$0xff]  }
   0x9   :  { %v2419_v22 = vld [vmem:[%s3636_s1 + $0xc8] sm:$0xff]   ;;  %2183 = vmatprep.mubr.msk.bf16.mxu0 %vm1102_vm0, %v2437_v21  ;;  %v2421_v24 = vld [vmem:[%s3636_s1 + $0xd0] sm:$0xff]   ;;  %v2423_v26 = vld [vmem:[%s3636_s1 + $0xd8] sm:$0xff]  }
   0xa   :  { %1220 = vmatpush1.bf16.msra.mxu1 %v2404_v5  ;;  %v2425_v28 = vld [vmem:[%s3636_s1 + $0xe0] sm:$0xff]   ;;  %v2426_v29 = vld [vmem:[%s3636_s1 + $0x68] sm:$0xff]   ;;  %v2428_v31 = vld [vmem:[%s3636_s1 + $0x70] sm:$0xff]  }
   0xb   :  { %1541 = vmatpush1.bf16.msra.mxu0 %v2405_v6  ;;  %1221 = vmatprep.subr.bf16.mxu1 %v2649_v0  ;;  %v2427_v30 = vld [vmem:[%s3636_s1 + $0xe8] sm:$0xff]   ;;  %v2429_v32 = vld [vmem:[%s3636_s1 + $0xf0] sm:$0xff]   ;;  %v2431_v33 = vld [vmem:[%s3636_s1 + $0xf8] ss:$0 sps:$4 sm:$0x33]  }
   0xc   :  { %1542 = vmatprep.subr.bf16.mxu0 %v2649_v0  ;;  %v2430_v34 = vld [vmem:[%s3636_s1 + $0x78] sm:$0xff]   ;;  %v1213_v35 = vsel %vm1211_vm1, %v2431_v33, 0  ;;  %v2432_v36 = vld [vmem:[%s3637_s0] ss:$16 sps:$4 sm:$0xff]   ;;  %v2438_v38 = vld [vmem:[%s3637_s0 + $0x24] ss:$16 sps:$4 sm:$0xff]  }
   0xd   :  { %v2435_v37 = vld [vmem:[%s3637_s0 + $0x8] ss:$16 sps:$4 sm:$0xff]   ;;  %v2440_v39 = vld [vmem:[%s3637_s0 + $0x2c] ss:$16 sps:$4 sm:$0xff]   ;;  %v2442_v40 = vld [vmem:[%s3637_s0 + $0x20] ss:$16 sps:$4 sm:$0xff]  }
   0xe   :  { %1222 = vmatpush1.bf16.msra.mxu1 %v2406_v7  ;;  %v2443_v41 = vld [vmem:[%s3637_s0 + $0x28] ss:$16 sps:$4 sm:$0xff]   ;;  %v2444_v42 = vld [vmem:[%s3637_s0 + $0x44] ss:$16 sps:$4 sm:$0xff]   ;;  %v2446_v43 = vld [vmem:[%s3637_s0 + $0x4c] ss:$16 sps:$4 sm:$0xff]  }
   0xf   :  { %1543 = vmatpush1.bf16.msra.mxu0 %v2407_v8  ;;  %1223 = vmatprep.subr.bf16.mxu1 %v2649_v0  ;;  %v2448_v44 = vld [vmem:[%s3637_s0 + $0x40] ss:$16 sps:$4 sm:$0xff]   ;;  %v2449_v45 = vld [vmem:[%s3637_s0 + $0x48] ss:$16 sps:$4 sm:$0xff]   ;;  %v2450_v46 = vld [vmem:[%s3637_s0 + $0x64] ss:$16 sps:$4 sm:$0xff]  }
  0x10   :  { %1544 = vmatprep.subr.bf16.mxu0 %v2649_v0  ;;  %v2452_v47 = vld [vmem:[%s3637_s0 + $0x6c] ss:$16 sps:$4 sm:$0xff]   ;;  %v2454_v48 = vld [vmem:[%s3637_s0 + $0x60] ss:$16 sps:$4 sm:$0xff]   ;;  %v2455_v49 = vld [vmem:[%s3637_s0 + $0x68] ss:$16 sps:$4 sm:$0xff]  }
  0x11   :  { %v2456_v50 = vld [vmem:[%s3637_s0 + $0x84] ss:$16 sps:$4 sm:$0xff]   ;;  %v2458_v51 = vld [vmem:[%s3637_s0 + $0x8c] ss:$16 sps:$4 sm:$0xff]   ;;  %v2460_v52 = vld [vmem:[%s3637_s0 + $0x80] ss:$16 sps:$4 sm:$0xff]  }
  0x12   :  { %1224 = vmatpush1.bf16.msra.mxu1 %v2408_v9  ;;  %v2461_v53 = vld [vmem:[%s3637_s0 + $0x88] ss:$16 sps:$4 sm:$0xff]   ;;  %v2462_v54 = vld [vmem:[%s3637_s0 + $0xa4] ss:$16 sps:$4 sm:$0xff]   ;;  %v2464_v55 = vld [vmem:[%s3637_s0 + $0xac] ss:$16 sps:$4 sm:$0xff]  }
  0x13   :  { %1545 = vmatpush1.bf16.msra.mxu0 %v2409_v10  ;;  %1225 = vmatprep.subr.bf16.mxu1 %v2649_v0  ;;  %v2466_v56 = vld [vmem:[%s3637_s0 + $0xa0] ss:$16 sps:$4 sm:$0xff]   ;;  %v2467_v57 = vld [vmem:[%s3637_s0 + $0xa8] ss:$16 sps:$4 sm:$0xff]   ;;  %v2468_v58 = vld [vmem:[%s3637_s0 + $0xc4] ss:$16 sps:$4 sm:$0xff]  }
  0x14   :  { %1546 = vmatprep.subr.bf16.mxu0 %v2649_v0  ;;  %v2470_v59 = vld [vmem:[%s3637_s0 + $0xcc] ss:$16 sps:$4 sm:$0xff]   ;;  %v2472_v60 = vld [vmem:[%s3637_s0 + $0xc0] ss:$16 sps:$4 sm:$0xff]   ;;  %v2473_v61 = vld [vmem:[%s3637_s0 + $0xc8] ss:$16 sps:$4 sm:$0xff]  }
  0x15   :  { %v2474_v62 = vld [vmem:[%s3637_s0 + $0xe4] ss:$16 sps:$4 sm:$0xff]   ;;  %v2476_v63 = vld [vmem:[%s3637_s0 + $0xec] ss:$16 sps:$4 sm:$0xff]   ;;  %v2479_v1 = vld [vmem:[%s3637_s0 + $0xe8] ss:$16 sps:$4 sm:$0xff]  }
  0x16   :  { %1226 = vmatpush1.bf16.msra.mxu1 %v2410_v11  ;;  %v2480_v2 = vld [vmem:[%s3637_s0 + $0x104] ss:$16 sps:$4 sm:$0xff]   ;;  %v2482_v3 = vld [vmem:[%s3637_s0 + $0x10c] ss:$16 sps:$4 sm:$0xff]   ;;  %v2484_v4 = vld [vmem:[%s3637_s0 + $0x100] ss:$16 sps:$4 sm:$0xff]  }
  0x17   :  { %1547 = vmatpush1.bf16.msra.mxu0 %v2411_v12  ;;  %1227 = vmatprep.subr.bf16.mxu1 %v2649_v0  ;;  %v2485_v5 = vld [vmem:[%s3637_s0 + $0x108] ss:$16 sps:$4 sm:$0xff]   ;;  %v2486_v6 = vld [vmem:[%s3637_s0 + $0x124] ss:$16 sps:$4 sm:$0xff]   ;;  %v2488_v7 = vld [vmem:[%s3637_s0 + $0x12c] ss:$16 sps:$4 sm:$0xff]  }
  0x18   :  { %1548 = vmatprep.subr.bf16.mxu0 %v2649_v0  ;;  %v2490_v8 = vld [vmem:[%s3637_s0 + $0x120] ss:$16 sps:$4 sm:$0xff]   ;;  %v2491_v9 = vld [vmem:[%s3637_s0 + $0x128] ss:$16 sps:$4 sm:$0xff]   ;;  %v2492_v10 = vld [vmem:[%s3637_s0 + $0x144] ss:$16 sps:$4 sm:$0xff]  }
  0x19   :  { %v2494_v11 = vld [vmem:[%s3637_s0 + $0x14c] ss:$16 sps:$4 sm:$0xff]   ;;  %v2496_v12 = vld [vmem:[%s3637_s0 + $0x140] ss:$16 sps:$4 sm:$0xff]   ;;  %v2509_v21 = vld [vmem:[%s3637_s0 + $0x188] ss:$16 sps:$4 sm:$0xff]  }
  0x1a   :  { %1228 = vmatpush1.bf16.msra.mxu1 %v2412_v13  ;;  %v2497_v13 = vld [vmem:[%s3637_s0 + $0x148] ss:$16 sps:$4 sm:$0xff]   ;;  %v2506_v19 = vld [vmem:[%s3637_s0 + $0x18c] ss:$16 sps:$4 sm:$0xff]  }
  0x1b   :  { %1549 = vmatpush1.bf16.msra.mxu0 %v2413_v14  ;;  %1229 = vmatprep.subr.bf16.mxu1 %v2649_v0  ;;  %v2498_v14 = vld [vmem:[%s3637_s0 + $0x164] ss:$16 sps:$4 sm:$0xff]   ;;  %v2527_v33 = vld [vmem:[%s3637_s0 + $0x1e8] ss:$16 sps:$4 sm:$0xff]  }
  0x1c   :  { %1550 = vmatprep.subr.bf16.mxu0 %v2649_v0 }
  0x1e   :  { %1230 = vmatpush1.bf16.msra.mxu1 %v2414_v15  ;;  %v2500_v15 = vld [vmem:[%s3637_s0 + $0x16c] ss:$16 sps:$4 sm:$0xff]  }
  0x1f   :  { %1551 = vmatpush1.bf16.msra.mxu0 %v2415_v16  ;;  %1231 = vmatprep.subr.bf16.mxu1 %v2649_v0  ;;  %v2502_v16 = vld [vmem:[%s3637_s0 + $0x160] ss:$16 sps:$4 sm:$0xff]  }
  0x20   :  { %1552 = vmatprep.subr.bf16.mxu0 %v2649_v0 }
  0x22   :  { %1232 = vmatpush1.bf16.msra.mxu1 %v2416_v17  ;;  %v2503_v17 = vld [vmem:[%s3637_s0 + $0x168] ss:$16 sps:$4 sm:$0xff]  }
  0x23   :  { %1553 = vmatpush1.bf16.msra.mxu0 %v2417_v18  ;;  %1233 = vmatprep.subr.bf16.mxu1 %v2649_v0  ;;  %v2504_v18 = vld [vmem:[%s3637_s0 + $0x184] ss:$16 sps:$4 sm:$0xff]  }
  0x24   :  { %1554 = vmatprep.subr.bf16.mxu0 %v2649_v0 }
  0x26   :  { %1234 = vmatpush1.bf16.msra.mxu1 %v2418_v20  ;;  %v2508_v20 = vld [vmem:[%s3637_s0 + $0x180] ss:$16 sps:$4 sm:$0xff]  }
  0x27   :  { %1555 = vmatpush1.bf16.msra.mxu0 %v2419_v22  ;;  %1235 = vmatprep.subr.bf16.mxu1 %v2649_v0  ;;  %v2510_v22 = vld [vmem:[%s3637_s0 + $0x1a4] ss:$16 sps:$4 sm:$0xff]  }
  0x28   :  { %1556 = vmatprep.subr.bf16.mxu0 %v2649_v0 }
  0x2a   :  { %1236 = vmatpush1.bf16.msra.mxu1 %v2420_v23  ;;  %v2512_v23 = vld [vmem:[%s3637_s0 + $0x1ac] ss:$16 sps:$4 sm:$0xff]  }
  0x2b   :  { %1557 = vmatpush1.bf16.msra.mxu0 %v2421_v24  ;;  %1237 = vmatprep.subr.bf16.mxu1 %v2649_v0  ;;  %v2514_v24 = vld [vmem:[%s3637_s0 + $0x1a0] ss:$16 sps:$4 sm:$0xff]  }
  0x2c   :  { %1558 = vmatprep.subr.bf16.mxu0 %v2649_v0 }
  0x2e   :  { %1238 = vmatpush1.bf16.msra.mxu1 %v2422_v25  ;;  %v2515_v25 = vld [vmem:[%s3637_s0 + $0x1a8] ss:$16 sps:$4 sm:$0xff]  }
  0x2f   :  { %1559 = vmatpush1.bf16.msra.mxu0 %v2423_v26  ;;  %1239 = vmatprep.subr.bf16.mxu1 %v2649_v0  ;;  %v2516_v26 = vld [vmem:[%s3637_s0 + $0x1c4] ss:$16 sps:$4 sm:$0xff]  }
  0x30   :  { %1560 = vmatprep.subr.bf16.mxu0 %v2649_v0 }
  0x32   :  { %1240 = vmatpush1.bf16.msra.mxu1 %v2424_v27  ;;  %v2518_v27 = vld [vmem:[%s3637_s0 + $0x1cc] ss:$16 sps:$4 sm:$0xff]  }
  0x33   :  { %1561 = vmatpush1.bf16.msra.mxu0 %v2425_v28  ;;  %1241 = vmatprep.subr.bf16.mxu1 %v2649_v0  ;;  %v2520_v28 = vld [vmem:[%s3637_s0 + $0x1c0] ss:$16 sps:$4 sm:$0xff]  }
  0x34   :  { %1562 = vmatprep.subr.bf16.mxu0 %v2649_v0 }
  0x36   :  { %1242 = vmatpush1.bf16.msra.mxu1 %v2426_v29  ;;  %v2521_v29 = vld [vmem:[%s3637_s0 + $0x1c8] ss:$16 sps:$4 sm:$0xff]  }
  0x37   :  { %1563 = vmatpush1.bf16.msra.mxu0 %v2427_v30  ;;  %1243 = vmatprep.subr.bf16.mxu1 %v2649_v0  ;;  %v2522_v30 = vld [vmem:[%s3637_s0 + $0x1e4] ss:$16 sps:$4 sm:$0xff]  }
  0x38   :  { %1564 = vmatprep.subr.bf16.mxu0 %v2649_v0 }
  0x3a   :  { %1244 = vmatpush1.bf16.msra.mxu1 %v2428_v31  ;;  %v2524_v31 = vld [vmem:[%s3637_s0 + $0x1ec] ss:$16 sps:$4 sm:$0xff]  }
  0x3b   :  { %1565 = vmatpush1.bf16.msra.mxu0 %v2429_v32  ;;  %1245 = vmatprep.subr.bf16.mxu1 %v2649_v0  ;;  %v2526_v32 = vld [vmem:[%s3637_s0 + $0x1e0] ss:$16 sps:$4 sm:$0xff]  }
  0x3c   :  { %1566 = vmatprep.subr.bf16.mxu0 %v2649_v0  ;;  %v2478_v0 = vld [vmem:[%s3637_s0 + $0xe0] ss:$16 sps:$4 sm:$0xff]  }
  0x3e   :  { %1246 = vmatpush1.bf16.msra.mxu1 %v2430_v34  ;;  %v2528_v34 = vld [vmem:[%s3637_s0 + $0x204] ss:$16 sps:$4 sm:$0xff]  }
  0x3f   :  { %1567 = vmatpush1.bf16.msra.mxu0 %v1213_v35  ;;  %v2530_v35 = vld [vmem:[%s3637_s0 + $0x20c] ss:$16 sps:$4 sm:$0xff]  }
  0x41   :  { %1248 = vmatmul.mubr.bf16.vlgmr.msra.gmra.mrb[0].mxu1 %v2432_v36  ;;  %v2532_v36 = vld [vmem:[%s3637_s0 + $0x200] ss:$16 sps:$4 sm:$0xff]  }
  0x42   :  { %1569 = vmatmul.mubr.bf16.vlgmr.msra.gmra.mrb[0].mxu0 %v2435_v37  ;;  %1255 = vmatprep.mubr.bf16.mxu1 %v2438_v38  ;;  %v2533_v37 = vld [vmem:[%s3637_s0 + $0x208] ss:$16 sps:$4 sm:$0xff]   ;;  %v2534_v38 = vld [vmem:[%s3637_s0 + $0x224] ss:$16 sps:$4 sm:$0xff]  }
  0x43   :  { %2184 = vmatprep.mubr.msk.bf16.mxu0 %vm1102_vm0, %v2440_v39  ;;  %v2536_v39 = vld [vmem:[%s3637_s0 + $0x22c] ss:$16 sps:$4 sm:$0xff]  }
  0x49   :  { %1256 = vmatmul.mubr.bf16.gmra.mrb[4].mxu1 %v2442_v40  ;;  %v2538_v40 = vld [vmem:[%s3637_s0 + $0x220] ss:$16 sps:$4 sm:$0xff]  }
  0x4a   :  { %1577 = vmatmul.mubr.bf16.gmra.mrb[4].mxu0 %v2443_v41  ;;  %1263 = vmatprep.mubr.bf16.mxu1 %v2444_v42  ;;  %v2539_v41 = vld [vmem:[%s3637_s0 + $0x228] ss:$16 sps:$4 sm:$0xff]   ;;  %v2540_v42 = vld [vmem:[%s3637_s0 + $0x244] ss:$16 sps:$4 sm:$0xff]  }
  0x4b   :  { %2185 = vmatprep.mubr.msk.bf16.mxu0 %vm1102_vm0, %v2446_v43  ;;  %v2542_v43 = vld [vmem:[%s3637_s0 + $0x24c] ss:$16 sps:$4 sm:$0xff]  }
  0x51   :  { %1264 = vmatmul.mubr.bf16.gmra.mrb[8].mxu1 %v2448_v44  ;;  %v2544_v44 = vld [vmem:[%s3637_s0 + $0x240] ss:$16 sps:$4 sm:$0xff]  }
  0x52   :  { %1585 = vmatmul.mubr.bf16.gmra.mrb[8].mxu0 %v2449_v45  ;;  %1271 = vmatprep.mubr.bf16.mxu1 %v2450_v46  ;;  %v2545_v45 = vld [vmem:[%s3637_s0 + $0x248] ss:$16 sps:$4 sm:$0xff]   ;;  %v2546_v46 = vld [vmem:[%s3637_s0 + $0x264] ss:$16 sps:$4 sm:$0xff]  }
  0x53   :  { %2186 = vmatprep.mubr.msk.bf16.mxu0 %vm1102_vm0, %v2452_v47  ;;  %v2548_v47 = vld [vmem:[%s3637_s0 + $0x26c] ss:$16 sps:$4 sm:$0xff]  }
  0x59   :  { %1272 = vmatmul.mubr.bf16.gmra.mrb[12].mxu1 %v2454_v48  ;;  %v2550_v48 = vld [vmem:[%s3637_s0 + $0x260] ss:$16 sps:$4 sm:$0xff]  }
  0x5a   :  { %1593 = vmatmul.mubr.bf16.gmra.mrb[12].mxu0 %v2455_v49  ;;  %1279 = vmatprep.mubr.bf16.mxu1 %v2456_v50  ;;  %v2551_v49 = vld [vmem:[%s3637_s0 + $0x268] ss:$16 sps:$4 sm:$0xff]   ;;  %v2552_v50 = vld [vmem:[%s3637_s0 + $0x284] ss:$16 sps:$4 sm:$0xff]  }
  0x5b   :  { %2187 = vmatprep.mubr.msk.bf16.mxu0 %vm1102_vm0, %v2458_v51  ;;  %v2554_v51 = vld [vmem:[%s3637_s0 + $0x28c] ss:$16 sps:$4 sm:$0xff]  }
  0x61   :  { %1280 = vmatmul.mubr.bf16.gmra.mrb[16].mxu1 %v2460_v52  ;;  %v2556_v52 = vld [vmem:[%s3637_s0 + $0x280] ss:$16 sps:$4 sm:$0xff]  }
  0x62   :  { %1601 = vmatmul.mubr.bf16.gmra.mrb[16].mxu0 %v2461_v53  ;;  %1287 = vmatprep.mubr.bf16.mxu1 %v2462_v54  ;;  %v2557_v53 = vld [vmem:[%s3637_s0 + $0x288] ss:$16 sps:$4 sm:$0xff]   ;;  %v2558_v54 = vld [vmem:[%s3637_s0 + $0x2a4] ss:$16 sps:$4 sm:$0xff]  }
  0x63   :  { %2188 = vmatprep.mubr.msk.bf16.mxu0 %vm1102_vm0, %v2464_v55  ;;  %v2560_v55 = vld [vmem:[%s3637_s0 + $0x2ac] ss:$16 sps:$4 sm:$0xff]  }
  0x69   :  { %1288 = vmatmul.mubr.bf16.gmra.mrb[20].mxu1 %v2466_v56  ;;  %v2562_v56 = vld [vmem:[%s3637_s0 + $0x2a0] ss:$16 sps:$4 sm:$0xff]  }
  0x6a   :  { %1609 = vmatmul.mubr.bf16.gmra.mrb[20].mxu0 %v2467_v57  ;;  %1295 = vmatprep.mubr.bf16.mxu1 %v2468_v58  ;;  %v2563_v57 = vld [vmem:[%s3637_s0 + $0x2a8] ss:$16 sps:$4 sm:$0xff]   ;;  %v2564_v58 = vld [vmem:[%s3637_s0 + $0x2c4] ss:$16 sps:$4 sm:$0xff]  }
  0x6b   :  { %2189 = vmatprep.mubr.msk.bf16.mxu0 %vm1102_vm0, %v2470_v59  ;;  %v2566_v59 = vld [vmem:[%s3637_s0 + $0x2cc] ss:$16 sps:$4 sm:$0xff]  }
  0x71   :  { %1296 = vmatmul.mubr.bf16.gmra.mrb[24].mxu1 %v2472_v60  ;;  %v2568_v60 = vld [vmem:[%s3637_s0 + $0x2c0] ss:$16 sps:$4 sm:$0xff]  }
  0x72   :  { %1617 = vmatmul.mubr.bf16.gmra.mrb[24].mxu0 %v2473_v61  ;;  %1303 = vmatprep.mubr.bf16.mxu1 %v2474_v62  ;;  %v2569_v61 = vld [vmem:[%s3637_s0 + $0x2c8] ss:$16 sps:$4 sm:$0xff]   ;;  %v2570_v62 = vld [vmem:[%s3637_s0 + $0x2e4] ss:$16 sps:$4 sm:$0xff]  }
  0x73   :  { %2190 = vmatprep.mubr.msk.bf16.mxu0 %vm1102_vm0, %v2476_v63  ;;  %v2572_v63 = vld [vmem:[%s3637_s0 + $0x2ec] ss:$16 sps:$4 sm:$0xff]  }
  0x79   :  { %1304 = vmatmul.mubr.bf16.gmra.mrb[28].mxu1 %v2478_v0  ;;  %v2574_v0 = vld [vmem:[%s3637_s0 + $0x2e0] ss:$16 sps:$4 sm:$0xff]  }
  0x7a   :  { %1625 = vmatmul.mubr.bf16.gmra.mrb[28].mxu0 %v2479_v1  ;;  %1311 = vmatprep.mubr.bf16.mxu1 %v2480_v2  ;;  %v2575_v1 = vld [vmem:[%s3637_s0 + $0x2e8] ss:$16 sps:$4 sm:$0xff]   ;;  %v2576_v2 = vld [vmem:[%s3637_s0 + $0x304] ss:$16 sps:$4 sm:$0xff]  }
  0x7b   :  { %2191 = vmatprep.mubr.msk.bf16.mxu0 %vm1102_vm0, %v2482_v3  ;;  %v2578_v3 = vld [vmem:[%s3637_s0 + $0x30c] ss:$16 sps:$4 sm:$0xff]  }
  0x81   :  { %1312 = vmatmul.mubr.bf16.gmra.mrb[32].mxu1 %v2484_v4  ;;  %v2580_v4 = vld [vmem:[%s3637_s0 + $0x300] ss:$16 sps:$4 sm:$0xff]  }
  0x82   :  { %1633 = vmatmul.mubr.bf16.gmra.mrb[32].mxu0 %v2485_v5  ;;  %1319 = vmatprep.mubr.bf16.mxu1 %v2486_v6  ;;  %v2581_v5 = vld [vmem:[%s3637_s0 + $0x308] ss:$16 sps:$4 sm:$0xff]   ;;  %v2582_v6 = vld [vmem:[%s3637_s0 + $0x324] ss:$16 sps:$4 sm:$0xff]  }
  0x83   :  { %2192 = vmatprep.mubr.msk.bf16.mxu0 %vm1102_vm0, %v2488_v7  ;;  %v2584_v7 = vld [vmem:[%s3637_s0 + $0x32c] ss:$16 sps:$4 sm:$0xff]  }
  0x89   :  { %1320 = vmatmul.mubr.bf16.gmra.mrb[36].mxu1 %v2490_v8  ;;  %v2586_v8 = vld [vmem:[%s3637_s0 + $0x320] ss:$16 sps:$4 sm:$0xff]  }
  0x8a   :  { %1641 = vmatmul.mubr.bf16.gmra.mrb[36].mxu0 %v2491_v9  ;;  %1327 = vmatprep.mubr.bf16.mxu1 %v2492_v10  ;;  %v2587_v9 = vld [vmem:[%s3637_s0 + $0x328] ss:$16 sps:$4 sm:$0xff]   ;;  %v2588_v10 = vld [vmem:[%s3637_s0 + $0x344] ss:$16 sps:$4 sm:$0xff]  }
  0x8b   :  { %2193 = vmatprep.mubr.msk.bf16.mxu0 %vm1102_vm0, %v2494_v11  ;;  %v2590_v11 = vld [vmem:[%s3637_s0 + $0x34c] ss:$16 sps:$4 sm:$0xff]  }
  0x91   :  { %1328 = vmatmul.mubr.bf16.gmra.mrb[40].mxu1 %v2496_v12  ;;  %v2592_v12 = vld [vmem:[%s3637_s0 + $0x340] ss:$16 sps:$4 sm:$0xff]  }
  0x92   :  { %1649 = vmatmul.mubr.bf16.gmra.mrb[40].mxu0 %v2497_v13  ;;  %1335 = vmatprep.mubr.bf16.mxu1 %v2498_v14  ;;  %v2593_v13 = vld [vmem:[%s3637_s0 + $0x348] ss:$16 sps:$4 sm:$0xff]   ;;  %v2594_v14 = vld [vmem:[%s3637_s0 + $0x364] ss:$16 sps:$4 sm:$0xff]  }
  0x93   :  { %2194 = vmatprep.mubr.msk.bf16.mxu0 %vm1102_vm0, %v2500_v15  ;;  %v2596_v15 = vld [vmem:[%s3637_s0 + $0x36c] ss:$16 sps:$4 sm:$0xff]  }
  0x99   :  { %1336 = vmatmul.mubr.bf16.gmra.mrb[44].mxu1 %v2502_v16  ;;  %v3158_v16 = vld [vmem:[%s3638_s2] ss:$0 sm:$0xff] }
  0x9a   :  { %1657 = vmatmul.mubr.bf16.gmra.mrb[44].mxu0 %v2503_v17  ;;  %1343 = vmatprep.mubr.bf16.mxu1 %v2504_v18 }
  0x9b   :  { %2195 = vmatprep.mubr.msk.bf16.mxu0 %vm1102_vm0, %v2506_v19 }
  0xa1   :  { %1344 = vmatmul.mubr.bf16.gmra.mrb[48].mxu1 %v2508_v20 }
  0xa2   :  { %1665 = vmatmul.mubr.bf16.gmra.mrb[48].mxu0 %v2509_v21  ;;  %1351 = vmatprep.mubr.bf16.mxu1 %v2510_v22  ;;  %v2598_v21 = vld [vmem:[%s3637_s0 + $0x360] ss:$16 sps:$4 sm:$0xff]  }
  0xa3   :  { %2196 = vmatprep.mubr.msk.bf16.mxu0 %vm1102_vm0, %v2512_v23 }
  0xa9   :  { %1352 = vmatmul.mubr.bf16.gmra.mrb[52].mxu1 %v2514_v24  ;;  %v2599_v24 = vld [vmem:[%s3637_s0 + $0x368] ss:$16 sps:$4 sm:$0xff]  }
  0xaa   :  { %1673 = vmatmul.mubr.bf16.gmra.mrb[52].mxu0 %v2515_v25  ;;  %1359 = vmatprep.mubr.bf16.mxu1 %v2516_v26  ;;  %v2600_v25 = vld [vmem:[%s3637_s0 + $0x384] ss:$16 sps:$4 sm:$0xff]  }
  0xab   :  { %2197 = vmatprep.mubr.msk.bf16.mxu0 %vm1102_vm0, %v2518_v27 }
  0xb1   :  { %1360 = vmatmul.mubr.bf16.gmra.mrb[56].mxu1 %v2520_v28 }
  0xb2   :  { %1681 = vmatmul.mubr.bf16.gmra.mrb[56].mxu0 %v2521_v29  ;;  %1367 = vmatprep.mubr.bf16.mxu1 %v2522_v30  ;;  %v2602_v30 = vld [vmem:[%s3637_s0 + $0x38c] ss:$16 sps:$4 sm:$0xff]  }
  0xb3   :  { %2198 = vmatprep.mubr.msk.bf16.mxu0 %vm1102_vm0, %v2524_v31 }
  0xb9   :  { %1368 = vmatmul.mubr.bf16.gmra.mrb[60].mxu1 %v2526_v32 }
  0xba   :  { %1689 = vmatmul.mubr.bf16.gmra.mrb[60].mxu0 %v2527_v33  ;;  %1375 = vmatprep.mubr.bf16.mxu1 %v2528_v34 }
  0xbb   :  { %2199 = vmatprep.mubr.msk.bf16.mxu0 %vm1102_vm0, %v2530_v35 }
  0xc1   :  { %1376 = vmatmul.mubr.bf16.gmra.mrb[64].mxu1 %v2532_v36 }
  0xc2   :  { %1697 = vmatmul.mubr.bf16.gmra.mrb[64].mxu0 %v2533_v37  ;;  %1383 = vmatprep.mubr.bf16.mxu1 %v2534_v38  ;;  %v2604_v37 = vld [vmem:[%s3637_s0 + $0x380] ss:$16 sps:$4 sm:$0xff]  }
  0xc3   :  { %2200 = vmatprep.mubr.msk.bf16.mxu0 %vm1102_vm0, %v2536_v39 }
  0xc9   :  { %1384 = vmatmul.mubr.bf16.gmra.mrb[68].mxu1 %v2538_v40  ;;  %v2605_v40 = vld [vmem:[%s3637_s0 + $0x388] ss:$16 sps:$4 sm:$0xff]  }
  0xca   :  { %1705 = vmatmul.mubr.bf16.gmra.mrb[68].mxu0 %v2539_v41  ;;  %1391 = vmatprep.mubr.bf16.mxu1 %v2540_v42  ;;  %v2606_v41 = vld [vmem:[%s3637_s0 + $0x3a4] ss:$16 sps:$4 sm:$0xff]  }
  0xcb   :  { %2201 = vmatprep.mubr.msk.bf16.mxu0 %vm1102_vm0, %v2542_v43 }
  0xd1   :  { %1392 = vmatmul.mubr.bf16.gmra.mrb[72].mxu1 %v2544_v44 }
  0xd2   :  { %1713 = vmatmul.mubr.bf16.gmra.mrb[72].mxu0 %v2545_v45  ;;  %1399 = vmatprep.mubr.bf16.mxu1 %v2546_v46  ;;  %v2608_v46 = vld [vmem:[%s3637_s0 + $0x3ac] ss:$16 sps:$4 sm:$0xff]  }
  0xd3   :  { %2202 = vmatprep.mubr.msk.bf16.mxu0 %vm1102_vm0, %v2548_v47 }
  0xd9   :  { %1400 = vmatmul.mubr.bf16.gmra.mrb[76].mxu1 %v2550_v48 }
  0xda   :  { %1721 = vmatmul.mubr.bf16.gmra.mrb[76].mxu0 %v2551_v49  ;;  %1407 = vmatprep.mubr.bf16.mxu1 %v2552_v50 }
  0xdb   :  { %2203 = vmatprep.mubr.msk.bf16.mxu0 %vm1102_vm0, %v2554_v51 }
  0xe1   :  { %1408 = vmatmul.mubr.bf16.gmra.mrb[80].mxu1 %v2556_v52 }
  0xe2   :  { %1729 = vmatmul.mubr.bf16.gmra.mrb[80].mxu0 %v2557_v53  ;;  %1415 = vmatprep.mubr.bf16.mxu1 %v2558_v54  ;;  %v2610_v53 = vld [vmem:[%s3637_s0 + $0x3a0] ss:$16 sps:$4 sm:$0xff]  }
  0xe3   :  { %2204 = vmatprep.mubr.msk.bf16.mxu0 %vm1102_vm0, %v2560_v55 }
  0xe9   :  { %1416 = vmatmul.mubr.bf16.gmra.mrb[84].mxu1 %v2562_v56  ;;  %v2611_v56 = vld [vmem:[%s3637_s0 + $0x3a8] ss:$16 sps:$4 sm:$0xff]  }
  0xea   :  { %1737 = vmatmul.mubr.bf16.gmra.mrb[84].mxu0 %v2563_v57  ;;  %1423 = vmatprep.mubr.bf16.mxu1 %v2564_v58  ;;  %v2612_v57 = vld [vmem:[%s3637_s0 + $0x3c4] ss:$16 sps:$4 sm:$0xff]  }
  0xeb   :  { %2205 = vmatprep.mubr.msk.bf16.mxu0 %vm1102_vm0, %v2566_v59 }
  0xf1   :  { %1424 = vmatmul.mubr.bf16.gmra.mrb[88].mxu1 %v2568_v60 }
  0xf2   :  { %1745 = vmatmul.mubr.bf16.gmra.mrb[88].mxu0 %v2569_v61  ;;  %1431 = vmatprep.mubr.bf16.mxu1 %v2570_v62  ;;  %v2614_v62 = vld [vmem:[%s3637_s0 + $0x3cc] ss:$16 sps:$4 sm:$0xff]  }
  0xf3   :  { %2206 = vmatprep.mubr.msk.bf16.mxu0 %vm1102_vm0, %v2572_v63 }
  0xf9   :  { %1432 = vmatmul.mubr.bf16.gmra.mrb[92].mxu1 %v2574_v0 }
  0xfa   :  { %1753 = vmatmul.mubr.bf16.gmra.mrb[92].mxu0 %v2575_v1  ;;  %1439 = vmatprep.mubr.bf16.mxu1 %v2576_v2 }
  0xfb   :  { %2207 = vmatprep.mubr.msk.bf16.mxu0 %vm1102_vm0, %v2578_v3 }
 0x101   :  { %1440 = vmatmul.mubr.bf16.gmra.mrb[96].mxu1 %v2580_v4 }
 0x102   :  { %1761 = vmatmul.mubr.bf16.gmra.mrb[96].mxu0 %v2581_v5  ;;  %1447 = vmatprep.mubr.bf16.mxu1 %v2582_v6  ;;  %v2616_v5 = vld [vmem:[%s3637_s0 + $0x3c0] ss:$16 sps:$4 sm:$0xff]  }
 0x103   :  { %2208 = vmatprep.mubr.msk.bf16.mxu0 %vm1102_vm0, %v2584_v7 }
 0x109   :  { %1448 = vmatmul.mubr.bf16.gmra.mrb[100].mxu1 %v2586_v8  ;;  %v2617_v8 = vld [vmem:[%s3637_s0 + $0x3c8] ss:$16 sps:$4 sm:$0xff]  }
 0x10a   :  { %1769 = vmatmul.mubr.bf16.gmra.mrb[100].mxu0 %v2587_v9  ;;  %1455 = vmatprep.mubr.bf16.mxu1 %v2588_v10  ;;  %v2618_v9 = vld [vmem:[%s3637_s0 + $0x3e4] ss:$16 sps:$4 sm:$0xff]  }
 0x10b   :  { %2209 = vmatprep.mubr.msk.bf16.mxu0 %vm1102_vm0, %v2590_v11 }
 0x111   :  { %1456 = vmatmul.mubr.bf16.gmra.mrb[104].mxu1 %v2592_v12 }
 0x112   :  { %1777 = vmatmul.mubr.bf16.gmra.mrb[104].mxu0 %v2593_v13  ;;  %1463 = vmatprep.mubr.bf16.mxu1 %v2594_v14  ;;  %v2620_v14 = vld [vmem:[%s3637_s0 + $0x3ec] ss:$16 sps:$4 sm:$0xff]  }
 0x113   :  { %2210 = vmatprep.mubr.msk.bf16.mxu0 %vm1102_vm0, %v2596_v15 }
 0x114   :  { %v1249_v17 = vpop.f32.mrb[0].mxu1 }
 0x115   :  { %v1250_v18 = vadd.f32 %v3158_v16, %v1249_v17  ;;  %v1570_v19 = vpop.f32.mrb[0].mxu0  ;;  %v1251_v20 = vpop.f32.mrb[1].mxu1 }
 0x116   :  { %v1572_v22 = vpop.f32.mrb[1].mxu0  ;;  %v1252_v23 = vpop.f32.mrb[2].mxu1 }
 0x117   :  { %v3171_v26 = vadd.f32 %v1570_v19, %v1250_v18  ;;  %v1253_v27 = vadd.f32 %v3158_v16, %v1252_v23  ;;  %v1573_v28 = vpop.f32.mrb[2].mxu0  ;;  %v1254_v29 = vpop.f32.mrb[3].mxu1  ;;  %v2622_v22 = vld [vmem:[%s3637_s0 + $0x3e0] ss:$16 sps:$4 sm:$0xff]  }
 0x118   :  { %v1575_v31 = vpop.f32.mrb[3].mxu0 }
 0x119   :  { %v3177_v32 = vadd.f32 %v1573_v28, %v1253_v27  ;;  %1464 = vmatmul.mubr.bf16.gmra.mrb[108].mxu1 %v2598_v21  ;;  %v2624_v27 = vld [vmem:[%s3637_s0 + $0x404] ss:$16 sps:$4 sm:$0xff]  }
 0x11a   :  { %1785 = vmatmul.mubr.bf16.gmra.mrb[108].mxu0 %v2599_v24  ;;  %1471 = vmatprep.mubr.bf16.mxu1 %v2600_v25  ;;  %v2623_v25 = vld [vmem:[%s3637_s0 + $0x3e8] ss:$16 sps:$4 sm:$0xff]  }
 0x11b   :  { %2211 = vmatprep.mubr.msk.bf16.mxu0 %vm1102_vm0, %v2602_v30 }
 0x11c   :  { %v1257_v33 = vpop.f32.mrb[4].mxu1 }
 0x11d   :  { %v1258_v34 = vadd.f32 %v3158_v16, %v1257_v33  ;;  %v1578_v35 = vpop.f32.mrb[4].mxu0  ;;  %v1259_v36 = vpop.f32.mrb[5].mxu1  ;;  %v2626_v33 = vld [vmem:[%s3637_s0 + $0x40c] ss:$16 sps:$4 sm:$0xff]  }
 0x11e   :  { %v1580_v38 = vpop.f32.mrb[5].mxu0  ;;  %v1260_v39 = vpop.f32.mrb[6].mxu1 }
 0x11f   :  { %v3190_v42 = vadd.f32 %v1578_v35, %v1258_v34  ;;  %v1261_v43 = vadd.f32 %v3158_v16, %v1260_v39  ;;  %v1581_v44 = vpop.f32.mrb[6].mxu0  ;;  %v1262_v45 = vpop.f32.mrb[7].mxu1 }
 0x120   :  { %v1583_v47 = vpop.f32.mrb[7].mxu0  ;;  %v2630_v45 = vld [vmem:[%s3637_s0 + $0x424] ss:$16 sps:$4 sm:$0xff]  }
 0x121   :  { %v3196_v48 = vadd.f32 %v1581_v44, %v1261_v43  ;;  %1472 = vmatmul.mubr.bf16.gmra.mrb[112].mxu1 %v2604_v37  ;;  %v2629_v44 = vld [vmem:[%s3637_s0 + $0x408] ss:$16 sps:$4 sm:$0xff]  }
 0x122   :  { %1793 = vmatmul.mubr.bf16.gmra.mrb[112].mxu0 %v2605_v40  ;;  %1479 = vmatprep.mubr.bf16.mxu1 %v2606_v41  ;;  %v2628_v40 = vld [vmem:[%s3637_s0 + $0x400] ss:$16 sps:$4 sm:$0xff]  }
 0x123   :  { %2212 = vmatprep.mubr.msk.bf16.mxu0 %vm1102_vm0, %v2608_v46 }
 0x124   :  { %v1265_v49 = vpop.f32.mrb[8].mxu1 }
 0x125   :  { %v1266_v50 = vadd.f32 %v3158_v16, %v1265_v49  ;;  %v1586_v51 = vpop.f32.mrb[8].mxu0  ;;  %v1267_v52 = vpop.f32.mrb[9].mxu1 }
 0x126   :  { %v1588_v54 = vpop.f32.mrb[9].mxu0  ;;  %v1268_v55 = vpop.f32.mrb[10].mxu1 }
 0x127   :  { %v3209_v58 = vadd.f32 %v1586_v51, %v1266_v50  ;;  %v1269_v59 = vadd.f32 %v3158_v16, %v1268_v55  ;;  %v1589_v60 = vpop.f32.mrb[10].mxu0  ;;  %v1270_v61 = vpop.f32.mrb[11].mxu1  ;;  %v2632_v51 = vld [vmem:[%s3637_s0 + $0x42c] ss:$16 sps:$4 sm:$0xff]  }
 0x128   :  { %v1591_v63 = vpop.f32.mrb[11].mxu0 }
 0x129   :  { %v3215_v0 = vadd.f32 %v1589_v60, %v1269_v59  ;;  %1480 = vmatmul.mubr.bf16.gmra.mrb[116].mxu1 %v2610_v53  ;;  %v2634_v59 = vld [vmem:[%s3637_s0 + $0x420] ss:$16 sps:$4 sm:$0xff]   ;;  %v2636_v63 = vld [vmem:[%s3637_s0 + $0x444] ss:$16 sps:$4 sm:$0xff]  }
 0x12a   :  { %1801 = vmatmul.mubr.bf16.gmra.mrb[116].mxu0 %v2611_v56  ;;  %1487 = vmatprep.mubr.bf16.mxu1 %v2612_v57 }
 0x12b   :  { %2213 = vmatprep.mubr.msk.bf16.mxu0 %vm1102_vm0, %v2614_v62  ;;  %v2635_v62 = vld [vmem:[%s3637_s0 + $0x428] ss:$16 sps:$4 sm:$0xff]  }
 0x12c   :  { %v1273_v1 = vpop.f32.mrb[12].mxu1 }
 0x12d   :  { %v1274_v2 = vadd.f32 %v3158_v16, %v1273_v1  ;;  %v1594_v3 = vpop.f32.mrb[12].mxu0  ;;  %v1275_v4 = vpop.f32.mrb[13].mxu1 }
 0x12e   :  { %v1596_v6 = vpop.f32.mrb[13].mxu0  ;;  %v1276_v7 = vpop.f32.mrb[14].mxu1 }
 0x12f   :  { %v3228_v10 = vadd.f32 %v1594_v3, %v1274_v2  ;;  %v1277_v11 = vadd.f32 %v3158_v16, %v1276_v7  ;;  %v1597_v12 = vpop.f32.mrb[14].mxu0  ;;  %v1278_v13 = vpop.f32.mrb[15].mxu1 }
 0x130   :  { %v1599_v15 = vpop.f32.mrb[15].mxu0  ;;  %v2640_v13 = vld [vmem:[%s3637_s0 + $0x440] ss:$16 sps:$4 sm:$0xff]  }
 0x131   :  { %v3234_v17 = vadd.f32 %v1597_v12, %v1277_v11  ;;  %1488 = vmatmul.mubr.bf16.gmra.mrb[120].mxu1 %v2616_v5  ;;  %v2638_v5 = vld [vmem:[%s3637_s0 + $0x44c] ss:$16 sps:$4 sm:$0xff]  }
 0x132   :  { %1809 = vmatmul.mubr.bf16.gmra.mrb[120].mxu0 %v2617_v8  ;;  %1495 = vmatprep.mubr.bf16.mxu1 %v2618_v9 }
 0x133   :  { %2214 = vmatprep.mubr.msk.bf16.mxu0 %vm1102_vm0, %v2620_v14 }
 0x134   :  { %v1281_v18 = vpop.f32.mrb[16].mxu1 }
 0x135   :  { %v1282_v19 = vadd.f32 %v3158_v16, %v1281_v18  ;;  %v1602_v20 = vpop.f32.mrb[16].mxu0  ;;  %v1283_v21 = vpop.f32.mrb[17].mxu1  ;;  %v2641_v18 = vld [vmem:[%s3637_s0 + $0x448] ss:$16 sps:$4 sm:$0xff]  }
 0x136   :  { %v1604_v23 = vpop.f32.mrb[17].mxu0  ;;  %v1284_v24 = vpop.f32.mrb[18].mxu1 }
 0x137   :  { %v3247_v28 = vadd.f32 %v1602_v20, %v1282_v19  ;;  %v1285_v29 = vadd.f32 %v3158_v16, %v1284_v24  ;;  %v1605_v30 = vpop.f32.mrb[18].mxu0  ;;  %v1286_v31 = vpop.f32.mrb[19].mxu1  ;;  %v2642_v19 = vld [vmem:[%s3637_s0 + $0x464] ss:$16 sps:$4 sm:$0xff]   ;;  %v2644_v24 = vld [vmem:[%s3637_s0 + $0x46c] ss:$16 sps:$4 sm:$0xff]  }
 0x138   :  { %v1607_v34 = vpop.f32.mrb[19].mxu0 }
 0x139   :  { %v3253_v35 = vadd.f32 %v1605_v30, %v1285_v29  ;;  %1496 = vmatmul.mubr.bf16.gmra.mrb[124].mxu1 %v2622_v22  ;;  %v2646_v34 = vld [vmem:[%s3637_s0 + $0x460] ss:$16 sps:$4 sm:$0xff]  }
 0x13a   :  { %1817 = vmatmul.mubr.bf16.gmra.mrb[124].mxu0 %v2623_v25  ;;  %1503 = vmatprep.mubr.bf16.mxu1 %v2624_v27 }
 0x13b   :  { %2215 = vmatprep.mubr.msk.bf16.mxu0 %vm1102_vm0, %v2626_v33 }
 0x13c   :  { %v1289_v36 = vpop.f32.mrb[20].mxu1 }
 0x13d   :  { %v1290_v37 = vadd.f32 %v3158_v16, %v1289_v36  ;;  %v1610_v38 = vpop.f32.mrb[20].mxu0  ;;  %v1291_v39 = vpop.f32.mrb[21].mxu1 }
 0x13e   :  { %v1612_v41 = vpop.f32.mrb[21].mxu0  ;;  %v1292_v43 = vpop.f32.mrb[22].mxu1 }
 0x13f   :  { %v3266_v46 = vadd.f32 %v1610_v38, %v1290_v37  ;;  %v1293_v47 = vadd.f32 %v3158_v16, %v1292_v43  ;;  %v1613_v49 = vpop.f32.mrb[22].mxu0  ;;  %v1294_v50 = vpop.f32.mrb[23].mxu1  ;;  %v2647_v38 = vld [vmem:[%s3637_s0 + $0x468] ss:$16 sps:$4 sm:$0xff]  }
 0x140   :  { %v1615_v52 = vpop.f32.mrb[23].mxu0 }
 0x141   :  { %v3272_v53 = vadd.f32 %v1613_v49, %v1293_v47  ;;  %1504 = vmatmul.mubr.bf16.gmra.mrb[128].mxu1 %v2628_v40 }
 0x142   :  { %1825 = vmatmul.mubr.bf16.gmra.mrb[128].mxu0 %v2629_v44  ;;  %1511 = vmatprep.mubr.bf16.mxu1 %v2630_v45 }
 0x143   :  { %2216 = vmatprep.mubr.msk.bf16.mxu0 %vm1102_vm0, %v2632_v51 }
 0x144   :  { %v1297_v54 = vpop.f32.mrb[24].mxu1 }
 0x145   :  { %v1298_v55 = vadd.f32 %v3158_v16, %v1297_v54  ;;  %v1618_v56 = vpop.f32.mrb[24].mxu0  ;;  %v1299_v57 = vpop.f32.mrb[25].mxu1 }
 0x146   :  { %v1620_v60 = vpop.f32.mrb[25].mxu0  ;;  %v1300_v61 = vpop.f32.mrb[26].mxu1 }
 0x147   :  { %v3285_v1 = vadd.f32 %v1618_v56, %v1298_v55  ;;  %v1301_v2 = vadd.f32 %v3158_v16, %v1300_v61  ;;  %v1621_v3 = vpop.f32.mrb[26].mxu0  ;;  %v1302_v4 = vpop.f32.mrb[27].mxu1 }
 0x148   :  { %v1623_v6 = vpop.f32.mrb[27].mxu0 }
 0x149   :  { %v3291_v7 = vadd.f32 %v1621_v3, %v1301_v2  ;;  %1512 = vmatmul.mubr.bf16.gmra.mrb[132].mxu1 %v2634_v59 }
 0x14a   :  { %1833 = vmatmul.mubr.bf16.gmra.mrb[132].mxu0 %v2635_v62  ;;  %1519 = vmatprep.mubr.bf16.mxu1 %v2636_v63 }
 0x14b   :  { %2217 = vmatprep.mubr.msk.bf16.mxu0 %vm1102_vm0, %v2638_v5 }
 0x14c   :  { %v1305_v8 = vpop.f32.mrb[28].mxu1 }
 0x14d   :  { %v1306_v9 = vadd.f32 %v3158_v16, %v1305_v8  ;;  %v1626_v11 = vpop.f32.mrb[28].mxu0  ;;  %v1307_v12 = vpop.f32.mrb[29].mxu1 }
 0x14e   :  { %v1628_v14 = vpop.f32.mrb[29].mxu0  ;;  %v1308_v15 = vpop.f32.mrb[30].mxu1 }
 0x14f   :  { %v3304_v20 = vadd.f32 %v1626_v11, %v1306_v9  ;;  %v1309_v21 = vadd.f32 %v3158_v16, %v1308_v15  ;;  %v1629_v22 = vpop.f32.mrb[30].mxu0  ;;  %v1310_v23 = vpop.f32.mrb[31].mxu1 }
 0x150   :  { %v1631_v25 = vpop.f32.mrb[31].mxu0 }
 0x151   :  { %v3310_v27 = vadd.f32 %v1629_v22, %v1309_v21  ;;  %1520 = vmatmul.mubr.bf16.gmra.mrb[136].mxu1 %v2640_v13 }
 0x152   :  { %1841 = vmatmul.mubr.bf16.gmra.mrb[136].mxu0 %v2641_v18  ;;  %1527 = vmatprep.mubr.bf16.mxu1 %v2642_v19 }
 0x153   :  { %3646 = vst [vmem:[#allocation2_spill] sm:$0xff] %v3310_v27  ;;  %2218 = vmatprep.mubr.msk.bf16.mxu0 %vm1102_vm0, %v2644_v24 }
 0x154   :  { %v1313_v29 = vpop.f32.mrb[32].mxu1 }
 0x155   :  { %v1314_v30 = vadd.f32 %v3158_v16, %v1313_v29  ;;  %v1634_v31 = vpop.f32.mrb[32].mxu0  ;;  %v1315_v33 = vpop.f32.mrb[33].mxu1 }
 0x156   :  { %v1636_v36 = vpop.f32.mrb[33].mxu0  ;;  %v1316_v37 = vpop.f32.mrb[34].mxu1 }
 0x157   :  { %v3320_v39 = vadd.f32 %v1634_v31, %v1314_v30  ;;  %v1317_v40 = vadd.f32 %v3158_v16, %v1316_v37  ;;  %v1637_v41 = vpop.f32.mrb[34].mxu0  ;;  %v1318_v43 = vpop.f32.mrb[35].mxu1 }
 0x158   :  { %v1639_v44 = vpop.f32.mrb[35].mxu0 }
 0x159   :  { %3647 = vst [vmem:[#allocation3_spill] sm:$0xff] %v3320_v39  ;;  %v3323_v45 = vadd.f32 %v1637_v41, %v1317_v40  ;;  %1528 = vmatmul.mubr.bf16.gmra.mrb[140].mxu1 %v2646_v34 }
 0x15a   :  { %1849 = vmatmul.mubr.bf16.gmra.mrb[140].mxu0 %v2647_v38 }
 0x15b   :  { %3648 = vst [vmem:[#allocation4_spill] sm:$0xff] %v3323_v45 }
 0x15c   :  { %v1321_v47 = vpop.f32.mrb[36].mxu1 }
 0x15d   :  { %v1322_v49 = vadd.f32 %v3158_v16, %v1321_v47  ;;  %v1642_v50 = vpop.f32.mrb[36].mxu0  ;;  %v1323_v51 = vpop.f32.mrb[37].mxu1 }
 0x15e   :  { %v1644_v52 = vpop.f32.mrb[37].mxu0  ;;  %v1324_v54 = vpop.f32.mrb[38].mxu1 }
 0x15f   :  { %v3326_v55 = vadd.f32 %v1642_v50, %v1322_v49  ;;  %v1325_v56 = vadd.f32 %v3158_v16, %v1324_v54  ;;  %v1645_v57 = vpop.f32.mrb[38].mxu0  ;;  %v1326_v59 = vpop.f32.mrb[39].mxu1 }
 0x160   :  { %v1647_v60 = vpop.f32.mrb[39].mxu0 }
 0x161   :  { %v3331_v62 = vadd.f32 %v1645_v57, %v1325_v56 }
 0x164   :  { %v1329_v2 = vpop.f32.mrb[40].mxu1 }
 0x165   :  { %v1330_v3 = vadd.f32 %v3158_v16, %v1329_v2  ;;  %v1650_v4 = vpop.f32.mrb[40].mxu0  ;;  %v1331_v5 = vpop.f32.mrb[41].mxu1 }
 0x166   :  { %v1652_v6 = vpop.f32.mrb[41].mxu0  ;;  %v1332_v8 = vpop.f32.mrb[42].mxu1 }
 0x167   :  { %v3336_v9 = vadd.f32 %v1650_v4, %v1330_v3  ;;  %v1333_v11 = vadd.f32 %v3158_v16, %v1332_v8  ;;  %v1653_v12 = vpop.f32.mrb[42].mxu0  ;;  %v1334_v13 = vpop.f32.mrb[43].mxu1 }
 0x168   :  { %v1655_v14 = vpop.f32.mrb[43].mxu0 }
 0x169   :  { %v3341_v18 = vadd.f32 %v1653_v12, %v1333_v11 }
 0x16c   :  { %v1337_v21 = vpop.f32.mrb[44].mxu1 }
 0x16d   :  { %v1338_v22 = vadd.f32 %v3158_v16, %v1337_v21  ;;  %v1658_v23 = vpop.f32.mrb[44].mxu0  ;;  %v1339_v24 = vpop.f32.mrb[45].mxu1 }
 0x16e   :  { %v1660_v25 = vpop.f32.mrb[45].mxu0  ;;  %v1340_v29 = vpop.f32.mrb[46].mxu1 }
 0x16f   :  { %v3346_v30 = vadd.f32 %v1658_v23, %v1338_v22  ;;  %v1341_v31 = vadd.f32 %v3158_v16, %v1340_v29  ;;  %v1661_v33 = vpop.f32.mrb[46].mxu0  ;;  %v1342_v34 = vpop.f32.mrb[47].mxu1 }
 0x170   :  { %v1663_v36 = vpop.f32.mrb[47].mxu0 }
 0x171   :  { %v3351_v38 = vadd.f32 %v1661_v33, %v1341_v31 }
 0x174   :  { %v1345_v41 = vpop.f32.mrb[48].mxu1 }
 0x175   :  { %v1346_v43 = vadd.f32 %v3158_v16, %v1345_v41  ;;  %v1666_v44 = vpop.f32.mrb[48].mxu0  ;;  %v1347_v47 = vpop.f32.mrb[49].mxu1 }
 0x176   :  { %v1668_v49 = vpop.f32.mrb[49].mxu0  ;;  %v1348_v50 = vpop.f32.mrb[50].mxu1 }
 0x177   :  { %v3356_v51 = vadd.f32 %v1666_v44, %v1346_v43  ;;  %v1349_v52 = vadd.f32 %v3158_v16, %v1348_v50  ;;  %v1669_v54 = vpop.f32.mrb[50].mxu0  ;;  %v1350_v56 = vpop.f32.mrb[51].mxu1 }
 0x178   :  { %v1671_v57 = vpop.f32.mrb[51].mxu0 }
 0x179   :  { %v3361_v60 = vadd.f32 %v1669_v54, %v1349_v52 }
 0x17c   :  { %v1353_v3 = vpop.f32.mrb[52].mxu1 }
 0x17d   :  { %v1354_v4 = vadd.f32 %v3158_v16, %v1353_v3  ;;  %v1674_v5 = vpop.f32.mrb[52].mxu0  ;;  %v1355_v6 = vpop.f32.mrb[53].mxu1 }
 0x17e   :  { %v1676_v8 = vpop.f32.mrb[53].mxu0  ;;  %v1356_v11 = vpop.f32.mrb[54].mxu1 }
 0x17f   :  { %v3366_v12 = vadd.f32 %v1674_v5, %v1354_v4  ;;  %v1357_v13 = vadd.f32 %v3158_v16, %v1356_v11  ;;  %v1677_v14 = vpop.f32.mrb[54].mxu0  ;;  %v1358_v21 = vpop.f32.mrb[55].mxu1 }
 0x180   :  { %v1679_v22 = vpop.f32.mrb[55].mxu0 }
 0x181   :  { %v3371_v24 = vadd.f32 %v1677_v14, %v1357_v13 }
 0x184   :  { %v1361_v29 = vpop.f32.mrb[56].mxu1 }
 0x185   :  { %v1362_v31 = vadd.f32 %v3158_v16, %v1361_v29  ;;  %v1682_v33 = vpop.f32.mrb[56].mxu0  ;;  %v1363_v34 = vpop.f32.mrb[57].mxu1 }
 0x186   :  { %v1684_v36 = vpop.f32.mrb[57].mxu0  ;;  %v1364_v41 = vpop.f32.mrb[58].mxu1 }
 0x187   :  { %v3376_v43 = vadd.f32 %v1682_v33, %v1362_v31  ;;  %v1365_v44 = vadd.f32 %v3158_v16, %v1364_v41  ;;  %v1685_v47 = vpop.f32.mrb[58].mxu0  ;;  %v1366_v49 = vpop.f32.mrb[59].mxu1 }
 0x188   :  { %v1687_v50 = vpop.f32.mrb[59].mxu0 }
 0x189   :  { %v3381_v54 = vadd.f32 %v1685_v47, %v1365_v44 }
 0x18c   :  { %v1369_v57 = vpop.f32.mrb[60].mxu1 }
 0x18d   :  { %v1370_v3 = vadd.f32 %v3158_v16, %v1369_v57  ;;  %v1690_v4 = vpop.f32.mrb[60].mxu0  ;;  %v1371_v5 = vpop.f32.mrb[61].mxu1 }
 0x18e   :  { %v1692_v6 = vpop.f32.mrb[61].mxu0  ;;  %v1372_v8 = vpop.f32.mrb[62].mxu1 }
 0x18f   :  { %v3386_v11 = vadd.f32 %v1690_v4, %v1370_v3  ;;  %v1373_v13 = vadd.f32 %v3158_v16, %v1372_v8  ;;  %v1693_v14 = vpop.f32.mrb[62].mxu0  ;;  %v1374_v21 = vpop.f32.mrb[63].mxu1 }
 0x190   :  { %v1695_v22 = vpop.f32.mrb[63].mxu0 }
 0x191   :  { %v3391_v31 = vadd.f32 %v1693_v14, %v1373_v13 }
 0x194   :  { %v1377_v34 = vpop.f32.mrb[64].mxu1 }
 0x195   :  { %v1378_v36 = vadd.f32 %v3158_v16, %v1377_v34  ;;  %v1698_v41 = vpop.f32.mrb[64].mxu0  ;;  %v1379_v44 = vpop.f32.mrb[65].mxu1 }
 0x196   :  { %v1700_v47 = vpop.f32.mrb[65].mxu0  ;;  %v1380_v49 = vpop.f32.mrb[66].mxu1 }
 0x197   :  { %v3396_v50 = vadd.f32 %v1698_v41, %v1378_v36  ;;  %v1381_v57 = vadd.f32 %v3158_v16, %v1380_v49  ;;  %v1701_v3 = vpop.f32.mrb[66].mxu0  ;;  %v1382_v4 = vpop.f32.mrb[67].mxu1 }
 0x198   :  { %v1703_v5 = vpop.f32.mrb[67].mxu0 }
 0x199   :  { %v3401_v8 = vadd.f32 %v1701_v3, %v1381_v57 }
 0x19b   :  { %3649 = vst [vmem:[#allocation5_spill] sm:$0xff] %v3401_v8 }
 0x19c   :  { %v1385_v14 = vpop.f32.mrb[68].mxu1 }
 0x19d   :  { %v1386_v21 = vadd.f32 %v3158_v16, %v1385_v14  ;;  %v1706_v22 = vpop.f32.mrb[68].mxu0  ;;  %v1387_v34 = vpop.f32.mrb[69].mxu1 }
 0x19e   :  { %v1708_v36 = vpop.f32.mrb[69].mxu0  ;;  %v1388_v41 = vpop.f32.mrb[70].mxu1 }
 0x19f   :  { %v3406_v44 = vadd.f32 %v1706_v22, %v1386_v21  ;;  %v1389_v47 = vadd.f32 %v3158_v16, %v1388_v41  ;;  %v1709_v49 = vpop.f32.mrb[70].mxu0  ;;  %v1390_v4 = vpop.f32.mrb[71].mxu1 }
 0x1a0   :  { %v1711_v5 = vpop.f32.mrb[71].mxu0 }
 0x1a1   :  { %3650 = vst [vmem:[#allocation6_spill] sm:$0xff] %v3406_v44  ;;  %v3411_v3 = vadd.f32 %v1709_v49, %v1389_v47 }
 0x1a3   :  { %3651 = vst [vmem:[#allocation7_spill] sm:$0xff] %v3411_v3 }
 0x1a4   :  { %v1393_v14 = vpop.f32.mrb[72].mxu1 }
 0x1a5   :  { %v1394_v34 = vadd.f32 %v3158_v16, %v1393_v14  ;;  %v1714_v36 = vpop.f32.mrb[72].mxu0  ;;  %v1395_v6 = vpop.f32.mrb[73].mxu1 }
 0x1a6   :  { %v1716_v21 = vpop.f32.mrb[73].mxu0  ;;  %v1396_v22 = vpop.f32.mrb[74].mxu1 }
 0x1a7   :  { %v3416_v33 = vadd.f32 %v1714_v36, %v1394_v34  ;;  %v1397_v41 = vadd.f32 %v3158_v16, %v1396_v22  ;;  %v1717_v4 = vpop.f32.mrb[74].mxu0  ;;  %v1398_v5 = vpop.f32.mrb[75].mxu1 }
 0x1a8   :  { %v1719_v29 = vpop.f32.mrb[75].mxu0 }
 0x1a9   :  { %v3419_v57 = vadd.f32 %v1717_v4, %v1397_v41 }
 0x1ac   :  { %v1401_v47 = vpop.f32.mrb[76].mxu1 }
 0x1ad   :  { %v1402_v49 = vadd.f32 %v3158_v16, %v1401_v47  ;;  %v1722_v13 = vpop.f32.mrb[76].mxu0  ;;  %v1403_v56 = vpop.f32.mrb[77].mxu1 }
 0x1ae   :  { %v1724_v52 = vpop.f32.mrb[77].mxu0  ;;  %v1404_v14 = vpop.f32.mrb[78].mxu1 }
 0x1af   :  { %v3422_v25 = vadd.f32 %v1722_v13, %v1402_v49  ;;  %v1405_v6 = vadd.f32 %v3158_v16, %v1404_v14  ;;  %v1725_v34 = vpop.f32.mrb[78].mxu0  ;;  %v1406_v36 = vpop.f32.mrb[79].mxu1 }
 0x1b0   :  { %v1727_v21 = vpop.f32.mrb[79].mxu0 }
 0x1b1   :  { %v3425_v22 = vadd.f32 %v1725_v34, %v1405_v6 }
 0x1b4   :  { %v1409_v5 = vpop.f32.mrb[80].mxu1 }
 0x1b5   :  { %v1410_v29 = vadd.f32 %v3158_v16, %v1409_v5  ;;  %v1730_v41 = vpop.f32.mrb[80].mxu0  ;;  %v1411_v4 = vpop.f32.mrb[81].mxu1 }
 0x1b6   :  { %v1732_v23 = vpop.f32.mrb[81].mxu0  ;;  %v1412_v47 = vpop.f32.mrb[82].mxu1 }
 0x1b7   :  { %v3428_v2 = vadd.f32 %v1730_v41, %v1410_v29  ;;  %v1413_v52 = vadd.f32 %v3158_v16, %v1412_v47  ;;  %v1733_v56 = vpop.f32.mrb[82].mxu0  ;;  %v1414_v13 = vpop.f32.mrb[83].mxu1 }
 0x1b8   :  { %v1735_v49 = vpop.f32.mrb[83].mxu0 }
 0x1b9   :  { %v3431_v14 = vadd.f32 %v1733_v56, %v1413_v52 }
 0x1bc   :  { %v1417_v36 = vpop.f32.mrb[84].mxu1 }
 0x1bd   :  { %v1418_v6 = vadd.f32 %v3158_v16, %v1417_v36  ;;  %v1738_v34 = vpop.f32.mrb[84].mxu0  ;;  %v1419_v21 = vpop.f32.mrb[85].mxu1 }
 0x1be   :  { %v1740_v59 = vpop.f32.mrb[85].mxu0  ;;  %v1420_v5 = vpop.f32.mrb[86].mxu1 }
 0x1bf   :  { %v3434_v40 = vadd.f32 %v1738_v34, %v1418_v6  ;;  %v1421_v23 = vadd.f32 %v3158_v16, %v1420_v5  ;;  %v1741_v29 = vpop.f32.mrb[86].mxu0  ;;  %v1422_v41 = vpop.f32.mrb[87].mxu1 }
 0x1c0   :  { %v1743_v4 = vpop.f32.mrb[87].mxu0 }
 0x1c1   :  { %v3437_v47 = vadd.f32 %v1741_v29, %v1421_v23 }
 0x1c4   :  { %v1425_v13 = vpop.f32.mrb[88].mxu1 }
 0x1c5   :  { %v1426_v52 = vadd.f32 %v3158_v16, %v1425_v13  ;;  %v1746_v56 = vpop.f32.mrb[88].mxu0  ;;  %v1427_v49 = vpop.f32.mrb[89].mxu1 }
 0x1c6   :  { %v1748_v37 = vpop.f32.mrb[89].mxu0  ;;  %v1428_v36 = vpop.f32.mrb[90].mxu1 }
 0x1c7   :  { %v3440_v19 = vadd.f32 %v1746_v56, %v1426_v52  ;;  %v1429_v59 = vadd.f32 %v3158_v16, %v1428_v36  ;;  %v1749_v6 = vpop.f32.mrb[90].mxu0  ;;  %v1430_v34 = vpop.f32.mrb[91].mxu1 }
 0x1c8   :  { %v1751_v21 = vpop.f32.mrb[91].mxu0 }
 0x1c9   :  { %v3443_v5 = vadd.f32 %v1749_v6, %v1429_v59 }
 0x1cc   :  { %v1433_v41 = vpop.f32.mrb[92].mxu1 }
 0x1cd   :  { %v1434_v23 = vadd.f32 %v3158_v16, %v1433_v41  ;;  %v1754_v29 = vpop.f32.mrb[92].mxu0  ;;  %v1435_v4 = vpop.f32.mrb[93].mxu1 }
 0x1ce   :  { %v1756_v15 = vpop.f32.mrb[93].mxu0  ;;  %v1436_v13 = vpop.f32.mrb[94].mxu1 }
 0x1cf   :  { %v3446_v63 = vadd.f32 %v1754_v29, %v1434_v23  ;;  %v1437_v37 = vadd.f32 %v3158_v16, %v1436_v13  ;;  %v1757_v52 = vpop.f32.mrb[94].mxu0  ;;  %v1438_v56 = vpop.f32.mrb[95].mxu1 }
 0x1d0   :  { %v1759_v49 = vpop.f32.mrb[95].mxu0 }
 0x1d1   :  { %v3449_v36 = vadd.f32 %v1757_v52, %v1437_v37 }
 0x1d4   :  { %v1441_v34 = vpop.f32.mrb[96].mxu1 }
 0x1d5   :  { %v1442_v59 = vadd.f32 %v3158_v16, %v1441_v34  ;;  %v1762_v6 = vpop.f32.mrb[96].mxu0  ;;  %v1443_v21 = vpop.f32.mrb[97].mxu1 }
 0x1d6   :  { %v1764_v61 = vpop.f32.mrb[97].mxu0  ;;  %v1444_v41 = vpop.f32.mrb[98].mxu1 }
 0x1d7   :  { %v3452_v3 = vadd.f32 %v1762_v6, %v1442_v59  ;;  %v1445_v15 = vadd.f32 %v3158_v16, %v1444_v41  ;;  %v1765_v23 = vpop.f32.mrb[98].mxu0  ;;  %v1446_v29 = vpop.f32.mrb[99].mxu1 }
 0x1d8   :  { %v1767_v4 = vpop.f32.mrb[99].mxu0 }
 0x1d9   :  { %v3455_v13 = vadd.f32 %v1765_v23, %v1445_v15 }
 0x1dc   :  { %v1449_v56 = vpop.f32.mrb[100].mxu1 }
 0x1dd   :  { %v1450_v37 = vadd.f32 %v3158_v16, %v1449_v56  ;;  %v1770_v52 = vpop.f32.mrb[100].mxu0  ;;  %v1451_v49 = vpop.f32.mrb[101].mxu1 }
 0x1de   :  { %v1772_v45 = vpop.f32.mrb[101].mxu0  ;;  %v1452_v34 = vpop.f32.mrb[102].mxu1 }
 0x1df   :  { %v3458_v44 = vadd.f32 %v1770_v52, %v1450_v37  ;;  %v1453_v61 = vadd.f32 %v3158_v16, %v1452_v34  ;;  %v1773_v59 = vpop.f32.mrb[102].mxu0  ;;  %v1454_v6 = vpop.f32.mrb[103].mxu1 }
 0x1e0   :  { %v1775_v21 = vpop.f32.mrb[103].mxu0 }
 0x1e1   :  { %v3461_v41 = vadd.f32 %v1773_v59, %v1453_v61 }
 0x1e3   :  { %3652 = vst [vmem:[#allocation8_spill] sm:$0xff] %v3461_v41 }
 0x1e4   :  { %v1457_v29 = vpop.f32.mrb[104].mxu1 }
 0x1e5   :  { %v1458_v15 = vadd.f32 %v3158_v16, %v1457_v29  ;;  %v1778_v23 = vpop.f32.mrb[104].mxu0  ;;  %v1459_v4 = vpop.f32.mrb[105].mxu1 }
 0x1e6   :  { %v1780_v39 = vpop.f32.mrb[105].mxu0  ;;  %v1460_v56 = vpop.f32.mrb[106].mxu1 }
 0x1e7   :  { %v3464_v8 = vadd.f32 %v1778_v23, %v1458_v15  ;;  %v1461_v45 = vadd.f32 %v3158_v16, %v1460_v56  ;;  %v1781_v37 = vpop.f32.mrb[106].mxu0  ;;  %v1462_v52 = vpop.f32.mrb[107].mxu1 }
 0x1e8   :  { %v1783_v49 = vpop.f32.mrb[107].mxu0 }
 0x1e9   :  { %3653 = vst [vmem:[#allocation9_spill] sm:$0xff] %v3464_v8  ;;  %v3467_v34 = vadd.f32 %v1781_v37, %v1461_v45  ;;  %v3654_v45 = vmax.f32 %v3171_v26, %v3326_v55 }
 0x1ec   :  { %v1465_v6 = vpop.f32.mrb[108].mxu1 }
 0x1ed   :  { %v1466_v61 = vadd.f32 %v3158_v16, %v1465_v6  ;;  %v1786_v59 = vpop.f32.mrb[108].mxu0  ;;  %v1467_v21 = vpop.f32.mrb[109].mxu1 }
 0x1ee   :  { %v1788_v27 = vpop.f32.mrb[109].mxu0  ;;  %v1468_v29 = vpop.f32.mrb[110].mxu1 }
 0x1ef   :  { %v1787_v41 = vadd.f32 %v1786_v59, %v1466_v61  ;;  %v1469_v39 = vadd.f32 %v3158_v16, %v1468_v29  ;;  %v1789_v4 = vpop.f32.mrb[110].mxu0  ;;  %v1470_v15 = vpop.f32.mrb[111].mxu1  ;;  %v3655_v27 = vmax.f32 %v3177_v32, %v3331_v62 }
 0x1f0   :  { %v1791_v23 = vpop.f32.mrb[111].mxu0 }
 0x1f1   :  { %v1875_v56 = vmax.f32 %v3416_v33, %v1787_v41  ;;  %v1790_v8 = vadd.f32 %v1789_v4, %v1469_v39  ;;  %v3656_v4 = vmax.f32 %v3190_v42, %v3336_v9 }
 0x1f3   :  { %v1893_v37 = vmax.f32 %v3654_v45, %v1875_v56  ;;  %v1876_v52 = vmax.f32 %v3419_v57, %v1790_v8 }
 0x1f4   :  { %v1473_v49 = vpop.f32.mrb[112].mxu1 }
 0x1f5   :  { %v2237_v6 = vpack.c.bf16 %v1893_v37, %v1893_v37  ;;  %v1894_v61 = vmax.f32 %v3655_v27, %v1876_v52  ;;  %v1474_v59 = vadd.f32 %v3158_v16, %v1473_v49  ;;  %v1794_v21 = vpop.f32.mrb[112].mxu0  ;;  %v1475_v29 = vpop.f32.mrb[113].mxu1  ;;  %v3657_v52 = vmax.f32 %v3196_v48, %v3341_v18 }
 0x1f6   :  { %v1796_v15 = vpop.f32.mrb[113].mxu0  ;;  %v1476_v33 = vpop.f32.mrb[114].mxu1 }
 0x1f7   :  { %1984 = vst.msk [vmem:[%s3639_s3] sm:$0xf] %vm1983_vm2, %v2237_v6  ;;  %v2238_v26 = vpack.c.bf16 %v1894_v61, %v1894_v61  ;;  %v1795_v55 = vadd.f32 %v1794_v21, %v1474_v59  ;;  %v1477_v8 = vadd.f32 %v3158_v16, %v1476_v33  ;;  %v1797_v57 = vpop.f32.mrb[114].mxu0  ;;  %v1478_v41 = vpop.f32.mrb[115].mxu1  ;;  %v3658_v33 = vmax.f32 %v3209_v58, %v3346_v30 }
 0x1f8   :  { %v1799_v39 = vpop.f32.mrb[115].mxu0  ;;  %v3659_v41 = vmax.f32 %v3215_v0, %v3351_v38 }
 0x1f9   :  { %1985 = vst.msk [vmem:[%s3639_s3 + $0x4] sm:$0xf] %vm1983_vm2, %v2238_v26  ;;  %v1877_v32 = vmax.f32 %v3422_v25, %v1795_v55  ;;  %v1798_v62 = vadd.f32 %v1797_v57, %v1477_v8 }
 0x1fb   :  { %v1895_v23 = vmax.f32 %v3656_v4, %v1877_v32  ;;  %v1878_v56 = vmax.f32 %v3425_v22, %v1798_v62 }
 0x1fc   :  { %v1481_v45 = vpop.f32.mrb[116].mxu1 }
 0x1fd   :  { %v2239_v37 = vpack.c.bf16 %v1895_v23, %v1895_v23  ;;  %v1896_v49 = vmax.f32 %v3657_v52, %v1878_v56  ;;  %v1482_v6 = vadd.f32 %v3158_v16, %v1481_v45  ;;  %v1802_v27 = vpop.f32.mrb[116].mxu0  ;;  %v1483_v61 = vpop.f32.mrb[117].mxu1  ;;  %v3660_v52 = vmax.f32 %v3228_v10, %v3356_v51 }
 0x1fe   :  { %v1804_v59 = vpop.f32.mrb[117].mxu0  ;;  %v1484_v21 = vpop.f32.mrb[118].mxu1 }
 0x1ff   :  { %1986 = vst.msk [vmem:[%s3639_s3 + $0x8] sm:$0xf] %vm1983_vm2, %v2239_v37  ;;  %v2240_v42 = vpack.c.bf16 %v1896_v49, %v1896_v49  ;;  %v1803_v9 = vadd.f32 %v1802_v27, %v1482_v6  ;;  %v1485_v25 = vadd.f32 %v3158_v16, %v1484_v21  ;;  %v1805_v22 = vpop.f32.mrb[118].mxu0  ;;  %v1486_v29 = vpop.f32.mrb[119].mxu1  ;;  %v3661_v59 = vmax.f32 %v3234_v17, %v3361_v60 }
 0x200   :  { %v1807_v15 = vpop.f32.mrb[119].mxu0 }
 0x201   :  { %1987 = vst.msk [vmem:[%s3639_s3 + $0xc] sm:$0xf] %vm1983_vm2, %v2240_v42  ;;  %v1879_v48 = vmax.f32 %v3428_v2, %v1803_v9  ;;  %v1806_v18 = vadd.f32 %v1805_v22, %v1485_v25 }
 0x203   :  { %v1897_v26 = vmax.f32 %v3658_v33, %v1879_v48  ;;  %v1880_v55 = vmax.f32 %v3431_v14, %v1806_v18  ;;  %v3662_v18 = vmax.f32 %v3247_v28, %v3366_v12 }
 0x204   :  { %v1489_v8 = vpop.f32.mrb[120].mxu1 }
 0x205   :  { %v2241_v57 = vpack.c.bf16 %v1897_v26, %v1897_v26  ;;  %v1898_v39 = vmax.f32 %v3659_v41, %v1880_v55  ;;  %v1490_v32 = vadd.f32 %v3158_v16, %v1489_v8  ;;  %v1810_v62 = vpop.f32.mrb[120].mxu0  ;;  %v1491_v4 = vpop.f32.mrb[121].mxu1  ;;  %v3554_v41 = vld [vmem:[%s3638_s2] ss:$0 sm:$0xff] }
 0x206   :  { %v1812_v23 = vpop.f32.mrb[121].mxu0  ;;  %v1492_v56 = vpop.f32.mrb[122].mxu1 }
 0x207   :  { %1988 = vst.msk [vmem:[%s3639_s3 + $0x10] sm:$0xf] %vm1983_vm2, %v2241_v57  ;;  %v2242_v58 = vpack.c.bf16 %v1898_v39, %v1898_v39  ;;  %v1811_v30 = vadd.f32 %v1810_v62, %v1490_v32  ;;  %v1493_v2 = vadd.f32 %v3158_v16, %v1492_v56  ;;  %v1813_v14 = vpop.f32.mrb[122].mxu0  ;;  %v1494_v45 = vpop.f32.mrb[123].mxu1 }
 0x208   :  { %v1815_v37 = vpop.f32.mrb[123].mxu0 }
 0x209   :  { %1989 = vst.msk [vmem:[%s3639_s3 + $0x14] sm:$0xf] %vm1983_vm2, %v2242_v58  ;;  %v1881_v0 = vmax.f32 %v3434_v40, %v1811_v30  ;;  %v1814_v38 = vadd.f32 %v1813_v14, %v1493_v2  ;;  %v3664_v30 = vmax.f32 %v3266_v46, %v3376_v43 }
 0x20b   :  { %v1899_v49 = vmax.f32 %v3660_v52, %v1881_v0  ;;  %v1882_v6 = vmax.f32 %v3437_v47, %v1814_v38  ;;  %v3665_v0 = vmax.f32 %v3272_v53, %v3381_v54 }
 0x20c   :  { %v1497_v27 = vpop.f32.mrb[124].mxu1 }
 0x20d   :  { %v2243_v61 = vpack.c.bf16 %v1899_v49, %v1899_v49  ;;  %v1900_v21 = vmax.f32 %v3661_v59, %v1882_v6  ;;  %v1498_v42 = vadd.f32 %v3158_v16, %v1497_v27  ;;  %v1818_v9 = vpop.f32.mrb[124].mxu0  ;;  %v1499_v25 = vpop.f32.mrb[125].mxu1 }
 0x20e   :  { %v1820_v22 = vpop.f32.mrb[125].mxu0  ;;  %v1500_v29 = vpop.f32.mrb[126].mxu1 }
 0x20f   :  { %1990 = vst.msk [vmem:[%s3639_s3 + $0x18] sm:$0xf] %vm1983_vm2, %v2243_v61  ;;  %v2244_v10 = vpack.c.bf16 %v1900_v21, %v1900_v21  ;;  %v1819_v40 = vadd.f32 %v1818_v9, %v1498_v42  ;;  %v1501_v51 = vadd.f32 %v3158_v16, %v1500_v29  ;;  %v1821_v47 = vpop.f32.mrb[126].mxu0  ;;  %v1502_v15 = vpop.f32.mrb[127].mxu1  ;;  %v3663_v16 = vmax.f32 %v3253_v35, %v3371_v24 }
 0x210   :  { %v1823_v48 = vpop.f32.mrb[127].mxu0  ;;  %v3666_v42 = vmax.f32 %v3285_v1, %v3386_v11 }
 0x211   :  { %1991 = vst.msk [vmem:[%s3639_s3 + $0x1c] sm:$0xf] %vm1983_vm2, %v2244_v10  ;;  %v1883_v17 = vmax.f32 %v3440_v19, %v1819_v40  ;;  %v1822_v60 = vadd.f32 %v1821_v47, %v1501_v51  ;;  %v3667_v10 = vmax.f32 %v3291_v7, %v3391_v31 }
 0x213   :  { %v1901_v33 = vmax.f32 %v3662_v18, %v1883_v17  ;;  %v1884_v26 = vmax.f32 %v3443_v5, %v1822_v60 }
 0x214   :  { %v1505_v55 = vpop.f32.mrb[128].mxu1 }
 0x215   :  { %v2245_v8 = vpack.c.bf16 %v1901_v33, %v1901_v33  ;;  %v1902_v57 = vmax.f32 %v3663_v16, %v1884_v26  ;;  %v1506_v19 = vadd.f32 %v3554_v41, %v1505_v55  ;;  %v1826_v39 = vpop.f32.mrb[128].mxu0  ;;  %v1507_v32 = vpop.f32.mrb[129].mxu1  ;;  %v3668_v33 = vmax.f32 %v3304_v20, %v3396_v50  ;;  %v3669_v55 = vld [vmem:[#allocation8_spill] sm:$0xff] }
 0x216   :  { %v1828_v62 = vpop.f32.mrb[129].mxu0  ;;  %v1508_v28 = vpop.f32.mrb[130].mxu1 }
 0x217   :  { %1992 = vst.msk [vmem:[%s3639_s3 + $0x20] sm:$0xf] %vm1983_vm2, %v2245_v8  ;;  %v2246_v12 = vpack.c.bf16 %v1902_v57, %v1902_v57  ;;  %v1827_v5 = vadd.f32 %v1826_v39, %v1506_v19  ;;  %v1509_v35 = vadd.f32 %v3554_v41, %v1508_v28  ;;  %v1829_v24 = vpop.f32.mrb[130].mxu0  ;;  %v1510_v4 = vpop.f32.mrb[131].mxu1  ;;  %v3670_v19 = vld [vmem:[#allocation2_spill] sm:$0xff]  ;;  %v3671_v39 = vld [vmem:[#allocation5_spill] sm:$0xff] }
 0x218   :  { %v1831_v23 = vpop.f32.mrb[131].mxu0  ;;  %v3672_v32 = vmax.f32 %v3670_v19, %v3671_v39 }
 0x219   :  { %1993 = vst.msk [vmem:[%s3639_s3 + $0x24] sm:$0xf] %vm1983_vm2, %v2246_v12  ;;  %v1885_v56 = vmax.f32 %v3446_v63, %v1827_v5  ;;  %v1830_v58 = vadd.f32 %v1829_v24, %v1509_v35 }
 0x21b   :  { %v1903_v2 = vmax.f32 %v3664_v30, %v1885_v56  ;;  %v1886_v14 = vmax.f32 %v3449_v36, %v1830_v58  ;;  %v3673_v58 = vld [vmem:[#allocation9_spill] sm:$0xff] }
 0x21c   :  { %v1513_v45 = vpop.f32.mrb[132].mxu1 }
 0x21d   :  { %v2247_v37 = vpack.c.bf16 %v1903_v2, %v1903_v2  ;;  %v1904_v38 = vmax.f32 %v3665_v0, %v1886_v14  ;;  %v1514_v52 = vadd.f32 %v3554_v41, %v1513_v45  ;;  %v1834_v49 = vpop.f32.mrb[132].mxu0  ;;  %v1515_v6 = vpop.f32.mrb[133].mxu1  ;;  %v3674_v14 = vld [vmem:[#allocation3_spill] sm:$0xff]  ;;  %v3675_v45 = vld [vmem:[#allocation6_spill] sm:$0xff] }
 0x21e   :  { %v1836_v27 = vpop.f32.mrb[133].mxu0  ;;  %v1516_v61 = vpop.f32.mrb[134].mxu1 }
 0x21f   :  { %1994 = vst.msk [vmem:[%s3639_s3 + $0x28] sm:$0xf] %vm1983_vm2, %v2247_v37  ;;  %v2248_v46 = vpack.c.bf16 %v1904_v38, %v1904_v38  ;;  %v1835_v63 = vadd.f32 %v1834_v49, %v1514_v52  ;;  %v1517_v43 = vadd.f32 %v3554_v41, %v1516_v61  ;;  %v1837_v36 = vpop.f32.mrb[134].mxu0  ;;  %v1518_v59 = vpop.f32.mrb[135].mxu1  ;;  %v3676_v37 = vmax.f32 %v3674_v14, %v3675_v45  ;;  %v3677_v49 = vld [vmem:[#allocation4_spill] sm:$0xff] }
 0x220   :  { %v1839_v21 = vpop.f32.mrb[135].mxu0 }
 0x221   :  { %1995 = vst.msk [vmem:[%s3639_s3 + $0x2c] sm:$0xf] %vm1983_vm2, %v2248_v46  ;;  %v1887_v53 = vmax.f32 %v3452_v3, %v1835_v63  ;;  %v1838_v54 = vadd.f32 %v1837_v36, %v1517_v43 }
 0x223   :  { %v1905_v9 = vmax.f32 %v3666_v42, %v1887_v53  ;;  %v1888_v25 = vmax.f32 %v3455_v13, %v1838_v54 }
 0x224   :  { %v1521_v22 = vpop.f32.mrb[136].mxu1 }
 0x225   :  { %v2249_v29 = vpack.c.bf16 %v1905_v9, %v1905_v9  ;;  %v1906_v40 = vmax.f32 %v3667_v10, %v1888_v25  ;;  %v1522_v51 = vadd.f32 %v3554_v41, %v1521_v22  ;;  %v1842_v47 = vpop.f32.mrb[136].mxu0  ;;  %v1523_v15 = vpop.f32.mrb[137].mxu1 }
 0x226   :  { %v1844_v48 = vpop.f32.mrb[137].mxu0  ;;  %v1524_v17 = vpop.f32.mrb[138].mxu1 }
 0x227   :  { %1996 = vst.msk [vmem:[%s3639_s3 + $0x30] sm:$0xf] %vm1983_vm2, %v2249_v29  ;;  %v2250_v1 = vpack.c.bf16 %v1906_v40, %v1906_v40  ;;  %v1843_v11 = vadd.f32 %v1842_v47, %v1522_v51  ;;  %v1525_v3 = vadd.f32 %v3554_v41, %v1524_v17  ;;  %v1845_v13 = vpop.f32.mrb[138].mxu0  ;;  %v1526_v60 = vpop.f32.mrb[139].mxu1 }
 0x228   :  { %v1847_v18 = vpop.f32.mrb[139].mxu0 }
 0x229   :  { %1997 = vst.msk [vmem:[%s3639_s3 + $0x34] sm:$0xf] %vm1983_vm2, %v2250_v1  ;;  %v1889_v7 = vmax.f32 %v3458_v44, %v1843_v11  ;;  %v1846_v31 = vadd.f32 %v1845_v13, %v1525_v3 }
 0x22b   :  { %v1907_v26 = vmax.f32 %v3668_v33, %v1889_v7  ;;  %v1890_v8 = vmax.f32 %v3669_v55, %v1846_v31 }
 0x22c   :  { %v1529_v16 = vpop.f32.mrb[140].mxu1 }
 0x22d   :  { %v2251_v57 = vpack.c.bf16 %v1907_v26, %v1907_v26  ;;  %v1908_v62 = vmax.f32 %v3672_v32, %v1890_v8  ;;  %v1530_v28 = vadd.f32 %v3554_v41, %v1529_v16  ;;  %v1850_v12 = vpop.f32.mrb[140].mxu0  ;;  %v1531_v5 = vpop.f32.mrb[141].mxu1 }
 0x22e   :  { %v1852_v35 = vpop.f32.mrb[141].mxu0  ;;  %v1532_v24 = vpop.f32.mrb[142].mxu1 }
 0x22f   :  { %1998 = vst.msk [vmem:[%s3639_s3 + $0x38] sm:$0xf] %vm1983_vm2, %v2251_v57  ;;  %v2252_v20 = vpack.c.bf16 %v1908_v62, %v1908_v62  ;;  %v1851_v50 = vadd.f32 %v1850_v12, %v1530_v28  ;;  %v1533_v44 = vadd.f32 %v3554_v41, %v1532_v24  ;;  %v1853_v4 = vpop.f32.mrb[142].mxu0  ;;  %v1534_v23 = vpop.f32.mrb[143].mxu1  ;;  %v3678_v41 = vld [vmem:[#allocation7_spill] sm:$0xff] }
 0x230   :  { %v1855_v56 = vpop.f32.mrb[143].mxu0  ;;  %v3679_v6 = vmax.f32 %v3677_v49, %v3678_v41 }
 0x231   :  { %1999 = vst.msk [vmem:[%s3639_s3 + $0x3c] sm:$0xf] %vm1983_vm2, %v2252_v20  ;;  %v1891_v30 = vmax.f32 %v3673_v58, %v1851_v50  ;;  %v1854_v2 = vadd.f32 %v1853_v4, %v1533_v44 }
 0x233   :  { %v1909_v0 = vmax.f32 %v3676_v37, %v1891_v30  ;;  %v1892_v38 = vmax.f32 %v3467_v34, %v1854_v2 }
 0x235   :  { %v2253_v52 = vpack.c.bf16 %v1909_v0, %v1909_v0  ;;  %v1910_v27 = vmax.f32 %v3679_v6, %v1892_v38 }
 0x237   :  { %2000 = vst.msk [vmem:[%s3639_s3 + $0x40] sm:$0xf] %vm1983_vm2, %v2253_v52  ;;  %v2254_v61 = vpack.c.bf16 %v1910_v27, %v1910_v27 }
 0x239   :  { %2001 = vst.msk [vmem:[%s3639_s3 + $0x44] sm:$0xf] %vm1983_vm2, %v2254_v61 }

// kernel: forward.5
= control target key start
LH: loop header
LB: loop body
LE: loop exit
PB: predicated region body
PF: predicated region fallthrough
CT: control target
= control target key end

     0   :  { %v934_v1 = vlaneseq  ;;  %v9765_v3 = vmov 0   ;;  %v9766_v6 = vmov 1966171168   ;;  %vm5672_vm0 = vcmask 130048   ;;  %s12906_s0 = inlined_call_operand.vmem [shape: bf16[2,3600], index: 0, kind: input, shape index: {}]   ;;  %s12907_s1 = inlined_call_operand.vmem [shape: bf16[3600,512], index: 1, kind: input, shape index: {}]   ;;  %s12908_s2 = inlined_call_operand.vmem [shape: f32[1,512], index: 2, kind: input, shape index: {}]   ;;  %s12909_s3 = inlined_call_operand.vmem [shape: f32[2,2], index: 3, kind: input, shape index: {}]   ;;  %s12910_s4 = inlined_call_operand.vmem [shape: f32[512,2], index: 4, kind: input, shape index: {}]   ;;  %s12911_s5 = inlined_call_operand.vmem [shape: f32[2,2], index: 5, kind: input, shape index: {}]   ;;  %s12912_s6 = inlined_call_operand.vmem [shape: f32[1,2], index: 6, kind: input, shape index: {}]   ;;  %s12913_s7 = inlined_call_operand.hbm [shape: f32[2,2], index: 7, kind: output, shape index: {}]  }
   0x1   :  { %v8383_v0 = vld [vmem:[%s12907_s1 + $0x4] ss:$16 sps:$4 sm:$0xff]   ;;  %v8385_v2 = vld [vmem:[%s12907_s1] ss:$16 sps:$4 sm:$0xff]   ;;  %6282 = vmatprep.mubr.bf16.mxu1 %v9765_v3  ;;  %v960_v7 = vunpack.c.l.s4 %v9766_v6  ;;  %v8394_v12 = vld [vmem:[%s12907_s1 + $0xc] ss:$16 sps:$4 sm:$0xff]  }
   0x2   :  { %5676 = vmatprep.subr.bf16.mxu0 %v8383_v0  ;;  %v8386_v4 = vld [vmem:[%s12907_s1 + $0x1c04] ss:$16 sps:$4 sm:$0xff]   ;;  %v9820_v5 = vshrl.u32 %v934_v1, 7  ;;  %v8390_v9 = vld [vmem:[%s12907_s1 + $0x1c00] ss:$16 sps:$4 sm:$0xff]  }
   0x3   :  { %5677 = vmatpush1.bf16.msra.mxu0 %v8385_v2  ;;  %v8388_v8 = vld [vmem:[%s12907_s1 + $0x24] ss:$16 sps:$4 sm:$0xff]   ;;  %v8391_v10 = vld [vmem:[%s12907_s1 + $0x20] ss:$16 sps:$4 sm:$0xff]   ;;  %6250 = vmatprep.subr.bf16.mxu1 %v8386_v4  ;;  %v961_v11 = vunpack.c.0.s8 %v960_v7  ;;  %v31_v14 = vld [vmem:[%s12906_s0 + $0x18] sm:$0x1f] }
   0x4   :  { %5678 = vmatprep.subr.bf16.mxu0 %v8388_v8  ;;  %6251 = vmatpush1.bf16.msra.mxu1 %v8390_v9  ;;  %v8395_v13 = vld [vmem:[%s12907_s1 + $0x44] ss:$16 sps:$4 sm:$0xff]   ;;  %v1105_v16 = vcombine.high %v31_v14, %v31_v14  ;;  %v8398_v17 = vld [vmem:[%s12907_s1 + $0x40] ss:$16 sps:$4 sm:$0xff]   ;;  %v8392_v20 = vld [vmem:[%s12907_s1 + $0x8] ss:$16 sps:$4 sm:$0xff]  }
   0x5   :  { %v9841_v15 = vsub.s32 %v961_v11, %v9820_v5  ;;  %6291 = vmatprep.subr.bf16.mxu1 %v8394_v12  ;;  %v8402_v19 = vld [vmem:[%s12907_s1 + $0x64] ss:$16 sps:$4 sm:$0xff]   ;;  %v8401_v21 = vld [vmem:[%s12907_s1 + $0x2c] ss:$16 sps:$4 sm:$0xff]   ;;  %v8404_v23 = vld [vmem:[%s12907_s1 + $0x60] ss:$16 sps:$4 sm:$0xff]  }
   0x6   :  { %v8408_v24 = vld [vmem:[%s12907_s1 + $0x84] ss:$16 sps:$4 sm:$0xff]   ;;  %v8399_v25 = vld [vmem:[%s12907_s1 + $0x28] ss:$16 sps:$4 sm:$0xff]   ;;  %v8407_v26 = vld [vmem:[%s12907_s1 + $0x4c] ss:$16 sps:$4 sm:$0xff]  }
   0x7   :  { %5679 = vmatpush1.bf16.msra.mxu0 %v8391_v10  ;;  %v1119_v18 = vrot.slane %v1105_v16, %v9841_v15  ;;  %v8410_v27 = vld [vmem:[%s12907_s1 + $0x80] ss:$16 sps:$4 sm:$0xff]   ;;  %v8414_v28 = vld [vmem:[%s12907_s1 + $0xa4] ss:$16 sps:$4 sm:$0xff]   ;;  %v8405_v29 = vld [vmem:[%s12907_s1 + $0x48] ss:$16 sps:$4 sm:$0xff]  }
   0x8   :  { %5680 = vmatprep.subr.bf16.mxu0 %v8395_v13  ;;  %v8413_v30 = vld [vmem:[%s12907_s1 + $0x6c] ss:$16 sps:$4 sm:$0xff]   ;;  %v8416_v31 = vld [vmem:[%s12907_s1 + $0xa0] ss:$16 sps:$4 sm:$0xff]   ;;  %v8420_v32 = vld [vmem:[%s12907_s1 + $0xc4] ss:$16 sps:$4 sm:$0xff]  }
   0x9   :  { %v9857_v22 = vrot.slane %v1119_v18, %v9841_v15  ;;  %v8411_v33 = vld [vmem:[%s12907_s1 + $0x68] ss:$16 sps:$4 sm:$0xff]   ;;  %v8419_v34 = vld [vmem:[%s12907_s1 + $0x8c] ss:$16 sps:$4 sm:$0xff]   ;;  %v8422_v35 = vld [vmem:[%s12907_s1 + $0xc0] ss:$16 sps:$4 sm:$0xff]  }
   0xa   :  { %v8426_v36 = vld [vmem:[%s12907_s1 + $0xe4] ss:$16 sps:$4 sm:$0xff]   ;;  %v8417_v37 = vld [vmem:[%s12907_s1 + $0x88] ss:$16 sps:$4 sm:$0xff]   ;;  %v8425_v38 = vld [vmem:[%s12907_s1 + $0xac] ss:$16 sps:$4 sm:$0xff]  }
   0xb   :  { %5681 = vmatpush1.bf16.msra.mxu0 %v8398_v17  ;;  %8118 = vmatmul.mubr.msk.bf16.vlgmr.msra.gmra.mrb[0].mxu1 %vm5672_vm0, %v9857_v22  ;;  %v8428_v39 = vld [vmem:[%s12907_s1 + $0xe0] ss:$16 sps:$4 sm:$0xff]   ;;  %v8432_v40 = vld [vmem:[%s12907_s1 + $0x104] ss:$16 sps:$4 sm:$0xff]   ;;  %v8423_v41 = vld [vmem:[%s12907_s1 + $0xa8] ss:$16 sps:$4 sm:$0xff]  }
   0xc   :  { %5682 = vmatprep.subr.bf16.mxu0 %v8402_v19  ;;  %6292 = vmatpush1.bf16.msra.mxu1 %v8392_v20  ;;  %v8431_v42 = vld [vmem:[%s12907_s1 + $0xcc] ss:$16 sps:$4 sm:$0xff]   ;;  %v8434_v43 = vld [vmem:[%s12907_s1 + $0x100] ss:$16 sps:$4 sm:$0xff]   ;;  %v8438_v44 = vld [vmem:[%s12907_s1 + $0x124] ss:$16 sps:$4 sm:$0xff]  }
   0xd   :  { %6293 = vmatprep.subr.bf16.mxu1 %v8401_v21  ;;  %v8429_v45 = vld [vmem:[%s12907_s1 + $0xc8] ss:$16 sps:$4 sm:$0xff]   ;;  %v8437_v46 = vld [vmem:[%s12907_s1 + $0xec] ss:$16 sps:$4 sm:$0xff]   ;;  %v8440_v47 = vld [vmem:[%s12907_s1 + $0x120] ss:$16 sps:$4 sm:$0xff]  }
   0xe   :  { %v8444_v48 = vld [vmem:[%s12907_s1 + $0x144] ss:$16 sps:$4 sm:$0xff]   ;;  %v8435_v49 = vld [vmem:[%s12907_s1 + $0xe8] ss:$16 sps:$4 sm:$0xff]   ;;  %v8443_v50 = vld [vmem:[%s12907_s1 + $0x10c] ss:$16 sps:$4 sm:$0xff]  }
   0xf   :  { %5683 = vmatpush1.bf16.msra.mxu0 %v8404_v23  ;;  %v8446_v51 = vld [vmem:[%s12907_s1 + $0x140] ss:$16 sps:$4 sm:$0xff]   ;;  %v8450_v52 = vld [vmem:[%s12907_s1 + $0x164] ss:$16 sps:$4 sm:$0xff]   ;;  %v8441_v53 = vld [vmem:[%s12907_s1 + $0x108] ss:$16 sps:$4 sm:$0xff]  }
  0x10   :  { %5684 = vmatprep.subr.bf16.mxu0 %v8408_v24  ;;  %6294 = vmatpush1.bf16.msra.mxu1 %v8399_v25  ;;  %v8449_v54 = vld [vmem:[%s12907_s1 + $0x12c] ss:$16 sps:$4 sm:$0xff]   ;;  %v8452_v55 = vld [vmem:[%s12907_s1 + $0x160] ss:$16 sps:$4 sm:$0xff]   ;;  %v8456_v57 = vld [vmem:[%s12907_s1 + $0x184] ss:$16 sps:$4 sm:$0xff]  }
  0x11   :  { %6295 = vmatprep.subr.bf16.mxu1 %v8407_v26  ;;  %v9963_v56 = vld [vmem:[%s12906_s0] sm:$0xff]  ;;  %v8447_v59 = vld [vmem:[%s12907_s1 + $0x128] ss:$16 sps:$4 sm:$0xff]   ;;  %v8455_v60 = vld [vmem:[%s12907_s1 + $0x14c] ss:$16 sps:$4 sm:$0xff]  }
  0x12   :  { %v965_v58 = vrot.slane %v9963_v56, %v9841_v15  ;;  %v8458_v62 = vld [vmem:[%s12907_s1 + $0x180] ss:$16 sps:$4 sm:$0xff]   ;;  %v8462_v63 = vld [vmem:[%s12907_s1 + $0x1a4] ss:$16 sps:$4 sm:$0xff]   ;;  %v8453_v1 = vld [vmem:[%s12907_s1 + $0x148] ss:$16 sps:$4 sm:$0xff]  }
  0x13   :  { %5685 = vmatpush1.bf16.msra.mxu0 %v8410_v27  ;;  %v8461_v2 = vld [vmem:[%s12907_s1 + $0x16c] ss:$16 sps:$4 sm:$0xff]   ;;  %v8464_v4 = vld [vmem:[%s12907_s1 + $0x1a0] ss:$16 sps:$4 sm:$0xff]   ;;  %v8468_v6 = vld [vmem:[%s12907_s1 + $0x1c4] ss:$16 sps:$4 sm:$0xff]  }
  0x14   :  { %5686 = vmatprep.subr.bf16.mxu0 %v8414_v28  ;;  %6296 = vmatpush1.bf16.msra.mxu1 %v8405_v29  ;;  %v973_v61 = vcombine.high %v965_v58, %v965_v58  ;;  %v8459_v7 = vld [vmem:[%s12907_s1 + $0x168] ss:$16 sps:$4 sm:$0xff]   ;;  %v8467_v8 = vld [vmem:[%s12907_s1 + $0x18c] ss:$16 sps:$4 sm:$0xff]   ;;  %v8470_v9 = vld [vmem:[%s12907_s1 + $0x1c0] ss:$16 sps:$4 sm:$0xff]   ;;  %v10026_v18 = vrot.slane %v965_v58, %v9841_v15 }
  0x15   :  { %6297 = vmatprep.subr.bf16.mxu1 %v8413_v30  ;;  %v8474_v10 = vld [vmem:[%s12907_s1 + $0x1e4] ss:$16 sps:$4 sm:$0xff]   ;;  %v8465_v11 = vld [vmem:[%s12907_s1 + $0x188] ss:$16 sps:$4 sm:$0xff]   ;;  %v8473_v12 = vld [vmem:[%s12907_s1 + $0x1ac] ss:$16 sps:$4 sm:$0xff]  }
  0x16   :  { %v995_v0 = vrot.slane %v973_v61, %v9841_v15  ;;  %v8476_v13 = vld [vmem:[%s12907_s1 + $0x1e0] ss:$16 sps:$4 sm:$0xff]   ;;  %v8482_v14 = vld [vmem:[%s12907_s1 + $0x204] ss:$16 sps:$4 sm:$0xff]   ;;  %v8471_v16 = vld [vmem:[%s12907_s1 + $0x1a8] ss:$16 sps:$4 sm:$0xff]  }
  0x17   :  { %5687 = vmatpush1.bf16.msra.mxu0 %v8416_v31  ;;  %v8479_v17 = vld [vmem:[%s12907_s1 + $0x1cc] ss:$16 sps:$4 sm:$0xff]   ;;  %v8480_v19 = vld [vmem:[%s12907_s1 + $0x200] ss:$16 sps:$4 sm:$0xff]   ;;  %v8488_v20 = vld [vmem:[%s12907_s1 + $0x224] ss:$16 sps:$4 sm:$0xff]  }
  0x18   :  { %5688 = vmatprep.subr.bf16.mxu0 %v8420_v32  ;;  %6298 = vmatpush1.bf16.msra.mxu1 %v8411_v33  ;;  %v1005_v21 = vcombine.high %v995_v0, %v995_v0  ;;  %v8477_v23 = vld [vmem:[%s12907_s1 + $0x1c8] ss:$16 sps:$4 sm:$0xff]   ;;  %v8485_v24 = vld [vmem:[%s12907_s1 + $0x1ec] ss:$16 sps:$4 sm:$0xff]   ;;  %v8486_v25 = vld [vmem:[%s12907_s1 + $0x220] ss:$16 sps:$4 sm:$0xff]  }
  0x19   :  { %6299 = vmatprep.subr.bf16.mxu1 %v8419_v34  ;;  %5708 = vmatprep.mubr.bf16.mxu0 %v995_v0  ;;  %v8494_v26 = vld [vmem:[%s12907_s1 + $0x244] ss:$16 sps:$4 sm:$0xff]   ;;  %v8483_v27 = vld [vmem:[%s12907_s1 + $0x1e8] ss:$16 sps:$4 sm:$0xff]   ;;  %v8491_v28 = vld [vmem:[%s12907_s1 + $0x20c] ss:$16 sps:$4 sm:$0xff]  }
  0x1a   :  { %6323 = vmatprep.mubr.bf16.mxu1 %v995_v0  ;;  %v8492_v29 = vld [vmem:[%s12907_s1 + $0x240] ss:$16 sps:$4 sm:$0xff]   ;;  %v8500_v30 = vld [vmem:[%s12907_s1 + $0x264] ss:$16 sps:$4 sm:$0xff]   ;;  %v8489_v31 = vld [vmem:[%s12907_s1 + $0x208] ss:$16 sps:$4 sm:$0xff]  }
  0x1b   :  { %5689 = vmatpush1.bf16.msra.mxu0 %v8422_v35  ;;  %v8497_v32 = vld [vmem:[%s12907_s1 + $0x22c] ss:$16 sps:$4 sm:$0xff]   ;;  %v8498_v33 = vld [vmem:[%s12907_s1 + $0x260] ss:$16 sps:$4 sm:$0xff]   ;;  %v8506_v34 = vld [vmem:[%s12907_s1 + $0x284] ss:$16 sps:$4 sm:$0xff]  }
  0x1c   :  { %5690 = vmatprep.subr.bf16.mxu0 %v8426_v36  ;;  %6300 = vmatpush1.bf16.msra.mxu1 %v8417_v37  ;;  %v8495_v35 = vld [vmem:[%s12907_s1 + $0x228] ss:$16 sps:$4 sm:$0xff]   ;;  %v8503_v36 = vld [vmem:[%s12907_s1 + $0x24c] ss:$16 sps:$4 sm:$0xff]   ;;  %v8504_v37 = vld [vmem:[%s12907_s1 + $0x280] ss:$16 sps:$4 sm:$0xff]  }
  0x1d   :  { %6301 = vmatprep.subr.bf16.mxu1 %v8425_v38  ;;  %v8512_v38 = vld [vmem:[%s12907_s1 + $0x2a4] ss:$16 sps:$4 sm:$0xff]   ;;  %v8534_v58 = vld [vmem:[%s12907_s1 + $0x320] ss:$16 sps:$4 sm:$0xff]   ;;  %v8539_v61 = vld [vmem:[%s12907_s1 + $0x30c] ss:$16 sps:$4 sm:$0xff]  }
  0x1e   :  { %v8537_v0 = vld [vmem:[%s12907_s1 + $0x308] ss:$16 sps:$4 sm:$0xff]  }
  0x1f   :  { %5691 = vmatpush1.bf16.msra.mxu0 %v8428_v39  ;;  %v8501_v39 = vld [vmem:[%s12907_s1 + $0x248] ss:$16 sps:$4 sm:$0xff]  }
  0x20   :  { %5692 = vmatprep.subr.bf16.mxu0 %v8432_v40  ;;  %6302 = vmatpush1.bf16.msra.mxu1 %v8423_v41  ;;  %v8509_v40 = vld [vmem:[%s12907_s1 + $0x26c] ss:$16 sps:$4 sm:$0xff]   ;;  %v8510_v41 = vld [vmem:[%s12907_s1 + $0x2a0] ss:$16 sps:$4 sm:$0xff]  }
  0x21   :  { %6303 = vmatprep.subr.bf16.mxu1 %v8431_v42  ;;  %v8518_v42 = vld [vmem:[%s12907_s1 + $0x2c4] ss:$16 sps:$4 sm:$0xff]  }
  0x23   :  { %5693 = vmatpush1.bf16.msra.mxu0 %v8434_v43  ;;  %v8507_v43 = vld [vmem:[%s12907_s1 + $0x268] ss:$16 sps:$4 sm:$0xff]  }
  0x24   :  { %5694 = vmatprep.subr.bf16.mxu0 %v8438_v44  ;;  %6304 = vmatpush1.bf16.msra.mxu1 %v8429_v45  ;;  %v8515_v44 = vld [vmem:[%s12907_s1 + $0x28c] ss:$16 sps:$4 sm:$0xff]   ;;  %v8516_v45 = vld [vmem:[%s12907_s1 + $0x2c0] ss:$16 sps:$4 sm:$0xff]  }
  0x25   :  { %6305 = vmatprep.subr.bf16.mxu1 %v8437_v46  ;;  %v8524_v46 = vld [vmem:[%s12907_s1 + $0x2e4] ss:$16 sps:$4 sm:$0xff]  }
  0x27   :  { %5695 = vmatpush1.bf16.msra.mxu0 %v8440_v47  ;;  %v8513_v47 = vld [vmem:[%s12907_s1 + $0x288] ss:$16 sps:$4 sm:$0xff]  }
  0x28   :  { %5696 = vmatprep.subr.bf16.mxu0 %v8444_v48  ;;  %6306 = vmatpush1.bf16.msra.mxu1 %v8435_v49  ;;  %v8521_v48 = vld [vmem:[%s12907_s1 + $0x2ac] ss:$16 sps:$4 sm:$0xff]   ;;  %v8522_v49 = vld [vmem:[%s12907_s1 + $0x2e0] ss:$16 sps:$4 sm:$0xff]  }
  0x29   :  { %6307 = vmatprep.subr.bf16.mxu1 %v8443_v50  ;;  %v8530_v50 = vld [vmem:[%s12907_s1 + $0x304] ss:$16 sps:$4 sm:$0xff]  }
  0x2b   :  { %5697 = vmatpush1.bf16.msra.mxu0 %v8446_v51  ;;  %v8519_v51 = vld [vmem:[%s12907_s1 + $0x2a8] ss:$16 sps:$4 sm:$0xff]  }
  0x2c   :  { %5698 = vmatprep.subr.bf16.mxu0 %v8450_v52  ;;  %6308 = vmatpush1.bf16.msra.mxu1 %v8441_v53  ;;  %v8527_v52 = vld [vmem:[%s12907_s1 + $0x2cc] ss:$16 sps:$4 sm:$0xff]   ;;  %v8528_v53 = vld [vmem:[%s12907_s1 + $0x300] ss:$16 sps:$4 sm:$0xff]  }
  0x2d   :  { %6309 = vmatprep.subr.bf16.mxu1 %v8449_v54  ;;  %v8536_v54 = vld [vmem:[%s12907_s1 + $0x324] ss:$16 sps:$4 sm:$0xff]  }
  0x2f   :  { %5699 = vmatpush1.bf16.msra.mxu0 %v8452_v55  ;;  %v8525_v55 = vld [vmem:[%s12907_s1 + $0x2c8] ss:$16 sps:$4 sm:$0xff]  }
  0x30   :  { %5700 = vmatprep.subr.bf16.mxu0 %v8456_v57  ;;  %6310 = vmatpush1.bf16.msra.mxu1 %v8447_v59  ;;  %v8533_v57 = vld [vmem:[%s12907_s1 + $0x2ec] ss:$16 sps:$4 sm:$0xff]   ;;  %v8542_v59 = vld [vmem:[%s12907_s1 + $0x344] ss:$16 sps:$4 sm:$0xff]  }
  0x31   :  { %6311 = vmatprep.subr.bf16.mxu1 %v8455_v60  ;;  %v8531_v60 = vld [vmem:[%s12907_s1 + $0x2e8] ss:$16 sps:$4 sm:$0xff]  }
  0x33   :  { %5701 = vmatpush1.bf16.msra.mxu0 %v8458_v62  ;;  %v8540_v62 = vld [vmem:[%s12907_s1 + $0x340] ss:$16 sps:$4 sm:$0xff]  }
  0x34   :  { %5702 = vmatprep.subr.bf16.mxu0 %v8462_v63  ;;  %6312 = vmatpush1.bf16.msra.mxu1 %v8453_v1  ;;  %v8548_v63 = vld [vmem:[%s12907_s1 + $0x364] ss:$16 sps:$4 sm:$0xff]   ;;  %v8545_v1 = vld [vmem:[%s12907_s1 + $0x32c] ss:$16 sps:$4 sm:$0xff]  }
  0x35   :  { %6313 = vmatprep.subr.bf16.mxu1 %v8461_v2  ;;  %v8546_v2 = vld [vmem:[%s12907_s1 + $0x360] ss:$16 sps:$4 sm:$0xff]  }
  0x37   :  { %5703 = vmatpush1.bf16.msra.mxu0 %v8464_v4  ;;  %v8554_v4 = vld [vmem:[%s12907_s1 + $0x384] ss:$16 sps:$4 sm:$0xff]  }
  0x38   :  { %5704 = vmatprep.subr.bf16.mxu0 %v8468_v6  ;;  %6314 = vmatpush1.bf16.msra.mxu1 %v8459_v7  ;;  %v8543_v6 = vld [vmem:[%s12907_s1 + $0x328] ss:$16 sps:$4 sm:$0xff]   ;;  %v8551_v7 = vld [vmem:[%s12907_s1 + $0x34c] ss:$16 sps:$4 sm:$0xff]  }
  0x39   :  { %6315 = vmatprep.subr.bf16.mxu1 %v8467_v8  ;;  %v8552_v8 = vld [vmem:[%s12907_s1 + $0x380] ss:$16 sps:$4 sm:$0xff]  }
  0x3b   :  { %5705 = vmatpush1.bf16.msra.mxu0 %v8470_v9  ;;  %v8560_v9 = vld [vmem:[%s12907_s1 + $0x3a4] ss:$16 sps:$4 sm:$0xff]  }
  0x3c   :  { %5706 = vmatprep.subr.bf16.mxu0 %v8474_v10  ;;  %6316 = vmatpush1.bf16.msra.mxu1 %v8465_v11  ;;  %v8549_v10 = vld [vmem:[%s12907_s1 + $0x348] ss:$16 sps:$4 sm:$0xff]   ;;  %v8557_v11 = vld [vmem:[%s12907_s1 + $0x36c] ss:$16 sps:$4 sm:$0xff]  }
  0x3d   :  { %6317 = vmatprep.subr.bf16.mxu1 %v8473_v12  ;;  %v8558_v12 = vld [vmem:[%s12907_s1 + $0x3a0] ss:$16 sps:$4 sm:$0xff]  }
  0x3f   :  { %5707 = vmatpush1.bf16.msra.mxu0 %v8476_v13  ;;  %v8566_v13 = vld [vmem:[%s12907_s1 + $0x3c4] ss:$16 sps:$4 sm:$0xff]  }
  0x40   :  { %5717 = vmatprep.subr.bf16.mxu0 %v8482_v14  ;;  %6318 = vmatpush1.bf16.msra.mxu1 %v8471_v16  ;;  %v958_v14 = vcombine.high %v9963_v56, %v9963_v56  ;;  %v8555_v16 = vld [vmem:[%s12907_s1 + $0x368] ss:$16 sps:$4 sm:$0xff]   ;;  %v8572_v56 = vld [vmem:[%s12907_s1 + $0x3e4] ss:$16 sps:$4 sm:$0xff]  }
  0x41   :  { %6319 = vmatprep.subr.bf16.mxu1 %v8479_v17  ;;  %v8563_v17 = vld [vmem:[%s12907_s1 + $0x38c] ss:$16 sps:$4 sm:$0xff]  }
  0x42   :  { %5709 = vmatmul.mubr.bf16.vlgmr.msra.gmra.mrb[0].mxu0 %v10026_v18 }
  0x43   :  { %5718 = vmatpush1.bf16.msra.mxu0 %v8480_v19  ;;  %5749 = vmatprep.mubr.bf16.mxu0 %v1005_v21  ;;  %v8564_v19 = vld [vmem:[%s12907_s1 + $0x3c0] ss:$16 sps:$4 sm:$0xff]  }
  0x44   :  { %5719 = vmatprep.subr.bf16.mxu0 %v8488_v20  ;;  %6320 = vmatpush1.bf16.msra.mxu1 %v8477_v23  ;;  %v10207_v20 = vrot.slane %v958_v14, %v9841_v15  ;;  %v8569_v23 = vld [vmem:[%s12907_s1 + $0x3ac] ss:$16 sps:$4 sm:$0xff]   ;;  %v8650_v14 = vld [vmem:[%s12907_s1 + $0x584] ss:$16 sps:$4 sm:$0xff]  }
  0x45   :  { %6321 = vmatprep.subr.bf16.mxu1 %v8485_v24  ;;  %v8570_v24 = vld [vmem:[%s12907_s1 + $0x3e0] ss:$16 sps:$4 sm:$0xff]  }
  0x47   :  { %5720 = vmatpush1.bf16.msra.mxu0 %v8486_v25  ;;  %v8578_v25 = vld [vmem:[%s12907_s1 + $0x404] ss:$16 sps:$4 sm:$0xff]  }
  0x48   :  { %5721 = vmatprep.subr.bf16.mxu0 %v8494_v26  ;;  %6322 = vmatpush1.bf16.msra.mxu1 %v8483_v27  ;;  %v974_v26 = vcombine.high %v10207_v20, %v10207_v20  ;;  %v8567_v27 = vld [vmem:[%s12907_s1 + $0x3a8] ss:$16 sps:$4 sm:$0xff]  }
  0x49   :  { %6332 = vmatprep.subr.bf16.mxu1 %v8491_v28  ;;  %v8575_v28 = vld [vmem:[%s12907_s1 + $0x3cc] ss:$16 sps:$4 sm:$0xff]  }
  0x4b   :  { %5722 = vmatpush1.bf16.msra.mxu0 %v8492_v29  ;;  %6324 = vmatmul.mubr.bf16.vlgmr.msra.gmra.mrb[4].mxu1 %v10026_v18  ;;  %v1003_v29 = vcombine.high %v10026_v18, %v10026_v18  ;;  %v8581_v18 = vld [vmem:[%s12907_s1 + $0x3ec] ss:$16 sps:$4 sm:$0xff]  }
  0x4c   :  { %5723 = vmatprep.subr.bf16.mxu0 %v8500_v30  ;;  %6333 = vmatpush1.bf16.msra.mxu1 %v8489_v31  ;;  %v8576_v30 = vld [vmem:[%s12907_s1 + $0x400] ss:$16 sps:$4 sm:$0xff]   ;;  %v8584_v31 = vld [vmem:[%s12907_s1 + $0x424] ss:$16 sps:$4 sm:$0xff]  }
  0x4d   :  { %6364 = vmatprep.mubr.bf16.mxu1 %v1005_v21  ;;  %6334 = vmatprep.subr.bf16.mxu1 %v8497_v32  ;;  %v8561_v21 = vld [vmem:[%s12907_s1 + $0x388] ss:$16 sps:$4 sm:$0xff]   ;;  %v10238_v32 = vrot.slane %v974_v26, %v9841_v15 }
  0x4e   :  { %v8651_v26 = vld [vmem:[%s12907_s1 + $0x568] ss:$16 sps:$4 sm:$0xff]  }
  0x4f   :  { %5724 = vmatpush1.bf16.msra.mxu0 %v8498_v33  ;;  %v8573_v33 = vld [vmem:[%s12907_s1 + $0x3c8] ss:$16 sps:$4 sm:$0xff]  }
  0x50   :  { %5725 = vmatprep.subr.bf16.mxu0 %v8506_v34  ;;  %6335 = vmatpush1.bf16.msra.mxu1 %v8495_v35  ;;  %v8582_v34 = vld [vmem:[%s12907_s1 + $0x420] ss:$16 sps:$4 sm:$0xff]   ;;  %v8590_v35 = vld [vmem:[%s12907_s1 + $0x444] ss:$16 sps:$4 sm:$0xff]  }
  0x51   :  { %6336 = vmatprep.subr.bf16.mxu1 %v8503_v36  ;;  %v8579_v36 = vld [vmem:[%s12907_s1 + $0x3e8] ss:$16 sps:$4 sm:$0xff]  }
  0x53   :  { %5726 = vmatpush1.bf16.msra.mxu0 %v8504_v37  ;;  %v8587_v37 = vld [vmem:[%s12907_s1 + $0x40c] ss:$16 sps:$4 sm:$0xff]  }
  0x54   :  { %5727 = vmatprep.subr.bf16.mxu0 %v8512_v38  ;;  %6337 = vmatpush1.bf16.msra.mxu1 %v8501_v39  ;;  %v8588_v38 = vld [vmem:[%s12907_s1 + $0x440] ss:$16 sps:$4 sm:$0xff]   ;;  %v8596_v39 = vld [vmem:[%s12907_s1 + $0x464] ss:$16 sps:$4 sm:$0xff]  }
  0x55   :  { %6338 = vmatprep.subr.bf16.mxu1 %v8509_v40  ;;  %v8585_v40 = vld [vmem:[%s12907_s1 + $0x408] ss:$16 sps:$4 sm:$0xff]  }
  0x57   :  { %5728 = vmatpush1.bf16.msra.mxu0 %v8510_v41  ;;  %v8593_v41 = vld [vmem:[%s12907_s1 + $0x42c] ss:$16 sps:$4 sm:$0xff]  }
  0x58   :  { %5729 = vmatprep.subr.bf16.mxu0 %v8518_v42  ;;  %6339 = vmatpush1.bf16.msra.mxu1 %v8507_v43  ;;  %v8594_v42 = vld [vmem:[%s12907_s1 + $0x460] ss:$16 sps:$4 sm:$0xff]   ;;  %v8602_v43 = vld [vmem:[%s12907_s1 + $0x484] ss:$16 sps:$4 sm:$0xff]  }
  0x59   :  { %6340 = vmatprep.subr.bf16.mxu1 %v8515_v44  ;;  %v8591_v44 = vld [vmem:[%s12907_s1 + $0x428] ss:$16 sps:$4 sm:$0xff]  }
  0x5b   :  { %5730 = vmatpush1.bf16.msra.mxu0 %v8516_v45  ;;  %v8599_v45 = vld [vmem:[%s12907_s1 + $0x44c] ss:$16 sps:$4 sm:$0xff]  }
  0x5c   :  { %5731 = vmatprep.subr.bf16.mxu0 %v8524_v46  ;;  %6341 = vmatpush1.bf16.msra.mxu1 %v8513_v47  ;;  %v8600_v46 = vld [vmem:[%s12907_s1 + $0x480] ss:$16 sps:$4 sm:$0xff]   ;;  %v8608_v47 = vld [vmem:[%s12907_s1 + $0x4a4] ss:$16 sps:$4 sm:$0xff]  }
  0x5d   :  { %6342 = vmatprep.subr.bf16.mxu1 %v8521_v48  ;;  %v8597_v48 = vld [vmem:[%s12907_s1 + $0x448] ss:$16 sps:$4 sm:$0xff]  }
  0x5f   :  { %5732 = vmatpush1.bf16.msra.mxu0 %v8522_v49  ;;  %v8605_v49 = vld [vmem:[%s12907_s1 + $0x46c] ss:$16 sps:$4 sm:$0xff]  }
  0x60   :  { %5733 = vmatprep.subr.bf16.mxu0 %v8530_v50  ;;  %6343 = vmatpush1.bf16.msra.mxu1 %v8519_v51  ;;  %v8606_v50 = vld [vmem:[%s12907_s1 + $0x4a0] ss:$16 sps:$4 sm:$0xff]   ;;  %v8614_v51 = vld [vmem:[%s12907_s1 + $0x4c4] ss:$16 sps:$4 sm:$0xff]  }
  0x61   :  { %6344 = vmatprep.subr.bf16.mxu1 %v8527_v52  ;;  %v8603_v52 = vld [vmem:[%s12907_s1 + $0x468] ss:$16 sps:$4 sm:$0xff]  }
  0x63   :  { %5734 = vmatpush1.bf16.msra.mxu0 %v8528_v53  ;;  %v8611_v53 = vld [vmem:[%s12907_s1 + $0x48c] ss:$16 sps:$4 sm:$0xff]  }
  0x64   :  { %5735 = vmatprep.subr.bf16.mxu0 %v8536_v54  ;;  %6345 = vmatpush1.bf16.msra.mxu1 %v8525_v55  ;;  %v8612_v54 = vld [vmem:[%s12907_s1 + $0x4c0] ss:$16 sps:$4 sm:$0xff]   ;;  %v8620_v55 = vld [vmem:[%s12907_s1 + $0x4e4] ss:$16 sps:$4 sm:$0xff]  }
  0x65   :  { %6346 = vmatprep.subr.bf16.mxu1 %v8533_v57  ;;  %v8609_v57 = vld [vmem:[%s12907_s1 + $0x488] ss:$16 sps:$4 sm:$0xff]  }
  0x67   :  { %5736 = vmatpush1.bf16.msra.mxu0 %v8534_v58  ;;  %v8617_v58 = vld [vmem:[%s12907_s1 + $0x4ac] ss:$16 sps:$4 sm:$0xff]  }
  0x68   :  { %5737 = vmatprep.subr.bf16.mxu0 %v8542_v59  ;;  %6347 = vmatpush1.bf16.msra.mxu1 %v8531_v60  ;;  %v8618_v59 = vld [vmem:[%s12907_s1 + $0x4e0] ss:$16 sps:$4 sm:$0xff]   ;;  %v8626_v60 = vld [vmem:[%s12907_s1 + $0x504] ss:$16 sps:$4 sm:$0xff]  }
  0x69   :  { %6348 = vmatprep.subr.bf16.mxu1 %v8539_v61  ;;  %v8615_v61 = vld [vmem:[%s12907_s1 + $0x4a8] ss:$16 sps:$4 sm:$0xff]  }
  0x6b   :  { %5738 = vmatpush1.bf16.msra.mxu0 %v8540_v62  ;;  %v8623_v62 = vld [vmem:[%s12907_s1 + $0x4cc] ss:$16 sps:$4 sm:$0xff]  }
  0x6c   :  { %5739 = vmatprep.subr.bf16.mxu0 %v8548_v63  ;;  %6349 = vmatpush1.bf16.msra.mxu1 %v8537_v0  ;;  %v8624_v63 = vld [vmem:[%s12907_s1 + $0x500] ss:$16 sps:$4 sm:$0xff]   ;;  %v8632_v0 = vld [vmem:[%s12907_s1 + $0x524] ss:$16 sps:$4 sm:$0xff]  }
  0x6d   :  { %6350 = vmatprep.subr.bf16.mxu1 %v8545_v1  ;;  %v8621_v1 = vld [vmem:[%s12907_s1 + $0x4c8] ss:$16 sps:$4 sm:$0xff]  }
  0x6f   :  { %5740 = vmatpush1.bf16.msra.mxu0 %v8546_v2  ;;  %v8629_v2 = vld [vmem:[%s12907_s1 + $0x4ec] ss:$16 sps:$4 sm:$0xff]  }
  0x70   :  { %5741 = vmatprep.subr.bf16.mxu0 %v8554_v4  ;;  %6351 = vmatpush1.bf16.msra.mxu1 %v8543_v6  ;;  %v8630_v4 = vld [vmem:[%s12907_s1 + $0x520] ss:$16 sps:$4 sm:$0xff]   ;;  %v8638_v6 = vld [vmem:[%s12907_s1 + $0x544] ss:$16 sps:$4 sm:$0xff]  }
  0x71   :  { %6352 = vmatprep.subr.bf16.mxu1 %v8551_v7  ;;  %v8627_v7 = vld [vmem:[%s12907_s1 + $0x4e8] ss:$16 sps:$4 sm:$0xff]  }
  0x73   :  { %5742 = vmatpush1.bf16.msra.mxu0 %v8552_v8  ;;  %v8635_v8 = vld [vmem:[%s12907_s1 + $0x50c] ss:$16 sps:$4 sm:$0xff]  }
  0x74   :  { %5743 = vmatprep.subr.bf16.mxu0 %v8560_v9  ;;  %6353 = vmatpush1.bf16.msra.mxu1 %v8549_v10  ;;  %v8636_v9 = vld [vmem:[%s12907_s1 + $0x540] ss:$16 sps:$4 sm:$0xff]   ;;  %v8644_v10 = vld [vmem:[%s12907_s1 + $0x564] ss:$16 sps:$4 sm:$0xff]  }
  0x75   :  { %6354 = vmatprep.subr.bf16.mxu1 %v8557_v11  ;;  %v8633_v11 = vld [vmem:[%s12907_s1 + $0x508] ss:$16 sps:$4 sm:$0xff]  }
  0x77   :  { %5744 = vmatpush1.bf16.msra.mxu0 %v8558_v12  ;;  %v8641_v12 = vld [vmem:[%s12907_s1 + $0x52c] ss:$16 sps:$4 sm:$0xff]  }
  0x78   :  { %5745 = vmatprep.subr.bf16.mxu0 %v8566_v13  ;;  %6355 = vmatpush1.bf16.msra.mxu1 %v8555_v16  ;;  %v8642_v13 = vld [vmem:[%s12907_s1 + $0x560] ss:$16 sps:$4 sm:$0xff]   ;;  %v8639_v16 = vld [vmem:[%s12907_s1 + $0x528] ss:$16 sps:$4 sm:$0xff]  }
  0x79   :  { %6356 = vmatprep.subr.bf16.mxu1 %v8563_v17  ;;  %v8647_v17 = vld [vmem:[%s12907_s1 + $0x54c] ss:$16 sps:$4 sm:$0xff]  }
  0x7b   :  { %5746 = vmatpush1.bf16.msra.mxu0 %v8564_v19  ;;  %v8648_v19 = vld [vmem:[%s12907_s1 + $0x580] ss:$16 sps:$4 sm:$0xff]  }
  0x7c   :  { %5747 = vmatprep.subr.bf16.mxu0 %v8572_v56  ;;  %6357 = vmatpush1.bf16.msra.mxu1 %v8561_v21  ;;  %v8656_v56 = vld [vmem:[%s12907_s1 + $0x5a4] ss:$16 sps:$4 sm:$0xff]   ;;  %v8645_v21 = vld [vmem:[%s12907_s1 + $0x548] ss:$16 sps:$4 sm:$0xff]  }
  0x7d   :  { %6358 = vmatprep.subr.bf16.mxu1 %v8569_v23  ;;  %v8653_v23 = vld [vmem:[%s12907_s1 + $0x56c] ss:$16 sps:$4 sm:$0xff]  }
  0x7f   :  { %5748 = vmatpush1.bf16.msra.mxu0 %v8570_v24  ;;  %v8654_v24 = vld [vmem:[%s12907_s1 + $0x5a0] ss:$16 sps:$4 sm:$0xff]  }
  0x80   :  { %5758 = vmatprep.subr.bf16.mxu0 %v8578_v25  ;;  %6359 = vmatpush1.bf16.msra.mxu1 %v8567_v27  ;;  %v8662_v25 = vld [vmem:[%s12907_s1 + $0x5c4] ss:$16 sps:$4 sm:$0xff]   ;;  %v8659_v27 = vld [vmem:[%s12907_s1 + $0x58c] ss:$16 sps:$4 sm:$0xff]  }
  0x81   :  { %6360 = vmatprep.subr.bf16.mxu1 %v8575_v28  ;;  %v8660_v28 = vld [vmem:[%s12907_s1 + $0x5c0] ss:$16 sps:$4 sm:$0xff]  }
  0x82   :  { %5750 = vmatmul.mubr.bf16.vlgmr.msra.gmra.mrb[0].mxu0 %v1003_v29 }
  0x83   :  { %5759 = vmatpush1.bf16.msra.mxu0 %v8576_v30  ;;  %5790 = vmatprep.mubr.bf16.mxu0 %v10238_v32  ;;  %v8657_v30 = vld [vmem:[%s12907_s1 + $0x588] ss:$16 sps:$4 sm:$0xff]  }
  0x84   :  { %5760 = vmatprep.subr.bf16.mxu0 %v8584_v31  ;;  %6361 = vmatpush1.bf16.msra.mxu1 %v8573_v33  ;;  %v8665_v31 = vld [vmem:[%s12907_s1 + $0x5ac] ss:$16 sps:$4 sm:$0xff]   ;;  %v8666_v33 = vld [vmem:[%s12907_s1 + $0x5e0] ss:$16 sps:$4 sm:$0xff]  }
  0x85   :  { %6362 = vmatprep.subr.bf16.mxu1 %v8581_v18  ;;  %v8675_v18 = vld [vmem:[%s12907_s1 + $0x604] ss:$16 sps:$4 sm:$0xff]  }
  0x87   :  { %5761 = vmatpush1.bf16.msra.mxu0 %v8582_v34  ;;  %v8663_v34 = vld [vmem:[%s12907_s1 + $0x5a8] ss:$16 sps:$4 sm:$0xff]  }
  0x88   :  { %5762 = vmatprep.subr.bf16.mxu0 %v8590_v35  ;;  %6363 = vmatpush1.bf16.msra.mxu1 %v8579_v36  ;;  %v8671_v35 = vld [vmem:[%s12907_s1 + $0x5cc] ss:$16 sps:$4 sm:$0xff]   ;;  %v10430_v36 = vrot.slane %v10207_v20, %v9841_v15 }
  0x89   :  { %6373 = vmatprep.subr.bf16.mxu1 %v8587_v37  ;;  %v8673_v37 = vld [vmem:[%s12907_s1 + $0x600] ss:$16 sps:$4 sm:$0xff]   ;;  %v8678_v20 = vld [vmem:[%s12907_s1 + $0x5ec] ss:$16 sps:$4 sm:$0xff]  }
  0x8b   :  { %5763 = vmatpush1.bf16.msra.mxu0 %v8588_v38  ;;  %6365 = vmatmul.mubr.bf16.vlgmr.msra.gmra.mrb[4].mxu1 %v1003_v29  ;;  %v8668_v29 = vld [vmem:[%s12907_s1 + $0x5e4] ss:$16 sps:$4 sm:$0xff]  }
  0x8c   :  { %5764 = vmatprep.subr.bf16.mxu0 %v8596_v39  ;;  %6374 = vmatpush1.bf16.msra.mxu1 %v8585_v40  ;;  %v8681_v38 = vld [vmem:[%s12907_s1 + $0x624] ss:$16 sps:$4 sm:$0xff]   ;;  %v1006_v39 = vcombine.high %v10238_v32, %v10238_v32  ;;  %v8669_v40 = vld [vmem:[%s12907_s1 + $0x5c8] ss:$16 sps:$4 sm:$0xff]  }
  0x8d   :  { %6405 = vmatprep.mubr.bf16.mxu1 %v10238_v32  ;;  %6375 = vmatprep.subr.bf16.mxu1 %v8593_v41  ;;  %v8679_v41 = vld [vmem:[%s12907_s1 + $0x620] ss:$16 sps:$4 sm:$0xff]   ;;  %v8687_v32 = vld [vmem:[%s12907_s1 + $0x644] ss:$16 sps:$4 sm:$0xff]  }
  0x8f   :  { %5765 = vmatpush1.bf16.msra.mxu0 %v8594_v42  ;;  %v8676_v42 = vld [vmem:[%s12907_s1 + $0x5e8] ss:$16 sps:$4 sm:$0xff]  }
  0x90   :  { %5766 = vmatprep.subr.bf16.mxu0 %v8602_v43  ;;  %6376 = vmatpush1.bf16.msra.mxu1 %v8591_v44  ;;  %v8684_v43 = vld [vmem:[%s12907_s1 + $0x60c] ss:$16 sps:$4 sm:$0xff]   ;;  %v8685_v44 = vld [vmem:[%s12907_s1 + $0x640] ss:$16 sps:$4 sm:$0xff]  }
  0x91   :  { %6377 = vmatprep.subr.bf16.mxu1 %v8599_v45  ;;  %v8693_v45 = vld [vmem:[%s12907_s1 + $0x664] ss:$16 sps:$4 sm:$0xff]  }
  0x93   :  { %5767 = vmatpush1.bf16.msra.mxu0 %v8600_v46  ;;  %v8682_v46 = vld [vmem:[%s12907_s1 + $0x608] ss:$16 sps:$4 sm:$0xff]  }
  0x94   :  { %5768 = vmatprep.subr.bf16.mxu0 %v8608_v47  ;;  %6378 = vmatpush1.bf16.msra.mxu1 %v8597_v48  ;;  %v8690_v47 = vld [vmem:[%s12907_s1 + $0x62c] ss:$16 sps:$4 sm:$0xff]   ;;  %v8691_v48 = vld [vmem:[%s12907_s1 + $0x660] ss:$16 sps:$4 sm:$0xff]  }
  0x95   :  { %6379 = vmatprep.subr.bf16.mxu1 %v8605_v49  ;;  %v8699_v49 = vld [vmem:[%s12907_s1 + $0x684] ss:$16 sps:$4 sm:$0xff]  }
  0x97   :  { %5769 = vmatpush1.bf16.msra.mxu0 %v8606_v50  ;;  %v8688_v50 = vld [vmem:[%s12907_s1 + $0x628] ss:$16 sps:$4 sm:$0xff]  }
  0x98   :  { %5770 = vmatprep.subr.bf16.mxu0 %v8614_v51  ;;  %6380 = vmatpush1.bf16.msra.mxu1 %v8603_v52  ;;  %v8696_v51 = vld [vmem:[%s12907_s1 + $0x64c] ss:$16 sps:$4 sm:$0xff]   ;;  %v8697_v52 = vld [vmem:[%s12907_s1 + $0x680] ss:$16 sps:$4 sm:$0xff]  }
  0x99   :  { %6381 = vmatprep.subr.bf16.mxu1 %v8611_v53  ;;  %v8705_v53 = vld [vmem:[%s12907_s1 + $0x6a4] ss:$16 sps:$4 sm:$0xff]  }
  0x9b   :  { %5771 = vmatpush1.bf16.msra.mxu0 %v8612_v54  ;;  %v8694_v54 = vld [vmem:[%s12907_s1 + $0x648] ss:$16 sps:$4 sm:$0xff]  }
  0x9c   :  { %5772 = vmatprep.subr.bf16.mxu0 %v8620_v55  ;;  %6382 = vmatpush1.bf16.msra.mxu1 %v8609_v57  ;;  %v8702_v55 = vld [vmem:[%s12907_s1 + $0x66c] ss:$16 sps:$4 sm:$0xff]   ;;  %v8703_v57 = vld [vmem:[%s12907_s1 + $0x6a0] ss:$16 sps:$4 sm:$0xff]  }
  0x9d   :  { %6383 = vmatprep.subr.bf16.mxu1 %v8617_v58  ;;  %v8711_v58 = vld [vmem:[%s12907_s1 + $0x6c4] ss:$16 sps:$4 sm:$0xff]  }
  0x9f   :  { %5773 = vmatpush1.bf16.msra.mxu0 %v8618_v59  ;;  %v8700_v59 = vld [vmem:[%s12907_s1 + $0x668] ss:$16 sps:$4 sm:$0xff]  }
  0xa0   :  { %5774 = vmatprep.subr.bf16.mxu0 %v8626_v60  ;;  %6384 = vmatpush1.bf16.msra.mxu1 %v8615_v61  ;;  %v8708_v60 = vld [vmem:[%s12907_s1 + $0x68c] ss:$16 sps:$4 sm:$0xff]   ;;  %v8709_v61 = vld [vmem:[%s12907_s1 + $0x6c0] ss:$16 sps:$4 sm:$0xff]  }
  0xa1   :  { %6385 = vmatprep.subr.bf16.mxu1 %v8623_v62  ;;  %v8717_v62 = vld [vmem:[%s12907_s1 + $0x6e4] ss:$16 sps:$4 sm:$0xff]  }
  0xa3   :  { %5775 = vmatpush1.bf16.msra.mxu0 %v8624_v63  ;;  %v8706_v63 = vld [vmem:[%s12907_s1 + $0x688] ss:$16 sps:$4 sm:$0xff]  }
  0xa4   :  { %5776 = vmatprep.subr.bf16.mxu0 %v8632_v0  ;;  %6386 = vmatpush1.bf16.msra.mxu1 %v8621_v1  ;;  %v8714_v0 = vld [vmem:[%s12907_s1 + $0x6ac] ss:$16 sps:$4 sm:$0xff]   ;;  %v8715_v1 = vld [vmem:[%s12907_s1 + $0x6e0] ss:$16 sps:$4 sm:$0xff]  }
  0xa5   :  { %6387 = vmatprep.subr.bf16.mxu1 %v8629_v2  ;;  %v8723_v2 = vld [vmem:[%s12907_s1 + $0x704] ss:$16 sps:$4 sm:$0xff]  }
  0xa7   :  { %5777 = vmatpush1.bf16.msra.mxu0 %v8630_v4  ;;  %v8712_v4 = vld [vmem:[%s12907_s1 + $0x6a8] ss:$16 sps:$4 sm:$0xff]  }
  0xa8   :  { %5778 = vmatprep.subr.bf16.mxu0 %v8638_v6  ;;  %6388 = vmatpush1.bf16.msra.mxu1 %v8627_v7  ;;  %v8720_v6 = vld [vmem:[%s12907_s1 + $0x6cc] ss:$16 sps:$4 sm:$0xff]   ;;  %v8721_v7 = vld [vmem:[%s12907_s1 + $0x700] ss:$16 sps:$4 sm:$0xff]  }
  0xa9   :  { %6389 = vmatprep.subr.bf16.mxu1 %v8635_v8 }
  0xab   :  { %5779 = vmatpush1.bf16.msra.mxu0 %v8636_v9  ;;  %v8729_v9 = vld [vmem:[%s12907_s1 + $0x724] ss:$16 sps:$4 sm:$0xff]  }
  0xac   :  { %5780 = vmatprep.subr.bf16.mxu0 %v8644_v10  ;;  %6390 = vmatpush1.bf16.msra.mxu1 %v8633_v11 }
  0xad   :  { %6391 = vmatprep.subr.bf16.mxu1 %v8641_v12  ;;  %v8718_v12 = vld [vmem:[%s12907_s1 + $0x6c8] ss:$16 sps:$4 sm:$0xff]  }
  0xaf   :  { %5781 = vmatpush1.bf16.msra.mxu0 %v8642_v13 }
  0xb0   :  { %5782 = vmatprep.subr.bf16.mxu0 %v8650_v14  ;;  %6392 = vmatpush1.bf16.msra.mxu1 %v8639_v16  ;;  %v8726_v14 = vld [vmem:[%s12907_s1 + $0x6ec] ss:$16 sps:$4 sm:$0xff]   ;;  %v8727_v16 = vld [vmem:[%s12907_s1 + $0x720] ss:$16 sps:$4 sm:$0xff]  }
  0xb1   :  { %6393 = vmatprep.subr.bf16.mxu1 %v8647_v17  ;;  %v8735_v17 = vld [vmem:[%s12907_s1 + $0x744] ss:$16 sps:$4 sm:$0xff]  }
  0xb3   :  { %5783 = vmatpush1.bf16.msra.mxu0 %v8648_v19  ;;  %v8724_v19 = vld [vmem:[%s12907_s1 + $0x6e8] ss:$16 sps:$4 sm:$0xff]  }
  0xb4   :  { %5784 = vmatprep.subr.bf16.mxu0 %v8656_v56  ;;  %6394 = vmatpush1.bf16.msra.mxu1 %v8645_v21  ;;  %v8732_v56 = vld [vmem:[%s12907_s1 + $0x70c] ss:$16 sps:$4 sm:$0xff]   ;;  %v8733_v21 = vld [vmem:[%s12907_s1 + $0x740] ss:$16 sps:$4 sm:$0xff]  }
  0xb5   :  { %6395 = vmatprep.subr.bf16.mxu1 %v8653_v23  ;;  %v8741_v23 = vld [vmem:[%s12907_s1 + $0x764] ss:$16 sps:$4 sm:$0xff]  }
  0xb7   :  { %5785 = vmatpush1.bf16.msra.mxu0 %v8654_v24  ;;  %v8730_v24 = vld [vmem:[%s12907_s1 + $0x708] ss:$16 sps:$4 sm:$0xff]  }
  0xb8   :  { %5786 = vmatprep.subr.bf16.mxu0 %v8662_v25  ;;  %6396 = vmatpush1.bf16.msra.mxu1 %v8651_v26  ;;  %v8738_v25 = vld [vmem:[%s12907_s1 + $0x72c] ss:$16 sps:$4 sm:$0xff]   ;;  %v8739_v26 = vld [vmem:[%s12907_s1 + $0x760] ss:$16 sps:$4 sm:$0xff]  }
  0xb9   :  { %6397 = vmatprep.subr.bf16.mxu1 %v8659_v27  ;;  %v8747_v27 = vld [vmem:[%s12907_s1 + $0x784] ss:$16 sps:$4 sm:$0xff]  }
  0xbb   :  { %5787 = vmatpush1.bf16.msra.mxu0 %v8660_v28  ;;  %v8736_v28 = vld [vmem:[%s12907_s1 + $0x728] ss:$16 sps:$4 sm:$0xff]  }
  0xbc   :  { %5788 = vmatprep.subr.bf16.mxu0 %v8668_v29  ;;  %6398 = vmatpush1.bf16.msra.mxu1 %v8657_v30  ;;  %v8744_v29 = vld [vmem:[%s12907_s1 + $0x74c] ss:$16 sps:$4 sm:$0xff]   ;;  %v8745_v30 = vld [vmem:[%s12907_s1 + $0x780] ss:$16 sps:$4 sm:$0xff]  }
  0xbd   :  { %6399 = vmatprep.subr.bf16.mxu1 %v8665_v31  ;;  %v8753_v31 = vld [vmem:[%s12907_s1 + $0x7a4] ss:$16 sps:$4 sm:$0xff]  }
  0xbf   :  { %5789 = vmatpush1.bf16.msra.mxu0 %v8666_v33  ;;  %v8742_v33 = vld [vmem:[%s12907_s1 + $0x748] ss:$16 sps:$4 sm:$0xff]  }
  0xc0   :  { %5799 = vmatprep.subr.bf16.mxu0 %v8675_v18  ;;  %6400 = vmatpush1.bf16.msra.mxu1 %v8663_v34  ;;  %v8750_v18 = vld [vmem:[%s12907_s1 + $0x76c] ss:$16 sps:$4 sm:$0xff]   ;;  %v8751_v34 = vld [vmem:[%s12907_s1 + $0x7a0] ss:$16 sps:$4 sm:$0xff]  }
  0xc1   :  { %6401 = vmatprep.subr.bf16.mxu1 %v8671_v35  ;;  %v8759_v35 = vld [vmem:[%s12907_s1 + $0x7c4] ss:$16 sps:$4 sm:$0xff]  }
  0xc2   :  { %5791 = vmatmul.mubr.bf16.vlgmr.msra.gmra.mrb[0].mxu0 %v10430_v36 }
  0xc3   :  { %5800 = vmatpush1.bf16.msra.mxu0 %v8673_v37  ;;  %5831 = vmatprep.mubr.bf16.mxu0 %v1006_v39  ;;  %v10605_v37 = vld.sshfl [vmem:[%s12906_s0 + $0x8] sm:$0xff pattern:$0x75316420] }
  0xc4   :  { %5801 = vmatprep.subr.bf16.mxu0 %v8681_v38  ;;  %6402 = vmatpush1.bf16.msra.mxu1 %v8669_v40  ;;  %v8748_v38 = vld [vmem:[%s12907_s1 + $0x768] ss:$16 sps:$4 sm:$0xff]   ;;  %v8757_v40 = vld [vmem:[%s12907_s1 + $0x7c0] ss:$16 sps:$4 sm:$0xff]  }
  0xc5   :  { %6403 = vmatprep.subr.bf16.mxu1 %v8678_v20  ;;  %v8765_v20 = vld [vmem:[%s12907_s1 + $0x7e4] ss:$16 sps:$4 sm:$0xff]  }
  0xc7   :  { %5802 = vmatpush1.bf16.msra.mxu0 %v8679_v41  ;;  %v8754_v41 = vld [vmem:[%s12907_s1 + $0x788] ss:$16 sps:$4 sm:$0xff]  }
  0xc8   :  { %5803 = vmatprep.subr.bf16.mxu0 %v8687_v32  ;;  %6404 = vmatpush1.bf16.msra.mxu1 %v8676_v42  ;;  %v8762_v32 = vld [vmem:[%s12907_s1 + $0x7ac] ss:$16 sps:$4 sm:$0xff]   ;;  %v8763_v42 = vld [vmem:[%s12907_s1 + $0x7e0] ss:$16 sps:$4 sm:$0xff]  }
  0xc9   :  { %6414 = vmatprep.subr.bf16.mxu1 %v8684_v43  ;;  %v8771_v43 = vld [vmem:[%s12907_s1 + $0x804] ss:$16 sps:$4 sm:$0xff]  }
  0xcb   :  { %5804 = vmatpush1.bf16.msra.mxu0 %v8685_v44  ;;  %6406 = vmatmul.mubr.bf16.vlgmr.msra.gmra.mrb[4].mxu1 %v10430_v36  ;;  %v1022_v44 = vcombine.high %v10605_v37, %v10605_v37 }
  0xcc   :  { %5805 = vmatprep.subr.bf16.mxu0 %v8693_v45  ;;  %6415 = vmatpush1.bf16.msra.mxu1 %v8682_v46  ;;  %v8760_v45 = vld [vmem:[%s12907_s1 + $0x7a8] ss:$16 sps:$4 sm:$0xff]   ;;  %v8768_v46 = vld [vmem:[%s12907_s1 + $0x7cc] ss:$16 sps:$4 sm:$0xff]  }
  0xcd   :  { %6446 = vmatprep.mubr.bf16.mxu1 %v1006_v39  ;;  %6416 = vmatprep.subr.bf16.mxu1 %v8690_v47  ;;  %v8756_v39 = vld [vmem:[%s12907_s1 + $0x78c] ss:$16 sps:$4 sm:$0xff]   ;;  %v1004_v47 = vcombine.high %v10430_v36, %v10430_v36 }
  0xce   :  { %v8774_v36 = vld [vmem:[%s12907_s1 + $0x7ec] ss:$16 sps:$4 sm:$0xff]  }
  0xcf   :  { %5806 = vmatpush1.bf16.msra.mxu0 %v8691_v48  ;;  %v8769_v48 = vld [vmem:[%s12907_s1 + $0x800] ss:$16 sps:$4 sm:$0xff]  }
  0xd0   :  { %5807 = vmatprep.subr.bf16.mxu0 %v8699_v49  ;;  %6417 = vmatpush1.bf16.msra.mxu1 %v8688_v50  ;;  %v8777_v49 = vld [vmem:[%s12907_s1 + $0x824] ss:$16 sps:$4 sm:$0xff]   ;;  %v10648_v50 = vrot.slane %v1022_v44, %v9841_v15  ;;  %v8847_v44 = vld [vmem:[%s12907_s1 + $0x9a0] ss:$16 sps:$4 sm:$0xff]  }
  0xd1   :  { %6418 = vmatprep.subr.bf16.mxu1 %v8696_v51  ;;  %v8766_v51 = vld [vmem:[%s12907_s1 + $0x7c8] ss:$16 sps:$4 sm:$0xff]  }
  0xd3   :  { %5808 = vmatpush1.bf16.msra.mxu0 %v8697_v52  ;;  %v8775_v52 = vld [vmem:[%s12907_s1 + $0x820] ss:$16 sps:$4 sm:$0xff]  }
  0xd4   :  { %5809 = vmatprep.subr.bf16.mxu0 %v8705_v53  ;;  %6419 = vmatpush1.bf16.msra.mxu1 %v8694_v54  ;;  %v8783_v53 = vld [vmem:[%s12907_s1 + $0x844] ss:$16 sps:$4 sm:$0xff]   ;;  %v8772_v54 = vld [vmem:[%s12907_s1 + $0x7e8] ss:$16 sps:$4 sm:$0xff]  }
  0xd5   :  { %6420 = vmatprep.subr.bf16.mxu1 %v8702_v55  ;;  %v8780_v55 = vld [vmem:[%s12907_s1 + $0x80c] ss:$16 sps:$4 sm:$0xff]  }
  0xd7   :  { %5810 = vmatpush1.bf16.msra.mxu0 %v8703_v57  ;;  %v8781_v57 = vld [vmem:[%s12907_s1 + $0x840] ss:$16 sps:$4 sm:$0xff]  }
  0xd8   :  { %5811 = vmatprep.subr.bf16.mxu0 %v8711_v58  ;;  %6421 = vmatpush1.bf16.msra.mxu1 %v8700_v59  ;;  %v8789_v58 = vld [vmem:[%s12907_s1 + $0x864] ss:$16 sps:$4 sm:$0xff]   ;;  %v8778_v59 = vld [vmem:[%s12907_s1 + $0x808] ss:$16 sps:$4 sm:$0xff]  }
  0xd9   :  { %6422 = vmatprep.subr.bf16.mxu1 %v8708_v60  ;;  %v8786_v60 = vld [vmem:[%s12907_s1 + $0x82c] ss:$16 sps:$4 sm:$0xff]  }
  0xdb   :  { %5812 = vmatpush1.bf16.msra.mxu0 %v8709_v61  ;;  %v8787_v61 = vld [vmem:[%s12907_s1 + $0x860] ss:$16 sps:$4 sm:$0xff]  }
  0xdc   :  { %5813 = vmatprep.subr.bf16.mxu0 %v8717_v62  ;;  %6423 = vmatpush1.bf16.msra.mxu1 %v8706_v63  ;;  %v8795_v62 = vld [vmem:[%s12907_s1 + $0x884] ss:$16 sps:$4 sm:$0xff]   ;;  %v8784_v63 = vld [vmem:[%s12907_s1 + $0x828] ss:$16 sps:$4 sm:$0xff]  }
  0xdd   :  { %6424 = vmatprep.subr.bf16.mxu1 %v8714_v0  ;;  %v8792_v0 = vld [vmem:[%s12907_s1 + $0x84c] ss:$16 sps:$4 sm:$0xff]  }
  0xde   :  { %v10535_v8 = vpop.f32.mrb[0].mxu1 }
  0xdf   :  { %5814 = vmatpush1.bf16.msra.mxu0 %v8715_v1  ;;  %v10540_v10 = vpop.f32.mrb[1].mxu1  ;;  %v8793_v1 = vld [vmem:[%s12907_s1 + $0x880] ss:$16 sps:$4 sm:$0xff]  }
  0xe0   :  { %5815 = vmatprep.subr.bf16.mxu0 %v8723_v2  ;;  %6425 = vmatpush1.bf16.msra.mxu1 %v8712_v4  ;;  %v6288_v11 = vpop.f32.mrb[2].mxu1  ;;  %v8801_v2 = vld [vmem:[%s12907_s1 + $0x8a4] ss:$16 sps:$4 sm:$0xff]   ;;  %v8790_v4 = vld [vmem:[%s12907_s1 + $0x848] ss:$16 sps:$4 sm:$0xff]  }
  0xe1   :  { %v6289_v13 = vpop.f32.mrb[3].mxu1  ;;  %6426 = vmatprep.subr.bf16.mxu1 %v8720_v6  ;;  %v8798_v6 = vld [vmem:[%s12907_s1 + $0x86c] ss:$16 sps:$4 sm:$0xff]   ;;  %v8796_v11 = vld [vmem:[%s12907_s1 + $0x868] ss:$16 sps:$4 sm:$0xff]  }
  0xe2   :  { %v8805_v13 = vld [vmem:[%s12907_s1 + $0x8c0] ss:$16 sps:$4 sm:$0xff]  }
  0xe3   :  { %5816 = vmatpush1.bf16.msra.mxu0 %v8721_v7  ;;  %v8799_v7 = vld [vmem:[%s12907_s1 + $0x8a0] ss:$16 sps:$4 sm:$0xff]  }
  0xe4   :  { %5817 = vmatprep.subr.bf16.mxu0 %v8729_v9  ;;  %6427 = vmatpush1.bf16.msra.mxu1 %v8718_v12  ;;  %v8807_v9 = vld [vmem:[%s12907_s1 + $0x8c4] ss:$16 sps:$4 sm:$0xff]   ;;  %v8804_v12 = vld [vmem:[%s12907_s1 + $0x88c] ss:$16 sps:$4 sm:$0xff]  }
  0xe5   :  { %6428 = vmatprep.subr.bf16.mxu1 %v8726_v14  ;;  %v8813_v14 = vld [vmem:[%s12907_s1 + $0x8e4] ss:$16 sps:$4 sm:$0xff]  }
  0xe7   :  { %5818 = vmatpush1.bf16.msra.mxu0 %v8727_v16  ;;  %v8802_v16 = vld [vmem:[%s12907_s1 + $0x888] ss:$16 sps:$4 sm:$0xff]  }
  0xe8   :  { %5819 = vmatprep.subr.bf16.mxu0 %v8735_v17  ;;  %6429 = vmatpush1.bf16.msra.mxu1 %v8724_v19  ;;  %v8810_v17 = vld [vmem:[%s12907_s1 + $0x8ac] ss:$16 sps:$4 sm:$0xff]   ;;  %v8811_v19 = vld [vmem:[%s12907_s1 + $0x8e0] ss:$16 sps:$4 sm:$0xff]  }
  0xe9   :  { %6430 = vmatprep.subr.bf16.mxu1 %v8732_v56  ;;  %v8819_v56 = vld [vmem:[%s12907_s1 + $0x904] ss:$16 sps:$4 sm:$0xff]  }
  0xeb   :  { %5820 = vmatpush1.bf16.msra.mxu0 %v8733_v21  ;;  %v8808_v21 = vld [vmem:[%s12907_s1 + $0x8a8] ss:$16 sps:$4 sm:$0xff]  }
  0xec   :  { %5821 = vmatprep.subr.bf16.mxu0 %v8741_v23  ;;  %6431 = vmatpush1.bf16.msra.mxu1 %v8730_v24  ;;  %v8816_v23 = vld [vmem:[%s12907_s1 + $0x8cc] ss:$16 sps:$4 sm:$0xff]   ;;  %v8817_v24 = vld [vmem:[%s12907_s1 + $0x900] ss:$16 sps:$4 sm:$0xff]  }
  0xed   :  { %6432 = vmatprep.subr.bf16.mxu1 %v8738_v25  ;;  %v8825_v25 = vld [vmem:[%s12907_s1 + $0x924] ss:$16 sps:$4 sm:$0xff]  }
  0xef   :  { %5822 = vmatpush1.bf16.msra.mxu0 %v8739_v26  ;;  %v8814_v26 = vld [vmem:[%s12907_s1 + $0x8c8] ss:$16 sps:$4 sm:$0xff]  }
  0xf0   :  { %5823 = vmatprep.subr.bf16.mxu0 %v8747_v27  ;;  %6433 = vmatpush1.bf16.msra.mxu1 %v8736_v28  ;;  %v8822_v27 = vld [vmem:[%s12907_s1 + $0x8ec] ss:$16 sps:$4 sm:$0xff]   ;;  %v8823_v28 = vld [vmem:[%s12907_s1 + $0x920] ss:$16 sps:$4 sm:$0xff]  }
  0xf1   :  { %6434 = vmatprep.subr.bf16.mxu1 %v8744_v29  ;;  %v8831_v29 = vld [vmem:[%s12907_s1 + $0x944] ss:$16 sps:$4 sm:$0xff]  }
  0xf3   :  { %5824 = vmatpush1.bf16.msra.mxu0 %v8745_v30  ;;  %v8820_v30 = vld [vmem:[%s12907_s1 + $0x8e8] ss:$16 sps:$4 sm:$0xff]  }
  0xf4   :  { %5825 = vmatprep.subr.bf16.mxu0 %v8753_v31  ;;  %6435 = vmatpush1.bf16.msra.mxu1 %v8742_v33  ;;  %v8828_v31 = vld [vmem:[%s12907_s1 + $0x90c] ss:$16 sps:$4 sm:$0xff]   ;;  %v8829_v33 = vld [vmem:[%s12907_s1 + $0x940] ss:$16 sps:$4 sm:$0xff]  }
  0xf5   :  { %6436 = vmatprep.subr.bf16.mxu1 %v8750_v18  ;;  %v8837_v18 = vld [vmem:[%s12907_s1 + $0x964] ss:$16 sps:$4 sm:$0xff]  }
  0xf7   :  { %5826 = vmatpush1.bf16.msra.mxu0 %v8751_v34  ;;  %v8826_v34 = vld [vmem:[%s12907_s1 + $0x908] ss:$16 sps:$4 sm:$0xff]  }
  0xf8   :  { %5827 = vmatprep.subr.bf16.mxu0 %v8759_v35  ;;  %6437 = vmatpush1.bf16.msra.mxu1 %v8748_v38  ;;  %v8834_v35 = vld [vmem:[%s12907_s1 + $0x92c] ss:$16 sps:$4 sm:$0xff]   ;;  %v8835_v38 = vld [vmem:[%s12907_s1 + $0x960] ss:$16 sps:$4 sm:$0xff]  }
  0xf9   :  { %6438 = vmatprep.subr.bf16.mxu1 %v8756_v39  ;;  %v8843_v39 = vld [vmem:[%s12907_s1 + $0x984] ss:$16 sps:$4 sm:$0xff]  }
  0xfb   :  { %5828 = vmatpush1.bf16.msra.mxu0 %v8757_v40  ;;  %v8832_v40 = vld [vmem:[%s12907_s1 + $0x928] ss:$16 sps:$4 sm:$0xff]  }
  0xfc   :  { %5829 = vmatprep.subr.bf16.mxu0 %v8765_v20  ;;  %6439 = vmatpush1.bf16.msra.mxu1 %v8754_v41  ;;  %v8840_v20 = vld [vmem:[%s12907_s1 + $0x94c] ss:$16 sps:$4 sm:$0xff]   ;;  %v8841_v41 = vld [vmem:[%s12907_s1 + $0x980] ss:$16 sps:$4 sm:$0xff]  }
  0xfd   :  { %6440 = vmatprep.subr.bf16.mxu1 %v8762_v32  ;;  %v8849_v32 = vld [vmem:[%s12907_s1 + $0x9a4] ss:$16 sps:$4 sm:$0xff]  }
  0xff   :  { %5830 = vmatpush1.bf16.msra.mxu0 %v8763_v42  ;;  %v8838_v42 = vld [vmem:[%s12907_s1 + $0x948] ss:$16 sps:$4 sm:$0xff]  }
 0x100   :  { %5840 = vmatprep.subr.bf16.mxu0 %v8771_v43  ;;  %6441 = vmatpush1.bf16.msra.mxu1 %v8760_v45  ;;  %v8846_v43 = vld [vmem:[%s12907_s1 + $0x96c] ss:$16 sps:$4 sm:$0xff]   ;;  %v8855_v45 = vld [vmem:[%s12907_s1 + $0x9c4] ss:$16 sps:$4 sm:$0xff]  }
 0x101   :  { %6442 = vmatprep.subr.bf16.mxu1 %v8768_v46  ;;  %v8844_v46 = vld [vmem:[%s12907_s1 + $0x968] ss:$16 sps:$4 sm:$0xff]  }
 0x102   :  { %5832 = vmatmul.mubr.bf16.vlgmr.msra.gmra.mrb[0].mxu0 %v1004_v47 }
 0x103   :  { %5841 = vmatpush1.bf16.msra.mxu0 %v8769_v48  ;;  %5872 = vmatprep.mubr.bf16.mxu0 %v10648_v50  ;;  %v8853_v48 = vld [vmem:[%s12907_s1 + $0x9c0] ss:$16 sps:$4 sm:$0xff]  }
 0x104   :  { %5842 = vmatprep.subr.bf16.mxu0 %v8777_v49  ;;  %6443 = vmatpush1.bf16.msra.mxu1 %v8766_v51  ;;  %v8861_v49 = vld [vmem:[%s12907_s1 + $0x9e4] ss:$16 sps:$4 sm:$0xff]   ;;  %v8850_v51 = vld [vmem:[%s12907_s1 + $0x988] ss:$16 sps:$4 sm:$0xff]  }
 0x105   :  { %6444 = vmatprep.subr.bf16.mxu1 %v8774_v36  ;;  %v8858_v36 = vld [vmem:[%s12907_s1 + $0x9ac] ss:$16 sps:$4 sm:$0xff]  }
 0x107   :  { %5843 = vmatpush1.bf16.msra.mxu0 %v8775_v52  ;;  %v8859_v52 = vld [vmem:[%s12907_s1 + $0x9e0] ss:$16 sps:$4 sm:$0xff]  }
 0x108   :  { %5844 = vmatprep.subr.bf16.mxu0 %v8783_v53  ;;  %6445 = vmatpush1.bf16.msra.mxu1 %v8772_v54  ;;  %v8867_v53 = vld [vmem:[%s12907_s1 + $0xa04] ss:$16 sps:$4 sm:$0xff]   ;;  %v8856_v54 = vld [vmem:[%s12907_s1 + $0x9a8] ss:$16 sps:$4 sm:$0xff]  }
 0x109   :  { %6455 = vmatprep.subr.bf16.mxu1 %v8780_v55  ;;  %v8864_v55 = vld [vmem:[%s12907_s1 + $0x9cc] ss:$16 sps:$4 sm:$0xff]  }
 0x10b   :  { %5845 = vmatpush1.bf16.msra.mxu0 %v8781_v57  ;;  %6447 = vmatmul.mubr.bf16.vlgmr.msra.gmra.mrb[4].mxu1 %v1004_v47  ;;  %v8852_v47 = vld [vmem:[%s12907_s1 + $0x98c] ss:$16 sps:$4 sm:$0xff]   ;;  %v10840_v57 = vrot.slane %v10605_v37, %v9841_v15  ;;  %v8862_v37 = vld [vmem:[%s12907_s1 + $0x9c8] ss:$16 sps:$4 sm:$0xff]  }
 0x10c   :  { %5846 = vmatprep.subr.bf16.mxu0 %v8789_v58  ;;  %6456 = vmatpush1.bf16.msra.mxu1 %v8778_v59  ;;  %v8865_v58 = vld [vmem:[%s12907_s1 + $0xa00] ss:$16 sps:$4 sm:$0xff]   ;;  %v8873_v59 = vld [vmem:[%s12907_s1 + $0xa24] ss:$16 sps:$4 sm:$0xff]  }
 0x10d   :  { %6487 = vmatprep.mubr.bf16.mxu1 %v10648_v50  ;;  %6457 = vmatprep.subr.bf16.mxu1 %v8786_v60  ;;  %v1054_v60 = vcombine.high %v10648_v50, %v10648_v50  ;;  %v8879_v50 = vld [vmem:[%s12907_s1 + $0xa44] ss:$16 sps:$4 sm:$0xff]  }
 0x10f   :  { %5847 = vmatpush1.bf16.msra.mxu0 %v8787_v61  ;;  %v8870_v61 = vld [vmem:[%s12907_s1 + $0x9ec] ss:$16 sps:$4 sm:$0xff]  }
 0x110   :  { %5848 = vmatprep.subr.bf16.mxu0 %v8795_v62  ;;  %6458 = vmatpush1.bf16.msra.mxu1 %v8784_v63  ;;  %v8871_v62 = vld [vmem:[%s12907_s1 + $0xa20] ss:$16 sps:$4 sm:$0xff]   ;;  %v8868_v63 = vld [vmem:[%s12907_s1 + $0x9e8] ss:$16 sps:$4 sm:$0xff]  }
 0x111   :  { %6459 = vmatprep.subr.bf16.mxu1 %v8792_v0  ;;  %v8876_v0 = vld [vmem:[%s12907_s1 + $0xa0c] ss:$16 sps:$4 sm:$0xff]  }
 0x113   :  { %5849 = vmatpush1.bf16.msra.mxu0 %v8793_v1  ;;  %v8877_v1 = vld [vmem:[%s12907_s1 + $0xa40] ss:$16 sps:$4 sm:$0xff]  }
 0x114   :  { %5850 = vmatprep.subr.bf16.mxu0 %v8801_v2  ;;  %6460 = vmatpush1.bf16.msra.mxu1 %v8790_v4  ;;  %v8885_v2 = vld [vmem:[%s12907_s1 + $0xa64] ss:$16 sps:$4 sm:$0xff]   ;;  %v8874_v4 = vld [vmem:[%s12907_s1 + $0xa08] ss:$16 sps:$4 sm:$0xff]  }
 0x115   :  { %6461 = vmatprep.subr.bf16.mxu1 %v8798_v6  ;;  %v8882_v6 = vld [vmem:[%s12907_s1 + $0xa2c] ss:$16 sps:$4 sm:$0xff]  }
 0x117   :  { %5851 = vmatpush1.bf16.msra.mxu0 %v8799_v7  ;;  %v8883_v7 = vld [vmem:[%s12907_s1 + $0xa60] ss:$16 sps:$4 sm:$0xff]  }
 0x118   :  { %5852 = vmatprep.subr.bf16.mxu0 %v8807_v9  ;;  %6462 = vmatpush1.bf16.msra.mxu1 %v8796_v11  ;;  %v8891_v9 = vld [vmem:[%s12907_s1 + $0xa84] ss:$16 sps:$4 sm:$0xff]   ;;  %v8880_v11 = vld [vmem:[%s12907_s1 + $0xa28] ss:$16 sps:$4 sm:$0xff]  }
 0x119   :  { %6463 = vmatprep.subr.bf16.mxu1 %v8804_v12  ;;  %v8888_v12 = vld [vmem:[%s12907_s1 + $0xa4c] ss:$16 sps:$4 sm:$0xff]  }
 0x11b   :  { %5853 = vmatpush1.bf16.msra.mxu0 %v8805_v13  ;;  %v8889_v13 = vld [vmem:[%s12907_s1 + $0xa80] ss:$16 sps:$4 sm:$0xff]  }
 0x11c   :  { %5854 = vmatprep.subr.bf16.mxu0 %v8813_v14  ;;  %6464 = vmatpush1.bf16.msra.mxu1 %v8802_v16  ;;  %v8897_v14 = vld [vmem:[%s12907_s1 + $0xaa4] ss:$16 sps:$4 sm:$0xff]   ;;  %v8886_v16 = vld [vmem:[%s12907_s1 + $0xa48] ss:$16 sps:$4 sm:$0xff]  }
 0x11d   :  { %6465 = vmatprep.subr.bf16.mxu1 %v8810_v17  ;;  %v8894_v17 = vld [vmem:[%s12907_s1 + $0xa6c] ss:$16 sps:$4 sm:$0xff]  }
 0x11f   :  { %5855 = vmatpush1.bf16.msra.mxu0 %v8811_v19  ;;  %v8895_v19 = vld [vmem:[%s12907_s1 + $0xaa0] ss:$16 sps:$4 sm:$0xff]  }
 0x120   :  { %5856 = vmatprep.subr.bf16.mxu0 %v8819_v56  ;;  %6466 = vmatpush1.bf16.msra.mxu1 %v8808_v21  ;;  %v8903_v56 = vld [vmem:[%s12907_s1 + $0xac4] ss:$16 sps:$4 sm:$0xff]   ;;  %v8892_v21 = vld [vmem:[%s12907_s1 + $0xa68] ss:$16 sps:$4 sm:$0xff]  }
 0x121   :  { %6467 = vmatprep.subr.bf16.mxu1 %v8816_v23  ;;  %v8900_v23 = vld [vmem:[%s12907_s1 + $0xa8c] ss:$16 sps:$4 sm:$0xff]  }
 0x123   :  { %5857 = vmatpush1.bf16.msra.mxu0 %v8817_v24  ;;  %v8901_v24 = vld [vmem:[%s12907_s1 + $0xac0] ss:$16 sps:$4 sm:$0xff]  }
 0x124   :  { %5858 = vmatprep.subr.bf16.mxu0 %v8825_v25  ;;  %6468 = vmatpush1.bf16.msra.mxu1 %v8814_v26  ;;  %v8909_v25 = vld [vmem:[%s12907_s1 + $0xae4] ss:$16 sps:$4 sm:$0xff]   ;;  %v8898_v26 = vld [vmem:[%s12907_s1 + $0xa88] ss:$16 sps:$4 sm:$0xff]  }
 0x125   :  { %6469 = vmatprep.subr.bf16.mxu1 %v8822_v27  ;;  %v8906_v27 = vld [vmem:[%s12907_s1 + $0xaac] ss:$16 sps:$4 sm:$0xff]  }
 0x127   :  { %5859 = vmatpush1.bf16.msra.mxu0 %v8823_v28  ;;  %v8907_v28 = vld [vmem:[%s12907_s1 + $0xae0] ss:$16 sps:$4 sm:$0xff]  }
 0x128   :  { %5860 = vmatprep.subr.bf16.mxu0 %v8831_v29  ;;  %6470 = vmatpush1.bf16.msra.mxu1 %v8820_v30  ;;  %v8915_v29 = vld [vmem:[%s12907_s1 + $0xb04] ss:$16 sps:$4 sm:$0xff]   ;;  %v8904_v30 = vld [vmem:[%s12907_s1 + $0xaa8] ss:$16 sps:$4 sm:$0xff]  }
 0x129   :  { %6471 = vmatprep.subr.bf16.mxu1 %v8828_v31  ;;  %v8912_v31 = vld [vmem:[%s12907_s1 + $0xacc] ss:$16 sps:$4 sm:$0xff]  }
 0x12b   :  { %5861 = vmatpush1.bf16.msra.mxu0 %v8829_v33  ;;  %v8913_v33 = vld [vmem:[%s12907_s1 + $0xb00] ss:$16 sps:$4 sm:$0xff]  }
 0x12c   :  { %5862 = vmatprep.subr.bf16.mxu0 %v8837_v18  ;;  %6472 = vmatpush1.bf16.msra.mxu1 %v8826_v34  ;;  %v8921_v18 = vld [vmem:[%s12907_s1 + $0xb24] ss:$16 sps:$4 sm:$0xff]   ;;  %v8910_v34 = vld [vmem:[%s12907_s1 + $0xac8] ss:$16 sps:$4 sm:$0xff]  }
 0x12d   :  { %6473 = vmatprep.subr.bf16.mxu1 %v8834_v35  ;;  %v8918_v35 = vld [vmem:[%s12907_s1 + $0xaec] ss:$16 sps:$4 sm:$0xff]  }
 0x12f   :  { %5863 = vmatpush1.bf16.msra.mxu0 %v8835_v38  ;;  %v8919_v38 = vld [vmem:[%s12907_s1 + $0xb20] ss:$16 sps:$4 sm:$0xff]  }
 0x130   :  { %5864 = vmatprep.subr.bf16.mxu0 %v8843_v39  ;;  %6474 = vmatpush1.bf16.msra.mxu1 %v8832_v40  ;;  %v8927_v39 = vld [vmem:[%s12907_s1 + $0xb44] ss:$16 sps:$4 sm:$0xff]   ;;  %v8916_v40 = vld [vmem:[%s12907_s1 + $0xae8] ss:$16 sps:$4 sm:$0xff]  }
 0x131   :  { %6475 = vmatprep.subr.bf16.mxu1 %v8840_v20  ;;  %v8924_v20 = vld [vmem:[%s12907_s1 + $0xb0c] ss:$16 sps:$4 sm:$0xff]  }
 0x133   :  { %5865 = vmatpush1.bf16.msra.mxu0 %v8841_v41  ;;  %v8925_v41 = vld [vmem:[%s12907_s1 + $0xb40] ss:$16 sps:$4 sm:$0xff]  }
 0x134   :  { %5866 = vmatprep.subr.bf16.mxu0 %v8849_v32  ;;  %6476 = vmatpush1.bf16.msra.mxu1 %v8838_v42  ;;  %v8933_v32 = vld [vmem:[%s12907_s1 + $0xb64] ss:$16 sps:$4 sm:$0xff]   ;;  %v8922_v42 = vld [vmem:[%s12907_s1 + $0xb08] ss:$16 sps:$4 sm:$0xff]  }
 0x135   :  { %6477 = vmatprep.subr.bf16.mxu1 %v8846_v43  ;;  %v8930_v43 = vld [vmem:[%s12907_s1 + $0xb2c] ss:$16 sps:$4 sm:$0xff]  }
 0x137   :  { %5867 = vmatpush1.bf16.msra.mxu0 %v8847_v44  ;;  %v8931_v44 = vld [vmem:[%s12907_s1 + $0xb60] ss:$16 sps:$4 sm:$0xff]  }
 0x138   :  { %5868 = vmatprep.subr.bf16.mxu0 %v8855_v45  ;;  %6478 = vmatpush1.bf16.msra.mxu1 %v8844_v46  ;;  %v8939_v45 = vld [vmem:[%s12907_s1 + $0xb84] ss:$16 sps:$4 sm:$0xff]   ;;  %v8928_v46 = vld [vmem:[%s12907_s1 + $0xb28] ss:$16 sps:$4 sm:$0xff]  }
 0x139   :  { %6479 = vmatprep.subr.bf16.mxu1 %v8852_v47  ;;  %v8936_v47 = vld [vmem:[%s12907_s1 + $0xb4c] ss:$16 sps:$4 sm:$0xff]  }
 0x13b   :  { %5869 = vmatpush1.bf16.msra.mxu0 %v8853_v48  ;;  %v8937_v48 = vld [vmem:[%s12907_s1 + $0xb80] ss:$16 sps:$4 sm:$0xff]  }
 0x13c   :  { %5870 = vmatprep.subr.bf16.mxu0 %v8861_v49  ;;  %6480 = vmatpush1.bf16.msra.mxu1 %v8850_v51  ;;  %v8945_v49 = vld [vmem:[%s12907_s1 + $0xba4] ss:$16 sps:$4 sm:$0xff]   ;;  %v8934_v51 = vld [vmem:[%s12907_s1 + $0xb48] ss:$16 sps:$4 sm:$0xff]  }
 0x13d   :  { %6481 = vmatprep.subr.bf16.mxu1 %v8858_v36  ;;  %v8942_v36 = vld [vmem:[%s12907_s1 + $0xb6c] ss:$16 sps:$4 sm:$0xff]  }
 0x13f   :  { %5871 = vmatpush1.bf16.msra.mxu0 %v8859_v52  ;;  %v8943_v52 = vld [vmem:[%s12907_s1 + $0xba0] ss:$16 sps:$4 sm:$0xff]  }
 0x140   :  { %5881 = vmatprep.subr.bf16.mxu0 %v8867_v53  ;;  %6482 = vmatpush1.bf16.msra.mxu1 %v8856_v54  ;;  %v8951_v53 = vld [vmem:[%s12907_s1 + $0xbc4] ss:$16 sps:$4 sm:$0xff]   ;;  %v9737_v54 = vld [vmem:[%s12906_s0 + $0x8] sm:$0xff] }
 0x141   :  { %6483 = vmatprep.subr.bf16.mxu1 %v8864_v55  ;;  %v1007_v55 = vcombine.high %v9737_v54, %v9737_v54  ;;  %v9018_v54 = vld [vmem:[%s12907_s1 + $0xd08] ss:$16 sps:$4 sm:$0xff]  }
 0x142   :  { %5873 = vmatmul.mubr.bf16.vlgmr.msra.gmra.mrb[0].mxu0 %v10840_v57 }
 0x143   :  { %5882 = vmatpush1.bf16.msra.mxu0 %v8865_v58  ;;  %5913 = vmatprep.mubr.bf16.mxu0 %v1054_v60  ;;  %v8940_v58 = vld [vmem:[%s12907_s1 + $0xb68] ss:$16 sps:$4 sm:$0xff]  }
 0x144   :  { %5883 = vmatprep.subr.bf16.mxu0 %v8873_v59  ;;  %6484 = vmatpush1.bf16.msra.mxu1 %v8862_v37  ;;  %v8948_v59 = vld [vmem:[%s12907_s1 + $0xb8c] ss:$16 sps:$4 sm:$0xff]   ;;  %v8957_v37 = vld [vmem:[%s12907_s1 + $0xbe4] ss:$16 sps:$4 sm:$0xff]  }
 0x145   :  { %6485 = vmatprep.subr.bf16.mxu1 %v8870_v61  ;;  %v11024_v61 = vrot.slane %v1007_v55, %v9841_v15  ;;  %v9026_v55 = vld [vmem:[%s12907_s1 + $0xd2c] ss:$16 sps:$4 sm:$0xff]  }
 0x147   :  { %5884 = vmatpush1.bf16.msra.mxu0 %v8871_v62  ;;  %v8946_v62 = vld [vmem:[%s12907_s1 + $0xb88] ss:$16 sps:$4 sm:$0xff]  }
 0x148   :  { %5885 = vmatprep.subr.bf16.mxu0 %v8879_v50  ;;  %6486 = vmatpush1.bf16.msra.mxu1 %v8868_v63  ;;  %v8954_v50 = vld [vmem:[%s12907_s1 + $0xbac] ss:$16 sps:$4 sm:$0xff]   ;;  %v8955_v63 = vld [vmem:[%s12907_s1 + $0xbe0] ss:$16 sps:$4 sm:$0xff]  }
 0x149   :  { %6496 = vmatprep.subr.bf16.mxu1 %v8876_v0  ;;  %v8963_v0 = vld [vmem:[%s12907_s1 + $0xc04] ss:$16 sps:$4 sm:$0xff]  }
 0x14b   :  { %5886 = vmatpush1.bf16.msra.mxu0 %v8877_v1  ;;  %6488 = vmatmul.mubr.bf16.vlgmr.msra.gmra.mrb[4].mxu1 %v10840_v57  ;;  %v1023_v1 = vcombine.high %v11024_v61, %v11024_v61 }
 0x14c   :  { %5887 = vmatprep.subr.bf16.mxu0 %v8885_v2  ;;  %6497 = vmatpush1.bf16.msra.mxu1 %v8874_v4  ;;  %v8952_v2 = vld [vmem:[%s12907_s1 + $0xba8] ss:$16 sps:$4 sm:$0xff]   ;;  %v8960_v4 = vld [vmem:[%s12907_s1 + $0xbcc] ss:$16 sps:$4 sm:$0xff]  }
 0x14d   :  { %6528 = vmatprep.mubr.bf16.mxu1 %v1054_v60  ;;  %6498 = vmatprep.subr.bf16.mxu1 %v8882_v6  ;;  %v8949_v60 = vld [vmem:[%s12907_s1 + $0xbc0] ss:$16 sps:$4 sm:$0xff]   ;;  %v1052_v6 = vcombine.high %v10840_v57, %v10840_v57  ;;  %v8966_v57 = vld [vmem:[%s12907_s1 + $0xbec] ss:$16 sps:$4 sm:$0xff]  }
 0x14f   :  { %5888 = vmatpush1.bf16.msra.mxu0 %v8883_v7  ;;  %v8961_v7 = vld [vmem:[%s12907_s1 + $0xc00] ss:$16 sps:$4 sm:$0xff]  }
 0x150   :  { %5889 = vmatprep.subr.bf16.mxu0 %v8891_v9  ;;  %6499 = vmatpush1.bf16.msra.mxu1 %v8880_v11  ;;  %v8969_v9 = vld [vmem:[%s12907_s1 + $0xc24] ss:$16 sps:$4 sm:$0xff]   ;;  %v11055_v11 = vrot.slane %v1023_v1, %v9841_v15  ;;  %v9039_v1 = vld [vmem:[%s12907_s1 + $0xda0] ss:$16 sps:$4 sm:$0xff]  }
 0x151   :  { %6500 = vmatprep.subr.bf16.mxu1 %v8888_v12  ;;  %v8958_v12 = vld [vmem:[%s12907_s1 + $0xbc8] ss:$16 sps:$4 sm:$0xff]  }
 0x153   :  { %5890 = vmatpush1.bf16.msra.mxu0 %v8889_v13  ;;  %v8967_v13 = vld [vmem:[%s12907_s1 + $0xc20] ss:$16 sps:$4 sm:$0xff]  }
 0x154   :  { %5891 = vmatprep.subr.bf16.mxu0 %v8897_v14  ;;  %6501 = vmatpush1.bf16.msra.mxu1 %v8886_v16  ;;  %v8975_v14 = vld [vmem:[%s12907_s1 + $0xc44] ss:$16 sps:$4 sm:$0xff]   ;;  %v8964_v16 = vld [vmem:[%s12907_s1 + $0xbe8] ss:$16 sps:$4 sm:$0xff]  }
 0x155   :  { %6502 = vmatprep.subr.bf16.mxu1 %v8894_v17  ;;  %v8972_v17 = vld [vmem:[%s12907_s1 + $0xc0c] ss:$16 sps:$4 sm:$0xff]  }
 0x157   :  { %5892 = vmatpush1.bf16.msra.mxu0 %v8895_v19  ;;  %v8973_v19 = vld [vmem:[%s12907_s1 + $0xc40] ss:$16 sps:$4 sm:$0xff]  }
 0x158   :  { %5893 = vmatprep.subr.bf16.mxu0 %v8903_v56  ;;  %6503 = vmatpush1.bf16.msra.mxu1 %v8892_v21  ;;  %v8981_v56 = vld [vmem:[%s12907_s1 + $0xc64] ss:$16 sps:$4 sm:$0xff]   ;;  %v8970_v21 = vld [vmem:[%s12907_s1 + $0xc08] ss:$16 sps:$4 sm:$0xff]  }
 0x159   :  { %6504 = vmatprep.subr.bf16.mxu1 %v8900_v23  ;;  %v8978_v23 = vld [vmem:[%s12907_s1 + $0xc2c] ss:$16 sps:$4 sm:$0xff]  }
 0x15b   :  { %5894 = vmatpush1.bf16.msra.mxu0 %v8901_v24  ;;  %v8979_v24 = vld [vmem:[%s12907_s1 + $0xc60] ss:$16 sps:$4 sm:$0xff]  }
 0x15c   :  { %5895 = vmatprep.subr.bf16.mxu0 %v8909_v25  ;;  %6505 = vmatpush1.bf16.msra.mxu1 %v8898_v26  ;;  %v8987_v25 = vld [vmem:[%s12907_s1 + $0xc84] ss:$16 sps:$4 sm:$0xff]   ;;  %v8976_v26 = vld [vmem:[%s12907_s1 + $0xc28] ss:$16 sps:$4 sm:$0xff]  }
 0x15d   :  { %6506 = vmatprep.subr.bf16.mxu1 %v8906_v27  ;;  %v8984_v27 = vld [vmem:[%s12907_s1 + $0xc4c] ss:$16 sps:$4 sm:$0xff]  }
 0x15f   :  { %5896 = vmatpush1.bf16.msra.mxu0 %v8907_v28  ;;  %v8985_v28 = vld [vmem:[%s12907_s1 + $0xc80] ss:$16 sps:$4 sm:$0xff]  }
 0x160   :  { %5897 = vmatprep.subr.bf16.mxu0 %v8915_v29  ;;  %6507 = vmatpush1.bf16.msra.mxu1 %v8904_v30  ;;  %v8993_v29 = vld [vmem:[%s12907_s1 + $0xca4] ss:$16 sps:$4 sm:$0xff]   ;;  %v8982_v30 = vld [vmem:[%s12907_s1 + $0xc48] ss:$16 sps:$4 sm:$0xff]  }
 0x161   :  { %6508 = vmatprep.subr.bf16.mxu1 %v8912_v31  ;;  %v8990_v31 = vld [vmem:[%s12907_s1 + $0xc6c] ss:$16 sps:$4 sm:$0xff]  }
 0x163   :  { %5898 = vmatpush1.bf16.msra.mxu0 %v8913_v33  ;;  %v8991_v33 = vld [vmem:[%s12907_s1 + $0xca0] ss:$16 sps:$4 sm:$0xff]  }
 0x164   :  { %5899 = vmatprep.subr.bf16.mxu0 %v8921_v18  ;;  %6509 = vmatpush1.bf16.msra.mxu1 %v8910_v34  ;;  %v8999_v18 = vld [vmem:[%s12907_s1 + $0xcc4] ss:$16 sps:$4 sm:$0xff]   ;;  %v8988_v34 = vld [vmem:[%s12907_s1 + $0xc68] ss:$16 sps:$4 sm:$0xff]  }
 0x165   :  { %6510 = vmatprep.subr.bf16.mxu1 %v8918_v35  ;;  %v8996_v35 = vld [vmem:[%s12907_s1 + $0xc8c] ss:$16 sps:$4 sm:$0xff]  }
 0x167   :  { %5900 = vmatpush1.bf16.msra.mxu0 %v8919_v38  ;;  %v8997_v38 = vld [vmem:[%s12907_s1 + $0xcc0] ss:$16 sps:$4 sm:$0xff]  }
 0x168   :  { %5901 = vmatprep.subr.bf16.mxu0 %v8927_v39  ;;  %6511 = vmatpush1.bf16.msra.mxu1 %v8916_v40  ;;  %v9005_v39 = vld [vmem:[%s12907_s1 + $0xce4] ss:$16 sps:$4 sm:$0xff]   ;;  %v8994_v40 = vld [vmem:[%s12907_s1 + $0xc88] ss:$16 sps:$4 sm:$0xff]  }
 0x169   :  { %6512 = vmatprep.subr.bf16.mxu1 %v8924_v20  ;;  %v9002_v20 = vld [vmem:[%s12907_s1 + $0xcac] ss:$16 sps:$4 sm:$0xff]  }
 0x16b   :  { %5902 = vmatpush1.bf16.msra.mxu0 %v8925_v41  ;;  %v9003_v41 = vld [vmem:[%s12907_s1 + $0xce0] ss:$16 sps:$4 sm:$0xff]  }
 0x16c   :  { %5903 = vmatprep.subr.bf16.mxu0 %v8933_v32  ;;  %6513 = vmatpush1.bf16.msra.mxu1 %v8922_v42  ;;  %v9011_v32 = vld [vmem:[%s12907_s1 + $0xd04] ss:$16 sps:$4 sm:$0xff]   ;;  %v9000_v42 = vld [vmem:[%s12907_s1 + $0xca8] ss:$16 sps:$4 sm:$0xff]  }
 0x16d   :  { %6514 = vmatprep.subr.bf16.mxu1 %v8930_v43  ;;  %v9008_v43 = vld [vmem:[%s12907_s1 + $0xccc] ss:$16 sps:$4 sm:$0xff]  }
 0x16f   :  { %5904 = vmatpush1.bf16.msra.mxu0 %v8931_v44  ;;  %v9009_v44 = vld [vmem:[%s12907_s1 + $0xd00] ss:$16 sps:$4 sm:$0xff]  }
 0x170   :  { %5905 = vmatprep.subr.bf16.mxu0 %v8939_v45  ;;  %6515 = vmatpush1.bf16.msra.mxu1 %v8928_v46  ;;  %v9017_v45 = vld [vmem:[%s12907_s1 + $0xd24] ss:$16 sps:$4 sm:$0xff]   ;;  %v9006_v46 = vld [vmem:[%s12907_s1 + $0xcc8] ss:$16 sps:$4 sm:$0xff]  }
 0x171   :  { %6516 = vmatprep.subr.bf16.mxu1 %v8936_v47  ;;  %v9014_v47 = vld [vmem:[%s12907_s1 + $0xcec] ss:$16 sps:$4 sm:$0xff]  }
 0x173   :  { %5906 = vmatpush1.bf16.msra.mxu0 %v8937_v48  ;;  %v9015_v48 = vld [vmem:[%s12907_s1 + $0xd20] ss:$16 sps:$4 sm:$0xff]  }
 0x174   :  { %5907 = vmatprep.subr.bf16.mxu0 %v8945_v49  ;;  %6517 = vmatpush1.bf16.msra.mxu1 %v8934_v51  ;;  %v9023_v49 = vld [vmem:[%s12907_s1 + $0xd44] ss:$16 sps:$4 sm:$0xff]   ;;  %v9012_v51 = vld [vmem:[%s12907_s1 + $0xce8] ss:$16 sps:$4 sm:$0xff]  }
 0x175   :  { %6518 = vmatprep.subr.bf16.mxu1 %v8942_v36  ;;  %v9020_v36 = vld [vmem:[%s12907_s1 + $0xd0c] ss:$16 sps:$4 sm:$0xff]  }
 0x177   :  { %5908 = vmatpush1.bf16.msra.mxu0 %v8943_v52  ;;  %v9021_v52 = vld [vmem:[%s12907_s1 + $0xd40] ss:$16 sps:$4 sm:$0xff]  }
 0x178   :  { %5909 = vmatprep.subr.bf16.mxu0 %v8951_v53  ;;  %6519 = vmatpush1.bf16.msra.mxu1 %v8940_v58  ;;  %v9029_v53 = vld [vmem:[%s12907_s1 + $0xd64] ss:$16 sps:$4 sm:$0xff]   ;;  %v9027_v58 = vld [vmem:[%s12907_s1 + $0xd60] ss:$16 sps:$4 sm:$0xff]  }
 0x179   :  { %6520 = vmatprep.subr.bf16.mxu1 %v8948_v59  ;;  %v9035_v59 = vld [vmem:[%s12907_s1 + $0xd84] ss:$16 sps:$4 sm:$0xff]  }
 0x17b   :  { %5910 = vmatpush1.bf16.msra.mxu0 %v8949_v60  ;;  %v9024_v60 = vld [vmem:[%s12907_s1 + $0xd28] ss:$16 sps:$4 sm:$0xff]  }
 0x17c   :  { %5911 = vmatprep.subr.bf16.mxu0 %v8957_v37  ;;  %6521 = vmatpush1.bf16.msra.mxu1 %v8946_v62  ;;  %v9032_v37 = vld [vmem:[%s12907_s1 + $0xd4c] ss:$16 sps:$4 sm:$0xff]   ;;  %v9033_v62 = vld [vmem:[%s12907_s1 + $0xd80] ss:$16 sps:$4 sm:$0xff]  }
 0x17d   :  { %6522 = vmatprep.subr.bf16.mxu1 %v8954_v50  ;;  %v9041_v50 = vld [vmem:[%s12907_s1 + $0xda4] ss:$16 sps:$4 sm:$0xff]  }
 0x17f   :  { %5912 = vmatpush1.bf16.msra.mxu0 %v8955_v63  ;;  %v9030_v63 = vld [vmem:[%s12907_s1 + $0xd48] ss:$16 sps:$4 sm:$0xff]  }
 0x180   :  { %5922 = vmatprep.subr.bf16.mxu0 %v8963_v0  ;;  %6523 = vmatpush1.bf16.msra.mxu1 %v8952_v2  ;;  %v9038_v0 = vld [vmem:[%s12907_s1 + $0xd6c] ss:$16 sps:$4 sm:$0xff]   ;;  %v9047_v2 = vld [vmem:[%s12907_s1 + $0xdc4] ss:$16 sps:$4 sm:$0xff]  }
 0x181   :  { %6524 = vmatprep.subr.bf16.mxu1 %v8960_v4  ;;  %v9036_v4 = vld [vmem:[%s12907_s1 + $0xd68] ss:$16 sps:$4 sm:$0xff]  }
 0x182   :  { %5914 = vmatmul.mubr.bf16.vlgmr.msra.gmra.mrb[0].mxu0 %v1052_v6 }
 0x183   :  { %5923 = vmatpush1.bf16.msra.mxu0 %v8961_v7  ;;  %5954 = vmatprep.mubr.bf16.mxu0 %v11055_v11  ;;  %v9045_v7 = vld [vmem:[%s12907_s1 + $0xdc0] ss:$16 sps:$4 sm:$0xff]  }
 0x184   :  { %5924 = vmatprep.subr.bf16.mxu0 %v8969_v9  ;;  %6525 = vmatpush1.bf16.msra.mxu1 %v8958_v12  ;;  %v9053_v9 = vld [vmem:[%s12907_s1 + $0xde4] ss:$16 sps:$4 sm:$0xff]   ;;  %v9042_v12 = vld [vmem:[%s12907_s1 + $0xd88] ss:$16 sps:$4 sm:$0xff]  }
 0x185   :  { %6526 = vmatprep.subr.bf16.mxu1 %v8966_v57  ;;  %v9050_v57 = vld [vmem:[%s12907_s1 + $0xdac] ss:$16 sps:$4 sm:$0xff]  }
 0x187   :  { %5925 = vmatpush1.bf16.msra.mxu0 %v8967_v13  ;;  %v9051_v13 = vld [vmem:[%s12907_s1 + $0xde0] ss:$16 sps:$4 sm:$0xff]  }
 0x188   :  { %5926 = vmatprep.subr.bf16.mxu0 %v8975_v14  ;;  %6527 = vmatpush1.bf16.msra.mxu1 %v8964_v16  ;;  %v9060_v14 = vld [vmem:[%s12907_s1 + $0xe04] ss:$16 sps:$4 sm:$0xff]   ;;  %v9048_v16 = vld [vmem:[%s12907_s1 + $0xda8] ss:$16 sps:$4 sm:$0xff]  }
 0x189   :  { %6537 = vmatprep.subr.bf16.mxu1 %v8972_v17  ;;  %v9056_v17 = vld [vmem:[%s12907_s1 + $0xdcc] ss:$16 sps:$4 sm:$0xff]  }
 0x18b   :  { %5927 = vmatpush1.bf16.msra.mxu0 %v8973_v19  ;;  %6529 = vmatmul.mubr.bf16.vlgmr.msra.gmra.mrb[4].mxu1 %v1052_v6  ;;  %v9044_v6 = vld [vmem:[%s12907_s1 + $0xd8c] ss:$16 sps:$4 sm:$0xff]   ;;  %v11247_v19 = vrot.slane %v11024_v61, %v9841_v15  ;;  %v9054_v61 = vld [vmem:[%s12907_s1 + $0xdc8] ss:$16 sps:$4 sm:$0xff]  }
 0x18c   :  { %5928 = vmatprep.subr.bf16.mxu0 %v8981_v56  ;;  %6538 = vmatpush1.bf16.msra.mxu1 %v8970_v21  ;;  %v9058_v56 = vld [vmem:[%s12907_s1 + $0xe00] ss:$16 sps:$4 sm:$0xff]   ;;  %v9066_v21 = vld [vmem:[%s12907_s1 + $0xe24] ss:$16 sps:$4 sm:$0xff]  }
 0x18d   :  { %6569 = vmatprep.mubr.bf16.mxu1 %v11055_v11  ;;  %6539 = vmatprep.subr.bf16.mxu1 %v8978_v23  ;;  %v1055_v23 = vcombine.high %v11055_v11, %v11055_v11  ;;  %v9072_v11 = vld [vmem:[%s12907_s1 + $0xe44] ss:$16 sps:$4 sm:$0xff]  }
 0x18f   :  { %5929 = vmatpush1.bf16.msra.mxu0 %v8979_v24  ;;  %v9063_v24 = vld [vmem:[%s12907_s1 + $0xdec] ss:$16 sps:$4 sm:$0xff]  }
 0x190   :  { %5930 = vmatprep.subr.bf16.mxu0 %v8987_v25  ;;  %6540 = vmatpush1.bf16.msra.mxu1 %v8976_v26  ;;  %v9064_v25 = vld [vmem:[%s12907_s1 + $0xe20] ss:$16 sps:$4 sm:$0xff]   ;;  %v9061_v26 = vld [vmem:[%s12907_s1 + $0xde8] ss:$16 sps:$4 sm:$0xff]  }
 0x191   :  { %6541 = vmatprep.subr.bf16.mxu1 %v8984_v27  ;;  %v9069_v27 = vld [vmem:[%s12907_s1 + $0xe0c] ss:$16 sps:$4 sm:$0xff]  }
 0x193   :  { %5931 = vmatpush1.bf16.msra.mxu0 %v8985_v28  ;;  %v9070_v28 = vld [vmem:[%s12907_s1 + $0xe40] ss:$16 sps:$4 sm:$0xff]  }
 0x194   :  { %5932 = vmatprep.subr.bf16.mxu0 %v8993_v29  ;;  %6542 = vmatpush1.bf16.msra.mxu1 %v8982_v30  ;;  %v9078_v29 = vld [vmem:[%s12907_s1 + $0xe64] ss:$16 sps:$4 sm:$0xff]   ;;  %v9067_v30 = vld [vmem:[%s12907_s1 + $0xe08] ss:$16 sps:$4 sm:$0xff]  }
 0x195   :  { %6543 = vmatprep.subr.bf16.mxu1 %v8990_v31  ;;  %v9075_v31 = vld [vmem:[%s12907_s1 + $0xe2c] ss:$16 sps:$4 sm:$0xff]  }
 0x197   :  { %5933 = vmatpush1.bf16.msra.mxu0 %v8991_v33  ;;  %v9076_v33 = vld [vmem:[%s12907_s1 + $0xe60] ss:$16 sps:$4 sm:$0xff]  }
 0x198   :  { %5934 = vmatprep.subr.bf16.mxu0 %v8999_v18  ;;  %6544 = vmatpush1.bf16.msra.mxu1 %v8988_v34  ;;  %v9084_v18 = vld [vmem:[%s12907_s1 + $0xe84] ss:$16 sps:$4 sm:$0xff]   ;;  %v9073_v34 = vld [vmem:[%s12907_s1 + $0xe28] ss:$16 sps:$4 sm:$0xff]  }
 0x199   :  { %6545 = vmatprep.subr.bf16.mxu1 %v8996_v35  ;;  %v9081_v35 = vld [vmem:[%s12907_s1 + $0xe4c] ss:$16 sps:$4 sm:$0xff]  }
 0x19b   :  { %5935 = vmatpush1.bf16.msra.mxu0 %v8997_v38  ;;  %v9082_v38 = vld [vmem:[%s12907_s1 + $0xe80] ss:$16 sps:$4 sm:$0xff]  }
 0x19c   :  { %5936 = vmatprep.subr.bf16.mxu0 %v9005_v39  ;;  %6546 = vmatpush1.bf16.msra.mxu1 %v8994_v40  ;;  %v9090_v39 = vld [vmem:[%s12907_s1 + $0xea4] ss:$16 sps:$4 sm:$0xff]   ;;  %v9079_v40 = vld [vmem:[%s12907_s1 + $0xe48] ss:$16 sps:$4 sm:$0xff]  }
 0x19d   :  { %6547 = vmatprep.subr.bf16.mxu1 %v9002_v20  ;;  %v9087_v20 = vld [vmem:[%s12907_s1 + $0xe6c] ss:$16 sps:$4 sm:$0xff]  }
 0x19f   :  { %5937 = vmatpush1.bf16.msra.mxu0 %v9003_v41  ;;  %v9088_v41 = vld [vmem:[%s12907_s1 + $0xea0] ss:$16 sps:$4 sm:$0xff]  }
 0x1a0   :  { %5938 = vmatprep.subr.bf16.mxu0 %v9011_v32  ;;  %6548 = vmatpush1.bf16.msra.mxu1 %v9000_v42  ;;  %v9096_v32 = vld [vmem:[%s12907_s1 + $0xec4] ss:$16 sps:$4 sm:$0xff]   ;;  %v9085_v42 = vld [vmem:[%s12907_s1 + $0xe68] ss:$16 sps:$4 sm:$0xff]  }
 0x1a1   :  { %6549 = vmatprep.subr.bf16.mxu1 %v9008_v43  ;;  %v9093_v43 = vld [vmem:[%s12907_s1 + $0xe8c] ss:$16 sps:$4 sm:$0xff]  }
 0x1a3   :  { %5939 = vmatpush1.bf16.msra.mxu0 %v9009_v44  ;;  %v9094_v44 = vld [vmem:[%s12907_s1 + $0xec0] ss:$16 sps:$4 sm:$0xff]  }
 0x1a4   :  { %5940 = vmatprep.subr.bf16.mxu0 %v9017_v45  ;;  %6550 = vmatpush1.bf16.msra.mxu1 %v9006_v46  ;;  %v9102_v45 = vld [vmem:[%s12907_s1 + $0xee4] ss:$16 sps:$4 sm:$0xff]   ;;  %v9091_v46 = vld [vmem:[%s12907_s1 + $0xe88] ss:$16 sps:$4 sm:$0xff]  }
 0x1a5   :  { %6551 = vmatprep.subr.bf16.mxu1 %v9014_v47  ;;  %v9099_v47 = vld [vmem:[%s12907_s1 + $0xeac] ss:$16 sps:$4 sm:$0xff]  }
 0x1a7   :  { %5941 = vmatpush1.bf16.msra.mxu0 %v9015_v48  ;;  %v9100_v48 = vld [vmem:[%s12907_s1 + $0xee0] ss:$16 sps:$4 sm:$0xff]  }
 0x1a8   :  { %5942 = vmatprep.subr.bf16.mxu0 %v9023_v49  ;;  %6552 = vmatpush1.bf16.msra.mxu1 %v9012_v51  ;;  %v9108_v49 = vld [vmem:[%s12907_s1 + $0xf04] ss:$16 sps:$4 sm:$0xff]   ;;  %v9097_v51 = vld [vmem:[%s12907_s1 + $0xea8] ss:$16 sps:$4 sm:$0xff]  }
 0x1a9   :  { %6553 = vmatprep.subr.bf16.mxu1 %v9020_v36  ;;  %v9105_v36 = vld [vmem:[%s12907_s1 + $0xecc] ss:$16 sps:$4 sm:$0xff]  }
 0x1ab   :  { %5943 = vmatpush1.bf16.msra.mxu0 %v9021_v52  ;;  %v9106_v52 = vld [vmem:[%s12907_s1 + $0xf00] ss:$16 sps:$4 sm:$0xff]  }
 0x1ac   :  { %5944 = vmatprep.subr.bf16.mxu0 %v9029_v53  ;;  %6554 = vmatpush1.bf16.msra.mxu1 %v9018_v54  ;;  %v9114_v53 = vld [vmem:[%s12907_s1 + $0xf24] ss:$16 sps:$4 sm:$0xff]   ;;  %v9103_v54 = vld [vmem:[%s12907_s1 + $0xec8] ss:$16 sps:$4 sm:$0xff]  }
 0x1ad   :  { %6555 = vmatprep.subr.bf16.mxu1 %v9026_v55  ;;  %v9111_v55 = vld [vmem:[%s12907_s1 + $0xeec] ss:$16 sps:$4 sm:$0xff]  }
 0x1af   :  { %5945 = vmatpush1.bf16.msra.mxu0 %v9027_v58  ;;  %v9112_v58 = vld [vmem:[%s12907_s1 + $0xf20] ss:$16 sps:$4 sm:$0xff]  }
 0x1b0   :  { %5946 = vmatprep.subr.bf16.mxu0 %v9035_v59  ;;  %6556 = vmatpush1.bf16.msra.mxu1 %v9024_v60  ;;  %v9120_v59 = vld [vmem:[%s12907_s1 + $0xf44] ss:$16 sps:$4 sm:$0xff]   ;;  %v9109_v60 = vld [vmem:[%s12907_s1 + $0xee8] ss:$16 sps:$4 sm:$0xff]  }
 0x1b1   :  { %6557 = vmatprep.subr.bf16.mxu1 %v9032_v37  ;;  %v9117_v37 = vld [vmem:[%s12907_s1 + $0xf0c] ss:$16 sps:$4 sm:$0xff]  }
 0x1b3   :  { %5947 = vmatpush1.bf16.msra.mxu0 %v9033_v62  ;;  %v9118_v62 = vld [vmem:[%s12907_s1 + $0xf40] ss:$16 sps:$4 sm:$0xff]  }
 0x1b4   :  { %5948 = vmatprep.subr.bf16.mxu0 %v9041_v50  ;;  %6558 = vmatpush1.bf16.msra.mxu1 %v9030_v63  ;;  %v9126_v50 = vld [vmem:[%s12907_s1 + $0xf64] ss:$16 sps:$4 sm:$0xff]   ;;  %v9115_v63 = vld [vmem:[%s12907_s1 + $0xf08] ss:$16 sps:$4 sm:$0xff]  }
 0x1b5   :  { %6559 = vmatprep.subr.bf16.mxu1 %v9038_v0  ;;  %v9123_v0 = vld [vmem:[%s12907_s1 + $0xf2c] ss:$16 sps:$4 sm:$0xff]  }
 0x1b7   :  { %5949 = vmatpush1.bf16.msra.mxu0 %v9039_v1  ;;  %v9124_v1 = vld [vmem:[%s12907_s1 + $0xf60] ss:$16 sps:$4 sm:$0xff]  }
 0x1b8   :  { %5950 = vmatprep.subr.bf16.mxu0 %v9047_v2  ;;  %6560 = vmatpush1.bf16.msra.mxu1 %v9036_v4  ;;  %v9132_v2 = vld [vmem:[%s12907_s1 + $0xf84] ss:$16 sps:$4 sm:$0xff]   ;;  %v9121_v4 = vld [vmem:[%s12907_s1 + $0xf28] ss:$16 sps:$4 sm:$0xff]  }
 0x1b9   :  { %6561 = vmatprep.subr.bf16.mxu1 %v9044_v6  ;;  %v9129_v6 = vld [vmem:[%s12907_s1 + $0xf4c] ss:$16 sps:$4 sm:$0xff]  }
 0x1bb   :  { %5951 = vmatpush1.bf16.msra.mxu0 %v9045_v7  ;;  %v9130_v7 = vld [vmem:[%s12907_s1 + $0xf80] ss:$16 sps:$4 sm:$0xff]  }
 0x1bc   :  { %5952 = vmatprep.subr.bf16.mxu0 %v9053_v9  ;;  %6562 = vmatpush1.bf16.msra.mxu1 %v9042_v12  ;;  %v9138_v9 = vld [vmem:[%s12907_s1 + $0xfa4] ss:$16 sps:$4 sm:$0xff]   ;;  %v9127_v12 = vld [vmem:[%s12907_s1 + $0xf48] ss:$16 sps:$4 sm:$0xff]  }
 0x1bd   :  { %6563 = vmatprep.subr.bf16.mxu1 %v9050_v57  ;;  %v9135_v57 = vld [vmem:[%s12907_s1 + $0xf6c] ss:$16 sps:$4 sm:$0xff]  }
 0x1bf   :  { %5953 = vmatpush1.bf16.msra.mxu0 %v9051_v13  ;;  %v9136_v13 = vld [vmem:[%s12907_s1 + $0xfa0] ss:$16 sps:$4 sm:$0xff]  }
 0x1c0   :  { %5963 = vmatprep.subr.bf16.mxu0 %v9060_v14  ;;  %6564 = vmatpush1.bf16.msra.mxu1 %v9048_v16  ;;  %v9144_v14 = vld [vmem:[%s12907_s1 + $0xfc4] ss:$16 sps:$4 sm:$0xff]  }
 0x1c1   :  { %6565 = vmatprep.subr.bf16.mxu1 %v9056_v17  ;;  %v11418_v16 = vld [vmem:[%s12906_s0 + $0x10] sm:$0xff]  ;;  %v9133_v17 = vld [vmem:[%s12907_s1 + $0xf68] ss:$16 sps:$4 sm:$0xff]  }
 0x1c2   :  { %5955 = vmatmul.mubr.bf16.vlgmr.msra.gmra.mrb[0].mxu0 %v11247_v19 }
 0x1c3   :  { %5964 = vmatpush1.bf16.msra.mxu0 %v9058_v56  ;;  %5995 = vmatprep.mubr.bf16.mxu0 %v1055_v23  ;;  %v9141_v56 = vld [vmem:[%s12907_s1 + $0xf8c] ss:$16 sps:$4 sm:$0xff]  }
 0x1c4   :  { %5965 = vmatprep.subr.bf16.mxu0 %v9066_v21  ;;  %6566 = vmatpush1.bf16.msra.mxu1 %v9054_v61  ;;  %v9142_v21 = vld [vmem:[%s12907_s1 + $0xfc0] ss:$16 sps:$4 sm:$0xff]   ;;  %v11434_v61 = vrot.slane %v11418_v16, %v9841_v15 }
 0x1c5   :  { %6567 = vmatprep.subr.bf16.mxu1 %v9063_v24  ;;  %v9139_v24 = vld [vmem:[%s12907_s1 + $0xf88] ss:$16 sps:$4 sm:$0xff]  }
 0x1c7   :  { %5966 = vmatpush1.bf16.msra.mxu0 %v9064_v25  ;;  %v9147_v25 = vld [vmem:[%s12907_s1 + $0xfac] ss:$16 sps:$4 sm:$0xff]  }
 0x1c8   :  { %5967 = vmatprep.subr.bf16.mxu0 %v9072_v11  ;;  %6568 = vmatpush1.bf16.msra.mxu1 %v9061_v26  ;;  %v9148_v11 = vld [vmem:[%s12907_s1 + $0xfe0] ss:$16 sps:$4 sm:$0xff]   ;;  %v9156_v26 = vld [vmem:[%s12907_s1 + $0x1004] ss:$16 sps:$4 sm:$0xff]  }
 0x1c9   :  { %6578 = vmatprep.subr.bf16.mxu1 %v9069_v27  ;;  %v1071_v27 = vcombine.high %v11434_v61, %v11434_v61 }
 0x1cb   :  { %5968 = vmatpush1.bf16.msra.mxu0 %v9070_v28  ;;  %6570 = vmatmul.mubr.bf16.vlgmr.msra.gmra.mrb[4].mxu1 %v11247_v19  ;;  %v9145_v28 = vld [vmem:[%s12907_s1 + $0xfa8] ss:$16 sps:$4 sm:$0xff]  }
 0x1cc   :  { %5969 = vmatprep.subr.bf16.mxu0 %v9078_v29  ;;  %6579 = vmatpush1.bf16.msra.mxu1 %v9067_v30  ;;  %v9153_v29 = vld [vmem:[%s12907_s1 + $0xfcc] ss:$16 sps:$4 sm:$0xff]   ;;  %v1053_v30 = vcombine.high %v11247_v19, %v11247_v19 }
 0x1cd   :  { %6610 = vmatprep.mubr.bf16.mxu1 %v1055_v23  ;;  %6580 = vmatprep.subr.bf16.mxu1 %v9075_v31  ;;  %v9150_v23 = vld [vmem:[%s12907_s1 + $0xfe4] ss:$16 sps:$4 sm:$0xff]   ;;  %v9154_v31 = vld [vmem:[%s12907_s1 + $0x1000] ss:$16 sps:$4 sm:$0xff]  }
 0x1cf   :  { %5970 = vmatpush1.bf16.msra.mxu0 %v9076_v33  ;;  %v9162_v33 = vld [vmem:[%s12907_s1 + $0x1024] ss:$16 sps:$4 sm:$0xff]  }
 0x1d0   :  { %5971 = vmatprep.subr.bf16.mxu0 %v9084_v18  ;;  %6581 = vmatpush1.bf16.msra.mxu1 %v9073_v34  ;;  %v11465_v18 = vrot.slane %v1071_v27, %v9841_v15  ;;  %v9151_v34 = vld [vmem:[%s12907_s1 + $0xfc8] ss:$16 sps:$4 sm:$0xff]  }
 0x1d1   :  { %6582 = vmatprep.subr.bf16.mxu1 %v9081_v35 }
 0x1d3   :  { %5972 = vmatpush1.bf16.msra.mxu0 %v9082_v38 }
 0x1d4   :  { %5973 = vmatprep.subr.bf16.mxu0 %v9090_v39  ;;  %6583 = vmatpush1.bf16.msra.mxu1 %v9079_v40 }
 0x1d5   :  { %6584 = vmatprep.subr.bf16.mxu1 %v9087_v20 }
 0x1d7   :  { %5974 = vmatpush1.bf16.msra.mxu0 %v9088_v41 }
 0x1d8   :  { %5975 = vmatprep.subr.bf16.mxu0 %v9096_v32  ;;  %6585 = vmatpush1.bf16.msra.mxu1 %v9085_v42 }
 0x1d9   :  { %6586 = vmatprep.subr.bf16.mxu1 %v9093_v43 }
 0x1db   :  { %5976 = vmatpush1.bf16.msra.mxu0 %v9094_v44 }
 0x1dc   :  { %5977 = vmatprep.subr.bf16.mxu0 %v9102_v45  ;;  %6587 = vmatpush1.bf16.msra.mxu1 %v9091_v46 }
 0x1dd   :  { %6588 = vmatprep.subr.bf16.mxu1 %v9099_v47 }
 0x1df   :  { %5978 = vmatpush1.bf16.msra.mxu0 %v9100_v48 }
 0x1e0   :  { %5979 = vmatprep.subr.bf16.mxu0 %v9108_v49  ;;  %6589 = vmatpush1.bf16.msra.mxu1 %v9097_v51 }
 0x1e1   :  { %6590 = vmatprep.subr.bf16.mxu1 %v9105_v36 }
 0x1e3   :  { %5980 = vmatpush1.bf16.msra.mxu0 %v9106_v52 }
 0x1e4   :  { %5981 = vmatprep.subr.bf16.mxu0 %v9114_v53  ;;  %6591 = vmatpush1.bf16.msra.mxu1 %v9103_v54 }
 0x1e5   :  { %6592 = vmatprep.subr.bf16.mxu1 %v9111_v55 }
 0x1e7   :  { %5982 = vmatpush1.bf16.msra.mxu0 %v9112_v58 }
 0x1e8   :  { %5983 = vmatprep.subr.bf16.mxu0 %v9120_v59  ;;  %6593 = vmatpush1.bf16.msra.mxu1 %v9109_v60 }
 0x1e9   :  { %6594 = vmatprep.subr.bf16.mxu1 %v9117_v37 }
 0x1eb   :  { %5984 = vmatpush1.bf16.msra.mxu0 %v9118_v62 }
 0x1ec   :  { %5985 = vmatprep.subr.bf16.mxu0 %v9126_v50  ;;  %6595 = vmatpush1.bf16.msra.mxu1 %v9115_v63 }
 0x1ed   :  { %6596 = vmatprep.subr.bf16.mxu1 %v9123_v0 }
 0x1ef   :  { %5986 = vmatpush1.bf16.msra.mxu0 %v9124_v1 }
 0x1f0   :  { %5987 = vmatprep.subr.bf16.mxu0 %v9132_v2  ;;  %6597 = vmatpush1.bf16.msra.mxu1 %v9121_v4 }
 0x1f1   :  { %6598 = vmatprep.subr.bf16.mxu1 %v9129_v6 }
 0x1f3   :  { %5988 = vmatpush1.bf16.msra.mxu0 %v9130_v7 }
 0x1f4   :  { %5989 = vmatprep.subr.bf16.mxu0 %v9138_v9  ;;  %6599 = vmatpush1.bf16.msra.mxu1 %v9127_v12 }
 0x1f5   :  { %6600 = vmatprep.subr.bf16.mxu1 %v9135_v57 }
 0x1f7   :  { %5990 = vmatpush1.bf16.msra.mxu0 %v9136_v13 }
 0x1f8   :  { %5991 = vmatprep.subr.bf16.mxu0 %v9144_v14  ;;  %6601 = vmatpush1.bf16.msra.mxu1 %v9133_v17 }
 0x1f9   :  { %6602 = vmatprep.subr.bf16.mxu1 %v9141_v56 }
 0x1fb   :  { %5992 = vmatpush1.bf16.msra.mxu0 %v9142_v21 }
 0x1fc   :  { %5993 = vmatprep.subr.bf16.mxu0 %v9150_v23  ;;  %6603 = vmatpush1.bf16.msra.mxu1 %v9139_v24 }
 0x1fd   :  { %6604 = vmatprep.subr.bf16.mxu1 %v9147_v25 }
 0x1ff   :  { %5994 = vmatpush1.bf16.msra.mxu0 %v9148_v11 }
 0x200   :  { %6004 = vmatprep.subr.bf16.mxu0 %v9156_v26  ;;  %6605 = vmatpush1.bf16.msra.mxu1 %v9145_v28 }
 0x202   :  { %5996 = vmatmul.mubr.bf16.vlgmr.msra.gmra.mrb[0].mxu0 %v1053_v30 }
 0x203   :  { %12 = vsyncpa [#allocation3], 0  ;;  %6606 = vmatprep.subr.bf16.mxu1 %v9153_v29  ;;  %6005 = vmatpush1.bf16.msra.mxu0 %v9154_v31  ;;  %v9159_v19 = vld [vmem:[%s12907_s1 + $0xfec] ss:$16 sps:$4 sm:$0xff]   ;;  %v9160_v35 = vld [vmem:[%s12907_s1 + $0x1020] ss:$16 sps:$4 sm:$0xff]  }
 0x204   :  { %6006 = vmatprep.subr.bf16.mxu0 %v9162_v33  ;;  %v9168_v38 = vld [vmem:[%s12907_s1 + $0x1044] ss:$16 sps:$4 sm:$0xff]   ;;  %6036 = vmatprep.mubr.bf16.mxu0 %v11465_v18  ;;  %v9157_v39 = vld [vmem:[%s12907_s1 + $0xfe8] ss:$16 sps:$4 sm:$0xff]   ;;  %v9165_v40 = vld [vmem:[%s12907_s1 + $0x100c] ss:$16 sps:$4 sm:$0xff]  }
 0x205   :  { %6607 = vmatpush1.bf16.msra.mxu1 %v9151_v34  ;;  %v9166_v20 = vld [vmem:[%s12907_s1 + $0x1040] ss:$16 sps:$4 sm:$0xff]   ;;  %v9174_v41 = vld [vmem:[%s12907_s1 + $0x1064] ss:$16 sps:$4 sm:$0xff]   ;;  %v9163_v32 = vld [vmem:[%s12907_s1 + $0x1008] ss:$16 sps:$4 sm:$0xff]  }
 0x206   :  { %6608 = vmatprep.subr.bf16.mxu1 %v9159_v19  ;;  %v9171_v42 = vld [vmem:[%s12907_s1 + $0x102c] ss:$16 sps:$4 sm:$0xff]   ;;  %v9172_v43 = vld [vmem:[%s12907_s1 + $0x1060] ss:$16 sps:$4 sm:$0xff]   ;;  %v9180_v44 = vld [vmem:[%s12907_s1 + $0x1084] ss:$16 sps:$4 sm:$0xff]  }
 0x207   :  { %6007 = vmatpush1.bf16.msra.mxu0 %v9160_v35  ;;  %v9169_v45 = vld [vmem:[%s12907_s1 + $0x1028] ss:$16 sps:$4 sm:$0xff]   ;;  %v9177_v46 = vld [vmem:[%s12907_s1 + $0x104c] ss:$16 sps:$4 sm:$0xff]   ;;  %v9178_v47 = vld [vmem:[%s12907_s1 + $0x1080] ss:$16 sps:$4 sm:$0xff]  }
 0x208   :  { %6008 = vmatprep.subr.bf16.mxu0 %v9168_v38  ;;  %v9186_v48 = vld [vmem:[%s12907_s1 + $0x10a4] ss:$16 sps:$4 sm:$0xff]   ;;  %v9175_v49 = vld [vmem:[%s12907_s1 + $0x1048] ss:$16 sps:$4 sm:$0xff]   ;;  %v9183_v51 = vld [vmem:[%s12907_s1 + $0x106c] ss:$16 sps:$4 sm:$0xff]  }
 0x209   :  { %6609 = vmatpush1.bf16.msra.mxu1 %v9157_v39  ;;  %v9184_v36 = vld [vmem:[%s12907_s1 + $0x10a0] ss:$16 sps:$4 sm:$0xff]   ;;  %v9192_v52 = vld [vmem:[%s12907_s1 + $0x10c4] ss:$16 sps:$4 sm:$0xff]   ;;  %v9181_v53 = vld [vmem:[%s12907_s1 + $0x1068] ss:$16 sps:$4 sm:$0xff]  }
 0x20a   :  { %6619 = vmatprep.subr.bf16.mxu1 %v9165_v40  ;;  %v9189_v54 = vld [vmem:[%s12907_s1 + $0x108c] ss:$16 sps:$4 sm:$0xff]   ;;  %v9190_v55 = vld [vmem:[%s12907_s1 + $0x10c0] ss:$16 sps:$4 sm:$0xff]   ;;  %v9198_v58 = vld [vmem:[%s12907_s1 + $0x10e4] ss:$16 sps:$4 sm:$0xff]  }
 0x20b   :  { %6009 = vmatpush1.bf16.msra.mxu0 %v9166_v20  ;;  %v9187_v59 = vld [vmem:[%s12907_s1 + $0x1088] ss:$16 sps:$4 sm:$0xff]   ;;  %v9195_v60 = vld [vmem:[%s12907_s1 + $0x10ac] ss:$16 sps:$4 sm:$0xff]   ;;  %v9196_v37 = vld [vmem:[%s12907_s1 + $0x10e0] ss:$16 sps:$4 sm:$0xff]   ;;  %v11654_v20 = vrot.slane %v11434_v61, %v9841_v15 }
 0x20c   :  { %6010 = vmatprep.subr.bf16.mxu0 %v9174_v41  ;;  %6611 = vmatmul.mubr.bf16.vlgmr.msra.gmra.mrb[4].mxu1 %v1053_v30  ;;  %v9204_v62 = vld [vmem:[%s12907_s1 + $0x1104] ss:$16 sps:$4 sm:$0xff]   ;;  %v9193_v50 = vld [vmem:[%s12907_s1 + $0x10a8] ss:$16 sps:$4 sm:$0xff]   ;;  %v9201_v63 = vld [vmem:[%s12907_s1 + $0x10cc] ss:$16 sps:$4 sm:$0xff]  }
 0x20d   :  { %6620 = vmatpush1.bf16.msra.mxu1 %v9163_v32  ;;  %6651 = vmatprep.mubr.bf16.mxu1 %v11465_v18  ;;  %v9202_v0 = vld [vmem:[%s12907_s1 + $0x1100] ss:$16 sps:$4 sm:$0xff]   ;;  %v9210_v1 = vld [vmem:[%s12907_s1 + $0x1124] ss:$16 sps:$4 sm:$0xff]   ;;  %v9199_v2 = vld [vmem:[%s12907_s1 + $0x10c8] ss:$16 sps:$4 sm:$0xff]  }
 0x20e   :  { %6621 = vmatprep.subr.bf16.mxu1 %v9171_v42  ;;  %v9207_v4 = vld [vmem:[%s12907_s1 + $0x10ec] ss:$16 sps:$4 sm:$0xff]   ;;  %v9208_v6 = vld [vmem:[%s12907_s1 + $0x1120] ss:$16 sps:$4 sm:$0xff]   ;;  %v9216_v7 = vld [vmem:[%s12907_s1 + $0x1144] ss:$16 sps:$4 sm:$0xff]  }
 0x20f   :  { %6011 = vmatpush1.bf16.msra.mxu0 %v9172_v43  ;;  %v9205_v9 = vld [vmem:[%s12907_s1 + $0x10e8] ss:$16 sps:$4 sm:$0xff]   ;;  %v9213_v12 = vld [vmem:[%s12907_s1 + $0x110c] ss:$16 sps:$4 sm:$0xff]   ;;  %v9214_v57 = vld [vmem:[%s12907_s1 + $0x1140] ss:$16 sps:$4 sm:$0xff]   ;;  %v1103_v43 = vcombine.high %v11465_v18, %v11465_v18 }
 0x210   :  { %6012 = vmatprep.subr.bf16.mxu0 %v9180_v44  ;;  %v9222_v13 = vld [vmem:[%s12907_s1 + $0x1164] ss:$16 sps:$4 sm:$0xff]   ;;  %v9211_v14 = vld [vmem:[%s12907_s1 + $0x1108] ss:$16 sps:$4 sm:$0xff]   ;;  %v9219_v17 = vld [vmem:[%s12907_s1 + $0x112c] ss:$16 sps:$4 sm:$0xff]  }
 0x211   :  { %6622 = vmatpush1.bf16.msra.mxu1 %v9169_v45  ;;  %v9220_v56 = vld [vmem:[%s12907_s1 + $0x1160] ss:$16 sps:$4 sm:$0xff]   ;;  %v9228_v21 = vld [vmem:[%s12907_s1 + $0x1184] ss:$16 sps:$4 sm:$0xff]   ;;  %v9217_v23 = vld [vmem:[%s12907_s1 + $0x1128] ss:$16 sps:$4 sm:$0xff]  }
 0x212   :  { %6623 = vmatprep.subr.bf16.mxu1 %v9177_v46  ;;  %v9225_v24 = vld [vmem:[%s12907_s1 + $0x114c] ss:$16 sps:$4 sm:$0xff]   ;;  %v9226_v25 = vld [vmem:[%s12907_s1 + $0x1180] ss:$16 sps:$4 sm:$0xff]   ;;  %v9234_v11 = vld [vmem:[%s12907_s1 + $0x11a4] ss:$16 sps:$4 sm:$0xff]  }
 0x213   :  { %6013 = vmatpush1.bf16.msra.mxu0 %v9178_v47  ;;  %v9223_v26 = vld [vmem:[%s12907_s1 + $0x1148] ss:$16 sps:$4 sm:$0xff]   ;;  %v9231_v27 = vld [vmem:[%s12907_s1 + $0x116c] ss:$16 sps:$4 sm:$0xff]   ;;  %v9232_v28 = vld [vmem:[%s12907_s1 + $0x11a0] ss:$16 sps:$4 sm:$0xff]  }
 0x214   :  { %6014 = vmatprep.subr.bf16.mxu0 %v9186_v48  ;;  %v9240_v29 = vld [vmem:[%s12907_s1 + $0x11c4] ss:$16 sps:$4 sm:$0xff]   ;;  %v9229_v30 = vld [vmem:[%s12907_s1 + $0x1168] ss:$16 sps:$4 sm:$0xff]   ;;  %v9237_v31 = vld [vmem:[%s12907_s1 + $0x118c] ss:$16 sps:$4 sm:$0xff]  }
 0x215   :  { %6624 = vmatpush1.bf16.msra.mxu1 %v9175_v49  ;;  %v9238_v33 = vld [vmem:[%s12907_s1 + $0x11c0] ss:$16 sps:$4 sm:$0xff]   ;;  %v9246_v34 = vld [vmem:[%s12907_s1 + $0x11e4] ss:$16 sps:$4 sm:$0xff]   ;;  %v9235_v19 = vld [vmem:[%s12907_s1 + $0x1188] ss:$16 sps:$4 sm:$0xff]  }
 0x216   :  { %6625 = vmatprep.subr.bf16.mxu1 %v9183_v51  ;;  %v9243_v35 = vld [vmem:[%s12907_s1 + $0x11ac] ss:$16 sps:$4 sm:$0xff]   ;;  %v9244_v38 = vld [vmem:[%s12907_s1 + $0x11e0] ss:$16 sps:$4 sm:$0xff]   ;;  %v9252_v39 = vld [vmem:[%s12907_s1 + $0x1204] ss:$16 sps:$4 sm:$0xff]  }
 0x217   :  { %6015 = vmatpush1.bf16.msra.mxu0 %v9184_v36  ;;  %v9241_v40 = vld [vmem:[%s12907_s1 + $0x11a8] ss:$16 sps:$4 sm:$0xff]   ;;  %v9249_v41 = vld [vmem:[%s12907_s1 + $0x11cc] ss:$16 sps:$4 sm:$0xff]   ;;  %v9250_v32 = vld [vmem:[%s12907_s1 + $0x1200] ss:$16 sps:$4 sm:$0xff]  }
 0x218   :  { %6016 = vmatprep.subr.bf16.mxu0 %v9192_v52  ;;  %v9258_v42 = vld [vmem:[%s12907_s1 + $0x1224] ss:$16 sps:$4 sm:$0xff]   ;;  %v9247_v61 = vld [vmem:[%s12907_s1 + $0x11c8] ss:$16 sps:$4 sm:$0xff]   ;;  %v9255_v44 = vld [vmem:[%s12907_s1 + $0x11ec] ss:$16 sps:$4 sm:$0xff]  }
 0x219   :  { %6626 = vmatpush1.bf16.msra.mxu1 %v9181_v53  ;;  %v9256_v45 = vld [vmem:[%s12907_s1 + $0x1220] ss:$16 sps:$4 sm:$0xff]   ;;  %v9264_v18 = vld [vmem:[%s12907_s1 + $0x1244] ss:$16 sps:$4 sm:$0xff]   ;;  %v9253_v46 = vld [vmem:[%s12907_s1 + $0x11e8] ss:$16 sps:$4 sm:$0xff]  }
 0x21a   :  { %6627 = vmatprep.subr.bf16.mxu1 %v9189_v54  ;;  %v9261_v47 = vld [vmem:[%s12907_s1 + $0x120c] ss:$16 sps:$4 sm:$0xff]   ;;  %v9262_v48 = vld [vmem:[%s12907_s1 + $0x1240] ss:$16 sps:$4 sm:$0xff]   ;;  %v9270_v49 = vld [vmem:[%s12907_s1 + $0x1264] ss:$16 sps:$4 sm:$0xff]  }
 0x21b   :  { %6017 = vmatpush1.bf16.msra.mxu0 %v9190_v55  ;;  %v9259_v51 = vld [vmem:[%s12907_s1 + $0x1208] ss:$16 sps:$4 sm:$0xff]   ;;  %v9267_v36 = vld [vmem:[%s12907_s1 + $0x122c] ss:$16 sps:$4 sm:$0xff]   ;;  %v9268_v52 = vld [vmem:[%s12907_s1 + $0x1260] ss:$16 sps:$4 sm:$0xff]  }
 0x21c   :  { %6018 = vmatprep.subr.bf16.mxu0 %v9198_v58  ;;  %v9276_v53 = vld [vmem:[%s12907_s1 + $0x1284] ss:$16 sps:$4 sm:$0xff]   ;;  %v9265_v54 = vld [vmem:[%s12907_s1 + $0x1228] ss:$16 sps:$4 sm:$0xff]   ;;  %v9273_v55 = vld [vmem:[%s12907_s1 + $0x124c] ss:$16 sps:$4 sm:$0xff]  }
 0x21d   :  { %6628 = vmatpush1.bf16.msra.mxu1 %v9187_v59  ;;  %v9274_v58 = vld [vmem:[%s12907_s1 + $0x1280] ss:$16 sps:$4 sm:$0xff]   ;;  %v9282_v59 = vld [vmem:[%s12907_s1 + $0x12a4] ss:$16 sps:$4 sm:$0xff]   ;;  %vm6980_vm1 = vcmask 1041408   ;;  %vm9768_vm2 = vmmov 0  }
 0x21e   :  { %6629 = vmatprep.subr.bf16.mxu1 %v9195_v60  ;;  %v9271_v60 = vld [vmem:[%s12907_s1 + $0x1248] ss:$16 sps:$4 sm:$0xff]   ;;  %vm6976_vm3 = vcmask 15360   ;;  %s9769_s30 = smov [#allocation2]   ;;  %vm7202_vm4 = vcmask 9216  }
 0x21f   :  { %6019 = vmatpush1.bf16.msra.mxu0 %v9196_v37  ;;  %v9279_v37 = vld [vmem:[%s12907_s1 + $0x126c] ss:$16 sps:$4 sm:$0xff]   ;;  %s7210_s8 = sshll.u32 %s9769_s30, 4  ;;  %s7211_s8 = int_to_ptr.vmem [resolvable:$true] %s7210_s8 }
 0x220   :  { %6020 = vmatprep.subr.bf16.mxu0 %v9204_v62  ;;  %v9280_v62 = vld [vmem:[%s12907_s1 + $0x12a0] ss:$16 sps:$4 sm:$0xff]   ;;  %p9746_p1 = scmp.lt.s32.totalorder %s7211_s8, %s7211_s8 }
 0x221   :  { %6630 = vmatpush1.bf16.msra.mxu1 %v9193_v50  ;;  %v9288_v50 = vld [vmem:[%s12907_s1 + $0x12c4] ss:$16 sps:$4 sm:$0xff]  }
 0x222   :  { %6631 = vmatprep.subr.bf16.mxu1 %v9201_v63  ;;  %v9277_v63 = vld [vmem:[%s12907_s1 + $0x1268] ss:$16 sps:$4 sm:$0xff]  }
 0x223   :  { %6021 = vmatpush1.bf16.msra.mxu0 %v9202_v0  ;;  %v9285_v0 = vld [vmem:[%s12907_s1 + $0x128c] ss:$16 sps:$4 sm:$0xff]  }
 0x224   :  { %6022 = vmatprep.subr.bf16.mxu0 %v9210_v1  ;;  %v9286_v1 = vld [vmem:[%s12907_s1 + $0x12c0] ss:$16 sps:$4 sm:$0xff]  }
 0x225   :  { %6632 = vmatpush1.bf16.msra.mxu1 %v9199_v2  ;;  %v9294_v2 = vld [vmem:[%s12907_s1 + $0x12e4] ss:$16 sps:$4 sm:$0xff]  }
 0x226   :  { %6633 = vmatprep.subr.bf16.mxu1 %v9207_v4  ;;  %v9283_v4 = vld [vmem:[%s12907_s1 + $0x1288] ss:$16 sps:$4 sm:$0xff]  }
 0x227   :  { %6023 = vmatpush1.bf16.msra.mxu0 %v9208_v6  ;;  %v9291_v6 = vld [vmem:[%s12907_s1 + $0x12ac] ss:$16 sps:$4 sm:$0xff]  }
 0x228   :  { %6024 = vmatprep.subr.bf16.mxu0 %v9216_v7  ;;  %v9292_v7 = vld [vmem:[%s12907_s1 + $0x12e0] ss:$16 sps:$4 sm:$0xff]  }
 0x229   :  { %6634 = vmatpush1.bf16.msra.mxu1 %v9205_v9  ;;  %v9300_v9 = vld [vmem:[%s12907_s1 + $0x1304] ss:$16 sps:$4 sm:$0xff]  }
 0x22a   :  { %6635 = vmatprep.subr.bf16.mxu1 %v9213_v12  ;;  %v9289_v12 = vld [vmem:[%s12907_s1 + $0x12a8] ss:$16 sps:$4 sm:$0xff]  }
 0x22b   :  { %6025 = vmatpush1.bf16.msra.mxu0 %v9214_v57  ;;  %v9297_v57 = vld [vmem:[%s12907_s1 + $0x12cc] ss:$16 sps:$4 sm:$0xff]  }
 0x22c   :  { %6026 = vmatprep.subr.bf16.mxu0 %v9222_v13  ;;  %v9298_v13 = vld [vmem:[%s12907_s1 + $0x1300] ss:$16 sps:$4 sm:$0xff]  }
 0x22d   :  { %6636 = vmatpush1.bf16.msra.mxu1 %v9211_v14  ;;  %v9306_v14 = vld [vmem:[%s12907_s1 + $0x1324] ss:$16 sps:$4 sm:$0xff]  }
 0x22e   :  { %6637 = vmatprep.subr.bf16.mxu1 %v9219_v17  ;;  %v9295_v17 = vld [vmem:[%s12907_s1 + $0x12c8] ss:$16 sps:$4 sm:$0xff]  }
 0x22f   :  { %6027 = vmatpush1.bf16.msra.mxu0 %v9220_v56  ;;  %v9303_v56 = vld [vmem:[%s12907_s1 + $0x12ec] ss:$16 sps:$4 sm:$0xff]  }
 0x230   :  { %6028 = vmatprep.subr.bf16.mxu0 %v9228_v21  ;;  %v9304_v21 = vld [vmem:[%s12907_s1 + $0x1320] ss:$16 sps:$4 sm:$0xff]  }
 0x231   :  { %6638 = vmatpush1.bf16.msra.mxu1 %v9217_v23  ;;  %v9312_v23 = vld [vmem:[%s12907_s1 + $0x1344] ss:$16 sps:$4 sm:$0xff]  }
 0x232   :  { %6639 = vmatprep.subr.bf16.mxu1 %v9225_v24  ;;  %v9301_v24 = vld [vmem:[%s12907_s1 + $0x12e8] ss:$16 sps:$4 sm:$0xff]  }
 0x233   :  { %6029 = vmatpush1.bf16.msra.mxu0 %v9226_v25  ;;  %v9309_v25 = vld [vmem:[%s12907_s1 + $0x130c] ss:$16 sps:$4 sm:$0xff]  }
 0x234   :  { %6030 = vmatprep.subr.bf16.mxu0 %v9234_v11  ;;  %v9310_v11 = vld [vmem:[%s12907_s1 + $0x1340] ss:$16 sps:$4 sm:$0xff]  }
 0x235   :  { %6640 = vmatpush1.bf16.msra.mxu1 %v9223_v26  ;;  %v9318_v26 = vld [vmem:[%s12907_s1 + $0x1364] ss:$16 sps:$4 sm:$0xff]  }
 0x236   :  { %6641 = vmatprep.subr.bf16.mxu1 %v9231_v27  ;;  %v9307_v27 = vld [vmem:[%s12907_s1 + $0x1308] ss:$16 sps:$4 sm:$0xff]  }
 0x237   :  { %6031 = vmatpush1.bf16.msra.mxu0 %v9232_v28  ;;  %v9315_v28 = vld [vmem:[%s12907_s1 + $0x132c] ss:$16 sps:$4 sm:$0xff]  }
 0x238   :  { %6032 = vmatprep.subr.bf16.mxu0 %v9240_v29  ;;  %v9316_v29 = vld [vmem:[%s12907_s1 + $0x1360] ss:$16 sps:$4 sm:$0xff]  }
 0x239   :  { %6642 = vmatpush1.bf16.msra.mxu1 %v9229_v30  ;;  %v9324_v30 = vld [vmem:[%s12907_s1 + $0x1384] ss:$16 sps:$4 sm:$0xff]  }
 0x23a   :  { %6643 = vmatprep.subr.bf16.mxu1 %v9237_v31  ;;  %v9313_v31 = vld [vmem:[%s12907_s1 + $0x1328] ss:$16 sps:$4 sm:$0xff]  }
 0x23b   :  { %6033 = vmatpush1.bf16.msra.mxu0 %v9238_v33  ;;  %v9321_v33 = vld [vmem:[%s12907_s1 + $0x134c] ss:$16 sps:$4 sm:$0xff]  }
 0x23c   :  { %6034 = vmatprep.subr.bf16.mxu0 %v9246_v34  ;;  %v9322_v34 = vld [vmem:[%s12907_s1 + $0x1380] ss:$16 sps:$4 sm:$0xff]  }
 0x23d   :  { %6644 = vmatpush1.bf16.msra.mxu1 %v9235_v19  ;;  %v9330_v19 = vld [vmem:[%s12907_s1 + $0x13a4] ss:$16 sps:$4 sm:$0xff]  }
 0x23e   :  { %6645 = vmatprep.subr.bf16.mxu1 %v9243_v35  ;;  %v9319_v35 = vld [vmem:[%s12907_s1 + $0x1348] ss:$16 sps:$4 sm:$0xff]  }
 0x23f   :  { %6035 = vmatpush1.bf16.msra.mxu0 %v9244_v38  ;;  %v9327_v38 = vld [vmem:[%s12907_s1 + $0x136c] ss:$16 sps:$4 sm:$0xff]  }
 0x240   :  { %6045 = vmatprep.subr.bf16.mxu0 %v9252_v39  ;;  %v9328_v39 = vld [vmem:[%s12907_s1 + $0x13a0] ss:$16 sps:$4 sm:$0xff]  }
 0x241   :  { %6646 = vmatpush1.bf16.msra.mxu1 %v9241_v40  ;;  %v9336_v40 = vld [vmem:[%s12907_s1 + $0x13c4] ss:$16 sps:$4 sm:$0xff]  }
 0x242   :  { %6037 = vmatmul.mubr.bf16.vlgmr.msra.gmra.mrb[0].mxu0 %v11654_v20  ;;  %6647 = vmatprep.subr.bf16.mxu1 %v9249_v41  ;;  %v1056_v41 = vcombine.high %v11418_v16, %v11418_v16  ;;  %v9342_v16 = vld [vmem:[%s12907_s1 + $0x13e4] ss:$16 sps:$4 sm:$0xff]  }
 0x243   :  { %6046 = vmatpush1.bf16.msra.mxu0 %v9250_v32  ;;  %6077 = vmatprep.mubr.bf16.mxu0 %v1103_v43  ;;  %v9325_v32 = vld [vmem:[%s12907_s1 + $0x1368] ss:$16 sps:$4 sm:$0xff]  }
 0x244   :  { %6047 = vmatprep.subr.bf16.mxu0 %v9258_v42  ;;  %v9333_v42 = vld [vmem:[%s12907_s1 + $0x138c] ss:$16 sps:$4 sm:$0xff]  }
 0x245   :  { %6648 = vmatpush1.bf16.msra.mxu1 %v9247_v61  ;;  %v11840_v61 = vrot.slane %v1056_v41, %v9841_v15  ;;  %v9411_v41 = vld [vmem:[%s12907_s1 + $0x152c] ss:$16 sps:$4 sm:$0xff]  }
 0x246   :  { %6649 = vmatprep.subr.bf16.mxu1 %v9255_v44  ;;  %v9331_v44 = vld [vmem:[%s12907_s1 + $0x1388] ss:$16 sps:$4 sm:$0xff]  }
 0x247   :  { %6048 = vmatpush1.bf16.msra.mxu0 %v9256_v45  ;;  %v9339_v45 = vld [vmem:[%s12907_s1 + $0x13ac] ss:$16 sps:$4 sm:$0xff]  }
 0x248   :  { %6049 = vmatprep.subr.bf16.mxu0 %v9264_v18  ;;  %v9340_v18 = vld [vmem:[%s12907_s1 + $0x13e0] ss:$16 sps:$4 sm:$0xff]  }
 0x249   :  { %6650 = vmatpush1.bf16.msra.mxu1 %v9253_v46  ;;  %v9348_v46 = vld [vmem:[%s12907_s1 + $0x1404] ss:$16 sps:$4 sm:$0xff]  }
 0x24a   :  { %6660 = vmatprep.subr.bf16.mxu1 %v9261_v47  ;;  %v1072_v47 = vcombine.high %v11840_v61, %v11840_v61 }
 0x24b   :  { %6050 = vmatpush1.bf16.msra.mxu0 %v9262_v48  ;;  %v9337_v48 = vld [vmem:[%s12907_s1 + $0x13a8] ss:$16 sps:$4 sm:$0xff]  }
 0x24c   :  { %6051 = vmatprep.subr.bf16.mxu0 %v9270_v49  ;;  %6652 = vmatmul.mubr.bf16.vlgmr.msra.gmra.mrb[4].mxu1 %v11654_v20  ;;  %v1101_v49 = vcombine.high %v11654_v20, %v11654_v20  ;;  %v9343_v20 = vld [vmem:[%s12907_s1 + $0x13c8] ss:$16 sps:$4 sm:$0xff]  }
 0x24d   :  { %6661 = vmatpush1.bf16.msra.mxu1 %v9259_v51  ;;  %6692 = vmatprep.mubr.bf16.mxu1 %v1103_v43  ;;  %v9334_v43 = vld [vmem:[%s12907_s1 + $0x13c0] ss:$16 sps:$4 sm:$0xff]   ;;  %v9345_v51 = vld [vmem:[%s12907_s1 + $0x13cc] ss:$16 sps:$4 sm:$0xff]  }
 0x24e   :  { %6662 = vmatprep.subr.bf16.mxu1 %v9267_v36  ;;  %v9346_v36 = vld [vmem:[%s12907_s1 + $0x1400] ss:$16 sps:$4 sm:$0xff]  }
 0x24f   :  { %6052 = vmatpush1.bf16.msra.mxu0 %v9268_v52  ;;  %v9354_v52 = vld [vmem:[%s12907_s1 + $0x1424] ss:$16 sps:$4 sm:$0xff]  }
 0x250   :  { %6053 = vmatprep.subr.bf16.mxu0 %v9276_v53  ;;  %v11871_v53 = vrot.slane %v1072_v47, %v9841_v15  ;;  %v9424_v47 = vld [vmem:[%s12907_s1 + $0x15a0] ss:$16 sps:$4 sm:$0xff]  }
 0x251   :  { %6663 = vmatpush1.bf16.msra.mxu1 %v9265_v54  ;;  %v9351_v54 = vld [vmem:[%s12907_s1 + $0x13ec] ss:$16 sps:$4 sm:$0xff]  }
 0x252   :  { %6664 = vmatprep.subr.bf16.mxu1 %v9273_v55  ;;  %v9352_v55 = vld [vmem:[%s12907_s1 + $0x1420] ss:$16 sps:$4 sm:$0xff]  }
 0x253   :  { %6054 = vmatpush1.bf16.msra.mxu0 %v9274_v58  ;;  %v9360_v58 = vld [vmem:[%s12907_s1 + $0x1444] ss:$16 sps:$4 sm:$0xff]  }
 0x254   :  { %6055 = vmatprep.subr.bf16.mxu0 %v9282_v59  ;;  %v9349_v59 = vld [vmem:[%s12907_s1 + $0x13e8] ss:$16 sps:$4 sm:$0xff]  }
 0x255   :  { %6665 = vmatpush1.bf16.msra.mxu1 %v9271_v60  ;;  %v9357_v60 = vld [vmem:[%s12907_s1 + $0x140c] ss:$16 sps:$4 sm:$0xff]  }
 0x256   :  { %6666 = vmatprep.subr.bf16.mxu1 %v9279_v37  ;;  %v9358_v37 = vld [vmem:[%s12907_s1 + $0x1440] ss:$16 sps:$4 sm:$0xff]  }
 0x257   :  { %6056 = vmatpush1.bf16.msra.mxu0 %v9280_v62  ;;  %v9366_v62 = vld [vmem:[%s12907_s1 + $0x1464] ss:$16 sps:$4 sm:$0xff]  }
 0x258   :  { %6057 = vmatprep.subr.bf16.mxu0 %v9288_v50  ;;  %v9355_v50 = vld [vmem:[%s12907_s1 + $0x1408] ss:$16 sps:$4 sm:$0xff]  }
 0x259   :  { %6667 = vmatpush1.bf16.msra.mxu1 %v9277_v63  ;;  %v9363_v63 = vld [vmem:[%s12907_s1 + $0x142c] ss:$16 sps:$4 sm:$0xff]  }
 0x25a   :  { %6668 = vmatprep.subr.bf16.mxu1 %v9285_v0  ;;  %v9364_v0 = vld [vmem:[%s12907_s1 + $0x1460] ss:$16 sps:$4 sm:$0xff]  }
 0x25b   :  { %6058 = vmatpush1.bf16.msra.mxu0 %v9286_v1  ;;  %v9372_v1 = vld [vmem:[%s12907_s1 + $0x1484] ss:$16 sps:$4 sm:$0xff]  }
 0x25c   :  { %6059 = vmatprep.subr.bf16.mxu0 %v9294_v2  ;;  %v9361_v2 = vld [vmem:[%s12907_s1 + $0x1428] ss:$16 sps:$4 sm:$0xff]  }
 0x25d   :  { %6669 = vmatpush1.bf16.msra.mxu1 %v9283_v4  ;;  %v9369_v4 = vld [vmem:[%s12907_s1 + $0x144c] ss:$16 sps:$4 sm:$0xff]  }
 0x25e   :  { %6670 = vmatprep.subr.bf16.mxu1 %v9291_v6  ;;  %v9370_v6 = vld [vmem:[%s12907_s1 + $0x1480] ss:$16 sps:$4 sm:$0xff]  }
 0x25f   :  { %6060 = vmatpush1.bf16.msra.mxu0 %v9292_v7  ;;  %v9378_v7 = vld [vmem:[%s12907_s1 + $0x14a4] ss:$16 sps:$4 sm:$0xff]  }
 0x260   :  { %6061 = vmatprep.subr.bf16.mxu0 %v9300_v9  ;;  %v9367_v9 = vld [vmem:[%s12907_s1 + $0x1448] ss:$16 sps:$4 sm:$0xff]  }
 0x261   :  { %6671 = vmatpush1.bf16.msra.mxu1 %v9289_v12  ;;  %v9375_v12 = vld [vmem:[%s12907_s1 + $0x146c] ss:$16 sps:$4 sm:$0xff]  }
 0x262   :  { %6672 = vmatprep.subr.bf16.mxu1 %v9297_v57  ;;  %v9376_v57 = vld [vmem:[%s12907_s1 + $0x14a0] ss:$16 sps:$4 sm:$0xff]  }
 0x263   :  { %6062 = vmatpush1.bf16.msra.mxu0 %v9298_v13  ;;  %v9384_v13 = vld [vmem:[%s12907_s1 + $0x14c4] ss:$16 sps:$4 sm:$0xff]  }
 0x264   :  { %6063 = vmatprep.subr.bf16.mxu0 %v9306_v14  ;;  %v9373_v14 = vld [vmem:[%s12907_s1 + $0x1468] ss:$16 sps:$4 sm:$0xff]  }
 0x265   :  { %6673 = vmatpush1.bf16.msra.mxu1 %v9295_v17  ;;  %v9381_v17 = vld [vmem:[%s12907_s1 + $0x148c] ss:$16 sps:$4 sm:$0xff]  }
 0x266   :  { %6674 = vmatprep.subr.bf16.mxu1 %v9303_v56  ;;  %v9382_v56 = vld [vmem:[%s12907_s1 + $0x14c0] ss:$16 sps:$4 sm:$0xff]  }
 0x267   :  { %6064 = vmatpush1.bf16.msra.mxu0 %v9304_v21  ;;  %v9390_v21 = vld [vmem:[%s12907_s1 + $0x14e4] ss:$16 sps:$4 sm:$0xff]  }
 0x268   :  { %6065 = vmatprep.subr.bf16.mxu0 %v9312_v23  ;;  %v9379_v23 = vld [vmem:[%s12907_s1 + $0x1488] ss:$16 sps:$4 sm:$0xff]  }
 0x269   :  { %6675 = vmatpush1.bf16.msra.mxu1 %v9301_v24  ;;  %v9387_v24 = vld [vmem:[%s12907_s1 + $0x14ac] ss:$16 sps:$4 sm:$0xff]  }
 0x26a   :  { %6676 = vmatprep.subr.bf16.mxu1 %v9309_v25  ;;  %v9388_v25 = vld [vmem:[%s12907_s1 + $0x14e0] ss:$16 sps:$4 sm:$0xff]  }
 0x26b   :  { %6066 = vmatpush1.bf16.msra.mxu0 %v9310_v11  ;;  %v9396_v11 = vld [vmem:[%s12907_s1 + $0x1504] ss:$16 sps:$4 sm:$0xff]  }
 0x26c   :  { %6067 = vmatprep.subr.bf16.mxu0 %v9318_v26  ;;  %v9385_v26 = vld [vmem:[%s12907_s1 + $0x14a8] ss:$16 sps:$4 sm:$0xff]  }
 0x26d   :  { %6677 = vmatpush1.bf16.msra.mxu1 %v9307_v27  ;;  %v9393_v27 = vld [vmem:[%s12907_s1 + $0x14cc] ss:$16 sps:$4 sm:$0xff]  }
 0x26e   :  { %6678 = vmatprep.subr.bf16.mxu1 %v9315_v28  ;;  %v9394_v28 = vld [vmem:[%s12907_s1 + $0x1500] ss:$16 sps:$4 sm:$0xff]  }
 0x26f   :  { %6068 = vmatpush1.bf16.msra.mxu0 %v9316_v29  ;;  %v9402_v29 = vld [vmem:[%s12907_s1 + $0x1524] ss:$16 sps:$4 sm:$0xff]  }
 0x270   :  { %6069 = vmatprep.subr.bf16.mxu0 %v9324_v30  ;;  %v9391_v30 = vld [vmem:[%s12907_s1 + $0x14c8] ss:$16 sps:$4 sm:$0xff]  }
 0x271   :  { %6679 = vmatpush1.bf16.msra.mxu1 %v9313_v31  ;;  %v9399_v31 = vld [vmem:[%s12907_s1 + $0x14ec] ss:$16 sps:$4 sm:$0xff]  }
 0x272   :  { %6680 = vmatprep.subr.bf16.mxu1 %v9321_v33  ;;  %v9400_v33 = vld [vmem:[%s12907_s1 + $0x1520] ss:$16 sps:$4 sm:$0xff]  }
 0x273   :  { %6070 = vmatpush1.bf16.msra.mxu0 %v9322_v34  ;;  %v9408_v34 = vld [vmem:[%s12907_s1 + $0x1544] ss:$16 sps:$4 sm:$0xff]  }
 0x274   :  { %6071 = vmatprep.subr.bf16.mxu0 %v9330_v19  ;;  %v9397_v19 = vld [vmem:[%s12907_s1 + $0x14e8] ss:$16 sps:$4 sm:$0xff]  }
 0x275   :  { %6681 = vmatpush1.bf16.msra.mxu1 %v9319_v35  ;;  %v9405_v35 = vld [vmem:[%s12907_s1 + $0x150c] ss:$16 sps:$4 sm:$0xff]  }
 0x276   :  { %6682 = vmatprep.subr.bf16.mxu1 %v9327_v38  ;;  %v9406_v38 = vld [vmem:[%s12907_s1 + $0x1540] ss:$16 sps:$4 sm:$0xff]  }
 0x277   :  { %6072 = vmatpush1.bf16.msra.mxu0 %v9328_v39  ;;  %v9414_v39 = vld [vmem:[%s12907_s1 + $0x1564] ss:$16 sps:$4 sm:$0xff]  }
 0x278   :  { %6073 = vmatprep.subr.bf16.mxu0 %v9336_v40  ;;  %v9403_v40 = vld [vmem:[%s12907_s1 + $0x1508] ss:$16 sps:$4 sm:$0xff]  }
 0x279   :  { %6683 = vmatpush1.bf16.msra.mxu1 %v9325_v32  ;;  %v9412_v32 = vld [vmem:[%s12907_s1 + $0x1560] ss:$16 sps:$4 sm:$0xff]  }
 0x27a   :  { %6684 = vmatprep.subr.bf16.mxu1 %v9333_v42  ;;  %v9420_v42 = vld [vmem:[%s12907_s1 + $0x1584] ss:$16 sps:$4 sm:$0xff]  }
 0x27b   :  { %6074 = vmatpush1.bf16.msra.mxu0 %v9334_v43  ;;  %v9409_v43 = vld [vmem:[%s12907_s1 + $0x1528] ss:$16 sps:$4 sm:$0xff]  }
 0x27c   :  { %6075 = vmatprep.subr.bf16.mxu0 %v9342_v16  ;;  %v9417_v16 = vld [vmem:[%s12907_s1 + $0x154c] ss:$16 sps:$4 sm:$0xff]  }
 0x27d   :  { %6685 = vmatpush1.bf16.msra.mxu1 %v9331_v44  ;;  %v9418_v44 = vld [vmem:[%s12907_s1 + $0x1580] ss:$16 sps:$4 sm:$0xff]  }
 0x27e   :  { %6686 = vmatprep.subr.bf16.mxu1 %v9339_v45  ;;  %v9426_v45 = vld [vmem:[%s12907_s1 + $0x15a4] ss:$16 sps:$4 sm:$0xff]  }
 0x27f   :  { %6076 = vmatpush1.bf16.msra.mxu0 %v9340_v18  ;;  %v9415_v18 = vld [vmem:[%s12907_s1 + $0x1548] ss:$16 sps:$4 sm:$0xff]  }
 0x280   :  { %6086 = vmatprep.subr.bf16.mxu0 %v9348_v46  ;;  %v9423_v46 = vld [vmem:[%s12907_s1 + $0x156c] ss:$16 sps:$4 sm:$0xff]  }
 0x281   :  { %6687 = vmatpush1.bf16.msra.mxu1 %v9337_v48  ;;  %v9432_v48 = vld [vmem:[%s12907_s1 + $0x15c4] ss:$16 sps:$4 sm:$0xff]  }
 0x282   :  { %6078 = vmatmul.mubr.bf16.vlgmr.msra.gmra.mrb[0].mxu0 %v1101_v49  ;;  %6688 = vmatprep.subr.bf16.mxu1 %v9345_v51  ;;  %v9429_v51 = vld [vmem:[%s12907_s1 + $0x158c] ss:$16 sps:$4 sm:$0xff]  }
 0x283   :  { %6087 = vmatpush1.bf16.msra.mxu0 %v9346_v36  ;;  %6118 = vmatprep.mubr.bf16.mxu0 %v11871_v53  ;;  %v9430_v36 = vld [vmem:[%s12907_s1 + $0x15c0] ss:$16 sps:$4 sm:$0xff]  }
 0x284   :  { %6088 = vmatprep.subr.bf16.mxu0 %v9354_v52  ;;  %v9438_v52 = vld [vmem:[%s12907_s1 + $0x15e4] ss:$16 sps:$4 sm:$0xff]  }
 0x285   :  { %6689 = vmatpush1.bf16.msra.mxu1 %v9343_v20  ;;  %v9427_v20 = vld [vmem:[%s12907_s1 + $0x1588] ss:$16 sps:$4 sm:$0xff]  }
 0x286   :  { %6690 = vmatprep.subr.bf16.mxu1 %v9351_v54  ;;  %v9435_v54 = vld [vmem:[%s12907_s1 + $0x15ac] ss:$16 sps:$4 sm:$0xff]  }
 0x287   :  { %6089 = vmatpush1.bf16.msra.mxu0 %v9352_v55  ;;  %v9436_v55 = vld [vmem:[%s12907_s1 + $0x15e0] ss:$16 sps:$4 sm:$0xff]  }
 0x288   :  { %6090 = vmatprep.subr.bf16.mxu0 %v9360_v58  ;;  %v9445_v58 = vld [vmem:[%s12907_s1 + $0x1604] ss:$16 sps:$4 sm:$0xff]  }
 0x289   :  { %6691 = vmatpush1.bf16.msra.mxu1 %v9349_v59  ;;  %v9433_v59 = vld [vmem:[%s12907_s1 + $0x15a8] ss:$16 sps:$4 sm:$0xff]  }
 0x28a   :  { %6701 = vmatprep.subr.bf16.mxu1 %v9357_v60  ;;  %v12060_v60 = vrot.slane %v11840_v61, %v9841_v15  ;;  %v9439_v61 = vld [vmem:[%s12907_s1 + $0x15c8] ss:$16 sps:$4 sm:$0xff]  }
 0x28b   :  { %6091 = vmatpush1.bf16.msra.mxu0 %v9358_v37  ;;  %v9441_v37 = vld [vmem:[%s12907_s1 + $0x15cc] ss:$16 sps:$4 sm:$0xff]  }
 0x28c   :  { %6092 = vmatprep.subr.bf16.mxu0 %v9366_v62  ;;  %6693 = vmatmul.mubr.bf16.vlgmr.msra.gmra.mrb[4].mxu1 %v1101_v49  ;;  %v9421_v49 = vld [vmem:[%s12907_s1 + $0x1568] ss:$16 sps:$4 sm:$0xff]   ;;  %v9443_v62 = vld [vmem:[%s12907_s1 + $0x1600] ss:$16 sps:$4 sm:$0xff]  }
 0x28d   :  { %6702 = vmatpush1.bf16.msra.mxu1 %v9355_v50  ;;  %6733 = vmatprep.mubr.bf16.mxu1 %v11871_v53  ;;  %v9451_v50 = vld [vmem:[%s12907_s1 + $0x1624] ss:$16 sps:$4 sm:$0xff]  }
 0x28e   :  { %6703 = vmatprep.subr.bf16.mxu1 %v9363_v63  ;;  %v1104_v63 = vcombine.high %v11871_v53, %v11871_v53  ;;  %v9457_v53 = vld [vmem:[%s12907_s1 + $0x1644] ss:$16 sps:$4 sm:$0xff]  }
 0x28f   :  { %6093 = vmatpush1.bf16.msra.mxu0 %v9364_v0  ;;  %v9448_v0 = vld [vmem:[%s12907_s1 + $0x15ec] ss:$16 sps:$4 sm:$0xff]  }
 0x290   :  { %6094 = vmatprep.subr.bf16.mxu0 %v9372_v1  ;;  %v9449_v1 = vld [vmem:[%s12907_s1 + $0x1620] ss:$16 sps:$4 sm:$0xff]  }
 0x291   :  { %6704 = vmatpush1.bf16.msra.mxu1 %v9361_v2  ;;  %v9446_v2 = vld [vmem:[%s12907_s1 + $0x15e8] ss:$16 sps:$4 sm:$0xff]  }
 0x292   :  { %6705 = vmatprep.subr.bf16.mxu1 %v9369_v4  ;;  %v9454_v4 = vld [vmem:[%s12907_s1 + $0x160c] ss:$16 sps:$4 sm:$0xff]  }
 0x293   :  { %6095 = vmatpush1.bf16.msra.mxu0 %v9370_v6  ;;  %v9455_v6 = vld [vmem:[%s12907_s1 + $0x1640] ss:$16 sps:$4 sm:$0xff]  }
 0x294   :  { %6096 = vmatprep.subr.bf16.mxu0 %v9378_v7  ;;  %v9463_v7 = vld [vmem:[%s12907_s1 + $0x1664] ss:$16 sps:$4 sm:$0xff]  }
 0x295   :  { %6706 = vmatpush1.bf16.msra.mxu1 %v9367_v9  ;;  %v9452_v9 = vld [vmem:[%s12907_s1 + $0x1608] ss:$16 sps:$4 sm:$0xff]  }
 0x296   :  { %6707 = vmatprep.subr.bf16.mxu1 %v9375_v12  ;;  %v9460_v12 = vld [vmem:[%s12907_s1 + $0x162c] ss:$16 sps:$4 sm:$0xff]  }
 0x297   :  { %6097 = vmatpush1.bf16.msra.mxu0 %v9376_v57  ;;  %v9461_v57 = vld [vmem:[%s12907_s1 + $0x1660] ss:$16 sps:$4 sm:$0xff]  }
 0x298   :  { %6098 = vmatprep.subr.bf16.mxu0 %v9384_v13  ;;  %v9469_v13 = vld [vmem:[%s12907_s1 + $0x1684] ss:$16 sps:$4 sm:$0xff]  }
 0x299   :  { %6708 = vmatpush1.bf16.msra.mxu1 %v9373_v14  ;;  %v9458_v14 = vld [vmem:[%s12907_s1 + $0x1628] ss:$16 sps:$4 sm:$0xff]  }
 0x29a   :  { %6709 = vmatprep.subr.bf16.mxu1 %v9381_v17  ;;  %v9466_v17 = vld [vmem:[%s12907_s1 + $0x164c] ss:$16 sps:$4 sm:$0xff]  }
 0x29b   :  { %6099 = vmatpush1.bf16.msra.mxu0 %v9382_v56  ;;  %v9467_v56 = vld [vmem:[%s12907_s1 + $0x1680] ss:$16 sps:$4 sm:$0xff]  }
 0x29c   :  { %6100 = vmatprep.subr.bf16.mxu0 %v9390_v21  ;;  %v9475_v21 = vld [vmem:[%s12907_s1 + $0x16a4] ss:$16 sps:$4 sm:$0xff]  }
 0x29d   :  { %6710 = vmatpush1.bf16.msra.mxu1 %v9379_v23  ;;  %v9464_v23 = vld [vmem:[%s12907_s1 + $0x1648] ss:$16 sps:$4 sm:$0xff]  }
 0x29e   :  { %6711 = vmatprep.subr.bf16.mxu1 %v9387_v24  ;;  %v9472_v24 = vld [vmem:[%s12907_s1 + $0x166c] ss:$16 sps:$4 sm:$0xff]  }
 0x29f   :  { %6101 = vmatpush1.bf16.msra.mxu0 %v9388_v25  ;;  %v9473_v25 = vld [vmem:[%s12907_s1 + $0x16a0] ss:$16 sps:$4 sm:$0xff]  }
 0x2a0   :  { %6102 = vmatprep.subr.bf16.mxu0 %v9396_v11  ;;  %v9481_v11 = vld [vmem:[%s12907_s1 + $0x16c4] ss:$16 sps:$4 sm:$0xff]  }
 0x2a1   :  { %6712 = vmatpush1.bf16.msra.mxu1 %v9385_v26  ;;  %v9470_v26 = vld [vmem:[%s12907_s1 + $0x1668] ss:$16 sps:$4 sm:$0xff]  }
 0x2a2   :  { %6713 = vmatprep.subr.bf16.mxu1 %v9393_v27  ;;  %v9478_v27 = vld [vmem:[%s12907_s1 + $0x168c] ss:$16 sps:$4 sm:$0xff]  }
 0x2a3   :  { %6103 = vmatpush1.bf16.msra.mxu0 %v9394_v28  ;;  %v9479_v28 = vld [vmem:[%s12907_s1 + $0x16c0] ss:$16 sps:$4 sm:$0xff]  }
 0x2a4   :  { %6104 = vmatprep.subr.bf16.mxu0 %v9402_v29  ;;  %v9487_v29 = vld [vmem:[%s12907_s1 + $0x16e4] ss:$16 sps:$4 sm:$0xff]  }
 0x2a5   :  { %6714 = vmatpush1.bf16.msra.mxu1 %v9391_v30  ;;  %v9476_v30 = vld [vmem:[%s12907_s1 + $0x1688] ss:$16 sps:$4 sm:$0xff]  }
 0x2a6   :  { %6715 = vmatprep.subr.bf16.mxu1 %v9399_v31  ;;  %v9484_v31 = vld [vmem:[%s12907_s1 + $0x16ac] ss:$16 sps:$4 sm:$0xff]  }
 0x2a7   :  { %6105 = vmatpush1.bf16.msra.mxu0 %v9400_v33  ;;  %v9485_v33 = vld [vmem:[%s12907_s1 + $0x16e0] ss:$16 sps:$4 sm:$0xff]  }
 0x2a8   :  { %6106 = vmatprep.subr.bf16.mxu0 %v9408_v34  ;;  %v9493_v34 = vld [vmem:[%s12907_s1 + $0x1704] ss:$16 sps:$4 sm:$0xff]  }
 0x2a9   :  { %6716 = vmatpush1.bf16.msra.mxu1 %v9397_v19  ;;  %v9482_v19 = vld [vmem:[%s12907_s1 + $0x16a8] ss:$16 sps:$4 sm:$0xff]  }
 0x2aa   :  { %6717 = vmatprep.subr.bf16.mxu1 %v9405_v35  ;;  %v9490_v35 = vld [vmem:[%s12907_s1 + $0x16cc] ss:$16 sps:$4 sm:$0xff]  }
 0x2ab   :  { %6107 = vmatpush1.bf16.msra.mxu0 %v9406_v38  ;;  %v9491_v38 = vld [vmem:[%s12907_s1 + $0x1700] ss:$16 sps:$4 sm:$0xff]  }
 0x2ac   :  { %6108 = vmatprep.subr.bf16.mxu0 %v9414_v39  ;;  %v9499_v39 = vld [vmem:[%s12907_s1 + $0x1724] ss:$16 sps:$4 sm:$0xff]  }
 0x2ad   :  { %6718 = vmatpush1.bf16.msra.mxu1 %v9403_v40  ;;  %v9488_v40 = vld [vmem:[%s12907_s1 + $0x16c8] ss:$16 sps:$4 sm:$0xff]  }
 0x2ae   :  { %6719 = vmatprep.subr.bf16.mxu1 %v9411_v41  ;;  %v9496_v41 = vld [vmem:[%s12907_s1 + $0x16ec] ss:$16 sps:$4 sm:$0xff]  }
 0x2af   :  { %6109 = vmatpush1.bf16.msra.mxu0 %v9412_v32  ;;  %v9497_v32 = vld [vmem:[%s12907_s1 + $0x1720] ss:$16 sps:$4 sm:$0xff]  }
 0x2b0   :  { %6110 = vmatprep.subr.bf16.mxu0 %v9420_v42  ;;  %v9505_v42 = vld [vmem:[%s12907_s1 + $0x1744] ss:$16 sps:$4 sm:$0xff]  }
 0x2b1   :  { %6720 = vmatpush1.bf16.msra.mxu1 %v9409_v43  ;;  %v9494_v43 = vld [vmem:[%s12907_s1 + $0x16e8] ss:$16 sps:$4 sm:$0xff]  }
 0x2b2   :  { %6721 = vmatprep.subr.bf16.mxu1 %v9417_v16  ;;  %v9502_v16 = vld [vmem:[%s12907_s1 + $0x170c] ss:$16 sps:$4 sm:$0xff]  }
 0x2b3   :  { %6111 = vmatpush1.bf16.msra.mxu0 %v9418_v44  ;;  %v9503_v44 = vld [vmem:[%s12907_s1 + $0x1740] ss:$16 sps:$4 sm:$0xff]  }
 0x2b4   :  { %6112 = vmatprep.subr.bf16.mxu0 %v9426_v45  ;;  %v9511_v45 = vld [vmem:[%s12907_s1 + $0x1764] ss:$16 sps:$4 sm:$0xff]  }
 0x2b5   :  { %6722 = vmatpush1.bf16.msra.mxu1 %v9415_v18  ;;  %v9500_v18 = vld [vmem:[%s12907_s1 + $0x1708] ss:$16 sps:$4 sm:$0xff]  }
 0x2b6   :  { %6723 = vmatprep.subr.bf16.mxu1 %v9423_v46  ;;  %v9508_v46 = vld [vmem:[%s12907_s1 + $0x172c] ss:$16 sps:$4 sm:$0xff]  }
 0x2b7   :  { %6113 = vmatpush1.bf16.msra.mxu0 %v9424_v47  ;;  %v9509_v47 = vld [vmem:[%s12907_s1 + $0x1760] ss:$16 sps:$4 sm:$0xff]  }
 0x2b8   :  { %6114 = vmatprep.subr.bf16.mxu0 %v9432_v48  ;;  %v9517_v48 = vld [vmem:[%s12907_s1 + $0x1784] ss:$16 sps:$4 sm:$0xff]  }
 0x2b9   :  { %6724 = vmatpush1.bf16.msra.mxu1 %v9421_v49  ;;  %v9506_v49 = vld [vmem:[%s12907_s1 + $0x1728] ss:$16 sps:$4 sm:$0xff]  }
 0x2ba   :  { %6725 = vmatprep.subr.bf16.mxu1 %v9429_v51  ;;  %v9514_v51 = vld [vmem:[%s12907_s1 + $0x174c] ss:$16 sps:$4 sm:$0xff]  }
 0x2bb   :  { %6115 = vmatpush1.bf16.msra.mxu0 %v9430_v36  ;;  %v9515_v36 = vld [vmem:[%s12907_s1 + $0x1780] ss:$16 sps:$4 sm:$0xff]  }
 0x2bc   :  { %6116 = vmatprep.subr.bf16.mxu0 %v9438_v52  ;;  %v9523_v52 = vld [vmem:[%s12907_s1 + $0x17a4] ss:$16 sps:$4 sm:$0xff]  }
 0x2bd   :  { %6726 = vmatpush1.bf16.msra.mxu1 %v9427_v20  ;;  %v9512_v20 = vld [vmem:[%s12907_s1 + $0x1748] ss:$16 sps:$4 sm:$0xff]  }
 0x2be   :  { %6727 = vmatprep.subr.bf16.mxu1 %v9435_v54  ;;  %v9520_v54 = vld [vmem:[%s12907_s1 + $0x176c] ss:$16 sps:$4 sm:$0xff]  }
 0x2bf   :  { %6117 = vmatpush1.bf16.msra.mxu0 %v9436_v55  ;;  %v9521_v55 = vld [vmem:[%s12907_s1 + $0x17a0] ss:$16 sps:$4 sm:$0xff]  }
 0x2c0   :  { %6127 = vmatprep.subr.bf16.mxu0 %v9445_v58  ;;  %v9529_v58 = vld [vmem:[%s12907_s1 + $0x17c4] ss:$16 sps:$4 sm:$0xff]  }
 0x2c1   :  { %6728 = vmatpush1.bf16.msra.mxu1 %v9433_v59  ;;  %v9518_v59 = vld [vmem:[%s12907_s1 + $0x1768] ss:$16 sps:$4 sm:$0xff]  }
 0x2c2   :  { %6119 = vmatmul.mubr.bf16.vlgmr.msra.gmra.mrb[0].mxu0 %v12060_v60  ;;  %6729 = vmatprep.subr.bf16.mxu1 %v9441_v37  ;;  %v9526_v37 = vld [vmem:[%s12907_s1 + $0x178c] ss:$16 sps:$4 sm:$0xff]  }
 0x2c3   :  { %6128 = vmatpush1.bf16.msra.mxu0 %v9443_v62  ;;  %6159 = vmatprep.mubr.bf16.mxu0 %v1104_v63  ;;  %v9527_v62 = vld [vmem:[%s12907_s1 + $0x17c0] ss:$16 sps:$4 sm:$0xff]  }
 0x2c4   :  { %6129 = vmatprep.subr.bf16.mxu0 %v9451_v50  ;;  %v9535_v50 = vld [vmem:[%s12907_s1 + $0x17e4] ss:$16 sps:$4 sm:$0xff]  }
 0x2c5   :  { %6730 = vmatpush1.bf16.msra.mxu1 %v9439_v61  ;;  %v9524_v61 = vld [vmem:[%s12907_s1 + $0x1788] ss:$16 sps:$4 sm:$0xff]  }
 0x2c6   :  { %6731 = vmatprep.subr.bf16.mxu1 %v9448_v0  ;;  %v9532_v0 = vld [vmem:[%s12907_s1 + $0x17ac] ss:$16 sps:$4 sm:$0xff]  }
 0x2c7   :  { %6130 = vmatpush1.bf16.msra.mxu0 %v9449_v1  ;;  %v9533_v1 = vld [vmem:[%s12907_s1 + $0x17e0] ss:$16 sps:$4 sm:$0xff]  }
 0x2c8   :  { %6131 = vmatprep.subr.bf16.mxu0 %v9457_v53  ;;  %v9541_v53 = vld [vmem:[%s12907_s1 + $0x1804] ss:$16 sps:$4 sm:$0xff]  }
 0x2c9   :  { %6732 = vmatpush1.bf16.msra.mxu1 %v9446_v2 }
 0x2ca   :  { %6742 = vmatprep.subr.bf16.mxu1 %v9454_v4  ;;  %v9530_v4 = vld [vmem:[%s12907_s1 + $0x17a8] ss:$16 sps:$4 sm:$0xff]  }
 0x2cb   :  { %6132 = vmatpush1.bf16.msra.mxu0 %v9455_v6  ;;  %v1102_v6 = vcombine.high %v12060_v60, %v12060_v60 }
 0x2cc   :  { %6133 = vmatprep.subr.bf16.mxu0 %v9463_v7  ;;  %6734 = vmatmul.mubr.bf16.vlgmr.msra.gmra.mrb[4].mxu1 %v12060_v60  ;;  %v9538_v7 = vld [vmem:[%s12907_s1 + $0x17cc] ss:$16 sps:$4 sm:$0xff]   ;;  %v9536_v60 = vld [vmem:[%s12907_s1 + $0x17c8] ss:$16 sps:$4 sm:$0xff]  }
 0x2cd   :  { %6743 = vmatpush1.bf16.msra.mxu1 %v9452_v9  ;;  %6774 = vmatprep.mubr.bf16.mxu1 %v1104_v63  ;;  %v12246_v63 = vld.sshfl [vmem:[%s12906_s0 + $0x18] sm:$0x37 pattern:$0x75316420]  ;;  %v9539_v9 = vld [vmem:[%s12907_s1 + $0x1800] ss:$16 sps:$4 sm:$0xff]  }
 0x2ce   :  { %6744 = vmatprep.subr.bf16.mxu1 %v9460_v12  ;;  %v1120_v2 = vcombine.high %v12246_v63, %v12246_v63  ;;  %v9547_v12 = vld [vmem:[%s12907_s1 + $0x1824] ss:$16 sps:$4 sm:$0xff]  }
 0x2cf   :  { %6134 = vmatpush1.bf16.msra.mxu0 %v9461_v57 }
 0x2d0   :  { %6135 = vmatprep.subr.bf16.mxu0 %v9469_v13  ;;  %v12277_v57 = vrot.slane %v1120_v2, %v9841_v15  ;;  %v9544_v13 = vld [vmem:[%s12907_s1 + $0x17ec] ss:$16 sps:$4 sm:$0xff]   ;;  %v9617_v2 = vld [vmem:[%s12907_s1 + $0x19a0] ss:$16 sps:$4 sm:$0xff]  }
 0x2d1   :  { %6745 = vmatpush1.bf16.msra.mxu1 %v9458_v14  ;;  %v9545_v14 = vld [vmem:[%s12907_s1 + $0x1820] ss:$16 sps:$4 sm:$0xff]  }
 0x2d2   :  { %6746 = vmatprep.subr.bf16.mxu1 %v9466_v17  ;;  %v9553_v17 = vld [vmem:[%s12907_s1 + $0x1844] ss:$16 sps:$4 sm:$0xff]  }
 0x2d3   :  { %6136 = vmatpush1.bf16.msra.mxu0 %v9467_v56  ;;  %v9542_v56 = vld [vmem:[%s12907_s1 + $0x17e8] ss:$16 sps:$4 sm:$0xff]  }
 0x2d4   :  { %6137 = vmatprep.subr.bf16.mxu0 %v9475_v21  ;;  %v9550_v21 = vld [vmem:[%s12907_s1 + $0x180c] ss:$16 sps:$4 sm:$0xff]  }
 0x2d5   :  { %6747 = vmatpush1.bf16.msra.mxu1 %v9464_v23  ;;  %v9551_v23 = vld [vmem:[%s12907_s1 + $0x1840] ss:$16 sps:$4 sm:$0xff]  }
 0x2d6   :  { %6748 = vmatprep.subr.bf16.mxu1 %v9472_v24  ;;  %v9559_v24 = vld [vmem:[%s12907_s1 + $0x1864] ss:$16 sps:$4 sm:$0xff]  }
 0x2d7   :  { %6138 = vmatpush1.bf16.msra.mxu0 %v9473_v25  ;;  %v9548_v25 = vld [vmem:[%s12907_s1 + $0x1808] ss:$16 sps:$4 sm:$0xff]  }
 0x2d8   :  { %6139 = vmatprep.subr.bf16.mxu0 %v9481_v11  ;;  %v9556_v11 = vld [vmem:[%s12907_s1 + $0x182c] ss:$16 sps:$4 sm:$0xff]  }
 0x2d9   :  { %6749 = vmatpush1.bf16.msra.mxu1 %v9470_v26  ;;  %v9557_v26 = vld [vmem:[%s12907_s1 + $0x1860] ss:$16 sps:$4 sm:$0xff]  }
 0x2da   :  { %6750 = vmatprep.subr.bf16.mxu1 %v9478_v27  ;;  %v9565_v27 = vld [vmem:[%s12907_s1 + $0x1884] ss:$16 sps:$4 sm:$0xff]  }
 0x2db   :  { %6140 = vmatpush1.bf16.msra.mxu0 %v9479_v28  ;;  %v9554_v28 = vld [vmem:[%s12907_s1 + $0x1828] ss:$16 sps:$4 sm:$0xff]  }
 0x2dc   :  { %6141 = vmatprep.subr.bf16.mxu0 %v9487_v29  ;;  %v9562_v29 = vld [vmem:[%s12907_s1 + $0x184c] ss:$16 sps:$4 sm:$0xff]  }
 0x2dd   :  { %6751 = vmatpush1.bf16.msra.mxu1 %v9476_v30  ;;  %v9563_v30 = vld [vmem:[%s12907_s1 + $0x1880] ss:$16 sps:$4 sm:$0xff]  }
 0x2de   :  { %6752 = vmatprep.subr.bf16.mxu1 %v9484_v31  ;;  %v9571_v31 = vld [vmem:[%s12907_s1 + $0x18a4] ss:$16 sps:$4 sm:$0xff]  }
 0x2df   :  { %6142 = vmatpush1.bf16.msra.mxu0 %v9485_v33  ;;  %v9560_v33 = vld [vmem:[%s12907_s1 + $0x1848] ss:$16 sps:$4 sm:$0xff]  }
 0x2e0   :  { %6143 = vmatprep.subr.bf16.mxu0 %v9493_v34  ;;  %v9568_v34 = vld [vmem:[%s12907_s1 + $0x186c] ss:$16 sps:$4 sm:$0xff]  }
 0x2e1   :  { %6753 = vmatpush1.bf16.msra.mxu1 %v9482_v19  ;;  %v9569_v19 = vld [vmem:[%s12907_s1 + $0x18a0] ss:$16 sps:$4 sm:$0xff]  }
 0x2e2   :  { %6754 = vmatprep.subr.bf16.mxu1 %v9490_v35  ;;  %v9577_v35 = vld [vmem:[%s12907_s1 + $0x18c4] ss:$16 sps:$4 sm:$0xff]  }
 0x2e3   :  { %6144 = vmatpush1.bf16.msra.mxu0 %v9491_v38  ;;  %v9566_v38 = vld [vmem:[%s12907_s1 + $0x1868] ss:$16 sps:$4 sm:$0xff]  }
 0x2e4   :  { %6145 = vmatprep.subr.bf16.mxu0 %v9499_v39  ;;  %v9574_v39 = vld [vmem:[%s12907_s1 + $0x188c] ss:$16 sps:$4 sm:$0xff]  }
 0x2e5   :  { %6755 = vmatpush1.bf16.msra.mxu1 %v9488_v40  ;;  %v9575_v40 = vld [vmem:[%s12907_s1 + $0x18c0] ss:$16 sps:$4 sm:$0xff]  }
 0x2e6   :  { %6756 = vmatprep.subr.bf16.mxu1 %v9496_v41  ;;  %v9583_v41 = vld [vmem:[%s12907_s1 + $0x18e4] ss:$16 sps:$4 sm:$0xff]  }
 0x2e7   :  { %6146 = vmatpush1.bf16.msra.mxu0 %v9497_v32  ;;  %v9572_v32 = vld [vmem:[%s12907_s1 + $0x1888] ss:$16 sps:$4 sm:$0xff]  }
 0x2e8   :  { %6147 = vmatprep.subr.bf16.mxu0 %v9505_v42  ;;  %v9580_v42 = vld [vmem:[%s12907_s1 + $0x18ac] ss:$16 sps:$4 sm:$0xff]  }
 0x2e9   :  { %6757 = vmatpush1.bf16.msra.mxu1 %v9494_v43  ;;  %v9581_v43 = vld [vmem:[%s12907_s1 + $0x18e0] ss:$16 sps:$4 sm:$0xff]  }
 0x2ea   :  { %6758 = vmatprep.subr.bf16.mxu1 %v9502_v16  ;;  %v9589_v16 = vld [vmem:[%s12907_s1 + $0x1904] ss:$16 sps:$4 sm:$0xff]  }
 0x2eb   :  { %6148 = vmatpush1.bf16.msra.mxu0 %v9503_v44  ;;  %v9578_v44 = vld [vmem:[%s12907_s1 + $0x18a8] ss:$16 sps:$4 sm:$0xff]  }
 0x2ec   :  { %6149 = vmatprep.subr.bf16.mxu0 %v9511_v45  ;;  %v9586_v45 = vld [vmem:[%s12907_s1 + $0x18cc] ss:$16 sps:$4 sm:$0xff]  }
 0x2ed   :  { %6759 = vmatpush1.bf16.msra.mxu1 %v9500_v18  ;;  %v9587_v18 = vld [vmem:[%s12907_s1 + $0x1900] ss:$16 sps:$4 sm:$0xff]  }
 0x2ee   :  { %6760 = vmatprep.subr.bf16.mxu1 %v9508_v46  ;;  %v9595_v46 = vld [vmem:[%s12907_s1 + $0x1924] ss:$16 sps:$4 sm:$0xff]  }
 0x2ef   :  { %6150 = vmatpush1.bf16.msra.mxu0 %v9509_v47  ;;  %v9584_v47 = vld [vmem:[%s12907_s1 + $0x18c8] ss:$16 sps:$4 sm:$0xff]  }
 0x2f0   :  { %6151 = vmatprep.subr.bf16.mxu0 %v9517_v48  ;;  %v9592_v48 = vld [vmem:[%s12907_s1 + $0x18ec] ss:$16 sps:$4 sm:$0xff]  }
 0x2f1   :  { %6761 = vmatpush1.bf16.msra.mxu1 %v9506_v49  ;;  %v9593_v49 = vld [vmem:[%s12907_s1 + $0x1920] ss:$16 sps:$4 sm:$0xff]  }
 0x2f2   :  { %6762 = vmatprep.subr.bf16.mxu1 %v9514_v51  ;;  %v9601_v51 = vld [vmem:[%s12907_s1 + $0x1944] ss:$16 sps:$4 sm:$0xff]  }
 0x2f3   :  { %6152 = vmatpush1.bf16.msra.mxu0 %v9515_v36  ;;  %v9590_v36 = vld [vmem:[%s12907_s1 + $0x18e8] ss:$16 sps:$4 sm:$0xff]  }
 0x2f4   :  { %6153 = vmatprep.subr.bf16.mxu0 %v9523_v52  ;;  %v9598_v52 = vld [vmem:[%s12907_s1 + $0x190c] ss:$16 sps:$4 sm:$0xff]  }
 0x2f5   :  { %6763 = vmatpush1.bf16.msra.mxu1 %v9512_v20  ;;  %v9599_v20 = vld [vmem:[%s12907_s1 + $0x1940] ss:$16 sps:$4 sm:$0xff]  }
 0x2f6   :  { %6764 = vmatprep.subr.bf16.mxu1 %v9520_v54  ;;  %v9607_v54 = vld [vmem:[%s12907_s1 + $0x1964] ss:$16 sps:$4 sm:$0xff]  }
 0x2f7   :  { %6154 = vmatpush1.bf16.msra.mxu0 %v9521_v55  ;;  %v9596_v55 = vld [vmem:[%s12907_s1 + $0x1908] ss:$16 sps:$4 sm:$0xff]  }
 0x2f8   :  { %6155 = vmatprep.subr.bf16.mxu0 %v9529_v58  ;;  %v9604_v58 = vld [vmem:[%s12907_s1 + $0x192c] ss:$16 sps:$4 sm:$0xff]  }
 0x2f9   :  { %6765 = vmatpush1.bf16.msra.mxu1 %v9518_v59  ;;  %v9605_v59 = vld [vmem:[%s12907_s1 + $0x1960] ss:$16 sps:$4 sm:$0xff]  }
 0x2fa   :  { %6766 = vmatprep.subr.bf16.mxu1 %v9526_v37  ;;  %v9613_v37 = vld [vmem:[%s12907_s1 + $0x1984] ss:$16 sps:$4 sm:$0xff]  }
 0x2fb   :  { %6156 = vmatpush1.bf16.msra.mxu0 %v9527_v62  ;;  %v9602_v62 = vld [vmem:[%s12907_s1 + $0x1928] ss:$16 sps:$4 sm:$0xff]  }
 0x2fc   :  { %6157 = vmatprep.subr.bf16.mxu0 %v9535_v50  ;;  %v9610_v50 = vld [vmem:[%s12907_s1 + $0x194c] ss:$16 sps:$4 sm:$0xff]  }
 0x2fd   :  { %6767 = vmatpush1.bf16.msra.mxu1 %v9524_v61  ;;  %v9611_v61 = vld [vmem:[%s12907_s1 + $0x1980] ss:$16 sps:$4 sm:$0xff]  }
 0x2fe   :  { %6768 = vmatprep.subr.bf16.mxu1 %v9532_v0  ;;  %v9619_v0 = vld [vmem:[%s12907_s1 + $0x19a4] ss:$16 sps:$4 sm:$0xff]  }
 0x2ff   :  { %6158 = vmatpush1.bf16.msra.mxu0 %v9533_v1  ;;  %v9608_v1 = vld [vmem:[%s12907_s1 + $0x1948] ss:$16 sps:$4 sm:$0xff]  }
 0x300   :  { %6168 = vmatprep.subr.bf16.mxu0 %v9541_v53  ;;  %v9616_v53 = vld [vmem:[%s12907_s1 + $0x196c] ss:$16 sps:$4 sm:$0xff]  }
 0x301   :  { %6769 = vmatpush1.bf16.msra.mxu1 %v9530_v4  ;;  %v9625_v4 = vld [vmem:[%s12907_s1 + $0x19c4] ss:$16 sps:$4 sm:$0xff]  }
 0x302   :  { %6160 = vmatmul.mubr.bf16.vlgmr.msra.gmra.mrb[0].mxu0 %v1102_v6  ;;  %6770 = vmatprep.subr.bf16.mxu1 %v9538_v7  ;;  %v9622_v7 = vld [vmem:[%s12907_s1 + $0x198c] ss:$16 sps:$4 sm:$0xff]  }
 0x303   :  { %6169 = vmatpush1.bf16.msra.mxu0 %v9539_v9  ;;  %6200 = vmatprep.mubr.bf16.mxu0 %v12277_v57  ;;  %v9623_v9 = vld [vmem:[%s12907_s1 + $0x19c0] ss:$16 sps:$4 sm:$0xff]  }
 0x304   :  { %6170 = vmatprep.subr.bf16.mxu0 %v9547_v12  ;;  %v9631_v12 = vld [vmem:[%s12907_s1 + $0x19e4] ss:$16 sps:$4 sm:$0xff]  }
 0x305   :  { %6771 = vmatpush1.bf16.msra.mxu1 %v9536_v60  ;;  %v9620_v60 = vld [vmem:[%s12907_s1 + $0x1988] ss:$16 sps:$4 sm:$0xff]  }
 0x306   :  { %6772 = vmatprep.subr.bf16.mxu1 %v9544_v13  ;;  %v9628_v13 = vld [vmem:[%s12907_s1 + $0x19ac] ss:$16 sps:$4 sm:$0xff]  }
 0x307   :  { %6171 = vmatpush1.bf16.msra.mxu0 %v9545_v14  ;;  %v9629_v14 = vld [vmem:[%s12907_s1 + $0x19e0] ss:$16 sps:$4 sm:$0xff]  }
 0x308   :  { %6172 = vmatprep.subr.bf16.mxu0 %v9553_v17  ;;  %v9637_v17 = vld [vmem:[%s12907_s1 + $0x1a04] ss:$16 sps:$4 sm:$0xff]  }
 0x309   :  { %6773 = vmatpush1.bf16.msra.mxu1 %v9542_v56  ;;  %v9626_v56 = vld [vmem:[%s12907_s1 + $0x19a8] ss:$16 sps:$4 sm:$0xff]  }
 0x30a   :  { %6783 = vmatprep.subr.bf16.mxu1 %v9550_v21  ;;  %v12466_v21 = vrot.slane %v12246_v63, %v9841_v15  ;;  %v9632_v15 = vld [vmem:[%s12907_s1 + $0x19c8] ss:$16 sps:$4 sm:$0xff]   ;;  %v9640_v63 = vld [vmem:[%s12907_s1 + $0x19ec] ss:$16 sps:$4 sm:$0xff]  }
 0x30b   :  { %6173 = vmatpush1.bf16.msra.mxu0 %v9551_v23  ;;  %v9634_v23 = vld [vmem:[%s12907_s1 + $0x19cc] ss:$16 sps:$4 sm:$0xff]  }
 0x30c   :  { %6174 = vmatprep.subr.bf16.mxu0 %v9559_v24  ;;  %6775 = vmatmul.mubr.bf16.vlgmr.msra.gmra.mrb[4].mxu1 %v1102_v6  ;;  %v9614_v6 = vld [vmem:[%s12907_s1 + $0x1968] ss:$16 sps:$4 sm:$0xff]   ;;  %v9635_v24 = vld [vmem:[%s12907_s1 + $0x1a00] ss:$16 sps:$4 sm:$0xff]  }
 0x30d   :  { %6784 = vmatpush1.bf16.msra.mxu1 %v9548_v25  ;;  %6815 = vmatprep.mubr.bf16.mxu1 %v12277_v57  ;;  %v9643_v25 = vld [vmem:[%s12907_s1 + $0x1a24] ss:$16 sps:$4 sm:$0xff]  }
 0x30e   :  { %6785 = vmatprep.subr.bf16.mxu1 %v9556_v11  ;;  %v1143_v11 = vcombine.high %v12277_v57, %v12277_v57  ;;  %v9649_v57 = vld [vmem:[%s12907_s1 + $0x1a44] ss:$16 sps:$4 sm:$0xff]  }
 0x30f   :  { %6175 = vmatpush1.bf16.msra.mxu0 %v9557_v26  ;;  %v9641_v26 = vld [vmem:[%s12907_s1 + $0x1a20] ss:$16 sps:$4 sm:$0xff]  }
 0x310   :  { %6176 = vmatprep.subr.bf16.mxu0 %v9565_v27  ;;  %v9638_v27 = vld [vmem:[%s12907_s1 + $0x19e8] ss:$16 sps:$4 sm:$0xff]  }
 0x311   :  { %6786 = vmatpush1.bf16.msra.mxu1 %v9554_v28  ;;  %v9646_v28 = vld [vmem:[%s12907_s1 + $0x1a0c] ss:$16 sps:$4 sm:$0xff]  }
 0x312   :  { %6787 = vmatprep.subr.bf16.mxu1 %v9562_v29  ;;  %v9647_v29 = vld [vmem:[%s12907_s1 + $0x1a40] ss:$16 sps:$4 sm:$0xff]  }
 0x313   :  { %6177 = vmatpush1.bf16.msra.mxu0 %v9563_v30  ;;  %v9655_v30 = vld [vmem:[%s12907_s1 + $0x1a64] ss:$16 sps:$4 sm:$0xff]  }
 0x314   :  { %6178 = vmatprep.subr.bf16.mxu0 %v9571_v31  ;;  %v9644_v31 = vld [vmem:[%s12907_s1 + $0x1a08] ss:$16 sps:$4 sm:$0xff]  }
 0x315   :  { %6788 = vmatpush1.bf16.msra.mxu1 %v9560_v33  ;;  %v9652_v33 = vld [vmem:[%s12907_s1 + $0x1a2c] ss:$16 sps:$4 sm:$0xff]  }
 0x316   :  { %6789 = vmatprep.subr.bf16.mxu1 %v9568_v34  ;;  %v9653_v34 = vld [vmem:[%s12907_s1 + $0x1a60] ss:$16 sps:$4 sm:$0xff]  }
 0x317   :  { %6179 = vmatpush1.bf16.msra.mxu0 %v9569_v19  ;;  %v9661_v19 = vld [vmem:[%s12907_s1 + $0x1a84] ss:$16 sps:$4 sm:$0xff]  }
 0x318   :  { %6180 = vmatprep.subr.bf16.mxu0 %v9577_v35  ;;  %v9650_v35 = vld [vmem:[%s12907_s1 + $0x1a28] ss:$16 sps:$4 sm:$0xff]  }
 0x319   :  { %6790 = vmatpush1.bf16.msra.mxu1 %v9566_v38  ;;  %v9658_v38 = vld [vmem:[%s12907_s1 + $0x1a4c] ss:$16 sps:$4 sm:$0xff]  }
 0x31a   :  { %6791 = vmatprep.subr.bf16.mxu1 %v9574_v39  ;;  %v9659_v39 = vld [vmem:[%s12907_s1 + $0x1a80] ss:$16 sps:$4 sm:$0xff]  }
 0x31b   :  { %6181 = vmatpush1.bf16.msra.mxu0 %v9575_v40  ;;  %v9667_v40 = vld [vmem:[%s12907_s1 + $0x1aa4] ss:$16 sps:$4 sm:$0xff]  }
 0x31c   :  { %6182 = vmatprep.subr.bf16.mxu0 %v9583_v41  ;;  %v9656_v41 = vld [vmem:[%s12907_s1 + $0x1a48] ss:$16 sps:$4 sm:$0xff]  }
 0x31d   :  { %6792 = vmatpush1.bf16.msra.mxu1 %v9572_v32  ;;  %v9664_v32 = vld [vmem:[%s12907_s1 + $0x1a6c] ss:$16 sps:$4 sm:$0xff]  }
 0x31e   :  { %6793 = vmatprep.subr.bf16.mxu1 %v9580_v42  ;;  %v9665_v42 = vld [vmem:[%s12907_s1 + $0x1aa0] ss:$16 sps:$4 sm:$0xff]  }
 0x31f   :  { %6183 = vmatpush1.bf16.msra.mxu0 %v9581_v43  ;;  %v9673_v43 = vld [vmem:[%s12907_s1 + $0x1ac4] ss:$16 sps:$4 sm:$0xff]  }
 0x320   :  { %6184 = vmatprep.subr.bf16.mxu0 %v9589_v16  ;;  %v9662_v16 = vld [vmem:[%s12907_s1 + $0x1a68] ss:$16 sps:$4 sm:$0xff]  }
 0x321   :  { %6794 = vmatpush1.bf16.msra.mxu1 %v9578_v44  ;;  %v9670_v44 = vld [vmem:[%s12907_s1 + $0x1a8c] ss:$16 sps:$4 sm:$0xff]  }
 0x322   :  { %6795 = vmatprep.subr.bf16.mxu1 %v9586_v45  ;;  %v9671_v45 = vld [vmem:[%s12907_s1 + $0x1ac0] ss:$16 sps:$4 sm:$0xff]  }
 0x323   :  { %6185 = vmatpush1.bf16.msra.mxu0 %v9587_v18  ;;  %v9679_v18 = vld [vmem:[%s12907_s1 + $0x1ae4] ss:$16 sps:$4 sm:$0xff]  }
 0x324   :  { %6186 = vmatprep.subr.bf16.mxu0 %v9595_v46  ;;  %v9668_v46 = vld [vmem:[%s12907_s1 + $0x1a88] ss:$16 sps:$4 sm:$0xff]  }
 0x325   :  { %6796 = vmatpush1.bf16.msra.mxu1 %v9584_v47  ;;  %v9676_v47 = vld [vmem:[%s12907_s1 + $0x1aac] ss:$16 sps:$4 sm:$0xff]  }
 0x326   :  { %6797 = vmatprep.subr.bf16.mxu1 %v9592_v48  ;;  %v9677_v48 = vld [vmem:[%s12907_s1 + $0x1ae0] ss:$16 sps:$4 sm:$0xff]  }
 0x327   :  { %6187 = vmatpush1.bf16.msra.mxu0 %v9593_v49  ;;  %v9685_v49 = vld [vmem:[%s12907_s1 + $0x1b04] ss:$16 sps:$4 sm:$0xff]  }
 0x328   :  { %6188 = vmatprep.subr.bf16.mxu0 %v9601_v51  ;;  %v9674_v51 = vld [vmem:[%s12907_s1 + $0x1aa8] ss:$16 sps:$4 sm:$0xff]  }
 0x329   :  { %6798 = vmatpush1.bf16.msra.mxu1 %v9590_v36  ;;  %v9682_v36 = vld [vmem:[%s12907_s1 + $0x1acc] ss:$16 sps:$4 sm:$0xff]  }
 0x32a   :  { %6799 = vmatprep.subr.bf16.mxu1 %v9598_v52  ;;  %v9683_v52 = vld [vmem:[%s12907_s1 + $0x1b00] ss:$16 sps:$4 sm:$0xff]  }
 0x32b   :  { %6189 = vmatpush1.bf16.msra.mxu0 %v9599_v20  ;;  %v9691_v20 = vld [vmem:[%s12907_s1 + $0x1b24] ss:$16 sps:$4 sm:$0xff]  }
 0x32c   :  { %6190 = vmatprep.subr.bf16.mxu0 %v9607_v54  ;;  %v9680_v54 = vld [vmem:[%s12907_s1 + $0x1ac8] ss:$16 sps:$4 sm:$0xff]  }
 0x32d   :  { %6800 = vmatpush1.bf16.msra.mxu1 %v9596_v55  ;;  %v9688_v55 = vld [vmem:[%s12907_s1 + $0x1aec] ss:$16 sps:$4 sm:$0xff]  }
 0x32e   :  { %6801 = vmatprep.subr.bf16.mxu1 %v9604_v58  ;;  %v9689_v58 = vld [vmem:[%s12907_s1 + $0x1b20] ss:$16 sps:$4 sm:$0xff]  }
 0x32f   :  { %6191 = vmatpush1.bf16.msra.mxu0 %v9605_v59  ;;  %v9697_v59 = vld [vmem:[%s12907_s1 + $0x1b44] ss:$16 sps:$4 sm:$0xff]  }
 0x330   :  { %6192 = vmatprep.subr.bf16.mxu0 %v9613_v37  ;;  %v9686_v37 = vld [vmem:[%s12907_s1 + $0x1ae8] ss:$16 sps:$4 sm:$0xff]  }
 0x331   :  { %6802 = vmatpush1.bf16.msra.mxu1 %v9602_v62  ;;  %v9694_v62 = vld [vmem:[%s12907_s1 + $0x1b0c] ss:$16 sps:$4 sm:$0xff]  }
 0x332   :  { %6803 = vmatprep.subr.bf16.mxu1 %v9610_v50  ;;  %v9695_v50 = vld [vmem:[%s12907_s1 + $0x1b40] ss:$16 sps:$4 sm:$0xff]  }
 0x333   :  { %6193 = vmatpush1.bf16.msra.mxu0 %v9611_v61  ;;  %v9703_v61 = vld [vmem:[%s12907_s1 + $0x1b64] ss:$16 sps:$4 sm:$0xff]  }
 0x334   :  { %6194 = vmatprep.subr.bf16.mxu0 %v9619_v0  ;;  %v9692_v0 = vld [vmem:[%s12907_s1 + $0x1b08] ss:$16 sps:$4 sm:$0xff]  }
 0x335   :  { %6804 = vmatpush1.bf16.msra.mxu1 %v9608_v1  ;;  %v9700_v1 = vld [vmem:[%s12907_s1 + $0x1b2c] ss:$16 sps:$4 sm:$0xff]  }
 0x336   :  { %6805 = vmatprep.subr.bf16.mxu1 %v9616_v53  ;;  %v9701_v53 = vld [vmem:[%s12907_s1 + $0x1b60] ss:$16 sps:$4 sm:$0xff]  }
 0x337   :  { %6195 = vmatpush1.bf16.msra.mxu0 %v9617_v2  ;;  %v9709_v2 = vld [vmem:[%s12907_s1 + $0x1b84] ss:$16 sps:$4 sm:$0xff]  }
 0x338   :  { %6196 = vmatprep.subr.bf16.mxu0 %v9625_v4  ;;  %v9698_v4 = vld [vmem:[%s12907_s1 + $0x1b28] ss:$16 sps:$4 sm:$0xff]  }
 0x339   :  { %6806 = vmatpush1.bf16.msra.mxu1 %v9614_v6  ;;  %v9706_v6 = vld [vmem:[%s12907_s1 + $0x1b4c] ss:$16 sps:$4 sm:$0xff]  }
 0x33a   :  { %6807 = vmatprep.subr.bf16.mxu1 %v9622_v7  ;;  %v9707_v7 = vld [vmem:[%s12907_s1 + $0x1b80] ss:$16 sps:$4 sm:$0xff]  }
 0x33b   :  { %6197 = vmatpush1.bf16.msra.mxu0 %v9623_v9  ;;  %v9715_v9 = vld [vmem:[%s12907_s1 + $0x1ba4] ss:$16 sps:$4 sm:$0xff]  }
 0x33c   :  { %6198 = vmatprep.subr.bf16.mxu0 %v9631_v12  ;;  %v9704_v12 = vld [vmem:[%s12907_s1 + $0x1b48] ss:$16 sps:$4 sm:$0xff]  }
 0x33d   :  { %6808 = vmatpush1.bf16.msra.mxu1 %v9620_v60  ;;  %v9712_v60 = vld [vmem:[%s12907_s1 + $0x1b6c] ss:$16 sps:$4 sm:$0xff]  }
 0x33e   :  { %6809 = vmatprep.subr.bf16.mxu1 %v9628_v13  ;;  %v9713_v13 = vld [vmem:[%s12907_s1 + $0x1ba0] ss:$16 sps:$4 sm:$0xff]  }
 0x33f   :  { %6199 = vmatpush1.bf16.msra.mxu0 %v9629_v14  ;;  %v9721_v14 = vld [vmem:[%s12907_s1 + $0x1bc4] ss:$16 sps:$4 sm:$0xff]  }
 0x340   :  { %6209 = vmatprep.subr.bf16.mxu0 %v9637_v17  ;;  %v9710_v17 = vld [vmem:[%s12907_s1 + $0x1b68] ss:$16 sps:$4 sm:$0xff]  }
 0x341   :  { %6810 = vmatpush1.bf16.msra.mxu1 %v9626_v56  ;;  %v9718_v56 = vld [vmem:[%s12907_s1 + $0x1b8c] ss:$16 sps:$4 sm:$0xff]  }
 0x342   :  { %6201 = vmatmul.mubr.bf16.vlgmr.msra.gmra.mrb[0].mxu0 %v12466_v21  ;;  %6811 = vmatprep.subr.bf16.mxu1 %v9634_v23  ;;  %v9719_v23 = vld [vmem:[%s12907_s1 + $0x1bc0] ss:$16 sps:$4 sm:$0xff]  }
 0x343   :  { %6210 = vmatpush1.bf16.msra.mxu0 %v9635_v24  ;;  %6241 = vmatprep.mubr.bf16.mxu0 %v1143_v11  ;;  %v9727_v24 = vld [vmem:[%s12907_s1 + $0x1be4] ss:$16 sps:$4 sm:$0xff]  }
 0x344   :  { %6211 = vmatprep.subr.bf16.mxu0 %v9643_v25  ;;  %v9716_v25 = vld [vmem:[%s12907_s1 + $0x1b88] ss:$16 sps:$4 sm:$0xff]  }
 0x345   :  { %6812 = vmatpush1.bf16.msra.mxu1 %v9632_v15  ;;  %v9725_v15 = vld [vmem:[%s12907_s1 + $0x1be0] ss:$16 sps:$4 sm:$0xff]  }
 0x346   :  { %6813 = vmatprep.subr.bf16.mxu1 %v9640_v63  ;;  %v6958_v63 = vld [vmem:[%s12910_s4 + $0x180] sm:$0xff] }
 0x347   :  { %6212 = vmatpush1.bf16.msra.mxu0 %v9641_v26  ;;  %v6959_v26 = vld [vmem:[%s12910_s4 + $0x188] sm:$0xff] }
 0x348   :  { %6213 = vmatprep.subr.bf16.mxu0 %v9649_v57  ;;  %v9722_v57 = vld [vmem:[%s12907_s1 + $0x1ba8] ss:$16 sps:$4 sm:$0xff]  }
 0x349   :  { %6814 = vmatpush1.bf16.msra.mxu1 %v9638_v27  ;;  %v1142_v27 = vcombine.high %v12466_v21, %v12466_v21 }
 0x34a   :  { %6824 = vmatprep.subr.bf16.mxu1 %v9646_v28  ;;  %v9730_v28 = vld [vmem:[%s12907_s1 + $0x1bcc] ss:$16 sps:$4 sm:$0xff]  }
 0x34b   :  { %6214 = vmatpush1.bf16.msra.mxu0 %v9647_v29  ;;  %v9767_v29 = vmov 0.0  }
 0x34c   :  { %6215 = vmatprep.subr.bf16.mxu0 %v9655_v30  ;;  %6816 = vmatmul.mubr.bf16.vlgmr.msra.gmra.mrb[4].mxu1 %v12466_v21  ;;  %v6975_v30 = vld [vmem:[%s12911_s5] sm:$0x3]  ;;  %v9733_v21 = vld [vmem:[%s12907_s1 + $0x1bec] ss:$16 sps:$4 sm:$0xff]  }
 0x34d   :  { %6825 = vmatpush1.bf16.msra.mxu1 %v9644_v31  ;;  %6856 = vmatprep.mubr.bf16.mxu1 %v1143_v11  ;;  %v9724_v11 = vld [vmem:[%s12907_s1 + $0x1bac] ss:$16 sps:$4 sm:$0xff]   ;;  %v8232_v31 = vpack.c.bf16 %v6959_v26, %v6958_v63  ;;  %v6922_v26 = vld [vmem:[%s12910_s4 + $0x60] sm:$0xff] }
 0x34e   :  { %6826 = vmatprep.subr.bf16.mxu1 %v9652_v33  ;;  %v9728_v33 = vld [vmem:[%s12907_s1 + $0x1bc8] ss:$16 sps:$4 sm:$0xff]  }
 0x34f   :  { %6216 = vmatpush1.bf16.msra.mxu0 %v9653_v34  ;;  %v6942_v34 = vld [vmem:[%s12910_s4 + $0x100] sm:$0xff] }
 0x350   :  { %6217 = vmatprep.subr.bf16.mxu0 %v9661_v19  ;;  %v6943_v19 = vld [vmem:[%s12910_s4 + $0x108] sm:$0xff] }
 0x351   :  { %6827 = vmatpush1.bf16.msra.mxu1 %v9650_v35  ;;  %v6960_v35 = vld [vmem:[%s12910_s4 + $0x190] sm:$0xff] }
 0x352   :  { %6828 = vmatprep.subr.bf16.mxu1 %v9658_v38  ;;  %v6961_v38 = vld [vmem:[%s12910_s4 + $0x198] sm:$0xff] }
 0x353   :  { %6218 = vmatpush1.bf16.msra.mxu0 %v9659_v39  ;;  %v9731_v39 = vld [vmem:[%s12907_s1 + $0x1be8] ss:$16 sps:$4 sm:$0xff]  }
 0x354   :  { %6219 = vmatprep.subr.bf16.mxu0 %v9667_v40  ;;  %v9736_v40 = vld [vmem:[%s12907_s1 + $0x1c0c] ss:$16 sps:$4 sm:$0xff]  }
 0x355   :  { %6829 = vmatpush1.bf16.msra.mxu1 %v9656_v41  ;;  %v6926_v41 = vld [vmem:[%s12910_s4 + $0x80] sm:$0xff] }
 0x356   :  { %6830 = vmatprep.subr.bf16.mxu1 %v9664_v32  ;;  %v6974_v32 = vld [vmem:[%s12909_s3] sm:$0x3] }
 0x357   :  { %6220 = vmatpush1.bf16.msra.mxu0 %v9665_v42  ;;  %v8234_v42 = vpack.c.bf16 %v6943_v19, %v6942_v34  ;;  %v6940_v34 = vld [vmem:[%s12910_s4 + $0xf0] sm:$0xff]  ;;  %v6941_v19 = vld [vmem:[%s12910_s4 + $0xf8] sm:$0xff] }
 0x358   :  { %6221 = vmatprep.subr.bf16.mxu0 %v9673_v43  ;;  %v6927_v43 = vld [vmem:[%s12910_s4 + $0x88] sm:$0xff] }
 0x359   :  { %6831 = vmatpush1.bf16.msra.mxu1 %v9662_v16  ;;  %v8236_v16 = vpack.c.bf16 %v6961_v38, %v6960_v35  ;;  %v8228_v35 = vpack.c.bf16 %v6941_v19, %v6940_v34  ;;  %v6924_v38 = vld [vmem:[%s12910_s4 + $0x70] sm:$0xff] }
 0x35a   :  { %6832 = vmatprep.subr.bf16.mxu1 %v9670_v44  ;;  %v6944_v44 = vld [vmem:[%s12910_s4 + $0x110] sm:$0xff] }
 0x35b   :  { %6222 = vmatpush1.bf16.msra.mxu0 %v9671_v45  ;;  %v6945_v45 = vld [vmem:[%s12910_s4 + $0x118] sm:$0xff] }
 0x35c   :  { %6223 = vmatprep.subr.bf16.mxu0 %v9679_v18  ;;  %v9734_v18 = vld [vmem:[%s12907_s1 + $0x1c08] ss:$16 sps:$4 sm:$0xff]   ;;  %s9741_s1 = scalar_lea.vmem %s7211_s8, 32 }
 0x35d   :  { %6833 = vmatpush1.bf16.msra.mxu1 %v9668_v46  ;;  %v8200_v46 = vpack.c.bf16 %v6927_v43, %v6926_v41  ;;  %v6949_v43 = vld [vmem:[%s12910_s4 + $0x138] sm:$0xff]  ;;  %p9742_p0 = scmp.ne.s32.totalorder %s7211_s8, %s9741_s1  ;;  %p9747_p2 = scmp.lt.s32.totalorder %s9741_s1, %s9741_s1 }
 0x35e   :  { %6834 = vmatprep.subr.bf16.mxu1 %v9676_v47  ;;  %v8238_v47 = vpack.c.bf16 %v6945_v45, %v6944_v44  ;;  %v6966_v45 = vld [vmem:[%s12910_s4 + $0x1c0] sm:$0xff] }
 0x35f   :  { %6224 = vmatpush1.bf16.msra.mxu0 %v9677_v48  ;;  %v6910_v48 = vld [vmem:[%s12910_s4] sm:$0xff]  ;;  %p9748_p3 = por %p9747_p2, %p9746_p1 }
 0x360   :  { %6225 = vmatprep.subr.bf16.mxu0 %v9685_v49  ;;  %v6911_v49 = vld [vmem:[%s12910_s4 + $0x8] sm:$0xff] }
 0x361   :  { %6835 = vmatpush1.bf16.msra.mxu1 %v9674_v51  ;;  %v6928_v51 = vld [vmem:[%s12910_s4 + $0x90] sm:$0xff]  ;;  %p9749_p4 = pnand %p9748_p3, %p9742_p0 }
 0x362   :  { %6836 = vmatprep.subr.bf16.mxu1 %v9682_v36  ;;  %v6929_v36 = vld [vmem:[%s12910_s4 + $0x98] sm:$0xff] }
 0x363   :  { %6226 = vmatpush1.bf16.msra.mxu0 %v9683_v52  ;;  %v8202_v52 = vpack.c.bf16 %v6911_v49, %v6910_v48  ;;  %v6951_v48 = vld [vmem:[%s12910_s4 + $0x148] sm:$0xff]  ;;  %v6968_v49 = vld [vmem:[%s12910_s4 + $0x1d0] sm:$0xff] }
 0x364   :  { %6227 = vmatprep.subr.bf16.mxu0 %v9691_v20  ;;  %v6912_v20 = vld [vmem:[%s12910_s4 + $0x10] sm:$0xff] }
 0x365   :  { %6837 = vmatpush1.bf16.msra.mxu1 %v9680_v54  ;;  %v6913_v54 = vld [vmem:[%s12910_s4 + $0x18] sm:$0xff] }
 0x366   :  { %6838 = vmatprep.subr.bf16.mxu1 %v9688_v55  ;;  %v6930_v55 = vld [vmem:[%s12910_s4 + $0xa0] sm:$0xff] }
 0x367   :  { %6228 = vmatpush1.bf16.msra.mxu0 %v9689_v58  ;;  %v6931_v58 = vld [vmem:[%s12910_s4 + $0xa8] sm:$0xff] }
 0x368   :  { %6229 = vmatprep.subr.bf16.mxu0 %v9697_v59  ;;  %v8206_v59 = vpack.c.bf16 %v6913_v54, %v6912_v20  ;;  %v6953_v20 = vld [vmem:[%s12910_s4 + $0x158] sm:$0xff]  ;;  %v6970_v54 = vld [vmem:[%s12910_s4 + $0x1e0] sm:$0xff] }
 0x369   :  { %6839 = vmatpush1.bf16.msra.mxu1 %v9686_v37  ;;  %v8208_v37 = vpack.c.bf16 %v6931_v58, %v6930_v55  ;;  %v6971_v55 = vld [vmem:[%s12910_s4 + $0x1e8] sm:$0xff] }
 0x36a   :  { %6840 = vmatprep.subr.bf16.mxu1 %v9694_v62  ;;  %v6914_v62 = vld [vmem:[%s12910_s4 + $0x20] sm:$0xff] }
 0x36b   :  { %6230 = vmatpush1.bf16.msra.mxu0 %v9695_v50  ;;  %v6915_v50 = vld [vmem:[%s12910_s4 + $0x28] sm:$0xff] }
 0x36c   :  { %6231 = vmatprep.subr.bf16.mxu0 %v9703_v61  ;;  %v6932_v61 = vld [vmem:[%s12910_s4 + $0xb0] sm:$0xff] }
 0x36d   :  { %6841 = vmatpush1.bf16.msra.mxu1 %v9692_v0  ;;  %v8210_v0 = vpack.c.bf16 %v6915_v50, %v6914_v62  ;;  %v6955_v62 = vld [vmem:[%s12910_s4 + $0x168] sm:$0xff] }
 0x36e   :  { %6842 = vmatprep.subr.bf16.mxu1 %v9700_v1 }
 0x36f   :  { %6232 = vmatpush1.bf16.msra.mxu0 %v9701_v53  ;;  %v6916_v53 = vld [vmem:[%s12910_s4 + $0x30] sm:$0xff] }
 0x370   :  { %6233 = vmatprep.subr.bf16.mxu0 %v9709_v2  ;;  %v6917_v2 = vld [vmem:[%s12910_s4 + $0x38] sm:$0xff] }
 0x371   :  { %6843 = vmatpush1.bf16.msra.mxu1 %v9698_v4  ;;  %v6934_v4 = vld [vmem:[%s12910_s4 + $0xc0] sm:$0xff] }
 0x372   :  { %6844 = vmatprep.subr.bf16.mxu1 %v9706_v6  ;;  %v6935_v6 = vld [vmem:[%s12910_s4 + $0xc8] sm:$0xff] }
 0x373   :  { %6234 = vmatpush1.bf16.msra.mxu0 %v9707_v7  ;;  %v8214_v7 = vpack.c.bf16 %v6917_v2, %v6916_v53  ;;  %v6957_v53 = vld [vmem:[%s12910_s4 + $0x178] sm:$0xff] }
 0x374   :  { %6235 = vmatprep.subr.bf16.mxu0 %v9715_v9  ;;  %v8216_v9 = vpack.c.bf16 %v6935_v6, %v6934_v4  ;;  %v936_v4 = vsub.s32 0, %v9820_v5  ;;  %v932_v6 = vld [vmem:[%s12908_s2] sm:$0xf] }
 0x375   :  { %6845 = vmatpush1.bf16.msra.mxu1 %v9704_v12  ;;  %v6918_v12 = vld [vmem:[%s12910_s4 + $0x40] sm:$0xff] }
 0x376   :  { %6846 = vmatprep.subr.bf16.mxu1 %v9712_v60  ;;  %v6919_v60 = vld [vmem:[%s12910_s4 + $0x48] sm:$0xff] }
 0x377   :  { %6236 = vmatpush1.bf16.msra.mxu0 %v9713_v13  ;;  %v6936_v13 = vld [vmem:[%s12910_s4 + $0xd0] sm:$0xff] }
 0x378   :  { %6237 = vmatprep.subr.bf16.mxu0 %v9721_v14  ;;  %v6937_v14 = vld [vmem:[%s12910_s4 + $0xd8] sm:$0xff] }
 0x379   :  { %6847 = vmatpush1.bf16.msra.mxu1 %v9710_v17  ;;  %v8218_v17 = vpack.c.bf16 %v6919_v60, %v6918_v12 }
 0x37a   :  { %6848 = vmatprep.subr.bf16.mxu1 %v9718_v56  ;;  %v8220_v56 = vpack.c.bf16 %v6937_v14, %v6936_v13 }
 0x37b   :  { %6238 = vmatpush1.bf16.msra.mxu0 %v9719_v23  ;;  %v6920_v23 = vld [vmem:[%s12910_s4 + $0x50] sm:$0xff] }
 0x37c   :  { %6239 = vmatprep.subr.bf16.mxu0 %v9727_v24  ;;  %v6921_v24 = vld [vmem:[%s12910_s4 + $0x58] sm:$0xff] }
 0x37d   :  { %6849 = vmatpush1.bf16.msra.mxu1 %v9716_v25  ;;  %v8222_v25 = vpack.c.bf16 %v6921_v24, %v6920_v23 }
 0x37e   :  { %6850 = vmatprep.subr.bf16.mxu1 %v9724_v11  ;;  %v6938_v11 = vld [vmem:[%s12910_s4 + $0xe0] sm:$0xff] }
 0x37f   :  { %6240 = vmatpush1.bf16.msra.mxu0 %v9725_v15  ;;  %v6939_v15 = vld [vmem:[%s12910_s4 + $0xe8] sm:$0xff] }
 0x380   :  { %8195 = vmatprep.subr.mxu0 %v9767_v29  ;;  %v8224_v63 = vpack.c.bf16 %v6939_v15, %v6938_v11 }
 0x381   :  { %6851 = vmatpush1.bf16.msra.mxu1 %v9722_v57  ;;  %v6923_v57 = vld [vmem:[%s12910_s4 + $0x68] sm:$0xff] }
 0x382   :  { %6242 = vmatmul.mubr.bf16.vlgmr.msra.gmra.mrb[0].mxu0 %v1142_v27  ;;  %6852 = vmatprep.subr.bf16.mxu1 %v9730_v28  ;;  %v6962_v28 = vld [vmem:[%s12910_s4 + $0x1a0] sm:$0xff] }
 0x383   :  { %8196 = vmatpush3.msk.msra.mxu0 %vm6980_vm1, %v6975_v30  ;;  %8197 = vmatprep.mubr.msk.f32.mxu0 %vm9768_vm2, %v9767_v29  ;;  %v6963_v29 = vld [vmem:[%s12910_s4 + $0x1a8] sm:$0xff] }
 0x384   :  { %8233 = vmatprep.subr.bf16.mxu0 %v8232_v31  ;;  %v8240_v30 = vpack.c.bf16 %v6963_v29, %v6962_v28  ;;  %v6946_v31 = vld [vmem:[%s12910_s4 + $0x120] sm:$0xff] }
 0x385   :  { %6853 = vmatpush1.bf16.msra.mxu1 %v9728_v33  ;;  %v6947_v33 = vld [vmem:[%s12910_s4 + $0x128] sm:$0xff] }
 0x386   :  { %6854 = vmatprep.subr.bf16.mxu1 %v9733_v21  ;;  %v8242_v21 = vpack.c.bf16 %v6947_v33, %v6946_v31 }
 0x389   :  { %6855 = vmatpush1.bf16.msra.mxu1 %v9731_v39  ;;  %v6925_v39 = vld [vmem:[%s12910_s4 + $0x78] sm:$0xff] }
 0x38a   :  { %8198 = vmatmul.mubr.msk.f32.vlgmr.msra.gmra.mrb[4].mxu0 %vm6976_vm3, %v6974_v32  ;;  %6865 = vmatprep.subr.bf16.mxu1 %v9736_v40  ;;  %v6964_v40 = vld [vmem:[%s12910_s4 + $0x1b0] sm:$0xff]  ;;  %v8230_v41 = vpack.c.bf16 %v6925_v39, %v6924_v38  ;;  %v6965_v32 = vld [vmem:[%s12910_s4 + $0x1b8] sm:$0xff] }
 0x38b   :  { %8235 = vmatpush3.bf16.msra.mxu0 %v8234_v42  ;;  %v6948_v42 = vld [vmem:[%s12910_s4 + $0x130] sm:$0xff] }
 0x38c   :  { %8237 = vmatprep.subr.bf16.mxu0 %v8236_v16  ;;  %6857 = vmatmul.mubr.bf16.vlgmr.msra.gmra.mrb[4].mxu1 %v1142_v27  ;;  %v8226_v27 = vpack.c.bf16 %v6923_v57, %v6922_v26  ;;  %v8244_v16 = vpack.c.bf16 %v6965_v32, %v6964_v40  ;;  %v8246_v44 = vpack.c.bf16 %v6949_v43, %v6948_v42  ;;  %v944_v57 = vsub.s32 2, %v9820_v5 }
 0x38d   :  { %6866 = vmatpush1.bf16.msra.mxu1 %v9734_v18  ;;  %6897 = vmatprep.mubr.bf16.mxu1 %v9765_v3  ;;  %v8204_v3 = vpack.c.bf16 %v6929_v36, %v6928_v51  ;;  %v6967_v18 = vld [vmem:[%s12910_s4 + $0x1c8] sm:$0xff]  ;;  %v6969_v51 = vld [vmem:[%s12910_s4 + $0x1d8] sm:$0xff] }
 0x38e   :  { %8201 = vmatprep.subr.bf16.mxu1 %v8200_v46  ;;  %v6950_v46 = vld [vmem:[%s12910_s4 + $0x140] sm:$0xff]  ;;  %v945_v28 = vrot.slane %v932_v6, %v944_v57 }
 0x38f   :  { %8239 = vmatpush3.bf16.msra.mxu0 %v8238_v47  ;;  %v8248_v47 = vpack.c.bf16 %v6967_v18, %v6966_v45  ;;  %v8250_v36 = vpack.c.bf16 %v6951_v48, %v6950_v46 }
 0x390   :  { %8241 = vmatprep.subr.bf16.mxu0 %v8240_v30 }
 0x393   :  { %8243 = vmatpush3.bf16.msra.mxu0 %v8242_v21 }
 0x394   :  { %8245 = vmatprep.subr.bf16.mxu0 %v8244_v16 }
 0x397   :  { %8247 = vmatpush3.bf16.msra.mxu0 %v8246_v44 }
 0x398   :  { %8119 = vmatmul.mubr.msk.bf16.vlgmr.msra.gmra.mrb[4].mxu1 %vm5672_vm0, %v9857_v22  ;;  %v6933_v22 = vld [vmem:[%s12910_s4 + $0xb8] sm:$0xff]  ;;  %8249 = vmatprep.subr.bf16.mxu0 %v8248_v47 }
 0x399   :  { %8203 = vmatpush3.bf16.msra.mxu1 %v8202_v52  ;;  %v8212_v1 = vpack.c.bf16 %v6933_v22, %v6932_v61  ;;  %v8252_v52 = vpack.c.bf16 %v6969_v51, %v6968_v49  ;;  %v6972_v61 = vld [vmem:[%s12910_s4 + $0x1f0] sm:$0xff]  ;;  %v6973_v22 = vld [vmem:[%s12910_s4 + $0x1f8] sm:$0xff] }
 0x39a   :  { %8205 = vmatprep.subr.bf16.mxu1 %v8204_v3  ;;  %v6952_v3 = vld [vmem:[%s12910_s4 + $0x150] sm:$0xff] }
 0x39b   :  { %8251 = vmatpush3.bf16.msra.mxu0 %v8250_v36  ;;  %v8254_v58 = vpack.c.bf16 %v6953_v20, %v6952_v3 }
 0x39c   :  { %8253 = vmatprep.subr.bf16.mxu0 %v8252_v52 }
 0x39d   :  { %8207 = vmatpush3.bf16.msra.mxu1 %v8206_v59  ;;  %v8256_v59 = vpack.c.bf16 %v6971_v55, %v6970_v54 }
 0x39e   :  { %8209 = vmatprep.subr.bf16.mxu1 %v8208_v37  ;;  %v6954_v37 = vld [vmem:[%s12910_s4 + $0x160] sm:$0xff] }
 0x39f   :  { %8255 = vmatpush3.bf16.msra.mxu0 %v8254_v58  ;;  %v8258_v50 = vpack.c.bf16 %v6955_v62, %v6954_v37 }
 0x3a0   :  { %8257 = vmatprep.subr.bf16.mxu0 %v8256_v59 }
 0x3a1   :  { %8211 = vmatpush3.bf16.msra.mxu1 %v8210_v0  ;;  %v8260_v0 = vpack.c.bf16 %v6973_v22, %v6972_v61 }
 0x3a2   :  { %8213 = vmatprep.subr.bf16.mxu1 %v8212_v1  ;;  %v6956_v1 = vld [vmem:[%s12910_s4 + $0x170] sm:$0xff] }
 0x3a3   :  { %8259 = vmatpush3.bf16.msra.mxu0 %v8258_v50  ;;  %v8262_v2 = vpack.c.bf16 %v6957_v53, %v6956_v1 }
 0x3a4   :  { %8261 = vmatprep.subr.bf16.mxu0 %v8260_v0 }
 0x3a5   :  { %8215 = vmatpush3.bf16.msra.mxu1 %v8214_v7  ;;  %v940_v7 = vsub.s32 1, %v9820_v5 }
 0x3a6   :  { %8217 = vmatprep.subr.bf16.mxu1 %v8216_v9  ;;  %v937_v9 = vrot.slane %v932_v6, %v936_v4 }
 0x3a7   :  { %8263 = vmatpush3.bf16.msra.mxu0 %v8262_v2  ;;  %v941_v12 = vrot.slane %v932_v6, %v940_v7 }
 0x3a9   :  { %8219 = vmatpush3.bf16.msra.mxu1 %v8218_v17 }
 0x3aa   :  { %8221 = vmatprep.subr.bf16.mxu1 %v8220_v56 }
 0x3ad   :  { %8223 = vmatpush3.bf16.msra.mxu1 %v8222_v25 }
 0x3ae   :  { %8225 = vmatprep.subr.bf16.mxu1 %v8224_v63 }
 0x3b1   :  { %8227 = vmatpush3.bf16.msra.mxu1 %v8226_v27  ;;  %v948_v27 = vsub.s32 3, %v9820_v5  ;;  %v8122_v5 = vld [vmem:[%s12912_s6] ss:$0 sm:$0xff] }
 0x3b2   :  { %8229 = vmatprep.subr.bf16.mxu1 %v8228_v35 }
 0x3b3   :  { %v949_v29 = vrot.slane %v932_v6, %v948_v27 }
 0x3b5   :  { %8231 = vmatpush3.bf16.msra.mxu1 %v8230_v41 }
 0x455   :  { %v6243_v60 = vpop.f32.mrb[0].mxu0 }
 0x456   :  { %v8264_v13 = vadd.f32 %v6243_v60, %v937_v9  ;;  %v6245_v14 = vpop.f32.mrb[1].mxu0 }
 0x457   :  { %v8266_v17 = vadd.f32 %v6245_v14, %v941_v12  ;;  %v6247_v56 = vpop.f32.mrb[2].mxu0 }
 0x458   :  { %v8265_v23 = vadd.f32 %v8264_v13, %v10535_v8  ;;  %v6248_v24 = vpop.f32.mrb[3].mxu0 }
 0x459   :  { %v8267_v25 = vadd.f32 %v8266_v17, %v10540_v10 }
 0x45a   :  { %v6906_v15 = vmax.f32 %v8265_v23, 0.0 }
 0x45b   :  { %v6907_v11 = vmax.f32 %v8267_v25, 0.0 }
 0x45d   :  { %7118 = vmatprep.mubr.f32.mxu1 %v6907_v11  ;;  %v7050_v63 = vpop.f32.mrb[4].mxu0 }
 0x45e   :  { %7119 = vmatmul.mubr.f32.vlgmr.msra.gmra.mrb[8].mxu1 %v6906_v15  ;;  %v8199_v26 = vpop.f32.mrb[5].mxu0 }
 0x46b   :  { %v6899_v30 = vpop.f32.mrb[4].mxu1 }
 0x46c   :  { %v8268_v31 = vadd.f32 %v6899_v30, %v945_v28  ;;  %v6901_v33 = vpop.f32.mrb[5].mxu1 }
 0x46d   :  { %v8269_v21 = vadd.f32 %v6901_v33, %v949_v29  ;;  %v6903_v8 = vpop.f32.mrb[6].mxu1 }
 0x46e   :  { %v6904_v34 = vpop.f32.mrb[7].mxu1  ;;  %v6908_v10 = vmax.f32 %v8268_v31, 0.0 }
 0x46f   :  { %v6909_v19 = vmax.f32 %v8269_v21, 0.0 }
 0x471   :  { %7188 = vmatprep.mubr.f32.mxu0 %v6909_v19 }
 0x472   :  { %7189 = vmatmul.mubr.f32.vlgmr.msra.gmra.mrb[6].mxu0 %v6908_v10 }
 0x531   :  { %v8157_v35 = vpop.f32.mrb[8].mxu1 }
 0x532   :  { %v8158_v38 = vpop.f32.mrb[9].mxu1 }
 0x533   :  { %v8159_v39 = vadd.f32 %v8158_v38, %v8157_v35 }
 0x535   :  { %v7121_v40 = vadd.f32 %v8159_v39, %v7050_v63 }
 0x545   :  { %v8192_v41 = vpop.f32.mrb[6].mxu0 }
 0x546   :  { %v8193_v32 = vpop.f32.mrb[7].mxu0 }
 0x547   :  { %v8194_v42 = vadd.f32 %v8193_v32, %v8192_v41 }
 0x549   :  { %v7191_v43 = vadd.f32 %v8194_v42, %v7121_v40 }
 0x54b   :  { %v7201_v16 = vadd.f32 %v8122_v5, %v7191_v43 }
 0x54d   :  { %7203 = vst.msk [vmem:[#allocation2] sm:$0x3] %vm7202_vm4, %v7201_v16 }
 0x54e   :  { %9752 = shalt.err (!%p9749_p4)
}
 0x54f   :  { %s9753_s10 = scalar_lea.hbm %s12913_s7, 32 }
 0x550   :  { %p9754_p5 = scmp.ne.s32.totalorder %s12913_s7, %s9753_s10  ;;  %p9757_p6 = scmp.lt.u32.totalorder %s9753_s10, %s12913_s7 }
 0x552   :  { %p9759_p7 = pnand %p9757_p6, %p9754_p5 }
 0x554   :  { %9762 = shalt.err (!%p9759_p7)
}
 0x555   :  { %7213 = dma.vmem_to_hbm [thread:$0]  %s7211_s8, 32, %s12913_s7, [#allocation3]  }
 0x556   :  { %9763 = dma.done.wait [#allocation3], 32  }
 0x557   :  { %9764 = vsyncadd [#allocation3], 4294967264 }
 0x558   :  { %7217 = vsyncpa [#allocation3], 1 }

</bundles_post_ra>
